<compile_context>
chip_gen: v5e
topology: v5e:2x2
jax: 0.10.0
libtpu: 0.0.40
codegen_flags: <defaults>
</compile_context>

<pallas_src>
import jax
import jax.numpy as jnp
import numpy as np
from jax.experimental import pallas as pl


def make_gnn_decoder_kernel(n_iters, n_node_features):
    """Build a kernel closure with static n_iters / feature size."""
    F = n_node_features

    def kernel(node_inputs_ref, src_oh_ref, dst_oh_ref, dst_ohT_ref,
               w1s_ref, w1d_ref, b1_ref, w2_ref, b2_ref, w3_ref, b3_ref,
               w4_ref, b4_ref,
               wia_ref, wix_ref, wh_ref, bi_ref, bh_ref,
               wf_ref, bf_ref,
               out_ref):
        dot = lambda a, b: jnp.dot(a, b, preferred_element_type=jnp.float32)
        bf16 = jnp.bfloat16

        n_nodes = node_inputs_ref.shape[0]
        h = jnp.zeros((n_nodes, F), jnp.float32)   # hidden state, carried in regs

        # Fully unrolled: n_iters is a small static constant.
        for it in range(n_iters):
            h_bf = h.astype(bf16)

            # --- message MLP input, reassociated project-then-gather:
            #     cat(h[src], h[dst]) @ W1  ==  src_oh@(h@w1s) + dst_oh@(h@w1d)
            hp_s = dot(h_bf, w1s_ref[...]).astype(bf16)            # (N, H)
            hp_d = dot(h_bf, w1d_ref[...]).astype(bf16)            # (N, H)
            x = jnp.maximum(
                dot(src_oh_ref[...], hp_s) + dot(dst_oh_ref[...], hp_d)
                + b1_ref[...], 0.0)                                # (E, H)
            x = jnp.maximum(dot(x.astype(bf16), w2_ref[...]) + b2_ref[...], 0.0)
            x = jnp.maximum(dot(x.astype(bf16), w3_ref[...]) + b3_ref[...], 0.0)
            messages = dot(x.astype(bf16), w4_ref[...]) + b4_ref[...]  # (E, Ef)

            # --- scatter-add messages to destination nodes (index_add_)
            agg = dot(dst_ohT_ref[...], messages.astype(bf16))     # (N, Ef)

            # --- fused GRU gates (PyTorch semantics), gate order r | z | n
            gi = (dot(agg.astype(bf16), wia_ref[...])
                  + dot(node_inputs_ref[...], wix_ref[...])
                  + bi_ref[...])                                   # (N, 3F)
            gh = dot(h_bf, wh_ref[...]) + bh_ref[...]              # (N, 3F)

            r = jax.nn.sigmoid(gi[:, :F] + gh[:, :F])
            z = jax.nn.sigmoid(gi[:, F:2 * F] + gh[:, F:2 * F])
            n = jnp.tanh(gi[:, 2 * F:] + r * gh[:, 2 * F:])
            h = (1.0 - z) * n + z * h                              # (N, F)

            # --- per-iteration readout (static index store)
            out_ref[it] = (dot(h.astype(bf16), wf_ref[...])
                           + bf_ref[...]).astype(out_ref.dtype)

    return kernel


def gnn_decoder_forward(node_inputs, src_ids, dst_ids, params, n_iters):
    n_nodes = node_inputs.shape[0]
    F = params["wh"].shape[0]
    O = params["wf"].shape[1]
    bf16 = jnp.bfloat16

    # Glue: one-hot gather/scatter matrices (0/1 -> exact in bf16).
    src_oh = jax.nn.one_hot(src_ids, n_nodes, dtype=bf16)          # (E, N)
    dst_oh = jax.nn.one_hot(dst_ids, n_nodes, dtype=bf16)          # (E, N)
    dst_ohT = dst_oh.T                                             # (N, E)

    cw = lambda name: params[name].astype(bf16)                    # bf16 weights
    args = [
        node_inputs.astype(bf16), src_oh, dst_oh, dst_ohT,
        cw("w1s"), cw("w1d"), params["b1"],
        cw("w2"), params["b2"], cw("w3"), params["b3"],
        cw("w4"), params["b4"],
        cw("wia"), cw("wix"), cw("wh"), params["bi"], params["bh"],
        cw("wf"), params["bf"],
    ]

    kernel = make_gnn_decoder_kernel(n_iters, F)
    # No grid: every operand is small, whole-array resident in VMEM; the whole
    # (n_iters, n_nodes, O) output is one block written inside the kernel.
    return pl.pallas_call(
        kernel,
        out_shape=jax.ShapeDtypeStruct((n_iters, n_nodes, O), jnp.float32),
    )(*args)


def init_params(key, F, I, Ef, O, H):
    """Deterministic synthetic parameters matching the PyTorch module's shapes."""
    ks = jax.random.split(key, 14)
    s = 0.1
    w = lambda k, shape: (s * jax.random.normal(k, shape)).astype(jnp.float32)

    w1 = w(ks[0], (2 * F, H)); b1 = w(ks[1], (1, H))      # msg_net layer 1
    w2 = w(ks[2], (H, H));     b2 = w(ks[3], (1, H))      # msg_net layer 2
    w3 = w(ks[4], (H, H));     b3 = w(ks[5], (1, H))      # msg_net layer 3
    w4 = w(ks[6], (H, Ef));    b4 = w(ks[7], (1, Ef))     # msg_net layer 4

    gin = Ef + I                                          # GRU input size
    wi = w(ks[8], (gin, 3 * F))                           # weight_ih.T  (r|z|n)
    wh = w(ks[9], (F, 3 * F))                             # weight_hh.T  (r|z|n)
    bi = w(ks[10], (1, 3 * F))
    bh = w(ks[11], (1, 3 * F))

    wf = w(ks[12], (F, O)); bf = w(ks[13], (1, O))        # final_digits

    return dict(
        w1s=w1[:F], w1d=w1[F:], b1=b1, w2=w2, b2=b2, w3=w3, b3=b3, w4=w4, b4=b4,
        wia=wi[:Ef], wix=wi[Ef:], wh=wh, bi=bi, bh=bh,    # packed GRU (r|z|n)
        wf=wf, bf=bf,
    )


def reference_forward(node_inputs, src_ids, dst_ids, params, n_iters):
    """Plain-JAX f32 re-implementation of the PyTorch forward (correctness check)."""
    N = node_inputs.shape[0]
    F = params["wh"].shape[0]
    Ef = params["wia"].shape[0]
    h = jnp.zeros((N, F), jnp.float32)
    w1 = jnp.concatenate([params["w1s"], params["w1d"]], axis=0)
    wi = jnp.concatenate([params["wia"], params["wix"]], axis=0)
    outs = []
    for _ in range(n_iters):
        msg_in = jnp.concatenate([h[src_ids], h[dst_ids]], axis=1)
        x = jax.nn.relu(msg_in @ w1 + params["b1"])
        x = jax.nn.relu(x @ params["w2"] + params["b2"])
        x = jax.nn.relu(x @ params["w3"] + params["b3"])
        messages = x @ params["w4"] + params["b4"]
        agg = jnp.zeros((N, Ef), jnp.float32).at[dst_ids].add(messages)
        gin = jnp.concatenate([agg, node_inputs], axis=1)
        gi = gin @ wi + params["bi"]
        gh = h @ params["wh"] + params["bh"]
        r = jax.nn.sigmoid(gi[:, :F] + gh[:, :F])
        z = jax.nn.sigmoid(gi[:, F:2 * F] + gh[:, F:2 * F])
        n = jnp.tanh(gi[:, 2 * F:] + r * gh[:, 2 * F:])
        h = (1.0 - z) * n + z * h
        outs.append(h @ params["wf"] + params["bf"])
    return jnp.stack(outs, axis=0)


if __name__ == "__main__":
    # Module defaults: n_iters=7, F=10, I=9, Ef=11, O=9, H=96.
    n_iters = 7
    F, I, Ef, O, H = 10, 9, 11, 9, 96
    n_nodes, n_edges = 24, 64

    key = jax.random.PRNGKey(0)
    k_in, k_src, k_dst, k_par = jax.random.split(key, 4)

    node_inputs = jax.random.normal(k_in, (n_nodes, I), dtype=jnp.float32)
    src_ids = jax.random.randint(k_src, (n_edges,), 0, n_nodes)
    dst_ids = jax.random.randint(k_dst, (n_edges,), 0, n_nodes)
    params = init_params(k_par, F, I, Ef, O, H)

    out = jax.block_until_ready(
        gnn_decoder_forward(node_inputs, src_ids, dst_ids, params, n_iters))
    ref = jax.block_until_ready(
        reference_forward(node_inputs, src_ids, dst_ids, params, n_iters))

    assert out.shape == (n_iters, n_nodes, O)
    assert bool(jnp.all(jnp.isfinite(out)))
    np.testing.assert_allclose(np.asarray(out), np.asarray(ref), rtol=5e-2, atol=5e-2)

    print("KERNEL_OK")
</pallas_src>

<mosaic_0001>
module attributes {stable_mosaic.version = 11 : i64} {
  func.func @kernel(%arg0: memref<24x9xbf16, #tpu.memory_space<vmem>>, %arg1: memref<64x24xbf16, #tpu.memory_space<vmem>>, %arg2: memref<64x24xbf16, #tpu.memory_space<vmem>>, %arg3: memref<24x64xbf16, #tpu.memory_space<vmem>>, %arg4: memref<10x96xbf16, #tpu.memory_space<vmem>>, %arg5: memref<10x96xbf16, #tpu.memory_space<vmem>>, %arg6: memref<1x96xf32, #tpu.memory_space<vmem>>, %arg7: memref<96x96xbf16, #tpu.memory_space<vmem>>, %arg8: memref<1x96xf32, #tpu.memory_space<vmem>>, %arg9: memref<96x96xbf16, #tpu.memory_space<vmem>>, %arg10: memref<1x96xf32, #tpu.memory_space<vmem>>, %arg11: memref<96x11xbf16, #tpu.memory_space<vmem>>, %arg12: memref<1x11xf32, #tpu.memory_space<vmem>>, %arg13: memref<11x30xbf16, #tpu.memory_space<vmem>>, %arg14: memref<9x30xbf16, #tpu.memory_space<vmem>>, %arg15: memref<10x30xbf16, #tpu.memory_space<vmem>>, %arg16: memref<1x30xf32, #tpu.memory_space<vmem>>, %arg17: memref<1x30xf32, #tpu.memory_space<vmem>>, %arg18: memref<10x9xbf16, #tpu.memory_space<vmem>>, %arg19: memref<1x9xf32, #tpu.memory_space<vmem>>, %arg20: memref<7x24x9xf32, #tpu.memory_space<vmem>>) attributes {dimension_semantics = [], scalar_prefetch = 0 : i64, scratch_operands = 0 : i64, tpu.core_type = #tpu.core_type<tc>} {
    %cst = arith.constant 0.000000e+00 : f32
    %0 = vector.broadcast %cst : f32 to vector<24x10xf32>
    %1 = arith.truncf %0 : vector<24x10xf32> to vector<24x10xbf16>
    %c0 = arith.constant 0 : index
    %c0_0 = arith.constant 0 : index
    %2 = vector.load %arg4[%c0, %c0_0] : memref<10x96xbf16, #tpu.memory_space<vmem>>, vector<10x96xbf16>
    %cst_1 = arith.constant dense<0.000000e+00> : vector<24x96xf32>
    %3 = tpu.matmul %1, %2, %cst_1 {dimension_numbers = #tpu.dot_dimension_numbers<[1], [0], [0], [1], [0, 0, 1, 1], [], []>} : vector<24x10xbf16>, vector<10x96xbf16>, vector<24x96xf32> -> vector<24x96xf32>
    %4 = arith.truncf %3 : vector<24x96xf32> to vector<24x96xbf16>
    %c0_2 = arith.constant 0 : index
    %c0_3 = arith.constant 0 : index
    %5 = vector.load %arg5[%c0_2, %c0_3] : memref<10x96xbf16, #tpu.memory_space<vmem>>, vector<10x96xbf16>
    %cst_4 = arith.constant dense<0.000000e+00> : vector<24x96xf32>
    %6 = tpu.matmul %1, %5, %cst_4 {dimension_numbers = #tpu.dot_dimension_numbers<[1], [0], [0], [1], [0, 0, 1, 1], [], []>} : vector<24x10xbf16>, vector<10x96xbf16>, vector<24x96xf32> -> vector<24x96xf32>
    %7 = arith.truncf %6 : vector<24x96xf32> to vector<24x96xbf16>
    %c0_5 = arith.constant 0 : index
    %c0_6 = arith.constant 0 : index
    %8 = vector.load %arg1[%c0_5, %c0_6] : memref<64x24xbf16, #tpu.memory_space<vmem>>, vector<64x24xbf16>
    %cst_7 = arith.constant dense<0.000000e+00> : vector<64x96xf32>
    %9 = tpu.matmul %8, %4, %cst_7 {dimension_numbers = #tpu.dot_dimension_numbers<[1], [0], [0], [1], [0, 0, 1, 1], [], []>} : vector<64x24xbf16>, vector<24x96xbf16>, vector<64x96xf32> -> vector<64x96xf32>
    %c0_8 = arith.constant 0 : index
    %c0_9 = arith.constant 0 : index
    %10 = vector.load %arg2[%c0_8, %c0_9] : memref<64x24xbf16, #tpu.memory_space<vmem>>, vector<64x24xbf16>
    %cst_10 = arith.constant dense<0.000000e+00> : vector<64x96xf32>
    %11 = tpu.matmul %10, %7, %cst_10 {dimension_numbers = #tpu.dot_dimension_numbers<[1], [0], [0], [1], [0, 0, 1, 1], [], []>} : vector<64x24xbf16>, vector<24x96xbf16>, vector<64x96xf32> -> vector<64x96xf32>
    %12 = arith.addf %9, %11 : vector<64x96xf32>
    %c0_11 = arith.constant 0 : index
    %c0_12 = arith.constant 0 : index
    %13 = vector.load %arg6[%c0_11, %c0_12] : memref<1x96xf32, #tpu.memory_space<vmem>>, vector<1x96xf32>
    %14 = vector.broadcast %13 : vector<1x96xf32> to vector<64x96xf32>
    %15 = arith.addf %12, %14 : vector<64x96xf32>
    %cst_13 = arith.constant 0.000000e+00 : f32
    %16 = vector.broadcast %cst_13 : f32 to vector<64x96xf32>
    %17 = arith.maximumf %15, %16 : vector<64x96xf32>
    %18 = arith.truncf %17 : vector<64x96xf32> to vector<64x96xbf16>
    %c0_14 = arith.constant 0 : index
    %c0_15 = arith.constant 0 : index
    %19 = vector.load %arg7[%c0_14, %c0_15] : memref<96x96xbf16, #tpu.memory_space<vmem>>, vector<96x96xbf16>
    %cst_16 = arith.constant dense<0.000000e+00> : vector<64x96xf32>
    %20 = tpu.matmul %18, %19, %cst_16 {dimension_numbers = #tpu.dot_dimension_numbers<[1], [0], [0], [1], [0, 0, 1, 1], [], []>} : vector<64x96xbf16>, vector<96x96xbf16>, vector<64x96xf32> -> vector<64x96xf32>
    %c0_17 = arith.constant 0 : index
    %c0_18 = arith.constant 0 : index
    %21 = vector.load %arg8[%c0_17, %c0_18] : memref<1x96xf32, #tpu.memory_space<vmem>>, vector<1x96xf32>
    %22 = vector.broadcast %21 : vector<1x96xf32> to vector<64x96xf32>
    %23 = arith.addf %20, %22 : vector<64x96xf32>
    %cst_19 = arith.constant 0.000000e+00 : f32
    %24 = vector.broadcast %cst_19 : f32 to vector<64x96xf32>
    %25 = arith.maximumf %23, %24 : vector<64x96xf32>
    %26 = arith.truncf %25 : vector<64x96xf32> to vector<64x96xbf16>
    %c0_20 = arith.constant 0 : index
    %c0_21 = arith.constant 0 : index
    %27 = vector.load %arg9[%c0_20, %c0_21] : memref<96x96xbf16, #tpu.memory_space<vmem>>, vector<96x96xbf16>
    %cst_22 = arith.constant dense<0.000000e+00> : vector<64x96xf32>
    %28 = tpu.matmul %26, %27, %cst_22 {dimension_numbers = #tpu.dot_dimension_numbers<[1], [0], [0], [1], [0, 0, 1, 1], [], []>} : vector<64x96xbf16>, vector<96x96xbf16>, vector<64x96xf32> -> vector<64x96xf32>
    %c0_23 = arith.constant 0 : index
    %c0_24 = arith.constant 0 : index
    %29 = vector.load %arg10[%c0_23, %c0_24] : memref<1x96xf32, #tpu.memory_space<vmem>>, vector<1x96xf32>
    %30 = vector.broadcast %29 : vector<1x96xf32> to vector<64x96xf32>
    %31 = arith.addf %28, %30 : vector<64x96xf32>
    %cst_25 = arith.constant 0.000000e+00 : f32
    %32 = vector.broadcast %cst_25 : f32 to vector<64x96xf32>
    %33 = arith.maximumf %31, %32 : vector<64x96xf32>
    %34 = arith.truncf %33 : vector<64x96xf32> to vector<64x96xbf16>
    %c0_26 = arith.constant 0 : index
    %c0_27 = arith.constant 0 : index
    %35 = vector.load %arg11[%c0_26, %c0_27] : memref<96x11xbf16, #tpu.memory_space<vmem>>, vector<96x11xbf16>
    %cst_28 = arith.constant dense<0.000000e+00> : vector<64x11xf32>
    %36 = tpu.matmul %34, %35, %cst_28 {dimension_numbers = #tpu.dot_dimension_numbers<[1], [0], [0], [1], [0, 0, 1, 1], [], []>} : vector<64x96xbf16>, vector<96x11xbf16>, vector<64x11xf32> -> vector<64x11xf32>
    %c0_29 = arith.constant 0 : index
    %c0_30 = arith.constant 0 : index
    %37 = vector.load %arg12[%c0_29, %c0_30] : memref<1x11xf32, #tpu.memory_space<vmem>>, vector<1x11xf32>
    %38 = vector.broadcast %37 : vector<1x11xf32> to vector<64x11xf32>
    %39 = arith.addf %36, %38 : vector<64x11xf32>
    %c0_31 = arith.constant 0 : index
    %c0_32 = arith.constant 0 : index
    %40 = vector.load %arg3[%c0_31, %c0_32] : memref<24x64xbf16, #tpu.memory_space<vmem>>, vector<24x64xbf16>
    %41 = arith.truncf %39 : vector<64x11xf32> to vector<64x11xbf16>
    %cst_33 = arith.constant dense<0.000000e+00> : vector<24x11xf32>
    %42 = tpu.matmul %40, %41, %cst_33 {dimension_numbers = #tpu.dot_dimension_numbers<[1], [0], [0], [1], [0, 0, 1, 1], [], []>} : vector<24x64xbf16>, vector<64x11xbf16>, vector<24x11xf32> -> vector<24x11xf32>
    %43 = arith.truncf %42 : vector<24x11xf32> to vector<24x11xbf16>
    %c0_34 = arith.constant 0 : index
    %c0_35 = arith.constant 0 : index
    %44 = vector.load %arg13[%c0_34, %c0_35] : memref<11x30xbf16, #tpu.memory_space<vmem>>, vector<11x30xbf16>
    %cst_36 = arith.constant dense<0.000000e+00> : vector<24x30xf32>
    %45 = tpu.matmul %43, %44, %cst_36 {dimension_numbers = #tpu.dot_dimension_numbers<[1], [0], [0], [1], [0, 0, 1, 1], [], []>} : vector<24x11xbf16>, vector<11x30xbf16>, vector<24x30xf32> -> vector<24x30xf32>
    %c0_37 = arith.constant 0 : index
    %c0_38 = arith.constant 0 : index
    %46 = vector.load %arg0[%c0_37, %c0_38] : memref<24x9xbf16, #tpu.memory_space<vmem>>, vector<24x9xbf16>
    %c0_39 = arith.constant 0 : index
    %c0_40 = arith.constant 0 : index
    %47 = vector.load %arg14[%c0_39, %c0_40] : memref<9x30xbf16, #tpu.memory_space<vmem>>, vector<9x30xbf16>
    %cst_41 = arith.constant dense<0.000000e+00> : vector<24x30xf32>
    %48 = tpu.matmul %46, %47, %cst_41 {dimension_numbers = #tpu.dot_dimension_numbers<[1], [0], [0], [1], [0, 0, 1, 1], [], []>} : vector<24x9xbf16>, vector<9x30xbf16>, vector<24x30xf32> -> vector<24x30xf32>
    %49 = arith.addf %45, %48 : vector<24x30xf32>
    %c0_42 = arith.constant 0 : index
    %c0_43 = arith.constant 0 : index
    %50 = vector.load %arg16[%c0_42, %c0_43] : memref<1x30xf32, #tpu.memory_space<vmem>>, vector<1x30xf32>
    %51 = vector.broadcast %50 : vector<1x30xf32> to vector<24x30xf32>
    %52 = arith.addf %49, %51 : vector<24x30xf32>
    %c0_44 = arith.constant 0 : index
    %c0_45 = arith.constant 0 : index
    %53 = vector.load %arg15[%c0_44, %c0_45] : memref<10x30xbf16, #tpu.memory_space<vmem>>, vector<10x30xbf16>
    %cst_46 = arith.constant dense<0.000000e+00> : vector<24x30xf32>
    %54 = tpu.matmul %1, %53, %cst_46 {dimension_numbers = #tpu.dot_dimension_numbers<[1], [0], [0], [1], [0, 0, 1, 1], [], []>} : vector<24x10xbf16>, vector<10x30xbf16>, vector<24x30xf32> -> vector<24x30xf32>
    %c0_47 = arith.constant 0 : index
    %c0_48 = arith.constant 0 : index
    %55 = vector.load %arg17[%c0_47, %c0_48] : memref<1x30xf32, #tpu.memory_space<vmem>>, vector<1x30xf32>
    %56 = vector.broadcast %55 : vector<1x30xf32> to vector<24x30xf32>
    %57 = arith.addf %54, %56 : vector<24x30xf32>
    %58 = vector.extract_strided_slice %52 {offsets = [0, 0], sizes = [24, 10], strides = [1, 1]} : vector<24x30xf32> to vector<24x10xf32>
    %59 = vector.extract_strided_slice %57 {offsets = [0, 0], sizes = [24, 10], strides = [1, 1]} : vector<24x30xf32> to vector<24x10xf32>
    %60 = arith.addf %58, %59 : vector<24x10xf32>
    %61 = arith.negf %60 : vector<24x10xf32>
    %62 = math.exp %61 : vector<24x10xf32>
    %cst_49 = arith.constant 1.000000e+00 : f32
    %63 = vector.broadcast %cst_49 : f32 to vector<24x10xf32>
    %64 = arith.addf %63, %62 : vector<24x10xf32>
    %65 = arith.divf %63, %64 : vector<24x10xf32>
    %66 = vector.extract_strided_slice %52 {offsets = [0, 10], sizes = [24, 10], strides = [1, 1]} : vector<24x30xf32> to vector<24x10xf32>
    %67 = vector.extract_strided_slice %57 {offsets = [0, 10], sizes = [24, 10], strides = [1, 1]} : vector<24x30xf32> to vector<24x10xf32>
    %68 = arith.addf %66, %67 : vector<24x10xf32>
    %69 = arith.negf %68 : vector<24x10xf32>
    %70 = math.exp %69 : vector<24x10xf32>
    %cst_50 = arith.constant 1.000000e+00 : f32
    %71 = vector.broadcast %cst_50 : f32 to vector<24x10xf32>
    %72 = arith.addf %71, %70 : vector<24x10xf32>
    %73 = arith.divf %71, %72 : vector<24x10xf32>
    %74 = vector.extract_strided_slice %52 {offsets = [0, 20], sizes = [24, 10], strides = [1, 1]} : vector<24x30xf32> to vector<24x10xf32>
    %75 = vector.extract_strided_slice %57 {offsets = [0, 20], sizes = [24, 10], strides = [1, 1]} : vector<24x30xf32> to vector<24x10xf32>
    %76 = arith.mulf %65, %75 : vector<24x10xf32>
    %77 = arith.addf %74, %76 : vector<24x10xf32>
    %78 = math.tanh %77 : vector<24x10xf32>
    %cst_51 = arith.constant 1.000000e+00 : f32
    %79 = vector.broadcast %cst_51 : f32 to vector<24x10xf32>
    %80 = arith.subf %79, %73 : vector<24x10xf32>
    %81 = arith.mulf %80, %78 : vector<24x10xf32>
    %82 = arith.mulf %73, %0 : vector<24x10xf32>
    %83 = arith.addf %81, %82 : vector<24x10xf32>
    %84 = arith.truncf %83 : vector<24x10xf32> to vector<24x10xbf16>
    %c0_52 = arith.constant 0 : index
    %c0_53 = arith.constant 0 : index
    %85 = vector.load %arg18[%c0_52, %c0_53] : memref<10x9xbf16, #tpu.memory_space<vmem>>, vector<10x9xbf16>
    %cst_54 = arith.constant dense<0.000000e+00> : vector<24x9xf32>
    %86 = tpu.matmul %84, %85, %cst_54 {dimension_numbers = #tpu.dot_dimension_numbers<[1], [0], [0], [1], [0, 0, 1, 1], [], []>} : vector<24x10xbf16>, vector<10x9xbf16>, vector<24x9xf32> -> vector<24x9xf32>
    %c0_55 = arith.constant 0 : index
    %c0_56 = arith.constant 0 : index
    %87 = vector.load %arg19[%c0_55, %c0_56] : memref<1x9xf32, #tpu.memory_space<vmem>>, vector<1x9xf32>
    %88 = vector.broadcast %87 : vector<1x9xf32> to vector<24x9xf32>
    %89 = arith.addf %86, %88 : vector<24x9xf32>
    %c0_57 = arith.constant 0 : index
    %c0_58 = arith.constant 0 : index
    %c0_59 = arith.constant 0 : index
    %90 = vector.load %arg20[%c0_57, %c0_58, %c0_59] : memref<7x24x9xf32, #tpu.memory_space<vmem>>, vector<1x24x9xf32>
    %91 = vector.shape_cast %90 : vector<1x24x9xf32> to vector<24x9xf32>
    %92 = vector.shape_cast %89 : vector<24x9xf32> to vector<1x24x9xf32>
    tpu.vector_store %arg20[%c0_57, %c0_58, %c0_59], %92 {strides = array<i32>} : memref<7x24x9xf32, #tpu.memory_space<vmem>>, vector<1x24x9xf32>,
    %93 = arith.truncf %83 : vector<24x10xf32> to vector<24x10xbf16>
    %c0_60 = arith.constant 0 : index
    %c0_61 = arith.constant 0 : index
    %94 = vector.load %arg4[%c0_60, %c0_61] : memref<10x96xbf16, #tpu.memory_space<vmem>>, vector<10x96xbf16>
    %cst_62 = arith.constant dense<0.000000e+00> : vector<24x96xf32>
    %95 = tpu.matmul %93, %94, %cst_62 {dimension_numbers = #tpu.dot_dimension_numbers<[1], [0], [0], [1], [0, 0, 1, 1], [], []>} : vector<24x10xbf16>, vector<10x96xbf16>, vector<24x96xf32> -> vector<24x96xf32>
    %96 = arith.truncf %95 : vector<24x96xf32> to vector<24x96xbf16>
    %c0_63 = arith.constant 0 : index
    %c0_64 = arith.constant 0 : index
    %97 = vector.load %arg5[%c0_63, %c0_64] : memref<10x96xbf16, #tpu.memory_space<vmem>>, vector<10x96xbf16>
    %cst_65 = arith.constant dense<0.000000e+00> : vector<24x96xf32>
    %98 = tpu.matmul %93, %97, %cst_65 {dimension_numbers = #tpu.dot_dimension_numbers<[1], [0], [0], [1], [0, 0, 1, 1], [], []>} : vector<24x10xbf16>, vector<10x96xbf16>, vector<24x96xf32> -> vector<24x96xf32>
    %99 = arith.truncf %98 : vector<24x96xf32> to vector<24x96xbf16>
    %c0_66 = arith.constant 0 : index
    %c0_67 = arith.constant 0 : index
    %100 = vector.load %arg1[%c0_66, %c0_67] : memref<64x24xbf16, #tpu.memory_space<vmem>>, vector<64x24xbf16>
    %cst_68 = arith.constant dense<0.000000e+00> : vector<64x96xf32>
    %101 = tpu.matmul %100, %96, %cst_68 {dimension_numbers = #tpu.dot_dimension_numbers<[1], [0], [0], [1], [0, 0, 1, 1], [], []>} : vector<64x24xbf16>, vector<24x96xbf16>, vector<64x96xf32> -> vector<64x96xf32>
    %c0_69 = arith.constant 0 : index
    %c0_70 = arith.constant 0 : index
    %102 = vector.load %arg2[%c0_69, %c0_70] : memref<64x24xbf16, #tpu.memory_space<vmem>>, vector<64x24xbf16>
    %cst_71 = arith.constant dense<0.000000e+00> : vector<64x96xf32>
    %103 = tpu.matmul %102, %99, %cst_71 {dimension_numbers = #tpu.dot_dimension_numbers<[1], [0], [0], [1], [0, 0, 1, 1], [], []>} : vector<64x24xbf16>, vector<24x96xbf16>, vector<64x96xf32> -> vector<64x96xf32>
    %104 = arith.addf %101, %103 : vector<64x96xf32>
    %c0_72 = arith.constant 0 : index
    %c0_73 = arith.constant 0 : index
    %105 = vector.load %arg6[%c0_72, %c0_73] : memref<1x96xf32, #tpu.memory_space<vmem>>, vector<1x96xf32>
    %106 = vector.broadcast %105 : vector<1x96xf32> to vector<64x96xf32>
    %107 = arith.addf %104, %106 : vector<64x96xf32>
    %cst_74 = arith.constant 0.000000e+00 : f32
    %108 = vector.broadcast %cst_74 : f32 to vector<64x96xf32>
    %109 = arith.maximumf %107, %108 : vector<64x96xf32>
    %110 = arith.truncf %109 : vector<64x96xf32> to vector<64x96xbf16>
    %c0_75 = arith.constant 0 : index
    %c0_76 = arith.constant 0 : index
    %111 = vector.load %arg7[%c0_75, %c0_76] : memref<96x96xbf16, #tpu.memory_space<vmem>>, vector<96x96xbf16>
    %cst_77 = arith.constant dense<0.000000e+00> : vector<64x96xf32>
    %112 = tpu.matmul %110, %111, %cst_77 {dimension_numbers = #tpu.dot_dimension_numbers<[1], [0], [0], [1], [0, 0, 1, 1], [], []>} : vector<64x96xbf16>, vector<96x96xbf16>, vector<64x96xf32> -> vector<64x96xf32>
    %c0_78 = arith.constant 0 : index
    %c0_79 = arith.constant 0 : index
    %113 = vector.load %arg8[%c0_78, %c0_79] : memref<1x96xf32, #tpu.memory_space<vmem>>, vector<1x96xf32>
    %114 = vector.broadcast %113 : vector<1x96xf32> to vector<64x96xf32>
    %115 = arith.addf %112, %114 : vector<64x96xf32>
    %cst_80 = arith.constant 0.000000e+00 : f32
    %116 = vector.broadcast %cst_80 : f32 to vector<64x96xf32>
    %117 = arith.maximumf %115, %116 : vector<64x96xf32>
    %118 = arith.truncf %117 : vector<64x96xf32> to vector<64x96xbf16>
    %c0_81 = arith.constant 0 : index
    %c0_82 = arith.constant 0 : index
    %119 = vector.load %arg9[%c0_81, %c0_82] : memref<96x96xbf16, #tpu.memory_space<vmem>>, vector<96x96xbf16>
    %cst_83 = arith.constant dense<0.000000e+00> : vector<64x96xf32>
    %120 = tpu.matmul %118, %119, %cst_83 {dimension_numbers = #tpu.dot_dimension_numbers<[1], [0], [0], [1], [0, 0, 1, 1], [], []>} : vector<64x96xbf16>, vector<96x96xbf16>, vector<64x96xf32> -> vector<64x96xf32>
    %c0_84 = arith.constant 0 : index
    %c0_85 = arith.constant 0 : index
    %121 = vector.load %arg10[%c0_84, %c0_85] : memref<1x96xf32, #tpu.memory_space<vmem>>, vector<1x96xf32>
    %122 = vector.broadcast %121 : vector<1x96xf32> to vector<64x96xf32>
    %123 = arith.addf %120, %122 : vector<64x96xf32>
    %cst_86 = arith.constant 0.000000e+00 : f32
    %124 = vector.broadcast %cst_86 : f32 to vector<64x96xf32>
    %125 = arith.maximumf %123, %124 : vector<64x96xf32>
    %126 = arith.truncf %125 : vector<64x96xf32> to vector<64x96xbf16>
    %c0_87 = arith.constant 0 : index
    %c0_88 = arith.constant 0 : index
    %127 = vector.load %arg11[%c0_87, %c0_88] : memref<96x11xbf16, #tpu.memory_space<vmem>>, vector<96x11xbf16>
    %cst_89 = arith.constant dense<0.000000e+00> : vector<64x11xf32>
    %128 = tpu.matmul %126, %127, %cst_89 {dimension_numbers = #tpu.dot_dimension_numbers<[1], [0], [0], [1], [0, 0, 1, 1], [], []>} : vector<64x96xbf16>, vector<96x11xbf16>, vector<64x11xf32> -> vector<64x11xf32>
    %c0_90 = arith.constant 0 : index
    %c0_91 = arith.constant 0 : index
    %129 = vector.load %arg12[%c0_90, %c0_91] : memref<1x11xf32, #tpu.memory_space<vmem>>, vector<1x11xf32>
    %130 = vector.broadcast %129 : vector<1x11xf32> to vector<64x11xf32>
    %131 = arith.addf %128, %130 : vector<64x11xf32>
    %c0_92 = arith.constant 0 : index
    %c0_93 = arith.constant 0 : index
    %132 = vector.load %arg3[%c0_92, %c0_93] : memref<24x64xbf16, #tpu.memory_space<vmem>>, vector<24x64xbf16>
    %133 = arith.truncf %131 : vector<64x11xf32> to vector<64x11xbf16>
    %cst_94 = arith.constant dense<0.000000e+00> : vector<24x11xf32>
    %134 = tpu.matmul %132, %133, %cst_94 {dimension_numbers = #tpu.dot_dimension_numbers<[1], [0], [0], [1], [0, 0, 1, 1], [], []>} : vector<24x64xbf16>, vector<64x11xbf16>, vector<24x11xf32> -> vector<24x11xf32>
    %135 = arith.truncf %134 : vector<24x11xf32> to vector<24x11xbf16>
    %c0_95 = arith.constant 0 : index
    %c0_96 = arith.constant 0 : index
    %136 = vector.load %arg13[%c0_95, %c0_96] : memref<11x30xbf16, #tpu.memory_space<vmem>>, vector<11x30xbf16>
    %cst_97 = arith.constant dense<0.000000e+00> : vector<24x30xf32>
    %137 = tpu.matmul %135, %136, %cst_97 {dimension_numbers = #tpu.dot_dimension_numbers<[1], [0], [0], [1], [0, 0, 1, 1], [], []>} : vector<24x11xbf16>, vector<11x30xbf16>, vector<24x30xf32> -> vector<24x30xf32>
    %c0_98 = arith.constant 0 : index
    %c0_99 = arith.constant 0 : index
    %138 = vector.load %arg0[%c0_98, %c0_99] : memref<24x9xbf16, #tpu.memory_space<vmem>>, vector<24x9xbf16>
    %c0_100 = arith.constant 0 : index
    %c0_101 = arith.constant 0 : index
    %139 = vector.load %arg14[%c0_100, %c0_101] : memref<9x30xbf16, #tpu.memory_space<vmem>>, vector<9x30xbf16>
    %cst_102 = arith.constant dense<0.000000e+00> : vector<24x30xf32>
    %140 = tpu.matmul %138, %139, %cst_102 {dimension_numbers = #tpu.dot_dimension_numbers<[1], [0], [0], [1], [0, 0, 1, 1], [], []>} : vector<24x9xbf16>, vector<9x30xbf16>, vector<24x30xf32> -> vector<24x30xf32>
    %141 = arith.addf %137, %140 : vector<24x30xf32>
    %c0_103 = arith.constant 0 : index
    %c0_104 = arith.constant 0 : index
    %142 = vector.load %arg16[%c0_103, %c0_104] : memref<1x30xf32, #tpu.memory_space<vmem>>, vector<1x30xf32>
    %143 = vector.broadcast %142 : vector<1x30xf32> to vector<24x30xf32>
    %144 = arith.addf %141, %143 : vector<24x30xf32>
    %c0_105 = arith.constant 0 : index
    %c0_106 = arith.constant 0 : index
    %145 = vector.load %arg15[%c0_105, %c0_106] : memref<10x30xbf16, #tpu.memory_space<vmem>>, vector<10x30xbf16>
    %cst_107 = arith.constant dense<0.000000e+00> : vector<24x30xf32>
    %146 = tpu.matmul %93, %145, %cst_107 {dimension_numbers = #tpu.dot_dimension_numbers<[1], [0], [0], [1], [0, 0, 1, 1], [], []>} : vector<24x10xbf16>, vector<10x30xbf16>, vector<24x30xf32> -> vector<24x30xf32>
    %c0_108 = arith.constant 0 : index
    %c0_109 = arith.constant 0 : index
    %147 = vector.load %arg17[%c0_108, %c0_109] : memref<1x30xf32, #tpu.memory_space<vmem>>, vector<1x30xf32>
    %148 = vector.broadcast %147 : vector<1x30xf32> to vector<24x30xf32>
    %149 = arith.addf %146, %148 : vector<24x30xf32>
    %150 = vector.extract_strided_slice %144 {offsets = [0, 0], sizes = [24, 10], strides = [1, 1]} : vector<24x30xf32> to vector<24x10xf32>
    %151 = vector.extract_strided_slice %149 {offsets = [0, 0], sizes = [24, 10], strides = [1, 1]} : vector<24x30xf32> to vector<24x10xf32>
    %152 = arith.addf %150, %151 : vector<24x10xf32>
    %153 = arith.negf %152 : vector<24x10xf32>
    %154 = math.exp %153 : vector<24x10xf32>
    %cst_110 = arith.constant 1.000000e+00 : f32
    %155 = vector.broadcast %cst_110 : f32 to vector<24x10xf32>
    %156 = arith.addf %155, %154 : vector<24x10xf32>
    %157 = arith.divf %155, %156 : vector<24x10xf32>
    %158 = vector.extract_strided_slice %144 {offsets = [0, 10], sizes = [24, 10], strides = [1, 1]} : vector<24x30xf32> to vector<24x10xf32>
    %159 = vector.extract_strided_slice %149 {offsets = [0, 10], sizes = [24, 10], strides = [1, 1]} : vector<24x30xf32> to vector<24x10xf32>
    %160 = arith.addf %158, %159 : vector<24x10xf32>
    %161 = arith.negf %160 : vector<24x10xf32>
    %162 = math.exp %161 : vector<24x10xf32>
    %cst_111 = arith.constant 1.000000e+00 : f32
    %163 = vector.broadcast %cst_111 : f32 to vector<24x10xf32>
    %164 = arith.addf %163, %162 : vector<24x10xf32>
    %165 = arith.divf %163, %164 : vector<24x10xf32>
    %166 = vector.extract_strided_slice %144 {offsets = [0, 20], sizes = [24, 10], strides = [1, 1]} : vector<24x30xf32> to vector<24x10xf32>
    %167 = vector.extract_strided_slice %149 {offsets = [0, 20], sizes = [24, 10], strides = [1, 1]} : vector<24x30xf32> to vector<24x10xf32>
    %168 = arith.mulf %157, %167 : vector<24x10xf32>
    %169 = arith.addf %166, %168 : vector<24x10xf32>
    %170 = math.tanh %169 : vector<24x10xf32>
    %cst_112 = arith.constant 1.000000e+00 : f32
    %171 = vector.broadcast %cst_112 : f32 to vector<24x10xf32>
    %172 = arith.subf %171, %165 : vector<24x10xf32>
    %173 = arith.mulf %172, %170 : vector<24x10xf32>
    %174 = arith.mulf %165, %83 : vector<24x10xf32>
    %175 = arith.addf %173, %174 : vector<24x10xf32>
    %176 = arith.truncf %175 : vector<24x10xf32> to vector<24x10xbf16>
    %c0_113 = arith.constant 0 : index
    %c0_114 = arith.constant 0 : index
    %177 = vector.load %arg18[%c0_113, %c0_114] : memref<10x9xbf16, #tpu.memory_space<vmem>>, vector<10x9xbf16>
    %cst_115 = arith.constant dense<0.000000e+00> : vector<24x9xf32>
    %178 = tpu.matmul %176, %177, %cst_115 {dimension_numbers = #tpu.dot_dimension_numbers<[1], [0], [0], [1], [0, 0, 1, 1], [], []>} : vector<24x10xbf16>, vector<10x9xbf16>, vector<24x9xf32> -> vector<24x9xf32>
    %c0_116 = arith.constant 0 : index
    %c0_117 = arith.constant 0 : index
    %179 = vector.load %arg19[%c0_116, %c0_117] : memref<1x9xf32, #tpu.memory_space<vmem>>, vector<1x9xf32>
    %180 = vector.broadcast %179 : vector<1x9xf32> to vector<24x9xf32>
    %181 = arith.addf %178, %180 : vector<24x9xf32>
    %c1 = arith.constant 1 : index
    %c0_118 = arith.constant 0 : index
    %c0_119 = arith.constant 0 : index
    %182 = vector.load %arg20[%c1, %c0_118, %c0_119] : memref<7x24x9xf32, #tpu.memory_space<vmem>>, vector<1x24x9xf32>
    %183 = vector.shape_cast %182 : vector<1x24x9xf32> to vector<24x9xf32>
    %184 = vector.shape_cast %181 : vector<24x9xf32> to vector<1x24x9xf32>
    tpu.vector_store %arg20[%c1, %c0_118, %c0_119], %184 {strides = array<i32>} : memref<7x24x9xf32, #tpu.memory_space<vmem>>, vector<1x24x9xf32>,
    %185 = arith.truncf %175 : vector<24x10xf32> to vector<24x10xbf16>
    %c0_120 = arith.constant 0 : index
    %c0_121 = arith.constant 0 : index
    %186 = vector.load %arg4[%c0_120, %c0_121] : memref<10x96xbf16, #tpu.memory_space<vmem>>, vector<10x96xbf16>
    %cst_122 = arith.constant dense<0.000000e+00> : vector<24x96xf32>
    %187 = tpu.matmul %185, %186, %cst_122 {dimension_numbers = #tpu.dot_dimension_numbers<[1], [0], [0], [1], [0, 0, 1, 1], [], []>} : vector<24x10xbf16>, vector<10x96xbf16>, vector<24x96xf32> -> vector<24x96xf32>
    %188 = arith.truncf %187 : vector<24x96xf32> to vector<24x96xbf16>
    %c0_123 = arith.constant 0 : index
    %c0_124 = arith.constant 0 : index
    %189 = vector.load %arg5[%c0_123, %c0_124] : memref<10x96xbf16, #tpu.memory_space<vmem>>, vector<10x96xbf16>
    %cst_125 = arith.constant dense<0.000000e+00> : vector<24x96xf32>
    %190 = tpu.matmul %185, %189, %cst_125 {dimension_numbers = #tpu.dot_dimension_numbers<[1], [0], [0], [1], [0, 0, 1, 1], [], []>} : vector<24x10xbf16>, vector<10x96xbf16>, vector<24x96xf32> -> vector<24x96xf32>
    %191 = arith.truncf %190 : vector<24x96xf32> to vector<24x96xbf16>
    %c0_126 = arith.constant 0 : index
    %c0_127 = arith.constant 0 : index
    %192 = vector.load %arg1[%c0_126, %c0_127] : memref<64x24xbf16, #tpu.memory_space<vmem>>, vector<64x24xbf16>
    %cst_128 = arith.constant dense<0.000000e+00> : vector<64x96xf32>
    %193 = tpu.matmul %192, %188, %cst_128 {dimension_numbers = #tpu.dot_dimension_numbers<[1], [0], [0], [1], [0, 0, 1, 1], [], []>} : vector<64x24xbf16>, vector<24x96xbf16>, vector<64x96xf32> -> vector<64x96xf32>
    %c0_129 = arith.constant 0 : index
    %c0_130 = arith.constant 0 : index
    %194 = vector.load %arg2[%c0_129, %c0_130] : memref<64x24xbf16, #tpu.memory_space<vmem>>, vector<64x24xbf16>
    %cst_131 = arith.constant dense<0.000000e+00> : vector<64x96xf32>
    %195 = tpu.matmul %194, %191, %cst_131 {dimension_numbers = #tpu.dot_dimension_numbers<[1], [0], [0], [1], [0, 0, 1, 1], [], []>} : vector<64x24xbf16>, vector<24x96xbf16>, vector<64x96xf32> -> vector<64x96xf32>
    %196 = arith.addf %193, %195 : vector<64x96xf32>
    %c0_132 = arith.constant 0 : index
    %c0_133 = arith.constant 0 : index
    %197 = vector.load %arg6[%c0_132, %c0_133] : memref<1x96xf32, #tpu.memory_space<vmem>>, vector<1x96xf32>
    %198 = vector.broadcast %197 : vector<1x96xf32> to vector<64x96xf32>
    %199 = arith.addf %196, %198 : vector<64x96xf32>
    %cst_134 = arith.constant 0.000000e+00 : f32
    %200 = vector.broadcast %cst_134 : f32 to vector<64x96xf32>
    %201 = arith.maximumf %199, %200 : vector<64x96xf32>
    %202 = arith.truncf %201 : vector<64x96xf32> to vector<64x96xbf16>
    %c0_135 = arith.constant 0 : index
    %c0_136 = arith.constant 0 : index
    %203 = vector.load %arg7[%c0_135, %c0_136] : memref<96x96xbf16, #tpu.memory_space<vmem>>, vector<96x96xbf16>
    %cst_137 = arith.constant dense<0.000000e+00> : vector<64x96xf32>
    %204 = tpu.matmul %202, %203, %cst_137 {dimension_numbers = #tpu.dot_dimension_numbers<[1], [0], [0], [1], [0, 0, 1, 1], [], []>} : vector<64x96xbf16>, vector<96x96xbf16>, vector<64x96xf32> -> vector<64x96xf32>
    %c0_138 = arith.constant 0 : index
    %c0_139 = arith.constant 0 : index
    %205 = vector.load %arg8[%c0_138, %c0_139] : memref<1x96xf32, #tpu.memory_space<vmem>>, vector<1x96xf32>
    %206 = vector.broadcast %205 : vector<1x96xf32> to vector<64x96xf32>
    %207 = arith.addf %204, %206 : vector<64x96xf32>
    %cst_140 = arith.constant 0.000000e+00 : f32
    %208 = vector.broadcast %cst_140 : f32 to vector<64x96xf32>
    %209 = arith.maximumf %207, %208 : vector<64x96xf32>
    %210 = arith.truncf %209 : vector<64x96xf32> to vector<64x96xbf16>
    %c0_141 = arith.constant 0 : index
    %c0_142 = arith.constant 0 : index
    %211 = vector.load %arg9[%c0_141, %c0_142] : memref<96x96xbf16, #tpu.memory_space<vmem>>, vector<96x96xbf16>
    %cst_143 = arith.constant dense<0.000000e+00> : vector<64x96xf32>
    %212 = tpu.matmul %210, %211, %cst_143 {dimension_numbers = #tpu.dot_dimension_numbers<[1], [0], [0], [1], [0, 0, 1, 1], [], []>} : vector<64x96xbf16>, vector<96x96xbf16>, vector<64x96xf32> -> vector<64x96xf32>
    %c0_144 = arith.constant 0 : index
    %c0_145 = arith.constant 0 : index
    %213 = vector.load %arg10[%c0_144, %c0_145] : memref<1x96xf32, #tpu.memory_space<vmem>>, vector<1x96xf32>
    %214 = vector.broadcast %213 : vector<1x96xf32> to vector<64x96xf32>
    %215 = arith.addf %212, %214 : vector<64x96xf32>
    %cst_146 = arith.constant 0.000000e+00 : f32
    %216 = vector.broadcast %cst_146 : f32 to vector<64x96xf32>
    %217 = arith.maximumf %215, %216 : vector<64x96xf32>
    %218 = arith.truncf %217 : vector<64x96xf32> to vector<64x96xbf16>
    %c0_147 = arith.constant 0 : index
    %c0_148 = arith.constant 0 : index
    %219 = vector.load %arg11[%c0_147, %c0_148] : memref<96x11xbf16, #tpu.memory_space<vmem>>, vector<96x11xbf16>
    %cst_149 = arith.constant dense<0.000000e+00> : vector<64x11xf32>
    %220 = tpu.matmul %218, %219, %cst_149 {dimension_numbers = #tpu.dot_dimension_numbers<[1], [0], [0], [1], [0, 0, 1, 1], [], []>} : vector<64x96xbf16>, vector<96x11xbf16>, vector<64x11xf32> -> vector<64x11xf32>
    %c0_150 = arith.constant 0 : index
    %c0_151 = arith.constant 0 : index
    %221 = vector.load %arg12[%c0_150, %c0_151] : memref<1x11xf32, #tpu.memory_space<vmem>>, vector<1x11xf32>
    %222 = vector.broadcast %221 : vector<1x11xf32> to vector<64x11xf32>
    %223 = arith.addf %220, %222 : vector<64x11xf32>
    %c0_152 = arith.constant 0 : index
    %c0_153 = arith.constant 0 : index
    %224 = vector.load %arg3[%c0_152, %c0_153] : memref<24x64xbf16, #tpu.memory_space<vmem>>, vector<24x64xbf16>
    %225 = arith.truncf %223 : vector<64x11xf32> to vector<64x11xbf16>
    %cst_154 = arith.constant dense<0.000000e+00> : vector<24x11xf32>
    %226 = tpu.matmul %224, %225, %cst_154 {dimension_numbers = #tpu.dot_dimension_numbers<[1], [0], [0], [1], [0, 0, 1, 1], [], []>} : vector<24x64xbf16>, vector<64x11xbf16>, vector<24x11xf32> -> vector<24x11xf32>
    %227 = arith.truncf %226 : vector<24x11xf32> to vector<24x11xbf16>
    %c0_155 = arith.constant 0 : index
    %c0_156 = arith.constant 0 : index
    %228 = vector.load %arg13[%c0_155, %c0_156] : memref<11x30xbf16, #tpu.memory_space<vmem>>, vector<11x30xbf16>
    %cst_157 = arith.constant dense<0.000000e+00> : vector<24x30xf32>
    %229 = tpu.matmul %227, %228, %cst_157 {dimension_numbers = #tpu.dot_dimension_numbers<[1], [0], [0], [1], [0, 0, 1, 1], [], []>} : vector<24x11xbf16>, vector<11x30xbf16>, vector<24x30xf32> -> vector<24x30xf32>
    %c0_158 = arith.constant 0 : index
    %c0_159 = arith.constant 0 : index
    %230 = vector.load %arg0[%c0_158, %c0_159] : memref<24x9xbf16, #tpu.memory_space<vmem>>, vector<24x9xbf16>
    %c0_160 = arith.constant 0 : index
    %c0_161 = arith.constant 0 : index
    %231 = vector.load %arg14[%c0_160, %c0_161] : memref<9x30xbf16, #tpu.memory_space<vmem>>, vector<9x30xbf16>
    %cst_162 = arith.constant dense<0.000000e+00> : vector<24x30xf32>
    %232 = tpu.matmul %230, %231, %cst_162 {dimension_numbers = #tpu.dot_dimension_numbers<[1], [0], [0], [1], [0, 0, 1, 1], [], []>} : vector<24x9xbf16>, vector<9x30xbf16>, vector<24x30xf32> -> vector<24x30xf32>
    %233 = arith.addf %229, %232 : vector<24x30xf32>
    %c0_163 = arith.constant 0 : index
    %c0_164 = arith.constant 0 : index
    %234 = vector.load %arg16[%c0_163, %c0_164] : memref<1x30xf32, #tpu.memory_space<vmem>>, vector<1x30xf32>
    %235 = vector.broadcast %234 : vector<1x30xf32> to vector<24x30xf32>
    %236 = arith.addf %233, %235 : vector<24x30xf32>
    %c0_165 = arith.constant 0 : index
    %c0_166 = arith.constant 0 : index
    %237 = vector.load %arg15[%c0_165, %c0_166] : memref<10x30xbf16, #tpu.memory_space<vmem>>, vector<10x30xbf16>
    %cst_167 = arith.constant dense<0.000000e+00> : vector<24x30xf32>
    %238 = tpu.matmul %185, %237, %cst_167 {dimension_numbers = #tpu.dot_dimension_numbers<[1], [0], [0], [1], [0, 0, 1, 1], [], []>} : vector<24x10xbf16>, vector<10x30xbf16>, vector<24x30xf32> -> vector<24x30xf32>
    %c0_168 = arith.constant 0 : index
    %c0_169 = arith.constant 0 : index
    %239 = vector.load %arg17[%c0_168, %c0_169] : memref<1x30xf32, #tpu.memory_space<vmem>>, vector<1x30xf32>
    %240 = vector.broadcast %239 : vector<1x30xf32> to vector<24x30xf32>
    %241 = arith.addf %238, %240 : vector<24x30xf32>
    %242 = vector.extract_strided_slice %236 {offsets = [0, 0], sizes = [24, 10], strides = [1, 1]} : vector<24x30xf32> to vector<24x10xf32>
    %243 = vector.extract_strided_slice %241 {offsets = [0, 0], sizes = [24, 10], strides = [1, 1]} : vector<24x30xf32> to vector<24x10xf32>
    %244 = arith.addf %242, %243 : vector<24x10xf32>
    %245 = arith.negf %244 : vector<24x10xf32>
    %246 = math.exp %245 : vector<24x10xf32>
    %cst_170 = arith.constant 1.000000e+00 : f32
    %247 = vector.broadcast %cst_170 : f32 to vector<24x10xf32>
    %248 = arith.addf %247, %246 : vector<24x10xf32>
    %249 = arith.divf %247, %248 : vector<24x10xf32>
    %250 = vector.extract_strided_slice %236 {offsets = [0, 10], sizes = [24, 10], strides = [1, 1]} : vector<24x30xf32> to vector<24x10xf32>
    %251 = vector.extract_strided_slice %241 {offsets = [0, 10], sizes = [24, 10], strides = [1, 1]} : vector<24x30xf32> to vector<24x10xf32>
    %252 = arith.addf %250, %251 : vector<24x10xf32>
    %253 = arith.negf %252 : vector<24x10xf32>
    %254 = math.exp %253 : vector<24x10xf32>
    %cst_171 = arith.constant 1.000000e+00 : f32
    %255 = vector.broadcast %cst_171 : f32 to vector<24x10xf32>
    %256 = arith.addf %255, %254 : vector<24x10xf32>
    %257 = arith.divf %255, %256 : vector<24x10xf32>
    %258 = vector.extract_strided_slice %236 {offsets = [0, 20], sizes = [24, 10], strides = [1, 1]} : vector<24x30xf32> to vector<24x10xf32>
    %259 = vector.extract_strided_slice %241 {offsets = [0, 20], sizes = [24, 10], strides = [1, 1]} : vector<24x30xf32> to vector<24x10xf32>
    %260 = arith.mulf %249, %259 : vector<24x10xf32>
    %261 = arith.addf %258, %260 : vector<24x10xf32>
    %262 = math.tanh %261 : vector<24x10xf32>
    %cst_172 = arith.constant 1.000000e+00 : f32
    %263 = vector.broadcast %cst_172 : f32 to vector<24x10xf32>
    %264 = arith.subf %263, %257 : vector<24x10xf32>
    %265 = arith.mulf %264, %262 : vector<24x10xf32>
    %266 = arith.mulf %257, %175 : vector<24x10xf32>
    %267 = arith.addf %265, %266 : vector<24x10xf32>
    %268 = arith.truncf %267 : vector<24x10xf32> to vector<24x10xbf16>
    %c0_173 = arith.constant 0 : index
    %c0_174 = arith.constant 0 : index
    %269 = vector.load %arg18[%c0_173, %c0_174] : memref<10x9xbf16, #tpu.memory_space<vmem>>, vector<10x9xbf16>
    %cst_175 = arith.constant dense<0.000000e+00> : vector<24x9xf32>
    %270 = tpu.matmul %268, %269, %cst_175 {dimension_numbers = #tpu.dot_dimension_numbers<[1], [0], [0], [1], [0, 0, 1, 1], [], []>} : vector<24x10xbf16>, vector<10x9xbf16>, vector<24x9xf32> -> vector<24x9xf32>
    %c0_176 = arith.constant 0 : index
    %c0_177 = arith.constant 0 : index
    %271 = vector.load %arg19[%c0_176, %c0_177] : memref<1x9xf32, #tpu.memory_space<vmem>>, vector<1x9xf32>
    %272 = vector.broadcast %271 : vector<1x9xf32> to vector<24x9xf32>
    %273 = arith.addf %270, %272 : vector<24x9xf32>
    %c2 = arith.constant 2 : index
    %c0_178 = arith.constant 0 : index
    %c0_179 = arith.constant 0 : index
    %274 = vector.load %arg20[%c2, %c0_178, %c0_179] : memref<7x24x9xf32, #tpu.memory_space<vmem>>, vector<1x24x9xf32>
    %275 = vector.shape_cast %274 : vector<1x24x9xf32> to vector<24x9xf32>
    %276 = vector.shape_cast %273 : vector<24x9xf32> to vector<1x24x9xf32>
    tpu.vector_store %arg20[%c2, %c0_178, %c0_179], %276 {strides = array<i32>} : memref<7x24x9xf32, #tpu.memory_space<vmem>>, vector<1x24x9xf32>,
    %277 = arith.truncf %267 : vector<24x10xf32> to vector<24x10xbf16>
    %c0_180 = arith.constant 0 : index
    %c0_181 = arith.constant 0 : index
    %278 = vector.load %arg4[%c0_180, %c0_181] : memref<10x96xbf16, #tpu.memory_space<vmem>>, vector<10x96xbf16>
    %cst_182 = arith.constant dense<0.000000e+00> : vector<24x96xf32>
    %279 = tpu.matmul %277, %278, %cst_182 {dimension_numbers = #tpu.dot_dimension_numbers<[1], [0], [0], [1], [0, 0, 1, 1], [], []>} : vector<24x10xbf16>, vector<10x96xbf16>, vector<24x96xf32> -> vector<24x96xf32>
    %280 = arith.truncf %279 : vector<24x96xf32> to vector<24x96xbf16>
    %c0_183 = arith.constant 0 : index
    %c0_184 = arith.constant 0 : index
    %281 = vector.load %arg5[%c0_183, %c0_184] : memref<10x96xbf16, #tpu.memory_space<vmem>>, vector<10x96xbf16>
    %cst_185 = arith.constant dense<0.000000e+00> : vector<24x96xf32>
    %282 = tpu.matmul %277, %281, %cst_185 {dimension_numbers = #tpu.dot_dimension_numbers<[1], [0], [0], [1], [0, 0, 1, 1], [], []>} : vector<24x10xbf16>, vector<10x96xbf16>, vector<24x96xf32> -> vector<24x96xf32>
    %283 = arith.truncf %282 : vector<24x96xf32> to vector<24x96xbf16>
    %c0_186 = arith.constant 0 : index
    %c0_187 = arith.constant 0 : index
    %284 = vector.load %arg1[%c0_186, %c0_187] : memref<64x24xbf16, #tpu.memory_space<vmem>>, vector<64x24xbf16>
    %cst_188 = arith.constant dense<0.000000e+00> : vector<64x96xf32>
    %285 = tpu.matmul %284, %280, %cst_188 {dimension_numbers = #tpu.dot_dimension_numbers<[1], [0], [0], [1], [0, 0, 1, 1], [], []>} : vector<64x24xbf16>, vector<24x96xbf16>, vector<64x96xf32> -> vector<64x96xf32>
    %c0_189 = arith.constant 0 : index
    %c0_190 = arith.constant 0 : index
    %286 = vector.load %arg2[%c0_189, %c0_190] : memref<64x24xbf16, #tpu.memory_space<vmem>>, vector<64x24xbf16>
    %cst_191 = arith.constant dense<0.000000e+00> : vector<64x96xf32>
    %287 = tpu.matmul %286, %283, %cst_191 {dimension_numbers = #tpu.dot_dimension_numbers<[1], [0], [0], [1], [0, 0, 1, 1], [], []>} : vector<64x24xbf16>, vector<24x96xbf16>, vector<64x96xf32> -> vector<64x96xf32>
    %288 = arith.addf %285, %287 : vector<64x96xf32>
    %c0_192 = arith.constant 0 : index
    %c0_193 = arith.constant 0 : index
    %289 = vector.load %arg6[%c0_192, %c0_193] : memref<1x96xf32, #tpu.memory_space<vmem>>, vector<1x96xf32>
    %290 = vector.broadcast %289 : vector<1x96xf32> to vector<64x96xf32>
    %291 = arith.addf %288, %290 : vector<64x96xf32>
    %cst_194 = arith.constant 0.000000e+00 : f32
    %292 = vector.broadcast %cst_194 : f32 to vector<64x96xf32>
    %293 = arith.maximumf %291, %292 : vector<64x96xf32>
    %294 = arith.truncf %293 : vector<64x96xf32> to vector<64x96xbf16>
    %c0_195 = arith.constant 0 : index
    %c0_196 = arith.constant 0 : index
    %295 = vector.load %arg7[%c0_195, %c0_196] : memref<96x96xbf16, #tpu.memory_space<vmem>>, vector<96x96xbf16>
    %cst_197 = arith.constant dense<0.000000e+00> : vector<64x96xf32>
    %296 = tpu.matmul %294, %295, %cst_197 {dimension_numbers = #tpu.dot_dimension_numbers<[1], [0], [0], [1], [0, 0, 1, 1], [], []>} : vector<64x96xbf16>, vector<96x96xbf16>, vector<64x96xf32> -> vector<64x96xf32>
    %c0_198 = arith.constant 0 : index
    %c0_199 = arith.constant 0 : index
    %297 = vector.load %arg8[%c0_198, %c0_199] : memref<1x96xf32, #tpu.memory_space<vmem>>, vector<1x96xf32>
    %298 = vector.broadcast %297 : vector<1x96xf32> to vector<64x96xf32>
    %299 = arith.addf %296, %298 : vector<64x96xf32>
    %cst_200 = arith.constant 0.000000e+00 : f32
    %300 = vector.broadcast %cst_200 : f32 to vector<64x96xf32>
    %301 = arith.maximumf %299, %300 : vector<64x96xf32>
    %302 = arith.truncf %301 : vector<64x96xf32> to vector<64x96xbf16>
    %c0_201 = arith.constant 0 : index
    %c0_202 = arith.constant 0 : index
    %303 = vector.load %arg9[%c0_201, %c0_202] : memref<96x96xbf16, #tpu.memory_space<vmem>>, vector<96x96xbf16>
    %cst_203 = arith.constant dense<0.000000e+00> : vector<64x96xf32>
    %304 = tpu.matmul %302, %303, %cst_203 {dimension_numbers = #tpu.dot_dimension_numbers<[1], [0], [0], [1], [0, 0, 1, 1], [], []>} : vector<64x96xbf16>, vector<96x96xbf16>, vector<64x96xf32> -> vector<64x96xf32>
    %c0_204 = arith.constant 0 : index
    %c0_205 = arith.constant 0 : index
    %305 = vector.load %arg10[%c0_204, %c0_205] : memref<1x96xf32, #tpu.memory_space<vmem>>, vector<1x96xf32>
    %306 = vector.broadcast %305 : vector<1x96xf32> to vector<64x96xf32>
    %307 = arith.addf %304, %306 : vector<64x96xf32>
    %cst_206 = arith.constant 0.000000e+00 : f32
    %308 = vector.broadcast %cst_206 : f32 to vector<64x96xf32>
    %309 = arith.maximumf %307, %308 : vector<64x96xf32>
    %310 = arith.truncf %309 : vector<64x96xf32> to vector<64x96xbf16>
    %c0_207 = arith.constant 0 : index
    %c0_208 = arith.constant 0 : index
    %311 = vector.load %arg11[%c0_207, %c0_208] : memref<96x11xbf16, #tpu.memory_space<vmem>>, vector<96x11xbf16>
    %cst_209 = arith.constant dense<0.000000e+00> : vector<64x11xf32>
    %312 = tpu.matmul %310, %311, %cst_209 {dimension_numbers = #tpu.dot_dimension_numbers<[1], [0], [0], [1], [0, 0, 1, 1], [], []>} : vector<64x96xbf16>, vector<96x11xbf16>, vector<64x11xf32> -> vector<64x11xf32>
    %c0_210 = arith.constant 0 : index
    %c0_211 = arith.constant 0 : index
    %313 = vector.load %arg12[%c0_210, %c0_211] : memref<1x11xf32, #tpu.memory_space<vmem>>, vector<1x11xf32>
    %314 = vector.broadcast %313 : vector<1x11xf32> to vector<64x11xf32>
    %315 = arith.addf %312, %314 : vector<64x11xf32>
    %c0_212 = arith.constant 0 : index
    %c0_213 = arith.constant 0 : index
    %316 = vector.load %arg3[%c0_212, %c0_213] : memref<24x64xbf16, #tpu.memory_space<vmem>>, vector<24x64xbf16>
    %317 = arith.truncf %315 : vector<64x11xf32> to vector<64x11xbf16>
    %cst_214 = arith.constant dense<0.000000e+00> : vector<24x11xf32>
    %318 = tpu.matmul %316, %317, %cst_214 {dimension_numbers = #tpu.dot_dimension_numbers<[1], [0], [0], [1], [0, 0, 1, 1], [], []>} : vector<24x64xbf16>, vector<64x11xbf16>, vector<24x11xf32> -> vector<24x11xf32>
    %319 = arith.truncf %318 : vector<24x11xf32> to vector<24x11xbf16>
    %c0_215 = arith.constant 0 : index
    %c0_216 = arith.constant 0 : index
    %320 = vector.load %arg13[%c0_215, %c0_216] : memref<11x30xbf16, #tpu.memory_space<vmem>>, vector<11x30xbf16>
    %cst_217 = arith.constant dense<0.000000e+00> : vector<24x30xf32>
    %321 = tpu.matmul %319, %320, %cst_217 {dimension_numbers = #tpu.dot_dimension_numbers<[1], [0], [0], [1], [0, 0, 1, 1], [], []>} : vector<24x11xbf16>, vector<11x30xbf16>, vector<24x30xf32> -> vector<24x30xf32>
    %c0_218 = arith.constant 0 : index
    %c0_219 = arith.constant 0 : index
    %322 = vector.load %arg0[%c0_218, %c0_219] : memref<24x9xbf16, #tpu.memory_space<vmem>>, vector<24x9xbf16>
    %c0_220 = arith.constant 0 : index
    %c0_221 = arith.constant 0 : index
    %323 = vector.load %arg14[%c0_220, %c0_221] : memref<9x30xbf16, #tpu.memory_space<vmem>>, vector<9x30xbf16>
    %cst_222 = arith.constant dense<0.000000e+00> : vector<24x30xf32>
    %324 = tpu.matmul %322, %323, %cst_222 {dimension_numbers = #tpu.dot_dimension_numbers<[1], [0], [0], [1], [0, 0, 1, 1], [], []>} : vector<24x9xbf16>, vector<9x30xbf16>, vector<24x30xf32> -> vector<24x30xf32>
    %325 = arith.addf %321, %324 : vector<24x30xf32>
    %c0_223 = arith.constant 0 : index
    %c0_224 = arith.constant 0 : index
    %326 = vector.load %arg16[%c0_223, %c0_224] : memref<1x30xf32, #tpu.memory_space<vmem>>, vector<1x30xf32>
    %327 = vector.broadcast %326 : vector<1x30xf32> to vector<24x30xf32>
    %328 = arith.addf %325, %327 : vector<24x30xf32>
    %c0_225 = arith.constant 0 : index
    %c0_226 = arith.constant 0 : index
    %329 = vector.load %arg15[%c0_225, %c0_226] : memref<10x30xbf16, #tpu.memory_space<vmem>>, vector<10x30xbf16>
    %cst_227 = arith.constant dense<0.000000e+00> : vector<24x30xf32>
    %330 = tpu.matmul %277, %329, %cst_227 {dimension_numbers = #tpu.dot_dimension_numbers<[1], [0], [0], [1], [0, 0, 1, 1], [], []>} : vector<24x10xbf16>, vector<10x30xbf16>, vector<24x30xf32> -> vector<24x30xf32>
    %c0_228 = arith.constant 0 : index
    %c0_229 = arith.constant 0 : index
    %331 = vector.load %arg17[%c0_228, %c0_229] : memref<1x30xf32, #tpu.memory_space<vmem>>, vector<1x30xf32>
    %332 = vector.broadcast %331 : vector<1x30xf32> to vector<24x30xf32>
    %333 = arith.addf %330, %332 : vector<24x30xf32>
    %334 = vector.extract_strided_slice %328 {offsets = [0, 0], sizes = [24, 10], strides = [1, 1]} : vector<24x30xf32> to vector<24x10xf32>
    %335 = vector.extract_strided_slice %333 {offsets = [0, 0], sizes = [24, 10], strides = [1, 1]} : vector<24x30xf32> to vector<24x10xf32>
    %336 = arith.addf %334, %335 : vector<24x10xf32>
    %337 = arith.negf %336 : vector<24x10xf32>
    %338 = math.exp %337 : vector<24x10xf32>
    %cst_230 = arith.constant 1.000000e+00 : f32
    %339 = vector.broadcast %cst_230 : f32 to vector<24x10xf32>
    %340 = arith.addf %339, %338 : vector<24x10xf32>
    %341 = arith.divf %339, %340 : vector<24x10xf32>
    %342 = vector.extract_strided_slice %328 {offsets = [0, 10], sizes = [24, 10], strides = [1, 1]} : vector<24x30xf32> to vector<24x10xf32>
    %343 = vector.extract_strided_slice %333 {offsets = [0, 10], sizes = [24, 10], strides = [1, 1]} : vector<24x30xf32> to vector<24x10xf32>
    %344 = arith.addf %342, %343 : vector<24x10xf32>
    %345 = arith.negf %344 : vector<24x10xf32>
    %346 = math.exp %345 : vector<24x10xf32>
    %cst_231 = arith.constant 1.000000e+00 : f32
    %347 = vector.broadcast %cst_231 : f32 to vector<24x10xf32>
    %348 = arith.addf %347, %346 : vector<24x10xf32>
    %349 = arith.divf %347, %348 : vector<24x10xf32>
    %350 = vector.extract_strided_slice %328 {offsets = [0, 20], sizes = [24, 10], strides = [1, 1]} : vector<24x30xf32> to vector<24x10xf32>
    %351 = vector.extract_strided_slice %333 {offsets = [0, 20], sizes = [24, 10], strides = [1, 1]} : vector<24x30xf32> to vector<24x10xf32>
    %352 = arith.mulf %341, %351 : vector<24x10xf32>
    %353 = arith.addf %350, %352 : vector<24x10xf32>
    %354 = math.tanh %353 : vector<24x10xf32>
    %cst_232 = arith.constant 1.000000e+00 : f32
    %355 = vector.broadcast %cst_232 : f32 to vector<24x10xf32>
    %356 = arith.subf %355, %349 : vector<24x10xf32>
    %357 = arith.mulf %356, %354 : vector<24x10xf32>
    %358 = arith.mulf %349, %267 : vector<24x10xf32>
    %359 = arith.addf %357, %358 : vector<24x10xf32>
    %360 = arith.truncf %359 : vector<24x10xf32> to vector<24x10xbf16>
    %c0_233 = arith.constant 0 : index
    %c0_234 = arith.constant 0 : index
    %361 = vector.load %arg18[%c0_233, %c0_234] : memref<10x9xbf16, #tpu.memory_space<vmem>>, vector<10x9xbf16>
    %cst_235 = arith.constant dense<0.000000e+00> : vector<24x9xf32>
    %362 = tpu.matmul %360, %361, %cst_235 {dimension_numbers = #tpu.dot_dimension_numbers<[1], [0], [0], [1], [0, 0, 1, 1], [], []>} : vector<24x10xbf16>, vector<10x9xbf16>, vector<24x9xf32> -> vector<24x9xf32>
    %c0_236 = arith.constant 0 : index
    %c0_237 = arith.constant 0 : index
    %363 = vector.load %arg19[%c0_236, %c0_237] : memref<1x9xf32, #tpu.memory_space<vmem>>, vector<1x9xf32>
    %364 = vector.broadcast %363 : vector<1x9xf32> to vector<24x9xf32>
    %365 = arith.addf %362, %364 : vector<24x9xf32>
    %c3 = arith.constant 3 : index
    %c0_238 = arith.constant 0 : index
    %c0_239 = arith.constant 0 : index
    %366 = vector.load %arg20[%c3, %c0_238, %c0_239] : memref<7x24x9xf32, #tpu.memory_space<vmem>>, vector<1x24x9xf32>
    %367 = vector.shape_cast %366 : vector<1x24x9xf32> to vector<24x9xf32>
    %368 = vector.shape_cast %365 : vector<24x9xf32> to vector<1x24x9xf32>
    tpu.vector_store %arg20[%c3, %c0_238, %c0_239], %368 {strides = array<i32>} : memref<7x24x9xf32, #tpu.memory_space<vmem>>, vector<1x24x9xf32>,
    %369 = arith.truncf %359 : vector<24x10xf32> to vector<24x10xbf16>
    %c0_240 = arith.constant 0 : index
    %c0_241 = arith.constant 0 : index
    %370 = vector.load %arg4[%c0_240, %c0_241] : memref<10x96xbf16, #tpu.memory_space<vmem>>, vector<10x96xbf16>
    %cst_242 = arith.constant dense<0.000000e+00> : vector<24x96xf32>
    %371 = tpu.matmul %369, %370, %cst_242 {dimension_numbers = #tpu.dot_dimension_numbers<[1], [0], [0], [1], [0, 0, 1, 1], [], []>} : vector<24x10xbf16>, vector<10x96xbf16>, vector<24x96xf32> -> vector<24x96xf32>
    %372 = arith.truncf %371 : vector<24x96xf32> to vector<24x96xbf16>
    %c0_243 = arith.constant 0 : index
    %c0_244 = arith.constant 0 : index
    %373 = vector.load %arg5[%c0_243, %c0_244] : memref<10x96xbf16, #tpu.memory_space<vmem>>, vector<10x96xbf16>
    %cst_245 = arith.constant dense<0.000000e+00> : vector<24x96xf32>
    %374 = tpu.matmul %369, %373, %cst_245 {dimension_numbers = #tpu.dot_dimension_numbers<[1], [0], [0], [1], [0, 0, 1, 1], [], []>} : vector<24x10xbf16>, vector<10x96xbf16>, vector<24x96xf32> -> vector<24x96xf32>
    %375 = arith.truncf %374 : vector<24x96xf32> to vector<24x96xbf16>
    %c0_246 = arith.constant 0 : index
    %c0_247 = arith.constant 0 : index
    %376 = vector.load %arg1[%c0_246, %c0_247] : memref<64x24xbf16, #tpu.memory_space<vmem>>, vector<64x24xbf16>
    %cst_248 = arith.constant dense<0.000000e+00> : vector<64x96xf32>
    %377 = tpu.matmul %376, %372, %cst_248 {dimension_numbers = #tpu.dot_dimension_numbers<[1], [0], [0], [1], [0, 0, 1, 1], [], []>} : vector<64x24xbf16>, vector<24x96xbf16>, vector<64x96xf32> -> vector<64x96xf32>
    %c0_249 = arith.constant 0 : index
    %c0_250 = arith.constant 0 : index
    %378 = vector.load %arg2[%c0_249, %c0_250] : memref<64x24xbf16, #tpu.memory_space<vmem>>, vector<64x24xbf16>
    %cst_251 = arith.constant dense<0.000000e+00> : vector<64x96xf32>
    %379 = tpu.matmul %378, %375, %cst_251 {dimension_numbers = #tpu.dot_dimension_numbers<[1], [0], [0], [1], [0, 0, 1, 1], [], []>} : vector<64x24xbf16>, vector<24x96xbf16>, vector<64x96xf32> -> vector<64x96xf32>
    %380 = arith.addf %377, %379 : vector<64x96xf32>
    %c0_252 = arith.constant 0 : index
    %c0_253 = arith.constant 0 : index
    %381 = vector.load %arg6[%c0_252, %c0_253] : memref<1x96xf32, #tpu.memory_space<vmem>>, vector<1x96xf32>
    %382 = vector.broadcast %381 : vector<1x96xf32> to vector<64x96xf32>
    %383 = arith.addf %380, %382 : vector<64x96xf32>
    %cst_254 = arith.constant 0.000000e+00 : f32
    %384 = vector.broadcast %cst_254 : f32 to vector<64x96xf32>
    %385 = arith.maximumf %383, %384 : vector<64x96xf32>
    %386 = arith.truncf %385 : vector<64x96xf32> to vector<64x96xbf16>
    %c0_255 = arith.constant 0 : index
    %c0_256 = arith.constant 0 : index
    %387 = vector.load %arg7[%c0_255, %c0_256] : memref<96x96xbf16, #tpu.memory_space<vmem>>, vector<96x96xbf16>
    %cst_257 = arith.constant dense<0.000000e+00> : vector<64x96xf32>
    %388 = tpu.matmul %386, %387, %cst_257 {dimension_numbers = #tpu.dot_dimension_numbers<[1], [0], [0], [1], [0, 0, 1, 1], [], []>} : vector<64x96xbf16>, vector<96x96xbf16>, vector<64x96xf32> -> vector<64x96xf32>
    %c0_258 = arith.constant 0 : index
    %c0_259 = arith.constant 0 : index
    %389 = vector.load %arg8[%c0_258, %c0_259] : memref<1x96xf32, #tpu.memory_space<vmem>>, vector<1x96xf32>
    %390 = vector.broadcast %389 : vector<1x96xf32> to vector<64x96xf32>
    %391 = arith.addf %388, %390 : vector<64x96xf32>
    %cst_260 = arith.constant 0.000000e+00 : f32
    %392 = vector.broadcast %cst_260 : f32 to vector<64x96xf32>
    %393 = arith.maximumf %391, %392 : vector<64x96xf32>
    %394 = arith.truncf %393 : vector<64x96xf32> to vector<64x96xbf16>
    %c0_261 = arith.constant 0 : index
    %c0_262 = arith.constant 0 : index
    %395 = vector.load %arg9[%c0_261, %c0_262] : memref<96x96xbf16, #tpu.memory_space<vmem>>, vector<96x96xbf16>
    %cst_263 = arith.constant dense<0.000000e+00> : vector<64x96xf32>
    %396 = tpu.matmul %394, %395, %cst_263 {dimension_numbers = #tpu.dot_dimension_numbers<[1], [0], [0], [1], [0, 0, 1, 1], [], []>} : vector<64x96xbf16>, vector<96x96xbf16>, vector<64x96xf32> -> vector<64x96xf32>
    %c0_264 = arith.constant 0 : index
    %c0_265 = arith.constant 0 : index
    %397 = vector.load %arg10[%c0_264, %c0_265] : memref<1x96xf32, #tpu.memory_space<vmem>>, vector<1x96xf32>
    %398 = vector.broadcast %397 : vector<1x96xf32> to vector<64x96xf32>
    %399 = arith.addf %396, %398 : vector<64x96xf32>
    %cst_266 = arith.constant 0.000000e+00 : f32
    %400 = vector.broadcast %cst_266 : f32 to vector<64x96xf32>
    %401 = arith.maximumf %399, %400 : vector<64x96xf32>
    %402 = arith.truncf %401 : vector<64x96xf32> to vector<64x96xbf16>
    %c0_267 = arith.constant 0 : index
    %c0_268 = arith.constant 0 : index
    %403 = vector.load %arg11[%c0_267, %c0_268] : memref<96x11xbf16, #tpu.memory_space<vmem>>, vector<96x11xbf16>
    %cst_269 = arith.constant dense<0.000000e+00> : vector<64x11xf32>
    %404 = tpu.matmul %402, %403, %cst_269 {dimension_numbers = #tpu.dot_dimension_numbers<[1], [0], [0], [1], [0, 0, 1, 1], [], []>} : vector<64x96xbf16>, vector<96x11xbf16>, vector<64x11xf32> -> vector<64x11xf32>
    %c0_270 = arith.constant 0 : index
    %c0_271 = arith.constant 0 : index
    %405 = vector.load %arg12[%c0_270, %c0_271] : memref<1x11xf32, #tpu.memory_space<vmem>>, vector<1x11xf32>
    %406 = vector.broadcast %405 : vector<1x11xf32> to vector<64x11xf32>
    %407 = arith.addf %404, %406 : vector<64x11xf32>
    %c0_272 = arith.constant 0 : index
    %c0_273 = arith.constant 0 : index
    %408 = vector.load %arg3[%c0_272, %c0_273] : memref<24x64xbf16, #tpu.memory_space<vmem>>, vector<24x64xbf16>
    %409 = arith.truncf %407 : vector<64x11xf32> to vector<64x11xbf16>
    %cst_274 = arith.constant dense<0.000000e+00> : vector<24x11xf32>
    %410 = tpu.matmul %408, %409, %cst_274 {dimension_numbers = #tpu.dot_dimension_numbers<[1], [0], [0], [1], [0, 0, 1, 1], [], []>} : vector<24x64xbf16>, vector<64x11xbf16>, vector<24x11xf32> -> vector<24x11xf32>
    %411 = arith.truncf %410 : vector<24x11xf32> to vector<24x11xbf16>
    %c0_275 = arith.constant 0 : index
    %c0_276 = arith.constant 0 : index
    %412 = vector.load %arg13[%c0_275, %c0_276] : memref<11x30xbf16, #tpu.memory_space<vmem>>, vector<11x30xbf16>
    %cst_277 = arith.constant dense<0.000000e+00> : vector<24x30xf32>
    %413 = tpu.matmul %411, %412, %cst_277 {dimension_numbers = #tpu.dot_dimension_numbers<[1], [0], [0], [1], [0, 0, 1, 1], [], []>} : vector<24x11xbf16>, vector<11x30xbf16>, vector<24x30xf32> -> vector<24x30xf32>
    %c0_278 = arith.constant 0 : index
    %c0_279 = arith.constant 0 : index
    %414 = vector.load %arg0[%c0_278, %c0_279] : memref<24x9xbf16, #tpu.memory_space<vmem>>, vector<24x9xbf16>
    %c0_280 = arith.constant 0 : index
    %c0_281 = arith.constant 0 : index
    %415 = vector.load %arg14[%c0_280, %c0_281] : memref<9x30xbf16, #tpu.memory_space<vmem>>, vector<9x30xbf16>
    %cst_282 = arith.constant dense<0.000000e+00> : vector<24x30xf32>
    %416 = tpu.matmul %414, %415, %cst_282 {dimension_numbers = #tpu.dot_dimension_numbers<[1], [0], [0], [1], [0, 0, 1, 1], [], []>} : vector<24x9xbf16>, vector<9x30xbf16>, vector<24x30xf32> -> vector<24x30xf32>
    %417 = arith.addf %413, %416 : vector<24x30xf32>
    %c0_283 = arith.constant 0 : index
    %c0_284 = arith.constant 0 : index
    %418 = vector.load %arg16[%c0_283, %c0_284] : memref<1x30xf32, #tpu.memory_space<vmem>>, vector<1x30xf32>
    %419 = vector.broadcast %418 : vector<1x30xf32> to vector<24x30xf32>
    %420 = arith.addf %417, %419 : vector<24x30xf32>
    %c0_285 = arith.constant 0 : index
    %c0_286 = arith.constant 0 : index
    %421 = vector.load %arg15[%c0_285, %c0_286] : memref<10x30xbf16, #tpu.memory_space<vmem>>, vector<10x30xbf16>
    %cst_287 = arith.constant dense<0.000000e+00> : vector<24x30xf32>
    %422 = tpu.matmul %369, %421, %cst_287 {dimension_numbers = #tpu.dot_dimension_numbers<[1], [0], [0], [1], [0, 0, 1, 1], [], []>} : vector<24x10xbf16>, vector<10x30xbf16>, vector<24x30xf32> -> vector<24x30xf32>
    %c0_288 = arith.constant 0 : index
    %c0_289 = arith.constant 0 : index
    %423 = vector.load %arg17[%c0_288, %c0_289] : memref<1x30xf32, #tpu.memory_space<vmem>>, vector<1x30xf32>
    %424 = vector.broadcast %423 : vector<1x30xf32> to vector<24x30xf32>
    %425 = arith.addf %422, %424 : vector<24x30xf32>
    %426 = vector.extract_strided_slice %420 {offsets = [0, 0], sizes = [24, 10], strides = [1, 1]} : vector<24x30xf32> to vector<24x10xf32>
    %427 = vector.extract_strided_slice %425 {offsets = [0, 0], sizes = [24, 10], strides = [1, 1]} : vector<24x30xf32> to vector<24x10xf32>
    %428 = arith.addf %426, %427 : vector<24x10xf32>
    %429 = arith.negf %428 : vector<24x10xf32>
    %430 = math.exp %429 : vector<24x10xf32>
    %cst_290 = arith.constant 1.000000e+00 : f32
    %431 = vector.broadcast %cst_290 : f32 to vector<24x10xf32>
    %432 = arith.addf %431, %430 : vector<24x10xf32>
    %433 = arith.divf %431, %432 : vector<24x10xf32>
    %434 = vector.extract_strided_slice %420 {offsets = [0, 10], sizes = [24, 10], strides = [1, 1]} : vector<24x30xf32> to vector<24x10xf32>
    %435 = vector.extract_strided_slice %425 {offsets = [0, 10], sizes = [24, 10], strides = [1, 1]} : vector<24x30xf32> to vector<24x10xf32>
    %436 = arith.addf %434, %435 : vector<24x10xf32>
    %437 = arith.negf %436 : vector<24x10xf32>
    %438 = math.exp %437 : vector<24x10xf32>
    %cst_291 = arith.constant 1.000000e+00 : f32
    %439 = vector.broadcast %cst_291 : f32 to vector<24x10xf32>
    %440 = arith.addf %439, %438 : vector<24x10xf32>
    %441 = arith.divf %439, %440 : vector<24x10xf32>
    %442 = vector.extract_strided_slice %420 {offsets = [0, 20], sizes = [24, 10], strides = [1, 1]} : vector<24x30xf32> to vector<24x10xf32>
    %443 = vector.extract_strided_slice %425 {offsets = [0, 20], sizes = [24, 10], strides = [1, 1]} : vector<24x30xf32> to vector<24x10xf32>
    %444 = arith.mulf %433, %443 : vector<24x10xf32>
    %445 = arith.addf %442, %444 : vector<24x10xf32>
    %446 = math.tanh %445 : vector<24x10xf32>
    %cst_292 = arith.constant 1.000000e+00 : f32
    %447 = vector.broadcast %cst_292 : f32 to vector<24x10xf32>
    %448 = arith.subf %447, %441 : vector<24x10xf32>
    %449 = arith.mulf %448, %446 : vector<24x10xf32>
    %450 = arith.mulf %441, %359 : vector<24x10xf32>
    %451 = arith.addf %449, %450 : vector<24x10xf32>
    %452 = arith.truncf %451 : vector<24x10xf32> to vector<24x10xbf16>
    %c0_293 = arith.constant 0 : index
    %c0_294 = arith.constant 0 : index
    %453 = vector.load %arg18[%c0_293, %c0_294] : memref<10x9xbf16, #tpu.memory_space<vmem>>, vector<10x9xbf16>
    %cst_295 = arith.constant dense<0.000000e+00> : vector<24x9xf32>
    %454 = tpu.matmul %452, %453, %cst_295 {dimension_numbers = #tpu.dot_dimension_numbers<[1], [0], [0], [1], [0, 0, 1, 1], [], []>} : vector<24x10xbf16>, vector<10x9xbf16>, vector<24x9xf32> -> vector<24x9xf32>
    %c0_296 = arith.constant 0 : index
    %c0_297 = arith.constant 0 : index
    %455 = vector.load %arg19[%c0_296, %c0_297] : memref<1x9xf32, #tpu.memory_space<vmem>>, vector<1x9xf32>
    %456 = vector.broadcast %455 : vector<1x9xf32> to vector<24x9xf32>
    %457 = arith.addf %454, %456 : vector<24x9xf32>
    %c4 = arith.constant 4 : index
    %c0_298 = arith.constant 0 : index
    %c0_299 = arith.constant 0 : index
    %458 = vector.load %arg20[%c4, %c0_298, %c0_299] : memref<7x24x9xf32, #tpu.memory_space<vmem>>, vector<1x24x9xf32>
    %459 = vector.shape_cast %458 : vector<1x24x9xf32> to vector<24x9xf32>
    %460 = vector.shape_cast %457 : vector<24x9xf32> to vector<1x24x9xf32>
    tpu.vector_store %arg20[%c4, %c0_298, %c0_299], %460 {strides = array<i32>} : memref<7x24x9xf32, #tpu.memory_space<vmem>>, vector<1x24x9xf32>,
    %461 = arith.truncf %451 : vector<24x10xf32> to vector<24x10xbf16>
    %c0_300 = arith.constant 0 : index
    %c0_301 = arith.constant 0 : index
    %462 = vector.load %arg4[%c0_300, %c0_301] : memref<10x96xbf16, #tpu.memory_space<vmem>>, vector<10x96xbf16>
    %cst_302 = arith.constant dense<0.000000e+00> : vector<24x96xf32>
    %463 = tpu.matmul %461, %462, %cst_302 {dimension_numbers = #tpu.dot_dimension_numbers<[1], [0], [0], [1], [0, 0, 1, 1], [], []>} : vector<24x10xbf16>, vector<10x96xbf16>, vector<24x96xf32> -> vector<24x96xf32>
    %464 = arith.truncf %463 : vector<24x96xf32> to vector<24x96xbf16>
    %c0_303 = arith.constant 0 : index
    %c0_304 = arith.constant 0 : index
    %465 = vector.load %arg5[%c0_303, %c0_304] : memref<10x96xbf16, #tpu.memory_space<vmem>>, vector<10x96xbf16>
    %cst_305 = arith.constant dense<0.000000e+00> : vector<24x96xf32>
    %466 = tpu.matmul %461, %465, %cst_305 {dimension_numbers = #tpu.dot_dimension_numbers<[1], [0], [0], [1], [0, 0, 1, 1], [], []>} : vector<24x10xbf16>, vector<10x96xbf16>, vector<24x96xf32> -> vector<24x96xf32>
    %467 = arith.truncf %466 : vector<24x96xf32> to vector<24x96xbf16>
    %c0_306 = arith.constant 0 : index
    %c0_307 = arith.constant 0 : index
    %468 = vector.load %arg1[%c0_306, %c0_307] : memref<64x24xbf16, #tpu.memory_space<vmem>>, vector<64x24xbf16>
    %cst_308 = arith.constant dense<0.000000e+00> : vector<64x96xf32>
    %469 = tpu.matmul %468, %464, %cst_308 {dimension_numbers = #tpu.dot_dimension_numbers<[1], [0], [0], [1], [0, 0, 1, 1], [], []>} : vector<64x24xbf16>, vector<24x96xbf16>, vector<64x96xf32> -> vector<64x96xf32>
    %c0_309 = arith.constant 0 : index
    %c0_310 = arith.constant 0 : index
    %470 = vector.load %arg2[%c0_309, %c0_310] : memref<64x24xbf16, #tpu.memory_space<vmem>>, vector<64x24xbf16>
    %cst_311 = arith.constant dense<0.000000e+00> : vector<64x96xf32>
    %471 = tpu.matmul %470, %467, %cst_311 {dimension_numbers = #tpu.dot_dimension_numbers<[1], [0], [0], [1], [0, 0, 1, 1], [], []>} : vector<64x24xbf16>, vector<24x96xbf16>, vector<64x96xf32> -> vector<64x96xf32>
    %472 = arith.addf %469, %471 : vector<64x96xf32>
    %c0_312 = arith.constant 0 : index
    %c0_313 = arith.constant 0 : index
    %473 = vector.load %arg6[%c0_312, %c0_313] : memref<1x96xf32, #tpu.memory_space<vmem>>, vector<1x96xf32>
    %474 = vector.broadcast %473 : vector<1x96xf32> to vector<64x96xf32>
    %475 = arith.addf %472, %474 : vector<64x96xf32>
    %cst_314 = arith.constant 0.000000e+00 : f32
    %476 = vector.broadcast %cst_314 : f32 to vector<64x96xf32>
    %477 = arith.maximumf %475, %476 : vector<64x96xf32>
    %478 = arith.truncf %477 : vector<64x96xf32> to vector<64x96xbf16>
    %c0_315 = arith.constant 0 : index
    %c0_316 = arith.constant 0 : index
    %479 = vector.load %arg7[%c0_315, %c0_316] : memref<96x96xbf16, #tpu.memory_space<vmem>>, vector<96x96xbf16>
    %cst_317 = arith.constant dense<0.000000e+00> : vector<64x96xf32>
    %480 = tpu.matmul %478, %479, %cst_317 {dimension_numbers = #tpu.dot_dimension_numbers<[1], [0], [0], [1], [0, 0, 1, 1], [], []>} : vector<64x96xbf16>, vector<96x96xbf16>, vector<64x96xf32> -> vector<64x96xf32>
    %c0_318 = arith.constant 0 : index
    %c0_319 = arith.constant 0 : index
    %481 = vector.load %arg8[%c0_318, %c0_319] : memref<1x96xf32, #tpu.memory_space<vmem>>, vector<1x96xf32>
    %482 = vector.broadcast %481 : vector<1x96xf32> to vector<64x96xf32>
    %483 = arith.addf %480, %482 : vector<64x96xf32>
    %cst_320 = arith.constant 0.000000e+00 : f32
    %484 = vector.broadcast %cst_320 : f32 to vector<64x96xf32>
    %485 = arith.maximumf %483, %484 : vector<64x96xf32>
    %486 = arith.truncf %485 : vector<64x96xf32> to vector<64x96xbf16>
    %c0_321 = arith.constant 0 : index
    %c0_322 = arith.constant 0 : index
    %487 = vector.load %arg9[%c0_321, %c0_322] : memref<96x96xbf16, #tpu.memory_space<vmem>>, vector<96x96xbf16>
    %cst_323 = arith.constant dense<0.000000e+00> : vector<64x96xf32>
    %488 = tpu.matmul %486, %487, %cst_323 {dimension_numbers = #tpu.dot_dimension_numbers<[1], [0], [0], [1], [0, 0, 1, 1], [], []>} : vector<64x96xbf16>, vector<96x96xbf16>, vector<64x96xf32> -> vector<64x96xf32>
    %c0_324 = arith.constant 0 : index
    %c0_325 = arith.constant 0 : index
    %489 = vector.load %arg10[%c0_324, %c0_325] : memref<1x96xf32, #tpu.memory_space<vmem>>, vector<1x96xf32>
    %490 = vector.broadcast %489 : vector<1x96xf32> to vector<64x96xf32>
    %491 = arith.addf %488, %490 : vector<64x96xf32>
    %cst_326 = arith.constant 0.000000e+00 : f32
    %492 = vector.broadcast %cst_326 : f32 to vector<64x96xf32>
    %493 = arith.maximumf %491, %492 : vector<64x96xf32>
    %494 = arith.truncf %493 : vector<64x96xf32> to vector<64x96xbf16>
    %c0_327 = arith.constant 0 : index
    %c0_328 = arith.constant 0 : index
    %495 = vector.load %arg11[%c0_327, %c0_328] : memref<96x11xbf16, #tpu.memory_space<vmem>>, vector<96x11xbf16>
    %cst_329 = arith.constant dense<0.000000e+00> : vector<64x11xf32>
    %496 = tpu.matmul %494, %495, %cst_329 {dimension_numbers = #tpu.dot_dimension_numbers<[1], [0], [0], [1], [0, 0, 1, 1], [], []>} : vector<64x96xbf16>, vector<96x11xbf16>, vector<64x11xf32> -> vector<64x11xf32>
    %c0_330 = arith.constant 0 : index
    %c0_331 = arith.constant 0 : index
    %497 = vector.load %arg12[%c0_330, %c0_331] : memref<1x11xf32, #tpu.memory_space<vmem>>, vector<1x11xf32>
    %498 = vector.broadcast %497 : vector<1x11xf32> to vector<64x11xf32>
    %499 = arith.addf %496, %498 : vector<64x11xf32>
    %c0_332 = arith.constant 0 : index
    %c0_333 = arith.constant 0 : index
    %500 = vector.load %arg3[%c0_332, %c0_333] : memref<24x64xbf16, #tpu.memory_space<vmem>>, vector<24x64xbf16>
    %501 = arith.truncf %499 : vector<64x11xf32> to vector<64x11xbf16>
    %cst_334 = arith.constant dense<0.000000e+00> : vector<24x11xf32>
    %502 = tpu.matmul %500, %501, %cst_334 {dimension_numbers = #tpu.dot_dimension_numbers<[1], [0], [0], [1], [0, 0, 1, 1], [], []>} : vector<24x64xbf16>, vector<64x11xbf16>, vector<24x11xf32> -> vector<24x11xf32>
    %503 = arith.truncf %502 : vector<24x11xf32> to vector<24x11xbf16>
    %c0_335 = arith.constant 0 : index
    %c0_336 = arith.constant 0 : index
    %504 = vector.load %arg13[%c0_335, %c0_336] : memref<11x30xbf16, #tpu.memory_space<vmem>>, vector<11x30xbf16>
    %cst_337 = arith.constant dense<0.000000e+00> : vector<24x30xf32>
    %505 = tpu.matmul %503, %504, %cst_337 {dimension_numbers = #tpu.dot_dimension_numbers<[1], [0], [0], [1], [0, 0, 1, 1], [], []>} : vector<24x11xbf16>, vector<11x30xbf16>, vector<24x30xf32> -> vector<24x30xf32>
    %c0_338 = arith.constant 0 : index
    %c0_339 = arith.constant 0 : index
    %506 = vector.load %arg0[%c0_338, %c0_339] : memref<24x9xbf16, #tpu.memory_space<vmem>>, vector<24x9xbf16>
    %c0_340 = arith.constant 0 : index
    %c0_341 = arith.constant 0 : index
    %507 = vector.load %arg14[%c0_340, %c0_341] : memref<9x30xbf16, #tpu.memory_space<vmem>>, vector<9x30xbf16>
    %cst_342 = arith.constant dense<0.000000e+00> : vector<24x30xf32>
    %508 = tpu.matmul %506, %507, %cst_342 {dimension_numbers = #tpu.dot_dimension_numbers<[1], [0], [0], [1], [0, 0, 1, 1], [], []>} : vector<24x9xbf16>, vector<9x30xbf16>, vector<24x30xf32> -> vector<24x30xf32>
    %509 = arith.addf %505, %508 : vector<24x30xf32>
    %c0_343 = arith.constant 0 : index
    %c0_344 = arith.constant 0 : index
    %510 = vector.load %arg16[%c0_343, %c0_344] : memref<1x30xf32, #tpu.memory_space<vmem>>, vector<1x30xf32>
    %511 = vector.broadcast %510 : vector<1x30xf32> to vector<24x30xf32>
    %512 = arith.addf %509, %511 : vector<24x30xf32>
    %c0_345 = arith.constant 0 : index
    %c0_346 = arith.constant 0 : index
    %513 = vector.load %arg15[%c0_345, %c0_346] : memref<10x30xbf16, #tpu.memory_space<vmem>>, vector<10x30xbf16>
    %cst_347 = arith.constant dense<0.000000e+00> : vector<24x30xf32>
    %514 = tpu.matmul %461, %513, %cst_347 {dimension_numbers = #tpu.dot_dimension_numbers<[1], [0], [0], [1], [0, 0, 1, 1], [], []>} : vector<24x10xbf16>, vector<10x30xbf16>, vector<24x30xf32> -> vector<24x30xf32>
    %c0_348 = arith.constant 0 : index
    %c0_349 = arith.constant 0 : index
    %515 = vector.load %arg17[%c0_348, %c0_349] : memref<1x30xf32, #tpu.memory_space<vmem>>, vector<1x30xf32>
    %516 = vector.broadcast %515 : vector<1x30xf32> to vector<24x30xf32>
    %517 = arith.addf %514, %516 : vector<24x30xf32>
    %518 = vector.extract_strided_slice %512 {offsets = [0, 0], sizes = [24, 10], strides = [1, 1]} : vector<24x30xf32> to vector<24x10xf32>
    %519 = vector.extract_strided_slice %517 {offsets = [0, 0], sizes = [24, 10], strides = [1, 1]} : vector<24x30xf32> to vector<24x10xf32>
    %520 = arith.addf %518, %519 : vector<24x10xf32>
    %521 = arith.negf %520 : vector<24x10xf32>
    %522 = math.exp %521 : vector<24x10xf32>
    %cst_350 = arith.constant 1.000000e+00 : f32
    %523 = vector.broadcast %cst_350 : f32 to vector<24x10xf32>
    %524 = arith.addf %523, %522 : vector<24x10xf32>
    %525 = arith.divf %523, %524 : vector<24x10xf32>
    %526 = vector.extract_strided_slice %512 {offsets = [0, 10], sizes = [24, 10], strides = [1, 1]} : vector<24x30xf32> to vector<24x10xf32>
    %527 = vector.extract_strided_slice %517 {offsets = [0, 10], sizes = [24, 10], strides = [1, 1]} : vector<24x30xf32> to vector<24x10xf32>
    %528 = arith.addf %526, %527 : vector<24x10xf32>
    %529 = arith.negf %528 : vector<24x10xf32>
    %530 = math.exp %529 : vector<24x10xf32>
    %cst_351 = arith.constant 1.000000e+00 : f32
    %531 = vector.broadcast %cst_351 : f32 to vector<24x10xf32>
    %532 = arith.addf %531, %530 : vector<24x10xf32>
    %533 = arith.divf %531, %532 : vector<24x10xf32>
    %534 = vector.extract_strided_slice %512 {offsets = [0, 20], sizes = [24, 10], strides = [1, 1]} : vector<24x30xf32> to vector<24x10xf32>
    %535 = vector.extract_strided_slice %517 {offsets = [0, 20], sizes = [24, 10], strides = [1, 1]} : vector<24x30xf32> to vector<24x10xf32>
    %536 = arith.mulf %525, %535 : vector<24x10xf32>
    %537 = arith.addf %534, %536 : vector<24x10xf32>
    %538 = math.tanh %537 : vector<24x10xf32>
    %cst_352 = arith.constant 1.000000e+00 : f32
    %539 = vector.broadcast %cst_352 : f32 to vector<24x10xf32>
    %540 = arith.subf %539, %533 : vector<24x10xf32>
    %541 = arith.mulf %540, %538 : vector<24x10xf32>
    %542 = arith.mulf %533, %451 : vector<24x10xf32>
    %543 = arith.addf %541, %542 : vector<24x10xf32>
    %544 = arith.truncf %543 : vector<24x10xf32> to vector<24x10xbf16>
    %c0_353 = arith.constant 0 : index
    %c0_354 = arith.constant 0 : index
    %545 = vector.load %arg18[%c0_353, %c0_354] : memref<10x9xbf16, #tpu.memory_space<vmem>>, vector<10x9xbf16>
    %cst_355 = arith.constant dense<0.000000e+00> : vector<24x9xf32>
    %546 = tpu.matmul %544, %545, %cst_355 {dimension_numbers = #tpu.dot_dimension_numbers<[1], [0], [0], [1], [0, 0, 1, 1], [], []>} : vector<24x10xbf16>, vector<10x9xbf16>, vector<24x9xf32> -> vector<24x9xf32>
    %c0_356 = arith.constant 0 : index
    %c0_357 = arith.constant 0 : index
    %547 = vector.load %arg19[%c0_356, %c0_357] : memref<1x9xf32, #tpu.memory_space<vmem>>, vector<1x9xf32>
    %548 = vector.broadcast %547 : vector<1x9xf32> to vector<24x9xf32>
    %549 = arith.addf %546, %548 : vector<24x9xf32>
    %c5 = arith.constant 5 : index
    %c0_358 = arith.constant 0 : index
    %c0_359 = arith.constant 0 : index
    %550 = vector.load %arg20[%c5, %c0_358, %c0_359] : memref<7x24x9xf32, #tpu.memory_space<vmem>>, vector<1x24x9xf32>
    %551 = vector.shape_cast %550 : vector<1x24x9xf32> to vector<24x9xf32>
    %552 = vector.shape_cast %549 : vector<24x9xf32> to vector<1x24x9xf32>
    tpu.vector_store %arg20[%c5, %c0_358, %c0_359], %552 {strides = array<i32>} : memref<7x24x9xf32, #tpu.memory_space<vmem>>, vector<1x24x9xf32>,
    %553 = arith.truncf %543 : vector<24x10xf32> to vector<24x10xbf16>
    %c0_360 = arith.constant 0 : index
    %c0_361 = arith.constant 0 : index
    %554 = vector.load %arg4[%c0_360, %c0_361] : memref<10x96xbf16, #tpu.memory_space<vmem>>, vector<10x96xbf16>
    %cst_362 = arith.constant dense<0.000000e+00> : vector<24x96xf32>
    %555 = tpu.matmul %553, %554, %cst_362 {dimension_numbers = #tpu.dot_dimension_numbers<[1], [0], [0], [1], [0, 0, 1, 1], [], []>} : vector<24x10xbf16>, vector<10x96xbf16>, vector<24x96xf32> -> vector<24x96xf32>
    %556 = arith.truncf %555 : vector<24x96xf32> to vector<24x96xbf16>
    %c0_363 = arith.constant 0 : index
    %c0_364 = arith.constant 0 : index
    %557 = vector.load %arg5[%c0_363, %c0_364] : memref<10x96xbf16, #tpu.memory_space<vmem>>, vector<10x96xbf16>
    %cst_365 = arith.constant dense<0.000000e+00> : vector<24x96xf32>
    %558 = tpu.matmul %553, %557, %cst_365 {dimension_numbers = #tpu.dot_dimension_numbers<[1], [0], [0], [1], [0, 0, 1, 1], [], []>} : vector<24x10xbf16>, vector<10x96xbf16>, vector<24x96xf32> -> vector<24x96xf32>
    %559 = arith.truncf %558 : vector<24x96xf32> to vector<24x96xbf16>
    %c0_366 = arith.constant 0 : index
    %c0_367 = arith.constant 0 : index
    %560 = vector.load %arg1[%c0_366, %c0_367] : memref<64x24xbf16, #tpu.memory_space<vmem>>, vector<64x24xbf16>
    %cst_368 = arith.constant dense<0.000000e+00> : vector<64x96xf32>
    %561 = tpu.matmul %560, %556, %cst_368 {dimension_numbers = #tpu.dot_dimension_numbers<[1], [0], [0], [1], [0, 0, 1, 1], [], []>} : vector<64x24xbf16>, vector<24x96xbf16>, vector<64x96xf32> -> vector<64x96xf32>
    %c0_369 = arith.constant 0 : index
    %c0_370 = arith.constant 0 : index
    %562 = vector.load %arg2[%c0_369, %c0_370] : memref<64x24xbf16, #tpu.memory_space<vmem>>, vector<64x24xbf16>
    %cst_371 = arith.constant dense<0.000000e+00> : vector<64x96xf32>
    %563 = tpu.matmul %562, %559, %cst_371 {dimension_numbers = #tpu.dot_dimension_numbers<[1], [0], [0], [1], [0, 0, 1, 1], [], []>} : vector<64x24xbf16>, vector<24x96xbf16>, vector<64x96xf32> -> vector<64x96xf32>
    %564 = arith.addf %561, %563 : vector<64x96xf32>
    %c0_372 = arith.constant 0 : index
    %c0_373 = arith.constant 0 : index
    %565 = vector.load %arg6[%c0_372, %c0_373] : memref<1x96xf32, #tpu.memory_space<vmem>>, vector<1x96xf32>
    %566 = vector.broadcast %565 : vector<1x96xf32> to vector<64x96xf32>
    %567 = arith.addf %564, %566 : vector<64x96xf32>
    %cst_374 = arith.constant 0.000000e+00 : f32
    %568 = vector.broadcast %cst_374 : f32 to vector<64x96xf32>
    %569 = arith.maximumf %567, %568 : vector<64x96xf32>
    %570 = arith.truncf %569 : vector<64x96xf32> to vector<64x96xbf16>
    %c0_375 = arith.constant 0 : index
    %c0_376 = arith.constant 0 : index
    %571 = vector.load %arg7[%c0_375, %c0_376] : memref<96x96xbf16, #tpu.memory_space<vmem>>, vector<96x96xbf16>
    %cst_377 = arith.constant dense<0.000000e+00> : vector<64x96xf32>
    %572 = tpu.matmul %570, %571, %cst_377 {dimension_numbers = #tpu.dot_dimension_numbers<[1], [0], [0], [1], [0, 0, 1, 1], [], []>} : vector<64x96xbf16>, vector<96x96xbf16>, vector<64x96xf32> -> vector<64x96xf32>
    %c0_378 = arith.constant 0 : index
    %c0_379 = arith.constant 0 : index
    %573 = vector.load %arg8[%c0_378, %c0_379] : memref<1x96xf32, #tpu.memory_space<vmem>>, vector<1x96xf32>
    %574 = vector.broadcast %573 : vector<1x96xf32> to vector<64x96xf32>
    %575 = arith.addf %572, %574 : vector<64x96xf32>
    %cst_380 = arith.constant 0.000000e+00 : f32
    %576 = vector.broadcast %cst_380 : f32 to vector<64x96xf32>
    %577 = arith.maximumf %575, %576 : vector<64x96xf32>
    %578 = arith.truncf %577 : vector<64x96xf32> to vector<64x96xbf16>
    %c0_381 = arith.constant 0 : index
    %c0_382 = arith.constant 0 : index
    %579 = vector.load %arg9[%c0_381, %c0_382] : memref<96x96xbf16, #tpu.memory_space<vmem>>, vector<96x96xbf16>
    %cst_383 = arith.constant dense<0.000000e+00> : vector<64x96xf32>
    %580 = tpu.matmul %578, %579, %cst_383 {dimension_numbers = #tpu.dot_dimension_numbers<[1], [0], [0], [1], [0, 0, 1, 1], [], []>} : vector<64x96xbf16>, vector<96x96xbf16>, vector<64x96xf32> -> vector<64x96xf32>
    %c0_384 = arith.constant 0 : index
    %c0_385 = arith.constant 0 : index
    %581 = vector.load %arg10[%c0_384, %c0_385] : memref<1x96xf32, #tpu.memory_space<vmem>>, vector<1x96xf32>
    %582 = vector.broadcast %581 : vector<1x96xf32> to vector<64x96xf32>
    %583 = arith.addf %580, %582 : vector<64x96xf32>
    %cst_386 = arith.constant 0.000000e+00 : f32
    %584 = vector.broadcast %cst_386 : f32 to vector<64x96xf32>
    %585 = arith.maximumf %583, %584 : vector<64x96xf32>
    %586 = arith.truncf %585 : vector<64x96xf32> to vector<64x96xbf16>
    %c0_387 = arith.constant 0 : index
    %c0_388 = arith.constant 0 : index
    %587 = vector.load %arg11[%c0_387, %c0_388] : memref<96x11xbf16, #tpu.memory_space<vmem>>, vector<96x11xbf16>
    %cst_389 = arith.constant dense<0.000000e+00> : vector<64x11xf32>
    %588 = tpu.matmul %586, %587, %cst_389 {dimension_numbers = #tpu.dot_dimension_numbers<[1], [0], [0], [1], [0, 0, 1, 1], [], []>} : vector<64x96xbf16>, vector<96x11xbf16>, vector<64x11xf32> -> vector<64x11xf32>
    %c0_390 = arith.constant 0 : index
    %c0_391 = arith.constant 0 : index
    %589 = vector.load %arg12[%c0_390, %c0_391] : memref<1x11xf32, #tpu.memory_space<vmem>>, vector<1x11xf32>
    %590 = vector.broadcast %589 : vector<1x11xf32> to vector<64x11xf32>
    %591 = arith.addf %588, %590 : vector<64x11xf32>
    %c0_392 = arith.constant 0 : index
    %c0_393 = arith.constant 0 : index
    %592 = vector.load %arg3[%c0_392, %c0_393] : memref<24x64xbf16, #tpu.memory_space<vmem>>, vector<24x64xbf16>
    %593 = arith.truncf %591 : vector<64x11xf32> to vector<64x11xbf16>
    %cst_394 = arith.constant dense<0.000000e+00> : vector<24x11xf32>
    %594 = tpu.matmul %592, %593, %cst_394 {dimension_numbers = #tpu.dot_dimension_numbers<[1], [0], [0], [1], [0, 0, 1, 1], [], []>} : vector<24x64xbf16>, vector<64x11xbf16>, vector<24x11xf32> -> vector<24x11xf32>
    %595 = arith.truncf %594 : vector<24x11xf32> to vector<24x11xbf16>
    %c0_395 = arith.constant 0 : index
    %c0_396 = arith.constant 0 : index
    %596 = vector.load %arg13[%c0_395, %c0_396] : memref<11x30xbf16, #tpu.memory_space<vmem>>, vector<11x30xbf16>
    %cst_397 = arith.constant dense<0.000000e+00> : vector<24x30xf32>
    %597 = tpu.matmul %595, %596, %cst_397 {dimension_numbers = #tpu.dot_dimension_numbers<[1], [0], [0], [1], [0, 0, 1, 1], [], []>} : vector<24x11xbf16>, vector<11x30xbf16>, vector<24x30xf32> -> vector<24x30xf32>
    %c0_398 = arith.constant 0 : index
    %c0_399 = arith.constant 0 : index
    %598 = vector.load %arg0[%c0_398, %c0_399] : memref<24x9xbf16, #tpu.memory_space<vmem>>, vector<24x9xbf16>
    %c0_400 = arith.constant 0 : index
    %c0_401 = arith.constant 0 : index
    %599 = vector.load %arg14[%c0_400, %c0_401] : memref<9x30xbf16, #tpu.memory_space<vmem>>, vector<9x30xbf16>
    %cst_402 = arith.constant dense<0.000000e+00> : vector<24x30xf32>
    %600 = tpu.matmul %598, %599, %cst_402 {dimension_numbers = #tpu.dot_dimension_numbers<[1], [0], [0], [1], [0, 0, 1, 1], [], []>} : vector<24x9xbf16>, vector<9x30xbf16>, vector<24x30xf32> -> vector<24x30xf32>
    %601 = arith.addf %597, %600 : vector<24x30xf32>
    %c0_403 = arith.constant 0 : index
    %c0_404 = arith.constant 0 : index
    %602 = vector.load %arg16[%c0_403, %c0_404] : memref<1x30xf32, #tpu.memory_space<vmem>>, vector<1x30xf32>
    %603 = vector.broadcast %602 : vector<1x30xf32> to vector<24x30xf32>
    %604 = arith.addf %601, %603 : vector<24x30xf32>
    %c0_405 = arith.constant 0 : index
    %c0_406 = arith.constant 0 : index
    %605 = vector.load %arg15[%c0_405, %c0_406] : memref<10x30xbf16, #tpu.memory_space<vmem>>, vector<10x30xbf16>
    %cst_407 = arith.constant dense<0.000000e+00> : vector<24x30xf32>
    %606 = tpu.matmul %553, %605, %cst_407 {dimension_numbers = #tpu.dot_dimension_numbers<[1], [0], [0], [1], [0, 0, 1, 1], [], []>} : vector<24x10xbf16>, vector<10x30xbf16>, vector<24x30xf32> -> vector<24x30xf32>
    %c0_408 = arith.constant 0 : index
    %c0_409 = arith.constant 0 : index
    %607 = vector.load %arg17[%c0_408, %c0_409] : memref<1x30xf32, #tpu.memory_space<vmem>>, vector<1x30xf32>
    %608 = vector.broadcast %607 : vector<1x30xf32> to vector<24x30xf32>
    %609 = arith.addf %606, %608 : vector<24x30xf32>
    %610 = vector.extract_strided_slice %604 {offsets = [0, 0], sizes = [24, 10], strides = [1, 1]} : vector<24x30xf32> to vector<24x10xf32>
    %611 = vector.extract_strided_slice %609 {offsets = [0, 0], sizes = [24, 10], strides = [1, 1]} : vector<24x30xf32> to vector<24x10xf32>
    %612 = arith.addf %610, %611 : vector<24x10xf32>
    %613 = arith.negf %612 : vector<24x10xf32>
    %614 = math.exp %613 : vector<24x10xf32>
    %cst_410 = arith.constant 1.000000e+00 : f32
    %615 = vector.broadcast %cst_410 : f32 to vector<24x10xf32>
    %616 = arith.addf %615, %614 : vector<24x10xf32>
    %617 = arith.divf %615, %616 : vector<24x10xf32>
    %618 = vector.extract_strided_slice %604 {offsets = [0, 10], sizes = [24, 10], strides = [1, 1]} : vector<24x30xf32> to vector<24x10xf32>
    %619 = vector.extract_strided_slice %609 {offsets = [0, 10], sizes = [24, 10], strides = [1, 1]} : vector<24x30xf32> to vector<24x10xf32>
    %620 = arith.addf %618, %619 : vector<24x10xf32>
    %621 = arith.negf %620 : vector<24x10xf32>
    %622 = math.exp %621 : vector<24x10xf32>
    %cst_411 = arith.constant 1.000000e+00 : f32
    %623 = vector.broadcast %cst_411 : f32 to vector<24x10xf32>
    %624 = arith.addf %623, %622 : vector<24x10xf32>
    %625 = arith.divf %623, %624 : vector<24x10xf32>
    %626 = vector.extract_strided_slice %604 {offsets = [0, 20], sizes = [24, 10], strides = [1, 1]} : vector<24x30xf32> to vector<24x10xf32>
    %627 = vector.extract_strided_slice %609 {offsets = [0, 20], sizes = [24, 10], strides = [1, 1]} : vector<24x30xf32> to vector<24x10xf32>
    %628 = arith.mulf %617, %627 : vector<24x10xf32>
    %629 = arith.addf %626, %628 : vector<24x10xf32>
    %630 = math.tanh %629 : vector<24x10xf32>
    %cst_412 = arith.constant 1.000000e+00 : f32
    %631 = vector.broadcast %cst_412 : f32 to vector<24x10xf32>
    %632 = arith.subf %631, %625 : vector<24x10xf32>
    %633 = arith.mulf %632, %630 : vector<24x10xf32>
    %634 = arith.mulf %625, %543 : vector<24x10xf32>
    %635 = arith.addf %633, %634 : vector<24x10xf32>
    %636 = arith.truncf %635 : vector<24x10xf32> to vector<24x10xbf16>
    %c0_413 = arith.constant 0 : index
    %c0_414 = arith.constant 0 : index
    %637 = vector.load %arg18[%c0_413, %c0_414] : memref<10x9xbf16, #tpu.memory_space<vmem>>, vector<10x9xbf16>
    %cst_415 = arith.constant dense<0.000000e+00> : vector<24x9xf32>
    %638 = tpu.matmul %636, %637, %cst_415 {dimension_numbers = #tpu.dot_dimension_numbers<[1], [0], [0], [1], [0, 0, 1, 1], [], []>} : vector<24x10xbf16>, vector<10x9xbf16>, vector<24x9xf32> -> vector<24x9xf32>
    %c0_416 = arith.constant 0 : index
    %c0_417 = arith.constant 0 : index
    %639 = vector.load %arg19[%c0_416, %c0_417] : memref<1x9xf32, #tpu.memory_space<vmem>>, vector<1x9xf32>
    %640 = vector.broadcast %639 : vector<1x9xf32> to vector<24x9xf32>
    %641 = arith.addf %638, %640 : vector<24x9xf32>
    %c6 = arith.constant 6 : index
    %c0_418 = arith.constant 0 : index
    %c0_419 = arith.constant 0 : index
    %642 = vector.load %arg20[%c6, %c0_418, %c0_419] : memref<7x24x9xf32, #tpu.memory_space<vmem>>, vector<1x24x9xf32>
    %643 = vector.shape_cast %642 : vector<1x24x9xf32> to vector<24x9xf32>
    %644 = vector.shape_cast %641 : vector<24x9xf32> to vector<1x24x9xf32>
    tpu.vector_store %arg20[%c6, %c0_418, %c0_419], %644 {strides = array<i32>} : memref<7x24x9xf32, #tpu.memory_space<vmem>>, vector<1x24x9xf32>,
    return
  }
}

</mosaic_0001>

<bundles_post_ra>
// kernel: tpu_custom_call.1
= control target key start
LH: loop header
LB: loop body
LE: loop exit
PB: predicated region body
PF: predicated region fallthrough
CT: control target
= control target key end

     0   :  { %s9739_s0 = inlined_call_operand.vmem [shape: bf16[24,9], index: 0, kind: input, shape index: {}]   ;;  %s9740_s1 = inlined_call_operand.vmem [shape: bf16[64,24], index: 1, kind: input, shape index: {}]   ;;  %s9741_s2 = inlined_call_operand.vmem [shape: bf16[64,24], index: 2, kind: input, shape index: {}]   ;;  %s9742_s3 = inlined_call_operand.vmem [shape: bf16[24,64], index: 3, kind: input, shape index: {}]   ;;  %s9743_s4 = inlined_call_operand.vmem [shape: bf16[10,96], index: 4, kind: input, shape index: {}]   ;;  %s9744_s5 = inlined_call_operand.vmem [shape: bf16[10,96], index: 5, kind: input, shape index: {}]   ;;  %s9745_s6 = inlined_call_operand.vmem [shape: f32[1,96], index: 6, kind: input, shape index: {}]   ;;  %s9746_s7 = inlined_call_operand.vmem [shape: bf16[96,96], index: 7, kind: input, shape index: {}]   ;;  %s9747_s8 = inlined_call_operand.hbm [shape: f32[1,96], index: 8, kind: input, shape index: {}]   ;;  %s9748_s9 = inlined_call_operand.vmem [shape: bf16[96,96], index: 9, kind: input, shape index: {}]   ;;  %s9749_s10 = inlined_call_operand.hbm [shape: f32[1,96], index: 10, kind: input, shape index: {}]   ;;  %s9750_s11 = inlined_call_operand.vmem [shape: bf16[96,11], index: 11, kind: input, shape index: {}]   ;;  %s9751_s12 = inlined_call_operand.hbm [shape: f32[1,11], index: 12, kind: input, shape index: {}]   ;;  %s9752_s13 = inlined_call_operand.vmem [shape: bf16[11,30], index: 13, kind: input, shape index: {}]   ;;  %s9753_s14 = inlined_call_operand.vmem [shape: bf16[9,30], index: 14, kind: input, shape index: {}]   ;;  %s9754_s15 = inlined_call_operand.hbm [shape: bf16[10,30], index: 15, kind: input, shape index: {}]   ;;  %s9755_s16 = inlined_call_operand.hbm [shape: f32[1,30], index: 16, kind: input, shape index: {}]   ;;  %s9756_s17 = inlined_call_operand.hbm [shape: f32[1,30], index: 17, kind: input, shape index: {}]   ;;  %s9757_s18 = inlined_call_operand.vmem [shape: bf16[10,9], index: 18, kind: input, shape index: {}]   ;;  %s9758_s19 = inlined_call_operand.hbm [shape: f32[1,9], index: 19, kind: input, shape index: {}]   ;;  %s9759_s20 = inlined_call_operand.vmem [shape: f32[7,24,9], index: 20, kind: output, shape index: {}]  }
   0x1   :  { %9765 = sst [smem:[#allocation17_spill]] %s9739_s0 }
   0x2   :  { %9766 = sst [smem:[#allocation18_spill]] %s9740_s1 }
   0x3   :  { %9767 = sst [smem:[#allocation19_spill]] %s9741_s2 }
   0x4   :  { %9768 = sst [smem:[#allocation20_spill]] %s9742_s3 }
   0x5   :  { %9769 = sst [smem:[#allocation21_spill]] %s9743_s4 }
   0x6   :  { %25 = vsyncpa [#allocation3], 0 }
   0x7   :  { %26 = vsyncpa [#allocation5], 0 }
   0x8   :  { %27 = vsyncpa [#allocation8], 0  ;;  %s63_s23 = sshll.u32 %s9749_s10, 4  ;;  %s64_s23 = int_to_ptr.hbm [resolvable:$true] %s63_s23 }
   0x9   :  { %28 = vsyncpa [#allocation11], 0  ;;  %s8012_s24 = smov [#allocation4]   ;;  %s90_s26 = sshll.u32 %s9754_s15, 4  ;;  %s91_s26 = int_to_ptr.hbm [resolvable:$true] %s90_s26 }
   0xa   :  { %s65_s2 = sshll.u32 %s8012_s24, 4  ;;  %s8013_s27 = smov [#allocation7]   ;;  %s66_s2 = int_to_ptr.vmem [resolvable:$true] %s65_s2 }
   0xb   :  { %68 = dma.hbm_to_vmem [thread:$0]  %s64_s23, 16, %s66_s2, [#allocation5]  }
   0xc   :  { %s92_s28 = sshll.u32 %s8013_s27, 4  ;;  %s8014_s4 = smov 64   ;;  %s93_s28 = int_to_ptr.vmem [resolvable:$true] %s92_s28 }
   0xd   :  { %s8015_s29 = smov 4   ;;  %s115_s10 = sshll.u32 %s9756_s17, 4  ;;  %s116_s10 = int_to_ptr.hbm [resolvable:$true] %s115_s10 }
   0xe   :  { %98 = dma.hbm_to_vmem [thread:$0]  %s91_s26, 128, %s93_s28, [#allocation8], %s8014_s4, %s8014_s4, %s8015_s29  }
   0xf   :  { %s8016_s21 = smov [#allocation10]   ;;  %s50_s15 = sshll.u32 %s9747_s8, 4  ;;  %s51_s15 = int_to_ptr.hbm [resolvable:$true] %s50_s15 }
  0x10   :  { %s117_s1 = sshll.u32 %s8016_s21, 4  ;;  %s8017_s23 = smov [#allocation2]   ;;  %s118_s1 = int_to_ptr.vmem [resolvable:$true] %s117_s1 }
  0x11   :  { %120 = dma.hbm_to_vmem [thread:$0]  %s116_s10, 16, %s118_s1, [#allocation11]  }
  0x12   :  { %s52_s2 = sshll.u32 %s8017_s23, 4  ;;  %s76_s26 = sshll.u32 %s9751_s12, 4  ;;  %s53_s2 = int_to_ptr.vmem [resolvable:$true] %s52_s2  ;;  %s77_s26 = int_to_ptr.hbm [resolvable:$true] %s76_s26 }
  0x13   :  { %55 = dma.hbm_to_vmem [thread:$0]  %s51_s15, 16, %s53_s2, [#allocation3]  }
  0x14   :  { %s104_s28 = sshll.u32 %s9755_s16, 4  ;;  %s8018_s4 = smov [#allocation6]   ;;  %s105_s28 = int_to_ptr.hbm [resolvable:$true] %s104_s28 }
  0x15   :  { %s78_s29 = sshll.u32 %s8018_s4, 4  ;;  %s8019_s8 = smov [#allocation9]   ;;  %s79_s29 = int_to_ptr.vmem [resolvable:$true] %s78_s29 }
  0x16   :  { %81 = dma.hbm_to_vmem [thread:$0]  %s77_s26, 16, %s79_s29, [#allocation5]  }
  0x17   :  { %s106_s30 = sshll.u32 %s8019_s8, 4  ;;  %s128_s21 = sshll.u32 %s9758_s19, 4  ;;  %s107_s30 = int_to_ptr.vmem [resolvable:$true] %s106_s30  ;;  %s129_s21 = int_to_ptr.hbm [resolvable:$true] %s128_s21 }
  0x18   :  { %109 = dma.hbm_to_vmem [thread:$0]  %s105_s28, 16, %s107_s30, [#allocation8]  }
  0x19   :  { %s8020_s12 = smov [#allocation12]  }
  0x1a   :  { %s130_s1 = sshll.u32 %s8020_s12, 4  ;;  %s131_s1 = int_to_ptr.vmem [resolvable:$true] %s130_s1 }
  0x1b   :  { %133 = dma.hbm_to_vmem [thread:$0]  %s129_s21, 16, %s131_s1, [#allocation11]  }
  0x1c   :  { %8004 = dma.done.wait [#allocation3], 16  }
  0x1d   :  { %8005 = vsyncadd [#allocation3], 4294967280 }
  0x1e   :  { %8006 = dma.done.wait [#allocation5], 32  }
  0x1f   :  { %8007 = vsyncadd [#allocation5], 4294967264 }
  0x20   :  { %8008 = dma.done.wait [#allocation8], 144  }
  0x21   :  { %8009 = vsyncadd [#allocation8], 4294967152 }
  0x22   :  { %8010 = dma.done.wait [#allocation11], 32  }
  0x23   :  { %8011 = vsyncadd [#allocation11], 4294967264  ;;  %vm174_vm0 = vcmask 1044480   ;;  %s9770_s24 = sld [smem:[#allocation21_spill]]  ;;  %v6191_v2 = vld [vmem:[%s9744_s5] sm:$0xf] }
  0x24   :  { %v7409_v4 = vld [vmem:[%s9744_s5] sm:$0x10]  ;;  %v8021_v8 = vmov 0   ;;  %vm277_vm1 = vcmask 1043456   ;;  %s9771_s27 = sld [smem:[#allocation18_spill]]  ;;  %vm264_vm2 = vcmask 195584  }
  0x25   :  { %v6192_v5 = vor.u32 %v7409_v4, %v6191_v2  ;;  %s9772_s29 = sld [smem:[#allocation19_spill]]  ;;  %v7423_v27 = vld [vmem:[%s9746_s7 + $0x28] sm:$0xff]  ;;  %v7422_v28 = vld [vmem:[%s9746_s7 + $0x20] sm:$0xff]  ;;  %v7421_v33 = vld [vmem:[%s9746_s7 + $0x18] sm:$0xff]  ;;  %vm450_vm3 = vcmask 785408   ;;  %vm717_vm4 = vcmask 523264  }
  0x26   :  { %v7420_v34 = vld [vmem:[%s9746_s7 + $0x10] sm:$0xff]  ;;  %v7419_v35 = vld [vmem:[%s9746_s7 + $0x8] sm:$0xff]  ;;  %v7418_v36 = vld [vmem:[%s9746_s7] sm:$0xff]  ;;  %s9773_s3 = sld [smem:[#allocation20_spill]]  ;;  %vm806_vm5 = vcmask 1045504   ;;  %vm764_vm6 = vcmask 72704  }
  0x27   :  { %v206_v7 = vsel %vm174_vm0, %v6192_v5, 0  ;;  %v7661_v40 = vld [vmem:[%s9745_s6] ss:$0 sm:$0xff]  ;;  %v7429_v62 = vld [vmem:[%s9748_s9 + $0x28] sm:$0xff]  ;;  %s9774_s22 = sld [smem:[#allocation17_spill]]  ;;  %vm799_vm7 = vcmask 89088  }
  0x28   :  { %215 = vmatpush.bf16.msra.mxu1 %v206_v7  ;;  %v7428_v63 = vld [vmem:[%s9748_s9 + $0x20] sm:$0xff]  ;;  %s8023_s23 = smov 108   ;;  %s8024_s2 = smov 20  }
  0x29   :  { %v6187_v0 = vld [vmem:[%s9770_s24] sm:$0xf]  ;;  %v7408_v1 = vld [vmem:[%s9770_s24] sm:$0x10]  ;;  %s8025_s25 = smov 118  }
  0x2a   :  { %v6188_v3 = vor.u32 %v7408_v1, %v6187_v0  ;;  %v7410_v21 = vld [vmem:[%s9771_s27] sm:$0xff]  ;;  %v7411_v25 = vld [vmem:[%s9771_s27 + $0x8] sm:$0xff]  ;;  %v7412_v29 = vld [vmem:[%s9771_s27 + $0x10] sm:$0xff] }
  0x2b   :  { %216 = vmatmul.bf16.vlgmr.msra.gmra.mxu1 %v8021_v8  ;;  %v7414_v23 = vld [vmem:[%s9772_s29] sm:$0xff]  ;;  %v7415_v26 = vld [vmem:[%s9772_s29 + $0x8] sm:$0xff]  ;;  %v7416_v30 = vld [vmem:[%s9772_s29 + $0x10] sm:$0xff] }
  0x2c   :  { %v176_v6 = vsel %vm174_vm0, %v6188_v3, 0  ;;  %v7413_v31 = vld [vmem:[%s9771_s27 + $0x18] sm:$0xff]  ;;  %570 = vmatpush.bf16.msrb.mxu1 %v7429_v62 }
  0x2d   :  { %185 = vmatpush.bf16.msra.mxu0 %v176_v6  ;;  %v7417_v32 = vld [vmem:[%s9772_s29 + $0x18] sm:$0xff] }
  0x30   :  { %186 = vmatmul.bf16.vlgmr.msra.gmra.mxu0 %v8021_v8  ;;  %571 = vmatpush.bf16.msrb.mxu1 %v7428_v63 }
  0x31   :  { %465 = vmatpush.bf16.msrb.mxu0 %v7423_v27 }
  0x35   :  { %466 = vmatpush.bf16.msrb.mxu0 %v7422_v28 }
  0x39   :  { %467 = vmatpush.bf16.msrb.mxu0 %v7421_v33 }
  0x3b   :  { %221 = vmatmul.bf16.gmra.mxu1 %v8021_v8 }
  0x3d   :  { %468 = vmatpush.bf16.msrb.mxu0 %v7420_v34 }
  0x40   :  { %191 = vmatmul.bf16.gmra.mxu0 %v8021_v8 }
  0x41   :  { %469 = vmatpush.bf16.msrb.mxu0 %v7419_v35 }
  0x45   :  { %470 = vmatpush.bf16.msrb.mxu0 %v7418_v36 }
  0xa8   :  { %v217_v10 = vpop.f32.mrf.mxu1 }
  0xad   :  { %v187_v9 = vpop.f32.mrf.mxu0 }
  0xb0   :  { %v219_v12 = vpop.f32.mrf.mxu1 }
  0xb1   :  { %v226_v20 = vpack.c.bf16 %v219_v12, %v217_v10 }
  0xb5   :  { %v189_v11 = vpop.f32.mrf.mxu0 }
  0xb6   :  { %v196_v19 = vpack.c.bf16 %v189_v11, %v187_v9 }
  0xb8   :  { %v222_v15 = vpop.f32.mrf.mxu1 }
  0xb9   :  { %v227_v16 = vpack.c.bf16 %v222_v15, %v222_v15 }
  0xbb   :  { %v279_v18 = vsel %vm277_vm1, %v227_v16, 0 }
  0xbc   :  { %287 = vmatpush.bf16.msra.mxu2 %v279_v18 }
  0xbd   :  { %v192_v13 = vpop.f32.mrf.mxu0 }
  0xbe   :  { %v197_v14 = vpack.c.bf16 %v192_v13, %v192_v13 }
  0xc0   :  { %v343_v17 = vsel %vm277_vm1, %v197_v14, 0  ;;  %v224_v24 = vpop.f32.mrf.mxu1  ;;  %288 = vmatpush.bf16.msra.mxu2 %v226_v20 }
  0xc1   :  { %351 = vmatpush.bf16.msra.mxu3 %v343_v17  ;;  %v7424_v24 = vld [vmem:[%s9748_s9] sm:$0xff] }
  0xc3   :  { %6209 = vmatmul.msk.bf16.vlgmr.msra.gmra.mxu2 %vm264_vm2, %v7414_v23  ;;  %v7425_v23 = vld [vmem:[%s9748_s9 + $0x8] sm:$0xff] }
  0xc5   :  { %v194_v22 = vpop.f32.mrf.mxu0  ;;  %352 = vmatpush.bf16.msra.mxu3 %v196_v19 }
  0xc6   :  { %v7426_v22 = vld [vmem:[%s9748_s9 + $0x10] sm:$0xff] }
  0xc8   :  { %6229 = vmatmul.msk.bf16.vlgmr.msra.gmra.mxu3 %vm264_vm2, %v7410_v21  ;;  %v7427_v21 = vld [vmem:[%s9748_s9 + $0x18] sm:$0xff] }
  0xc9   :  { %572 = vmatpush.bf16.msrb.mxu1 %v7427_v21 }
  0xcd   :  { %573 = vmatpush.bf16.msrb.mxu1 %v7426_v22 }
  0xd1   :  { %574 = vmatpush.bf16.msrb.mxu1 %v7425_v23 }
  0xd3   :  { %6210 = vmatmul.msk.bf16.gmra.mxu2 %vm264_vm2, %v7415_v26  ;;  %v7662_v26 = vld [vmem:[#allocation2] ss:$0 sm:$0xff] }
  0xd5   :  { %575 = vmatpush.bf16.msrb.mxu1 %v7424_v24 }
  0xd8   :  { %6230 = vmatmul.msk.bf16.gmra.mxu3 %vm264_vm2, %v7411_v25 }
  0xe3   :  { %6211 = vmatmul.msk.bf16.gmra.mxu2 %vm264_vm2, %v7416_v30 }
  0xe8   :  { %6231 = vmatmul.msk.bf16.gmra.mxu3 %vm264_vm2, %v7412_v29 }
  0xf3   :  { %6212 = vmatmul.msk.bf16.gmra.mxu2 %vm264_vm2, %v7417_v32 }
  0xf8   :  { %6232 = vmatmul.msk.bf16.gmra.mxu3 %vm264_vm2, %v7413_v31 }
 0x146   :  { %v290_v38 = vpop.f32.mrf.mxu2 }
 0x14b   :  { %v354_v37 = vpop.f32.mrf.mxu3 }
 0x14c   :  { %v355_v39 = vadd.f32 %v354_v37, %v290_v38 }
 0x14e   :  { %v292_v42 = vpop.f32.mrf.mxu2  ;;  %v378_v43 = vadd.f32 %v7661_v40, %v355_v39 }
 0x150   :  { %v386_v46 = vmax.f32 %v378_v43, 0.0 }
 0x153   :  { %v356_v41 = vpop.f32.mrf.mxu3 }
 0x154   :  { %v357_v44 = vadd.f32 %v356_v41, %v292_v42  ;;  %v7434_v42 = vld [vmem:[%s9750_s11 + $0x20] sm:$0xff] }
 0x156   :  { %v379_v45 = vadd.f32 %v7661_v40, %v357_v44  ;;  %v295_v50 = vpop.f32.mrf.mxu2 }
 0x158   :  { %v387_v47 = vmax.f32 %v379_v45, 0.0 }
 0x15a   :  { %v394_v48 = vpack.c.bf16 %v387_v47, %v386_v46 }
 0x15b   :  { %v359_v49 = vpop.f32.mrf.mxu3 }
 0x15c   :  { %6257 = vmatmul.msk.bf16.vlgmr.msrb.gmra.mxu0 %vm450_vm3, %v394_v48  ;;  %v360_v51 = vadd.f32 %v359_v49, %v295_v50 }
 0x15e   :  { %v297_v53 = vpop.f32.mrf.mxu2  ;;  %v380_v54 = vadd.f32 %v7661_v40, %v360_v51 }
 0x160   :  { %v388_v57 = vmax.f32 %v380_v54, 0.0 }
 0x163   :  { %v361_v52 = vpop.f32.mrf.mxu3 }
 0x164   :  { %v362_v55 = vadd.f32 %v361_v52, %v297_v53 }
 0x166   :  { %v381_v56 = vadd.f32 %v7661_v40, %v362_v55  ;;  %v300_v61 = vpop.f32.mrf.mxu2 }
 0x168   :  { %v389_v58 = vmax.f32 %v381_v56, 0.0  ;;  %v7433_v56 = vld [vmem:[%s9750_s11 + $0x18] sm:$0xff] }
 0x16a   :  { %v395_v60 = vpack.c.bf16 %v389_v58, %v388_v57  ;;  %v7432_v57 = vld [vmem:[%s9750_s11 + $0x10] sm:$0xff]  ;;  %v7431_v58 = vld [vmem:[%s9750_s11 + $0x8] sm:$0xff] }
 0x16b   :  { %v364_v59 = vpop.f32.mrf.mxu3 }
 0x16c   :  { %6258 = vmatmul.msk.bf16.gmra.mxu0 %vm450_vm3, %v395_v60  ;;  %v365_v0 = vadd.f32 %v364_v59, %v300_v61  ;;  %v7430_v59 = vld [vmem:[%s9750_s11] sm:$0xff] }
 0x16d   :  { %v7663_v61 = vld [vmem:[#allocation4] ss:$0 sm:$0xff] }
 0x16e   :  { %v302_v2 = vpop.f32.mrf.mxu2  ;;  %v382_v3 = vadd.f32 %v7661_v40, %v365_v0 }
 0x170   :  { %v390_v6 = vmax.f32 %v382_v3, 0.0 }
 0x173   :  { %v366_v1 = vpop.f32.mrf.mxu3 }
 0x174   :  { %v367_v4 = vadd.f32 %v366_v1, %v302_v2 }
 0x176   :  { %v383_v5 = vadd.f32 %v7661_v40, %v367_v4  ;;  %v305_v11 = vpop.f32.mrf.mxu2 }
 0x178   :  { %v391_v7 = vmax.f32 %v383_v5, 0.0 }
 0x17a   :  { %v396_v10 = vpack.c.bf16 %v391_v7, %v390_v6 }
 0x17b   :  { %v369_v9 = vpop.f32.mrf.mxu3 }
 0x17c   :  { %6259 = vmatmul.msk.bf16.gmra.mxu0 %vm450_vm3, %v396_v10  ;;  %v370_v12 = vadd.f32 %v369_v9, %v305_v11 }
 0x17e   :  { %v307_v14 = vpop.f32.mrf.mxu2  ;;  %v384_v15 = vadd.f32 %v7661_v40, %v370_v12 }
 0x180   :  { %v392_v18 = vmax.f32 %v384_v15, 0.0 }
 0x183   :  { %v371_v13 = vpop.f32.mrf.mxu3 }
 0x184   :  { %v372_v16 = vadd.f32 %v371_v13, %v307_v14 }
 0x186   :  { %v385_v17 = vadd.f32 %v7661_v40, %v372_v16  ;;  %v7435_v40 = vld [vmem:[%s9750_s11 + $0x28] sm:$0xff] }
 0x187   :  { %675 = vmatpush.bf16.msrb.mxu2 %v7435_v40 }
 0x188   :  { %v393_v19 = vmax.f32 %v385_v17, 0.0 }
 0x18a   :  { %v397_v20 = vpack.c.bf16 %v393_v19, %v392_v18 }
 0x18b   :  { %676 = vmatpush.bf16.msrb.mxu2 %v7434_v42  ;;  %v6341_v42 = vld [vmem:[#allocation7] sm:$0xf] }
 0x18c   :  { %6260 = vmatmul.msk.bf16.gmra.mxu0 %vm450_vm3, %v397_v20 }
 0x18f   :  { %677 = vmatpush.bf16.msrb.mxu2 %v7433_v56  ;;  %v7439_v56 = vld [vmem:[%s9753_s14] sm:$0x10] }
 0x193   :  { %678 = vmatpush.bf16.msrb.mxu2 %v7432_v57 }
 0x197   :  { %679 = vmatpush.bf16.msrb.mxu2 %v7431_v58  ;;  %v8022_v58 = vmov 65535  }
 0x19b   :  { %680 = vmatpush.bf16.msrb.mxu2 %v7430_v59  ;;  %v771_v59 = vsel %vm277_vm1, 4294967295, %v8022_v58 }
 0x1d9   :  { %v472_v25 = vpop.f32.mrf.mxu0 }
 0x1da   :  { %v473_v27 = vadd.f32 %v7662_v26, %v472_v25 }
 0x1dc   :  { %v492_v30 = vmax.f32 %v473_v27, 0.0 }
 0x1e1   :  { %v474_v28 = vpop.f32.mrf.mxu0 }
 0x1e2   :  { %v475_v29 = vadd.f32 %v7662_v26, %v474_v28 }
 0x1e4   :  { %v493_v31 = vmax.f32 %v475_v29, 0.0 }
 0x1e6   :  { %v500_v32 = vpack.c.bf16 %v493_v31, %v492_v30 }
 0x1e8   :  { %6285 = vmatmul.msk.bf16.vlgmr.msrb.gmra.mxu1 %vm450_vm3, %v500_v32 }
 0x1e9   :  { %v477_v33 = vpop.f32.mrf.mxu0 }
 0x1ea   :  { %v478_v34 = vadd.f32 %v7662_v26, %v477_v33  ;;  %v7664_v33 = vld [vmem:[#allocation6] ss:$0 sm:$0xff] }
 0x1ec   :  { %v494_v37 = vmax.f32 %v478_v34, 0.0 }
 0x1f1   :  { %v479_v35 = vpop.f32.mrf.mxu0 }
 0x1f2   :  { %v480_v36 = vadd.f32 %v7662_v26, %v479_v35 }
 0x1f4   :  { %v495_v38 = vmax.f32 %v480_v36, 0.0 }
 0x1f6   :  { %v501_v39 = vpack.c.bf16 %v495_v38, %v494_v37 }
 0x1f8   :  { %6286 = vmatmul.msk.bf16.gmra.mxu1 %vm450_vm3, %v501_v39 }
 0x1f9   :  { %v482_v41 = vpop.f32.mrf.mxu0 }
 0x1fa   :  { %v483_v43 = vadd.f32 %v7662_v26, %v482_v41 }
 0x1fc   :  { %v496_v46 = vmax.f32 %v483_v43, 0.0  ;;  %v7440_v43 = vld [vmem:[#allocation7] sm:$0x10] }
 0x201   :  { %v484_v44 = vpop.f32.mrf.mxu0 }
 0x202   :  { %v485_v45 = vadd.f32 %v7662_v26, %v484_v44 }
 0x204   :  { %v497_v47 = vmax.f32 %v485_v45, 0.0 }
 0x206   :  { %v502_v48 = vpack.c.bf16 %v497_v47, %v496_v46  ;;  %v6342_v47 = vor.u32 %v7440_v43, %v6341_v42 }
 0x208   :  { %6287 = vmatmul.msk.bf16.gmra.mxu1 %vm450_vm3, %v502_v48 }
 0x209   :  { %v487_v49 = vpop.f32.mrf.mxu0 }
 0x20a   :  { %v488_v50 = vadd.f32 %v7662_v26, %v487_v49 }
 0x20c   :  { %v498_v53 = vmax.f32 %v488_v50, 0.0  ;;  %v849_v50 = vsel %vm174_vm0, %v6342_v47, 0 }
 0x211   :  { %v489_v51 = vpop.f32.mrf.mxu0 }
 0x212   :  { %v490_v52 = vadd.f32 %v7662_v26, %v489_v51  ;;  %v7436_v51 = vld [vmem:[%s9773_s3] sm:$0xff] }
 0x214   :  { %v499_v54 = vmax.f32 %v490_v52, 0.0  ;;  %v704_v52 = vld [vmem:[%s9773_s3 + $0x8] sm:$0xf] }
 0x216   :  { %v503_v55 = vpack.c.bf16 %v499_v54, %v498_v53  ;;  %v714_v53 = vunpack.c.l.b16 %v704_v52 }
 0x218   :  { %6288 = vmatmul.msk.bf16.gmra.mxu1 %vm450_vm3, %v503_v55  ;;  %v716_v54 = vpack.c.b16 %v714_v53, %v714_v53  ;;  %v6329_v55 = vld [vmem:[%s9753_s14] sm:$0xf] }
 0x219   :  { %v6330_v57 = vor.u32 %v7439_v56, %v6329_v55 }
 0x265   :  { %v577_v60 = vpop.f32.mrf.mxu1 }
 0x266   :  { %v578_v62 = vadd.f32 %v7663_v61, %v577_v60  ;;  %v6335_v60 = vld [vmem:[%s9752_s13] sm:$0xf] }
 0x268   :  { %v597_v1 = vmax.f32 %v578_v62, 0.0  ;;  %v807_v62 = vsel %vm174_vm0, 4294967295, %v8022_v58 }
 0x26d   :  { %v579_v63 = vpop.f32.mrf.mxu1 }
 0x26e   :  { %v580_v0 = vadd.f32 %v7663_v61, %v579_v63  ;;  %v8297_v63 = vsel %vm174_vm0, %v771_v59, 0 }
 0x270   :  { %v598_v2 = vmax.f32 %v580_v0, 0.0 }
 0x272   :  { %v605_v3 = vpack.c.bf16 %v598_v2, %v597_v1  ;;  %v8299_v1 = vsel %vm806_vm5, %v807_v62, 0  ;;  %v774_v2 = vand.u32 %v6330_v57, %v8297_v63 }
 0x274   :  { %6313 = vmatmul.msk.bf16.vlgmr.msrb.gmra.mxu2 %vm450_vm3, %v605_v3  ;;  %783 = vmatpush.bf16.msra.mxu0 %v774_v2 }
 0x275   :  { %v582_v4 = vpop.f32.mrf.mxu1 }
 0x276   :  { %v583_v5 = vadd.f32 %v7663_v61, %v582_v4  ;;  %v7438_v4 = vld [vmem:[%s9774_s22] sm:$0xff] }
 0x277   :  { %6331 = vmatmul.msk.bf16.vlgmr.msra.gmra.mxu0 %vm764_vm6, %v7438_v4 }
 0x278   :  { %v599_v9 = vmax.f32 %v583_v5, 0.0  ;;  %v748_v5 = vld [vmem:[%s9774_s22 + $0x8] sm:$0xf] }
 0x27d   :  { %v584_v6 = vpop.f32.mrf.mxu1 }
 0x27e   :  { %v585_v7 = vadd.f32 %v7663_v61, %v584_v6  ;;  %v756_v6 = vunpack.c.l.b16 %v748_v5 }
 0x280   :  { %v600_v10 = vmax.f32 %v585_v7, 0.0  ;;  %v758_v7 = vpack.c.b16 %v756_v6, %v756_v6 }
 0x282   :  { %v606_v11 = vpack.c.bf16 %v600_v10, %v599_v9 }
 0x284   :  { %6314 = vmatmul.msk.bf16.gmra.mxu2 %vm450_vm3, %v606_v11 }
 0x285   :  { %v587_v12 = vpop.f32.mrf.mxu1 }
 0x286   :  { %v588_v13 = vadd.f32 %v7663_v61, %v587_v12 }
 0x287   :  { %6332 = vmatmul.msk.bf16.gmra.mxu0 %vm764_vm6, %v758_v7 }
 0x288   :  { %v601_v16 = vmax.f32 %v588_v13, 0.0 }
 0x28d   :  { %v589_v14 = vpop.f32.mrf.mxu1 }
 0x28e   :  { %v590_v15 = vadd.f32 %v7663_v61, %v589_v14  ;;  %v7665_v14 = vld [vmem:[#allocation10] ss:$0 sm:$0xff] }
 0x290   :  { %v602_v17 = vmax.f32 %v590_v15, 0.0 }
 0x292   :  { %v607_v18 = vpack.c.bf16 %v602_v17, %v601_v16 }
 0x294   :  { %6315 = vmatmul.msk.bf16.gmra.mxu2 %vm450_vm3, %v607_v18 }
 0x295   :  { %v592_v19 = vpop.f32.mrf.mxu1 }
 0x296   :  { %v593_v20 = vadd.f32 %v7663_v61, %v592_v19 }
 0x298   :  { %v603_v23 = vmax.f32 %v593_v20, 0.0 }
 0x29d   :  { %v594_v21 = vpop.f32.mrf.mxu1 }
 0x29e   :  { %v595_v22 = vadd.f32 %v7663_v61, %v594_v21  ;;  %v7437_v61 = vld [vmem:[%s9752_s13] sm:$0x30] }
 0x29f   :  { %v6336_v0 = vor.u32 %v7437_v61, %v6335_v60 }
 0x2a0   :  { %v604_v24 = vmax.f32 %v595_v22, 0.0 }
 0x2a1   :  { %v810_v3 = vand.u32 %v6336_v0, %v8299_v1 }
 0x2a2   :  { %v608_v25 = vpack.c.bf16 %v604_v24, %v603_v23 }
 0x2a3   :  { %819 = vmatpush.bf16.msra.mxu1 %v810_v3 }
 0x2a4   :  { %6316 = vmatmul.msk.bf16.gmra.mxu2 %vm450_vm3, %v608_v25 }
 0x2f4   :  { %v785_v22 = vpop.f32.mrf.mxu0 }
 0x2f7   :  { %v682_v26 = vpop.f32.mrf.mxu2 }
 0x2f8   :  { %v683_v48 = vadd.f32 %v7664_v33, %v682_v26  ;;  %v7666_v26 = vld [vmem:[#allocation9] ss:$0 sm:$0xff] }
 0x2fc   :  { %v787_v23 = vpop.f32.mrf.mxu0 }
 0x2ff   :  { %v684_v27 = vpop.f32.mrf.mxu2 }
 0x300   :  { %v685_v45 = vadd.f32 %v7664_v33, %v684_v27 }
 0x302   :  { %v705_v49 = vpack.c.bf16 %v685_v45, %v683_v48 }
 0x304   :  { %v790_v24 = vpop.f32.mrf.mxu0 }
 0x307   :  { %v687_v28 = vpop.f32.mrf.mxu2 }
 0x308   :  { %v688_v44 = vadd.f32 %v7664_v33, %v687_v28 }
 0x30c   :  { %v792_v25 = vpop.f32.mrf.mxu0 }
 0x30f   :  { %v689_v29 = vpop.f32.mrf.mxu2 }
 0x310   :  { %v690_v40 = vadd.f32 %v7664_v33, %v689_v29 }
 0x312   :  { %v706_v46 = vpack.c.bf16 %v690_v40, %v688_v44 }
 0x317   :  { %v692_v30 = vpop.f32.mrf.mxu2 }
 0x318   :  { %v693_v39 = vadd.f32 %v7664_v33, %v692_v30 }
 0x31f   :  { %v694_v31 = vpop.f32.mrf.mxu2 }
 0x320   :  { %v695_v37 = vadd.f32 %v7664_v33, %v694_v31 }
 0x322   :  { %v707_v41 = vpack.c.bf16 %v695_v37, %v693_v39 }
 0x327   :  { %v697_v32 = vpop.f32.mrf.mxu2 }
 0x328   :  { %v698_v35 = vadd.f32 %v7664_v33, %v697_v32 }
 0x32f   :  { %v699_v34 = vpop.f32.mrf.mxu2 }
 0x330   :  { %v700_v36 = vadd.f32 %v7664_v33, %v699_v34 }
 0x332   :  { %v708_v38 = vpack.c.bf16 %v700_v36, %v698_v35 }
 0x334   :  { %728 = vmatpush.bf16.msrb.mxu3 %v708_v38 }
 0x338   :  { %729 = vmatpush.bf16.msrb.mxu3 %v707_v41 }
 0x33c   :  { %730 = vmatpush.bf16.msrb.mxu3 %v706_v46 }
 0x340   :  { %731 = vmatpush.bf16.msrb.mxu3 %v705_v49 }
 0x343   :  { %6321 = vmatmul.msk.bf16.vlgmr.msrb.gmra.mxu3 %vm717_vm4, %v7436_v51 }
 0x344   :  { %858 = vmatpush.bf16.msra.mxu3 %v849_v50 }
 0x353   :  { %6322 = vmatmul.msk.bf16.gmra.mxu3 %vm717_vm4, %v716_v54 }
 0x363   :  { %859 = vmatmul.bf16.vlgmr.msra.gmra.mxu3 %v8021_v8 }
 0x373   :  { %864 = vmatmul.bf16.gmra.mxu3 %v8021_v8 }
 0x3c6   :  { %v733_v9 = vpop.f32.mrf.mxu3 }
 0x3ce   :  { %v735_v10 = vpop.f32.mrf.mxu3 }
 0x3cf   :  { %v742_v11 = vpack.c.bf16 %v735_v10, %v733_v9 }
 0x3d1   :  { %6337 = vmatmul.msk.bf16.vlgmr.msra.gmra.mxu1 %vm799_vm7, %v742_v11 }
 0x3d6   :  { %v738_v8 = vpop.f32.mrf.mxu3 }
 0x3d7   :  { %v743_v12 = vpack.c.bf16 %v738_v8, %v738_v8 }
 0x3de   :  { %v740_v13 = vpop.f32.mrf.mxu3 }
 0x3e1   :  { %6338 = vmatmul.msk.bf16.gmra.mxu1 %vm799_vm7, %v743_v12 }
 0x3e6   :  { %v860_v15 = vpop.f32.mrf.mxu3 }
 0x3e7   :  { %v861_v16 = vadd.f32 %v7665_v14, %v860_v15 }
 0x3e9   :  { %932 = vrot.lane.b32.xlu0 %v861_v16, %s8023_s23 }
 0x3ee   :  { %v862_v17 = vpop.f32.mrf.mxu3 }
 0x3ef   :  { %v863_v18 = vadd.f32 %v7665_v14, %v862_v17 }
 0x3f1   :  { %934 = vrot.lane.b32.xlu0 %v863_v18, %s8023_s23 }
 0x3f6   :  { %v865_v19 = vpop.f32.mrf.mxu3 }
 0x3f7   :  { %v866_v20 = vadd.f32 %v7665_v14, %v865_v19 }
 0x3f9   :  { %936 = vrot.lane.b32.xlu1 %v866_v20, %s8023_s23 }
 0x3fe   :  { %v867_v21 = vpop.f32.mrf.mxu3 }
 0x44e   :  { %v821_v27 = vpop.f32.mrf.mxu1 }
 0x44f   :  { %v822_v28 = vadd.f32 %v821_v27, %v785_v22 }
 0x451   :  { %v8318_v29 = vadd.f32 %v7666_v26, %v822_v28 }
 0x453   :  { %v869_v30 = vadd.f32 %v861_v16, %v8318_v29 }
 0x455   :  { %v6343_v31 = vmul.f32 -1.442695, %v869_v30 }
 0x456   :  { %v823_v32 = vpop.f32.mrf.mxu1 }
 0x457   :  { %7710 = vpow2.f32 %v6343_v31  ;;  %v824_v33 = vadd.f32 %v823_v32, %v787_v23 }
 0x459   :  { %v8321_v34 = vadd.f32 %v7666_v26, %v824_v33 }
 0x45b   :  { %v870_v35 = vadd.f32 %v863_v18, %v8321_v34  ;;  %v933_v57 = vpop.permute.xlu0 %932 }
 0x45d   :  { %v7711_v36 = vpop.eup %7710  ;;  %v6344_v37 = vmul.f32 -1.442695, %v870_v35 }
 0x45e   :  { %v881_v38 = vadd.f32 1.0, %v7711_v36  ;;  %v826_v39 = vpop.f32.mrf.mxu1 }
 0x45f   :  { %7712 = vpow2.f32 %v6344_v37  ;;  %v827_v40 = vadd.f32 %v826_v39, %v790_v24 }
 0x460   :  { %7714 = vrcp.f32 %v881_v38  ;;  %v895_v50 = vand.u32 2147483648, %v881_v38  ;;  %v893_v52 = vand.u32 2147483647, %v881_v38  ;;  %vm889_vm9 = vweird.f32 %v881_v38 }
 0x461   :  { %v8324_v41 = vadd.f32 %v7666_v26, %v827_v40 }
 0x462   :  { %v896_v58 = vor.u32 1.1754944e-38, %v895_v50  ;;  %vm894_vm11 = vcmp.eq.f32.partialorder %v893_v52, 8.507059e+37  ;;  %v7443_v50 = vld [vmem:[%s9744_s5] sm:$0x10] }
 0x463   :  { %v871_v42 = vadd.f32 %v866_v20, %v8324_v41  ;;  %v935_v8 = vpop.permute.xlu0 %934 }
 0x465   :  { %v7713_v43 = vpop.eup %7712  ;;  %v6345_v44 = vmul.f32 -1.442695, %v871_v42 }
 0x466   :  { %v7715_v45 = vpop.eup %7714  ;;  %v882_v46 = vadd.f32 1.0, %v7713_v43  ;;  %v828_v47 = vpop.f32.mrf.mxu1 }
 0x467   :  { %7716 = vpow2.f32 %v6345_v44  ;;  %v885_v48 = vmul.f32 %v7715_v45, %v881_v38  ;;  %vm890_vm8 = vweird.f32 %v7715_v45 }
 0x468   :  { %7718 = vrcp.f32 %v882_v46  ;;  %vm891_vm10 = vmor %vm889_vm9, %vm890_vm8  ;;  %v910_v2 = vand.u32 2147483648, %v882_v46  ;;  %v908_v4 = vand.u32 2147483647, %v882_v46  ;;  %vm904_vm13 = vweird.f32 %v882_v46 }
 0x469   :  { %v886_v49 = vsub.f32 1.0, %v885_v48 }
 0x46a   :  { %v911_v7 = vor.u32 1.1754944e-38, %v910_v2  ;;  %vm909_vm15 = vcmp.eq.f32.partialorder %v908_v4, 8.507059e+37 }
 0x46b   :  { %v887_v51 = vmul.f32 %v7715_v45, %v886_v49  ;;  %v937_v18 = vpop.permute.xlu1 %936  ;;  %v6360_v49 = vld [vmem:[%s9744_s5] sm:$0xf] }
 0x46c   :  { %v6361_v52 = vor.u32 %v7443_v50, %v6360_v49 }
 0x46d   :  { %v7717_v53 = vpop.eup %7716  ;;  %v888_v54 = vadd.f32 %v7715_v45, %v887_v51  ;;  %v6348_v51 = vld [vmem:[%s9757_s18] sm:$0xf] }
 0x46e   :  { %v7719_v55 = vpop.eup %7718  ;;  %v883_v56 = vadd.f32 1.0, %v7717_v53  ;;  %v7441_v53 = vld [vmem:[%s9757_s18] sm:$0x10] }
 0x46f   :  { %v892_v59 = vsel %vm891_vm10, %v7715_v45, %v888_v54  ;;  %v900_v60 = vmul.f32 %v7719_v55, %v882_v46  ;;  %vm905_vm12 = vweird.f32 %v7719_v55  ;;  %v6354_v54 = vld [vmem:[%s9770_s24] sm:$0xf] }
 0x470   :  { %7720 = vrcp.f32 %v883_v56  ;;  %v8327_v61 = vsel %vm894_vm11, %v896_v58, %v892_v59  ;;  %vm906_vm14 = vmor %vm904_vm13, %vm905_vm12  ;;  %v925_v14 = vand.u32 2147483648, %v883_v56  ;;  %v923_v16 = vand.u32 2147483647, %v883_v56 }
 0x471   :  { %v941_v62 = vmul.f32 %v933_v57, %v8327_v61  ;;  %v901_v0 = vsub.f32 1.0, %v900_v60  ;;  %vm919_vm8 = vweird.f32 %v883_v56  ;;  %v980_v44 = vmul.f32 0.0, %v8327_v61 }
 0x472   :  { %v926_v19 = vor.u32 1.1754944e-38, %v925_v14  ;;  %vm924_vm10 = vcmp.eq.f32.partialorder %v923_v16, 8.507059e+37  ;;  %v1073_v58 = vsel %vm174_vm0, %v6361_v52, 0  ;;  %vm170_vm11 = vcmask 80896  }
 0x473   :  { %v902_v3 = vmul.f32 %v7719_v55, %v901_v0  ;;  %947 = vrot.lane.b32.xlu1 %v941_v62, %s8024_s2  ;;  %1082 = vmatpush.bf16.msra.mxu2 %v1073_v58  ;;  %v7667_v0 = vld [vmem:[#allocation12] ss:$0 sm:$0xff] }
 0x475   :  { %v903_v5 = vadd.f32 %v7719_v55, %v902_v3 }
 0x476   :  { %v7721_v6 = vpop.eup %7720 }
 0x477   :  { %v907_v9 = vsel %vm906_vm14, %v7719_v55, %v903_v5  ;;  %v915_v10 = vmul.f32 %v7721_v6, %v883_v56  ;;  %vm920_vm5 = vweird.f32 %v7721_v6  ;;  %v7442_v55 = vld [vmem:[%s9770_s24] sm:$0x10]  ;;  %v6349_v56 = vor.u32 %v7441_v53, %v6348_v51 }
 0x478   :  { %v912_v11 = vsel %vm909_vm15, %v911_v7, %v907_v9  ;;  %vm921_vm9 = vmor %vm919_vm8, %vm920_vm5  ;;  %v6355_v57 = vor.u32 %v7442_v55, %v6354_v54 }
 0x479   :  { %v942_v12 = vmul.f32 %v935_v8, %v912_v11  ;;  %v916_v13 = vsub.f32 1.0, %v915_v10  ;;  %v963_v40 = vsub.f32 1.0, %v912_v11  ;;  %v981_v43 = vmul.f32 0.0, %v912_v11 }
 0x47a   :  { %v1012_v59 = vsel %vm174_vm0, %v6349_v56, 0  ;;  %v1043_v60 = vsel %vm174_vm0, %v6355_v57, 0 }
 0x47b   :  { %949 = vrot.lane.b32.xlu2 %v942_v12, %s8024_s2  ;;  %v917_v15 = vmul.f32 %v7721_v6, %v916_v13  ;;  %1021 = vmatpush.bf16.msrb.mxu0 %v1012_v59 }
 0x47c   :  { %1052 = vmatpush.bf16.msrb.mxu1 %v1043_v60 }
 0x47d   :  { %v918_v17 = vadd.f32 %v7721_v6, %v917_v15 }
 0x47f   :  { %v922_v20 = vsel %vm921_vm9, %v7721_v6, %v918_v17  ;;  %v7444_v17 = vld [vmem:[%s9771_s27] sm:$0xff] }
 0x480   :  { %v927_v21 = vsel %vm924_vm10, %v926_v19, %v922_v20 }
 0x481   :  { %v943_v22 = vmul.f32 %v937_v18, %v927_v21  ;;  %v964_v33 = vsub.f32 1.0, %v927_v21  ;;  %v982_v35 = vmul.f32 0.0, %v927_v21 }
 0x483   :  { %951 = vrot.lane.b32.xlu2 %v943_v22, %s8024_s2 }
 0x4d5   :  { %v950_v23 = vpop.permute.xlu2 %949 }
 0x4d6   :  { %v957_v24 = vadd.f32 %v950_v23, %v8321_v34  ;;  %v7448_v23 = vld [vmem:[%s9772_s29] sm:$0xff] }
 0x4d8   :  { %7722 = vtanh.f32 %v957_v24 }
 0x4dd   :  { %v952_v25 = vpop.permute.xlu2 %951 }
 0x4de   :  { %v7723_v26 = vpop.eup %7722  ;;  %v958_v27 = vadd.f32 %v952_v25, %v8324_v41  ;;  %v962_v41 = vsub.f32 1.0, %v8327_v61  ;;  %v7445_v25 = vld [vmem:[%s9771_s27 + $0x8] sm:$0xff] }
 0x4df   :  { %970 = vrot.lane.b32.xlu1 %v7723_v26, %s8025_s25  ;;  %v7449_v26 = vld [vmem:[%s9772_s29 + $0x8] sm:$0xff] }
 0x4e0   :  { %7724 = vtanh.f32 %v958_v27  ;;  %v7446_v27 = vld [vmem:[%s9771_s27 + $0x10] sm:$0xff] }
 0x4e5   :  { %v948_v28 = vpop.permute.xlu1 %947 }
 0x4e6   :  { %v7725_v30 = vpop.eup %7724  ;;  %v956_v31 = vadd.f32 %v948_v28, %v8318_v29  ;;  %v7450_v28 = vld [vmem:[%s9772_s29 + $0x10] sm:$0xff] }
 0x4e7   :  { %972 = vrot.lane.b32.xlu2 %v7725_v30, %s8025_s25  ;;  %v7447_v30 = vld [vmem:[%s9771_s27 + $0x18] sm:$0xff] }
 0x4e8   :  { %7726 = vtanh.f32 %v956_v31  ;;  %v7451_v31 = vld [vmem:[%s9772_s29 + $0x18] sm:$0xff] }
 0x4ee   :  { %v7727_v32 = vpop.eup %7726 }
 0x4ef   :  { %968 = vrot.lane.b32.xlu0 %v7727_v32, %s8025_s25  ;;  %v7457_v32 = vld [vmem:[%s9746_s7 + $0x28] sm:$0xff] }
 0x4f0   :  { %1329 = vmatpush.bf16.msra.mxu1 %v7457_v32 }
 0x541   :  { %v973_v34 = vpop.permute.xlu2 %972 }
 0x542   :  { %v979_v36 = vmul.f32 %v973_v34, %v964_v33  ;;  %v7456_v33 = vld [vmem:[%s9746_s7 + $0x20] sm:$0xff]  ;;  %v7455_v34 = vld [vmem:[%s9746_s7 + $0x18] sm:$0xff] }
 0x543   :  { %1330 = vmatpush.bf16.msra.mxu1 %v7456_v33  ;;  %v7669_v33 = vld [vmem:[#allocation2] ss:$0 sm:$0xff] }
 0x544   :  { %v8339_v37 = vadd.f32 %v982_v35, %v979_v36  ;;  %v7454_v35 = vld [vmem:[%s9746_s7 + $0x10] sm:$0xff]  ;;  %v7453_v36 = vld [vmem:[%s9746_s7 + $0x8] sm:$0xff] }
 0x546   :  { %v987_v38 = vpack.c.bf16 %v8339_v37, %v8339_v37 }
 0x547   :  { %1331 = vmatpush.bf16.msra.mxu1 %v7455_v34 }
 0x548   :  { %998 = vrot.lane.b32.xlu1 %v987_v38, %s8025_s25  ;;  %v7452_v38 = vld [vmem:[%s9746_s7] sm:$0xff] }
 0x54b   :  { %1332 = vmatpush.bf16.msra.mxu1 %v7454_v35 }
 0x54f   :  { %1333 = vmatpush.bf16.msra.mxu1 %v7453_v36 }
 0x551   :  { %v971_v39 = vpop.permute.xlu1 %970 }
 0x552   :  { %v978_v29 = vmul.f32 %v971_v39, %v963_v40 }
 0x553   :  { %1334 = vmatpush.bf16.msra.mxu1 %v7452_v38 }
 0x554   :  { %v8346_v46 = vadd.f32 %v981_v43, %v978_v29 }
 0x561   :  { %v969_v42 = vpop.permute.xlu0 %968 }
 0x562   :  { %v977_v45 = vmul.f32 %v969_v42, %v962_v41  ;;  %v7668_v42 = vld [vmem:[%s9745_s6] ss:$0 sm:$0xff] }
 0x564   :  { %v8348_v47 = vadd.f32 %v980_v44, %v977_v45 }
 0x566   :  { %v986_v48 = vpack.c.bf16 %v8346_v46, %v8348_v47 }
 0x568   :  { %996 = vrot.lane.b32.xlu0 %v986_v48, %s8025_s25 }
 0x5ba   :  { %v8382_v62 = vpop.permute.xlu1 %998 }
 0x5da   :  { %v8374_v61 = vpop.permute.xlu0 %996 }
 0x5db   :  { %6350 = vmatmul.msk.bf16.vlgmr.msrb.gmra.mxu0 %vm170_vm11, %v8374_v61  ;;  %6356 = vmatmul.msk.bf16.vlgmr.msrb.gmra.mxu1 %vm170_vm11, %v8374_v61 }
 0x5dc   :  { %6362 = vmatmul.msk.bf16.vlgmr.msra.gmra.mxu2 %vm170_vm11, %v8374_v61 }
 0x5eb   :  { %6351 = vmatmul.msk.bf16.gmra.mxu0 %vm170_vm11, %v8382_v62  ;;  %6357 = vmatmul.msk.bf16.gmra.mxu1 %vm170_vm11, %v8382_v62 }
 0x5ec   :  { %6363 = vmatmul.msk.bf16.gmra.mxu2 %vm170_vm11, %v8382_v62 }
 0x658   :  { %v1023_v2 = vpop.f32.mrf.mxu0  ;;  %v1054_v3 = vpop.f32.mrf.mxu1 }
 0x659   :  { %v1024_v4 = vadd.f32 %v7667_v0, %v1023_v2 }
 0x65b   :  { %1032 = vst.msk [vmem:[%s9759_s20] sm:$0xff] %vm764_vm6, %v1024_v4 }
 0x65f   :  { %v1084_v5 = vpop.f32.mrf.mxu2 }
 0x660   :  { %v1025_v6 = vpop.f32.mrf.mxu0  ;;  %v1056_v7 = vpop.f32.mrf.mxu1 }
 0x661   :  { %v1026_v9 = vadd.f32 %v7667_v0, %v1025_v6  ;;  %v1063_v15 = vpack.c.bf16 %v1056_v7, %v1054_v3  ;;  %v7462_v6 = vld [vmem:[%s9748_s9 + $0x20] sm:$0xff] }
 0x663   :  { %1033 = vst.msk [vmem:[%s9759_s20 + $0x8] sm:$0xff] %vm764_vm6, %v1026_v9 }
 0x667   :  { %v1086_v10 = vpop.f32.mrf.mxu2 }
 0x668   :  { %v1028_v11 = vpop.f32.mrf.mxu0  ;;  %v1059_v8 = vpop.f32.mrf.mxu1  ;;  %v1093_v22 = vpack.c.bf16 %v1086_v10, %v1084_v5  ;;  %v7463_v5 = vld [vmem:[%s9748_s9 + $0x28] sm:$0xff] }
 0x669   :  { %v1029_v12 = vadd.f32 %v7667_v0, %v1028_v11  ;;  %v1064_v13 = vpack.c.bf16 %v1059_v8, %v1059_v8  ;;  %1434 = vmatpush.bf16.msrb.mxu2 %v7463_v5  ;;  %v7467_v5 = vld [vmem:[%s9750_s11 + $0x18] sm:$0xff] }
 0x66b   :  { %1034 = vst.msk [vmem:[%s9759_s20 + $0x10] sm:$0xff] %vm764_vm6, %v1029_v12  ;;  %v1208_v14 = vsel %vm277_vm1, %v1064_v13, 0 }
 0x66c   :  { %1216 = vmatpush.bf16.msra.mxu0 %v1208_v14 }
 0x66d   :  { %1435 = vmatpush.bf16.msrb.mxu2 %v7462_v6  ;;  %v7466_v6 = vld [vmem:[%s9750_s11 + $0x10] sm:$0xff] }
 0x66f   :  { %v1089_v16 = vpop.f32.mrf.mxu2 }
 0x670   :  { %v1094_v18 = vpack.c.bf16 %v1089_v16, %v1089_v16  ;;  %v1030_v19 = vpop.f32.mrf.mxu0  ;;  %v1061_v20 = vpop.f32.mrf.mxu1  ;;  %1217 = vmatpush.bf16.msra.mxu0 %v1063_v15 }
 0x672   :  { %v1144_v21 = vsel %vm277_vm1, %v1094_v18, 0 }
 0x673   :  { %1152 = vmatpush.bf16.msrb.mxu3 %v1144_v21  ;;  %6400 = vmatmul.msk.bf16.vlgmr.msra.gmra.mxu0 %vm264_vm2, %v7444_v17 }
 0x677   :  { %v1091_v24 = vpop.f32.mrf.mxu2  ;;  %1153 = vmatpush.bf16.msrb.mxu3 %v1093_v22 }
 0x67a   :  { %6380 = vmatmul.msk.bf16.vlgmr.msrb.gmra.mxu3 %vm264_vm2, %v7448_v23 }
 0x683   :  { %6401 = vmatmul.msk.bf16.gmra.mxu0 %vm264_vm2, %v7445_v25 }
 0x68a   :  { %6381 = vmatmul.msk.bf16.gmra.mxu3 %vm264_vm2, %v7449_v26 }
 0x693   :  { %6402 = vmatmul.msk.bf16.gmra.mxu0 %vm264_vm2, %v7446_v27  ;;  %v7461_v27 = vld [vmem:[%s9748_s9 + $0x18] sm:$0xff] }
 0x694   :  { %1436 = vmatpush.bf16.msrb.mxu2 %v7461_v27 }
 0x69a   :  { %6382 = vmatmul.msk.bf16.gmra.mxu3 %vm264_vm2, %v7450_v28  ;;  %v7460_v28 = vld [vmem:[%s9748_s9 + $0x10] sm:$0xff] }
 0x69b   :  { %1437 = vmatpush.bf16.msrb.mxu2 %v7460_v28 }
 0x6a3   :  { %6403 = vmatmul.msk.bf16.gmra.mxu0 %vm264_vm2, %v7447_v30  ;;  %v7459_v30 = vld [vmem:[%s9748_s9 + $0x8] sm:$0xff] }
 0x6a4   :  { %1438 = vmatpush.bf16.msrb.mxu2 %v7459_v30 }
 0x6aa   :  { %6383 = vmatmul.msk.bf16.gmra.mxu3 %vm264_vm2, %v7451_v31  ;;  %v7458_v31 = vld [vmem:[%s9748_s9] sm:$0xff] }
 0x6ab   :  { %1439 = vmatpush.bf16.msrb.mxu2 %v7458_v31 }
 0x6f0   :  { %v1219_v39 = vpop.f32.mrf.mxu0 }
 0x6f8   :  { %v1221_v40 = vpop.f32.mrf.mxu0 }
 0x6fd   :  { %v1155_v29 = vpop.f32.mrf.mxu3 }
 0x6fe   :  { %v1220_v41 = vadd.f32 %v1219_v39, %v1155_v29 }
 0x700   :  { %v1224_v43 = vpop.f32.mrf.mxu0  ;;  %v1243_v45 = vadd.f32 %v7668_v42, %v1220_v41 }
 0x702   :  { %v1251_v50 = vmax.f32 %v1243_v45, 0.0 }
 0x705   :  { %v1157_v44 = vpop.f32.mrf.mxu3 }
 0x706   :  { %v1222_v48 = vadd.f32 %v1221_v40, %v1157_v44 }
 0x708   :  { %v1244_v49 = vadd.f32 %v7668_v42, %v1222_v48  ;;  %v1226_v54 = vpop.f32.mrf.mxu0 }
 0x70a   :  { %v1252_v51 = vmax.f32 %v1244_v49, 0.0  ;;  %v7469_v49 = vld [vmem:[%s9750_s11 + $0x28] sm:$0xff] }
 0x70b   :  { %1539 = vmatpush.bf16.msra.mxu3 %v7469_v49 }
 0x70c   :  { %v1259_v52 = vpack.c.bf16 %v1252_v51, %v1251_v50  ;;  %v7468_v51 = vld [vmem:[%s9750_s11 + $0x20] sm:$0xff] }
 0x70d   :  { %v1160_v53 = vpop.f32.mrf.mxu3 }
 0x70e   :  { %6428 = vmatmul.msk.bf16.vlgmr.msra.gmra.mxu1 %vm450_vm3, %v1259_v52  ;;  %v1225_v55 = vadd.f32 %v1224_v43, %v1160_v53 }
 0x70f   :  { %1540 = vmatpush.bf16.msra.mxu3 %v7468_v51 }
 0x710   :  { %v1245_v57 = vadd.f32 %v7668_v42, %v1225_v55  ;;  %v1229_v59 = vpop.f32.mrf.mxu0 }
 0x712   :  { %v1253_v0 = vmax.f32 %v1245_v57, 0.0 }
 0x713   :  { %1541 = vmatpush.bf16.msra.mxu3 %v7467_v5 }
 0x715   :  { %v1162_v56 = vpop.f32.mrf.mxu3 }
 0x716   :  { %v1227_v58 = vadd.f32 %v1226_v54, %v1162_v56 }
 0x717   :  { %1542 = vmatpush.bf16.msra.mxu3 %v7466_v6  ;;  %v7470_v6 = vld [vmem:[%s9773_s3] sm:$0xff] }
 0x718   :  { %v1246_v60 = vadd.f32 %v7668_v42, %v1227_v58  ;;  %v1231_v7 = vpop.f32.mrf.mxu0 }
 0x71a   :  { %v1254_v2 = vmax.f32 %v1246_v60, 0.0 }
 0x71c   :  { %v1260_v3 = vpack.c.bf16 %v1254_v2, %v1253_v0 }
 0x71d   :  { %v1165_v4 = vpop.f32.mrf.mxu3 }
 0x71e   :  { %6429 = vmatmul.msk.bf16.gmra.mxu1 %vm450_vm3, %v1260_v3  ;;  %v1230_v9 = vadd.f32 %v1229_v59, %v1165_v4 }
 0x720   :  { %v1247_v11 = vadd.f32 %v7668_v42, %v1230_v9  ;;  %v1234_v15 = vpop.f32.mrf.mxu0  ;;  %v7464_v9 = vld [vmem:[%s9750_s11] sm:$0xff] }
 0x722   :  { %v1255_v13 = vmax.f32 %v1247_v11, 0.0  ;;  %v7670_v11 = vld [vmem:[#allocation4] ss:$0 sm:$0xff] }
 0x725   :  { %v1167_v10 = vpop.f32.mrf.mxu3 }
 0x726   :  { %v1232_v8 = vadd.f32 %v1231_v7, %v1167_v10  ;;  %v7465_v7 = vld [vmem:[%s9750_s11 + $0x8] sm:$0xff] }
 0x727   :  { %1543 = vmatpush.bf16.msra.mxu3 %v7465_v7  ;;  %v1568_v7 = vld [vmem:[%s9773_s3 + $0x8] sm:$0xf] }
 0x728   :  { %v1248_v12 = vadd.f32 %v7668_v42, %v1232_v8  ;;  %v1236_v19 = vpop.f32.mrf.mxu0 }
 0x72a   :  { %v1256_v14 = vmax.f32 %v1248_v12, 0.0 }
 0x72b   :  { %1544 = vmatpush.bf16.msra.mxu3 %v7464_v9  ;;  %v1578_v9 = vunpack.c.l.b16 %v1568_v7 }
 0x72c   :  { %v1261_v16 = vpack.c.bf16 %v1256_v14, %v1255_v13 }
 0x72d   :  { %v1170_v17 = vpop.f32.mrf.mxu3 }
 0x72e   :  { %6430 = vmatmul.msk.bf16.gmra.mxu1 %vm450_vm3, %v1261_v16  ;;  %v1235_v18 = vadd.f32 %v1234_v15, %v1170_v17 }
 0x730   :  { %v1249_v21 = vadd.f32 %v7668_v42, %v1235_v18 }
 0x732   :  { %v1257_v24 = vmax.f32 %v1249_v21, 0.0 }
 0x735   :  { %v1172_v20 = vpop.f32.mrf.mxu3 }
 0x736   :  { %v1237_v22 = vadd.f32 %v1236_v19, %v1172_v20 }
 0x738   :  { %v1250_v23 = vadd.f32 %v7668_v42, %v1237_v22 }
 0x73a   :  { %v1258_v25 = vmax.f32 %v1250_v23, 0.0 }
 0x73c   :  { %v1262_v26 = vpack.c.bf16 %v1258_v25, %v1257_v24 }
 0x73e   :  { %6431 = vmatmul.msk.bf16.gmra.mxu1 %vm450_vm3, %v1262_v26 }
 0x78b   :  { %v1336_v32 = vpop.f32.mrf.mxu1 }
 0x78c   :  { %v1337_v34 = vadd.f32 %v7669_v33, %v1336_v32 }
 0x78e   :  { %v1356_v38 = vmax.f32 %v1337_v34, 0.0 }
 0x793   :  { %v1338_v35 = vpop.f32.mrf.mxu1 }
 0x794   :  { %v1339_v36 = vadd.f32 %v7669_v33, %v1338_v35 }
 0x796   :  { %v1357_v39 = vmax.f32 %v1339_v36, 0.0 }
 0x798   :  { %v1364_v40 = vpack.c.bf16 %v1357_v39, %v1356_v38 }
 0x79a   :  { %6456 = vmatmul.msk.bf16.vlgmr.msrb.gmra.mxu2 %vm450_vm3, %v1364_v40 }
 0x79b   :  { %v1341_v29 = vpop.f32.mrf.mxu1 }
 0x79c   :  { %v1342_v41 = vadd.f32 %v7669_v33, %v1341_v29 }
 0x79e   :  { %v1358_v44 = vmax.f32 %v1342_v41, 0.0 }
 0x7a3   :  { %v1343_v42 = vpop.f32.mrf.mxu1 }
 0x7a4   :  { %v1344_v43 = vadd.f32 %v7669_v33, %v1343_v42 }
 0x7a6   :  { %v1359_v45 = vmax.f32 %v1344_v43, 0.0 }
 0x7a8   :  { %v1365_v48 = vpack.c.bf16 %v1359_v45, %v1358_v44 }
 0x7aa   :  { %6457 = vmatmul.msk.bf16.gmra.mxu2 %vm450_vm3, %v1365_v48  ;;  %v7671_v48 = vld [vmem:[#allocation6] ss:$0 sm:$0xff] }
 0x7ab   :  { %v1346_v50 = vpop.f32.mrf.mxu1 }
 0x7ac   :  { %v1347_v52 = vadd.f32 %v7669_v33, %v1346_v50 }
 0x7ae   :  { %v1360_v55 = vmax.f32 %v1347_v52, 0.0 }
 0x7b3   :  { %v1348_v53 = vpop.f32.mrf.mxu1 }
 0x7b4   :  { %v1349_v54 = vadd.f32 %v7669_v33, %v1348_v53 }
 0x7b6   :  { %v1361_v56 = vmax.f32 %v1349_v54, 0.0 }
 0x7b8   :  { %v1366_v57 = vpack.c.bf16 %v1361_v56, %v1360_v55 }
 0x7ba   :  { %6458 = vmatmul.msk.bf16.gmra.mxu2 %vm450_vm3, %v1366_v57  ;;  %v6512_v57 = vld [vmem:[#allocation7] sm:$0xf] }
 0x7bb   :  { %v1351_v58 = vpop.f32.mrf.mxu1 }
 0x7bc   :  { %v1352_v59 = vadd.f32 %v7669_v33, %v1351_v58  ;;  %v7474_v58 = vld [vmem:[#allocation7] sm:$0x10] }
 0x7be   :  { %v1362_v2 = vmax.f32 %v1352_v59, 0.0 }
 0x7c3   :  { %v1353_v60 = vpop.f32.mrf.mxu1 }
 0x7c4   :  { %v1354_v0 = vadd.f32 %v7669_v33, %v1353_v60 }
 0x7c6   :  { %v1363_v3 = vmax.f32 %v1354_v0, 0.0 }
 0x7c8   :  { %v1367_v4 = vpack.c.bf16 %v1363_v3, %v1362_v2  ;;  %v6513_v2 = vor.u32 %v7474_v58, %v6512_v57 }
 0x7ca   :  { %6459 = vmatmul.msk.bf16.gmra.mxu2 %vm450_vm3, %v1367_v4  ;;  %v1705_v5 = vsel %vm174_vm0, %v6513_v2, 0 }
 0x81d   :  { %v1441_v10 = vpop.f32.mrf.mxu2 }
 0x81e   :  { %v1442_v8 = vadd.f32 %v7670_v11, %v1441_v10  ;;  %v1580_v10 = vpack.c.b16 %v1578_v9, %v1578_v9 }
 0x820   :  { %v1461_v14 = vmax.f32 %v1442_v8, 0.0  ;;  %v7473_v8 = vld [vmem:[%s9753_s14] sm:$0x10] }
 0x825   :  { %v1443_v12 = vpop.f32.mrf.mxu2 }
 0x826   :  { %v1444_v13 = vadd.f32 %v7670_v11, %v1443_v12 }
 0x828   :  { %v1462_v15 = vmax.f32 %v1444_v13, 0.0 }
 0x82a   :  { %v1469_v16 = vpack.c.bf16 %v1462_v15, %v1461_v14  ;;  %v7472_v14 = vld [vmem:[%s9774_s22] sm:$0xff] }
 0x82b   :  { %v6506_v15 = vld [vmem:[%s9752_s13] sm:$0xf] }
 0x82c   :  { %6484 = vmatmul.msk.bf16.vlgmr.msra.gmra.mxu3 %vm450_vm3, %v1469_v16  ;;  %v7471_v16 = vld [vmem:[%s9752_s13] sm:$0x30] }
 0x82d   :  { %v1446_v17 = vpop.f32.mrf.mxu2 }
 0x82e   :  { %v1447_v18 = vadd.f32 %v7670_v11, %v1446_v17  ;;  %v6507_v17 = vor.u32 %v7471_v16, %v6506_v15 }
 0x830   :  { %v1463_v21 = vmax.f32 %v1447_v18, 0.0 }
 0x835   :  { %v1448_v19 = vpop.f32.mrf.mxu2 }
 0x836   :  { %v1449_v20 = vadd.f32 %v7670_v11, %v1448_v19 }
 0x838   :  { %v1464_v22 = vmax.f32 %v1449_v20, 0.0 }
 0x83a   :  { %v1470_v23 = vpack.c.bf16 %v1464_v22, %v1463_v21 }
 0x83c   :  { %6485 = vmatmul.msk.bf16.gmra.mxu3 %vm450_vm3, %v1470_v23 }
 0x83d   :  { %v1451_v24 = vpop.f32.mrf.mxu2 }
 0x83e   :  { %v1452_v25 = vadd.f32 %v7670_v11, %v1451_v24 }
 0x840   :  { %v1465_v28 = vmax.f32 %v1452_v25, 0.0 }
 0x845   :  { %v1453_v26 = vpop.f32.mrf.mxu2 }
 0x846   :  { %v1454_v27 = vadd.f32 %v7670_v11, %v1453_v26  ;;  %v7672_v26 = vld [vmem:[#allocation10] ss:$0 sm:$0xff] }
 0x848   :  { %v1466_v30 = vmax.f32 %v1454_v27, 0.0 }
 0x84a   :  { %v1471_v31 = vpack.c.bf16 %v1466_v30, %v1465_v28 }
 0x84c   :  { %6486 = vmatmul.msk.bf16.gmra.mxu3 %vm450_vm3, %v1471_v31 }
 0x84d   :  { %v1456_v32 = vpop.f32.mrf.mxu2 }
 0x84e   :  { %v1457_v33 = vadd.f32 %v7670_v11, %v1456_v32 }
 0x850   :  { %v1467_v36 = vmax.f32 %v1457_v33, 0.0 }
 0x855   :  { %v1458_v34 = vpop.f32.mrf.mxu2 }
 0x856   :  { %v1459_v35 = vadd.f32 %v7670_v11, %v1458_v34  ;;  %v6500_v11 = vld [vmem:[%s9753_s14] sm:$0xf] }
 0x857   :  { %v6501_v12 = vor.u32 %v7473_v8, %v6500_v11 }
 0x858   :  { %v1468_v38 = vmax.f32 %v1459_v35, 0.0 }
 0x859   :  { %v1634_v13 = vand.u32 %v6501_v12, %v8297_v63 }
 0x85a   :  { %v1472_v39 = vpack.c.bf16 %v1468_v38, %v1467_v36 }
 0x85b   :  { %1643 = vmatpush.bf16.msrb.mxu1 %v1634_v13 }
 0x85c   :  { %6487 = vmatmul.msk.bf16.gmra.mxu3 %vm450_vm3, %v1472_v39 }
 0x85e   :  { %6502 = vmatmul.msk.bf16.vlgmr.msrb.gmra.mxu1 %vm764_vm6, %v7472_v14 }
 0x8af   :  { %v1546_v40 = vpop.f32.mrf.mxu3 }
 0x8b0   :  { %v1547_v3 = vadd.f32 %v7671_v48, %v1546_v40  ;;  %v7673_v40 = vld [vmem:[#allocation9] ss:$0 sm:$0xff] }
 0x8b7   :  { %v1548_v29 = vpop.f32.mrf.mxu3 }
 0x8b8   :  { %v1549_v60 = vadd.f32 %v7671_v48, %v1548_v29 }
 0x8ba   :  { %v1569_v4 = vpack.c.bf16 %v1549_v60, %v1547_v3 }
 0x8bf   :  { %v1551_v41 = vpop.f32.mrf.mxu3 }
 0x8c0   :  { %v1552_v59 = vadd.f32 %v7671_v48, %v1551_v41 }
 0x8c7   :  { %v1553_v42 = vpop.f32.mrf.mxu3 }
 0x8c8   :  { %v1554_v55 = vadd.f32 %v7671_v48, %v1553_v42 }
 0x8ca   :  { %v1570_v0 = vpack.c.bf16 %v1554_v55, %v1552_v59 }
 0x8cf   :  { %v1556_v43 = vpop.f32.mrf.mxu3 }
 0x8d0   :  { %v1557_v54 = vadd.f32 %v7671_v48, %v1556_v43 }
 0x8d7   :  { %v1558_v44 = vpop.f32.mrf.mxu3 }
 0x8d8   :  { %v1559_v52 = vadd.f32 %v7671_v48, %v1558_v44 }
 0x8da   :  { %v1571_v56 = vpack.c.bf16 %v1559_v52, %v1557_v54 }
 0x8db   :  { %v1645_v35 = vpop.f32.mrf.mxu1 }
 0x8df   :  { %v1561_v45 = vpop.f32.mrf.mxu3 }
 0x8e0   :  { %v1562_v50 = vadd.f32 %v7671_v48, %v1561_v45 }
 0x8e3   :  { %v1647_v36 = vpop.f32.mrf.mxu1 }
 0x8e7   :  { %v1563_v49 = vpop.f32.mrf.mxu3 }
 0x8e8   :  { %v1564_v51 = vadd.f32 %v7671_v48, %v1563_v49 }
 0x8ea   :  { %v1572_v53 = vpack.c.bf16 %v1564_v51, %v1562_v50 }
 0x8ec   :  { %1591 = vmatpush.bf16.msrb.mxu0 %v1572_v53 }
 0x8f0   :  { %1592 = vmatpush.bf16.msrb.mxu0 %v1571_v56 }
 0x8f4   :  { %1593 = vmatpush.bf16.msrb.mxu0 %v1570_v0 }
 0x8f8   :  { %1594 = vmatpush.bf16.msrb.mxu0 %v1569_v4 }
 0x8fb   :  { %6492 = vmatmul.msk.bf16.vlgmr.msrb.gmra.mxu0 %vm717_vm4, %v7470_v6 }
 0x8fc   :  { %1714 = vmatpush.bf16.msra.mxu0 %v1705_v5 }
 0x90b   :  { %6493 = vmatmul.msk.bf16.gmra.mxu0 %vm717_vm4, %v1580_v10 }
 0x91b   :  { %6514 = vmatmul.msk.bf16.vlgmr.msra.gmra.mxu0 %vm170_vm11, %v8374_v61  ;;  %v1666_v61 = vand.u32 %v6507_v17, %v8299_v1 }
 0x91d   :  { %1675 = vmatpush.bf16.msra.mxu2 %v1666_v61  ;;  %7646 = vmatpush.bf16.msrb.mxu3 %v1666_v61 }
 0x92b   :  { %6515 = vmatmul.msk.bf16.gmra.mxu0 %vm170_vm11, %v8382_v62  ;;  %v1611_v62 = vld [vmem:[%s9774_s22 + $0x8] sm:$0xf] }
 0x92c   :  { %v1619_v18 = vunpack.c.l.b16 %v1611_v62 }
 0x92e   :  { %v1621_v19 = vpack.c.b16 %v1619_v18, %v1619_v18 }
 0x930   :  { %6503 = vmatmul.msk.bf16.gmra.mxu1 %vm764_vm6, %v1621_v19 }
 0x978   :  { %v1596_v20 = vpop.f32.mrf.mxu0 }
 0x980   :  { %v1598_v21 = vpop.f32.mrf.mxu0 }
 0x981   :  { %v1605_v22 = vpack.c.bf16 %v1598_v21, %v1596_v20 }
 0x983   :  { %6508 = vmatmul.msk.bf16.vlgmr.msra.gmra.mxu2 %vm799_vm7, %v1605_v22 }
 0x988   :  { %v1601_v23 = vpop.f32.mrf.mxu0 }
 0x989   :  { %v1606_v24 = vpack.c.bf16 %v1601_v23, %v1601_v23 }
 0x98b   :  { %6509 = vmatmul.msk.bf16.vlgmr.msrb.gmra.mxu3 %vm799_vm7, %v1606_v24 }
 0x990   :  { %v1603_v25 = vpop.f32.mrf.mxu0 }
 0x998   :  { %v1716_v27 = vpop.f32.mrf.mxu0 }
 0x999   :  { %v1717_v28 = vadd.f32 %v7672_v26, %v1716_v27 }
 0x99b   :  { %1788 = vrot.lane.b32.xlu2 %v1717_v28, %s8023_s23 }
 0x9a0   :  { %v1718_v30 = vpop.f32.mrf.mxu0 }
 0x9a1   :  { %v1719_v31 = vadd.f32 %v7672_v26, %v1718_v30 }
 0x9a3   :  { %1790 = vrot.lane.b32.xlu0 %v1719_v31, %s8023_s23 }
 0x9a8   :  { %v1721_v32 = vpop.f32.mrf.mxu0 }
 0x9a9   :  { %v1722_v33 = vadd.f32 %v7672_v26, %v1721_v32 }
 0x9ab   :  { %1792 = vrot.lane.b32.xlu1 %v1722_v33, %s8023_s23 }
 0x9ad   :  { %v1650_v38 = vpop.f32.mrf.mxu1 }
 0x9b0   :  { %v1723_v34 = vpop.f32.mrf.mxu0 }
 0x9b5   :  { %v1652_v39 = vpop.f32.mrf.mxu1 }
 0x9f5   :  { %v1789_v16 = vpop.permute.xlu2 %1788 }
 0xa06   :  { %v1677_v29 = vpop.f32.mrf.mxu2 }
 0xa07   :  { %v1678_v41 = vadd.f32 %v1677_v29, %v1645_v35 }
 0xa09   :  { %v8545_v42 = vadd.f32 %v7673_v40, %v1678_v41 }
 0xa0b   :  { %v1725_v43 = vadd.f32 %v1717_v28, %v8545_v42 }
 0xa0d   :  { %v6516_v44 = vmul.f32 -1.442695, %v1725_v43 }
 0xa0e   :  { %v1679_v45 = vpop.f32.mrf.mxu2  ;;  %v1682_v48 = vpop.f32.mrf.mxu3 }
 0xa0f   :  { %7728 = vpow2.f32 %v6516_v44  ;;  %v1680_v49 = vadd.f32 %v1679_v45, %v1647_v36  ;;  %v1683_v50 = vadd.f32 %v1682_v48, %v1650_v38 }
 0xa11   :  { %v8548_v51 = vadd.f32 %v7673_v40, %v1680_v49  ;;  %v8550_v52 = vadd.f32 %v7673_v40, %v1683_v50 }
 0xa13   :  { %v1726_v53 = vadd.f32 %v1719_v31, %v8548_v51  ;;  %v1727_v54 = vadd.f32 %v1722_v33, %v8550_v52 }
 0xa15   :  { %v7729_v55 = vpop.eup %7728  ;;  %v6517_v56 = vmul.f32 -1.442695, %v1726_v53  ;;  %v6518_v57 = vmul.f32 -1.442695, %v1727_v54  ;;  %v1791_v31 = vpop.permute.xlu0 %1790  ;;  %v7475_v53 = vld [vmem:[%s9757_s18] sm:$0x10] }
 0xa16   :  { %v1737_v58 = vadd.f32 1.0, %v7729_v55  ;;  %v1684_v59 = vpop.f32.mrf.mxu3  ;;  %v7476_v54 = vld [vmem:[%s9770_s24] sm:$0x10]  ;;  %v6536_v55 = vld [vmem:[%s9744_s5] sm:$0xf] }
 0xa17   :  { %7730 = vpow2.f32 %v6517_v56  ;;  %v7477_v56 = vld [vmem:[%s9744_s5] sm:$0x10] }
 0xa18   :  { %7732 = vrcp.f32 %v1737_v58  ;;  %v1751_v7 = vand.u32 2147483648, %v1737_v58  ;;  %v1749_v10 = vand.u32 2147483647, %v1737_v58  ;;  %vm1745_vm13 = vweird.f32 %v1737_v58 }
 0xa19   :  { %7734 = vpow2.f32 %v6518_v57 }
 0xa1a   :  { %v1752_v12 = vor.u32 1.1754944e-38, %v1751_v7  ;;  %vm1750_vm15 = vcmp.eq.f32.partialorder %v1749_v10, 8.507059e+37 }
 0xa1d   :  { %v7731_v60 = vpop.eup %7730  ;;  %v1793_v36 = vpop.permute.xlu1 %1792 }
 0xa1e   :  { %v7733_v0 = vpop.eup %7732  ;;  %v1738_v2 = vadd.f32 1.0, %v7731_v60 }
 0xa1f   :  { %v7735_v3 = vpop.eup %7734  ;;  %v1741_v4 = vmul.f32 %v7733_v0, %v1737_v58  ;;  %vm1746_vm12 = vweird.f32 %v7733_v0  ;;  %v6537_v58 = vor.u32 %v7477_v56, %v6536_v55 }
 0xa20   :  { %7736 = vrcp.f32 %v1738_v2  ;;  %v1739_v5 = vadd.f32 1.0, %v7735_v3  ;;  %vm1747_vm14 = vmor %vm1745_vm13, %vm1746_vm12  ;;  %v1766_v19 = vand.u32 2147483648, %v1738_v2  ;;  %v1764_v21 = vand.u32 2147483647, %v1738_v2 }
 0xa21   :  { %v1742_v6 = vsub.f32 1.0, %v1741_v4  ;;  %vm1760_vm8 = vweird.f32 %v1738_v2 }
 0xa22   :  { %7738 = vrcp.f32 %v1739_v5  ;;  %v1781_v23 = vand.u32 2147483648, %v1739_v5  ;;  %v1779_v26 = vand.u32 2147483647, %v1739_v5  ;;  %v1767_v27 = vor.u32 1.1754944e-38, %v1766_v19 }
 0xa23   :  { %v1743_v9 = vmul.f32 %v7733_v0, %v1742_v6  ;;  %vm1765_vm12 = vcmp.eq.f32.partialorder %v1764_v21, 8.507059e+37  ;;  %vm1775_vm13 = vweird.f32 %v1739_v5 }
 0xa24   :  { %v1782_v33 = vor.u32 1.1754944e-38, %v1781_v23 }
 0xa25   :  { %v1744_v11 = vadd.f32 %v7733_v0, %v1743_v9 }
 0xa26   :  { %v7737_v8 = vpop.eup %7736 }
 0xa27   :  { %v1756_v13 = vmul.f32 %v7737_v8, %v1738_v2  ;;  %v1748_v14 = vsel %vm1747_vm14, %v7733_v0, %v1744_v11  ;;  %vm1761_vm5 = vweird.f32 %v7737_v8  ;;  %v1930_v0 = vsel %vm174_vm0, %v6537_v58, 0  ;;  %v7675_v58 = vld [vmem:[%s9745_s6] ss:$0 sm:$0xff] }
 0xa28   :  { %v7739_v15 = vpop.eup %7738  ;;  %v8554_v17 = vsel %vm1750_vm15, %v1752_v12, %v1748_v14  ;;  %vm1762_vm10 = vmor %vm1760_vm8, %vm1761_vm5  ;;  %vm1780_vm15 = vcmp.eq.f32.partialorder %v1779_v26, 8.507059e+37  ;;  %1939 = vmatpush.bf16.msra.mxu3 %v1930_v0 }
 0xa29   :  { %v1757_v61 = vsub.f32 1.0, %v1756_v13  ;;  %v1771_v62 = vmul.f32 %v7739_v15, %v1739_v5  ;;  %v1797_v18 = vmul.f32 %v1789_v16, %v8554_v17  ;;  %vm1776_vm9 = vweird.f32 %v7739_v15 }
 0xa2a   :  { %vm1777_vm14 = vmor %vm1775_vm13, %vm1776_vm9  ;;  %v1818_v3 = vsub.f32 1.0, %v8554_v17  ;;  %v1836_v7 = vmul.f32 %v8554_v17, %v8348_v47  ;;  %v7674_v17 = vld [vmem:[#allocation12] ss:$0 sm:$0xff] }
 0xa2b   :  { %v1758_v20 = vmul.f32 %v7737_v8, %v1757_v61  ;;  %v1772_v22 = vsub.f32 1.0, %v1771_v62  ;;  %1803 = vrot.lane.b32.xlu2 %v1797_v18, %s8024_s2 }
 0xa2d   :  { %v1759_v24 = vadd.f32 %v7737_v8, %v1758_v20  ;;  %v1773_v25 = vmul.f32 %v7739_v15, %v1772_v22 }
 0xa2f   :  { %v1763_v28 = vsel %vm1762_vm10, %v7737_v8, %v1759_v24  ;;  %v1774_v30 = vadd.f32 %v7739_v15, %v1773_v25 }
 0xa30   :  { %v1768_v32 = vsel %vm1765_vm12, %v1767_v27, %v1763_v28 }
 0xa31   :  { %v1798_v34 = vmul.f32 %v1791_v31, %v1768_v32  ;;  %v1778_v35 = vsel %vm1777_vm14, %v7739_v15, %v1774_v30  ;;  %v1819_v5 = vsub.f32 1.0, %v1768_v32  ;;  %v1837_v10 = vmul.f32 %v1768_v32, %v8346_v46 }
 0xa32   :  { %v1783_v38 = vsel %vm1780_vm15, %v1782_v33, %v1778_v35 }
 0xa33   :  { %v1799_v39 = vmul.f32 %v1793_v36, %v1783_v38  ;;  %1805 = vrot.lane.b32.xlu0 %v1798_v34, %s8024_s2  ;;  %v1820_v9 = vsub.f32 1.0, %v1783_v38  ;;  %v1838_v13 = vmul.f32 %v1783_v38, %v8339_v37  ;;  %v7478_v38 = vld [vmem:[%s9771_s27] sm:$0xff] }
 0xa35   :  { %1807 = vrot.lane.b32.xlu1 %v1799_v39, %s8024_s2 }
 0xa85   :  { %v1804_v40 = vpop.permute.xlu2 %1803 }
 0xa86   :  { %v1812_v29 = vadd.f32 %v1804_v40, %v8545_v42  ;;  %v6521_v42 = vld [vmem:[%s9757_s18] sm:$0xf] }
 0xa87   :  { %v7482_v40 = vld [vmem:[%s9772_s29] sm:$0xff] }
 0xa88   :  { %7740 = vtanh.f32 %v1812_v29 }
 0xa8e   :  { %v7741_v41 = vpop.eup %7740 }
 0xa8f   :  { %1824 = vrot.lane.b32.xlu2 %v7741_v41, %s8025_s25  ;;  %v7479_v41 = vld [vmem:[%s9771_s27 + $0x8] sm:$0xff] }
 0xaa5   :  { %v1806_v43 = vpop.permute.xlu0 %1805 }
 0xaa6   :  { %v1813_v44 = vadd.f32 %v1806_v43, %v8548_v51  ;;  %v6530_v51 = vld [vmem:[%s9770_s24] sm:$0xf]  ;;  %v7483_v43 = vld [vmem:[%s9772_s29 + $0x8] sm:$0xff] }
 0xaa7   :  { %v1808_v45 = vpop.permute.xlu1 %1807  ;;  %v6531_v57 = vor.u32 %v7476_v54, %v6530_v51  ;;  %v7488_v51 = vld [vmem:[%s9746_s7 + $0x10] sm:$0xff]  ;;  %v7486_v54 = vld [vmem:[%s9746_s7] sm:$0xff] }
 0xaa8   :  { %v1814_v48 = vadd.f32 %v1808_v45, %v8550_v52  ;;  %7742 = vtanh.f32 %v1813_v44  ;;  %v6522_v52 = vor.u32 %v7475_v53, %v6521_v42  ;;  %v7491_v44 = vld [vmem:[%s9746_s7 + $0x28] sm:$0xff]  ;;  %v7490_v45 = vld [vmem:[%s9746_s7 + $0x20] sm:$0xff]  ;;  %v7485_v42 = vld [vmem:[%s9772_s29 + $0x18] sm:$0xff] }
 0xaa9   :  { %v1900_v60 = vsel %vm174_vm0, %v6531_v57, 0  ;;  %v7489_v53 = vld [vmem:[%s9746_s7 + $0x18] sm:$0xff] }
 0xaaa   :  { %7744 = vtanh.f32 %v1814_v48  ;;  %v1868_v59 = vsel %vm174_vm0, %v6522_v52, 0  ;;  %1909 = vmatpush.bf16.msrb.mxu2 %v1900_v60  ;;  %v7480_v48 = vld [vmem:[%s9771_s27 + $0x10] sm:$0xff]  ;;  %v7487_v52 = vld [vmem:[%s9746_s7 + $0x8] sm:$0xff] }
 0xaab   :  { %1877 = vmatpush.bf16.msra.mxu1 %v1868_v59 }
 0xaae   :  { %v7743_v49 = vpop.eup %7742  ;;  %2186 = vmatpush.bf16.msra.mxu2 %v7491_v44  ;;  %v7495_v44 = vld [vmem:[%s9748_s9 + $0x18] sm:$0xff] }
 0xaaf   :  { %1826 = vrot.lane.b32.xlu0 %v7743_v49, %s8025_s25  ;;  %v7484_v49 = vld [vmem:[%s9772_s29 + $0x10] sm:$0xff] }
 0xab0   :  { %v7745_v50 = vpop.eup %7744 }
 0xab1   :  { %1828 = vrot.lane.b32.xlu1 %v7745_v50, %s8025_s25  ;;  %v7481_v50 = vld [vmem:[%s9771_s27 + $0x18] sm:$0xff] }
 0xab2   :  { %2187 = vmatpush.bf16.msra.mxu2 %v7490_v45  ;;  %v7494_v45 = vld [vmem:[%s9748_s9 + $0x10] sm:$0xff] }
 0xab6   :  { %2188 = vmatpush.bf16.msra.mxu2 %v7489_v53 }
 0xaba   :  { %2189 = vmatpush.bf16.msra.mxu2 %v7488_v51 }
 0xabe   :  { %2190 = vmatpush.bf16.msra.mxu2 %v7487_v52 }
 0xac2   :  { %2191 = vmatpush.bf16.msra.mxu2 %v7486_v54 }
 0xae9   :  { %v1825_v2 = vpop.permute.xlu2 %1824 }
 0xaea   :  { %v1833_v4 = vmul.f32 %v1825_v2, %v1818_v3 }
 0xaec   :  { %v8591_v12 = vadd.f32 %v1836_v7, %v1833_v4 }
 0xb21   :  { %v1827_v6 = vpop.permute.xlu0 %1826 }
 0xb22   :  { %v1834_v11 = vmul.f32 %v1827_v6, %v1819_v5 }
 0xb23   :  { %v1829_v8 = vpop.permute.xlu1 %1828 }
 0xb24   :  { %v1835_v14 = vmul.f32 %v1829_v8, %v1820_v9  ;;  %v8594_v15 = vadd.f32 %v1837_v10, %v1834_v11 }
 0xb26   :  { %v8596_v16 = vadd.f32 %v1838_v13, %v1835_v14  ;;  %v1842_v61 = vpack.c.bf16 %v8594_v15, %v8591_v12 }
 0xb28   :  { %v1843_v47 = vpack.c.bf16 %v8596_v16, %v8596_v16  ;;  %1852 = vrot.lane.b32.xlu2 %v1842_v61, %s8025_s25 }
 0xb2a   :  { %1854 = vrot.lane.b32.xlu0 %v1843_v47, %s8025_s25 }
 0xb82   :  { %v8604_v46 = vpop.permute.xlu2 %1852 }
 0xb83   :  { %6523 = vmatmul.msk.bf16.vlgmr.msra.gmra.mxu1 %vm170_vm11, %v8604_v46  ;;  %6532 = vmatmul.msk.bf16.vlgmr.msrb.gmra.mxu2 %vm170_vm11, %v8604_v46 }
 0xb84   :  { %6538 = vmatmul.msk.bf16.vlgmr.msra.gmra.mxu3 %vm170_vm11, %v8604_v46 }
 0xb9c   :  { %v8612_v37 = vpop.permute.xlu0 %1854 }
 0xb9d   :  { %6524 = vmatmul.msk.bf16.gmra.mxu1 %vm170_vm11, %v8612_v37  ;;  %6533 = vmatmul.msk.bf16.gmra.mxu2 %vm170_vm11, %v8612_v37 }
 0xb9e   :  { %6539 = vmatmul.msk.bf16.gmra.mxu3 %vm170_vm11, %v8612_v37 }
 0xc00   :  { %v1879_v62 = vpop.f32.mrf.mxu1 }
 0xc01   :  { %v1880_v18 = vadd.f32 %v7674_v17, %v1879_v62 }
 0xc03   :  { %6525 = vst.msk [vmem:[%s9759_s20 + $0x18] sm:$0xff] %vm764_vm6, %v1880_v18 }
 0xc06   :  { %v1911_v21 = vpop.f32.mrf.mxu2 }
 0xc07   :  { %v1941_v22 = vpop.f32.mrf.mxu3 }
 0xc08   :  { %v1881_v19 = vpop.f32.mrf.mxu1 }
 0xc09   :  { %v1882_v20 = vadd.f32 %v7674_v17, %v1881_v19 }
 0xc0b   :  { %6526 = vst.msk [vmem:[%s9759_s20 + $0x20] sm:$0xff] %vm764_vm6, %v1882_v20  ;;  %v7497_v20 = vld [vmem:[%s9748_s9 + $0x28] sm:$0xff] }
 0xc0c   :  { %2291 = vmatpush.bf16.msrb.mxu3 %v7497_v20  ;;  %v7501_v20 = vld [vmem:[%s9750_s11 + $0x18] sm:$0xff] }
 0xc0e   :  { %v1913_v23 = vpop.f32.mrf.mxu2 }
 0xc0f   :  { %v1943_v24 = vpop.f32.mrf.mxu3  ;;  %v1920_v35 = vpack.c.bf16 %v1913_v23, %v1911_v21  ;;  %v7496_v21 = vld [vmem:[%s9748_s9 + $0x20] sm:$0xff] }
 0xc10   :  { %v1950_v36 = vpack.c.bf16 %v1943_v24, %v1941_v22  ;;  %2292 = vmatpush.bf16.msrb.mxu3 %v7496_v21  ;;  %v7500_v21 = vld [vmem:[%s9750_s11 + $0x10] sm:$0xff] }
 0xc14   :  { %2293 = vmatpush.bf16.msrb.mxu3 %v7495_v44 }
 0xc18   :  { %2294 = vmatpush.bf16.msrb.mxu3 %v7494_v45 }
 0xc1a   :  { %v1884_v25 = vpop.f32.mrf.mxu1 }
 0xc1b   :  { %v1885_v26 = vadd.f32 %v7674_v17, %v1884_v25 }
 0xc1d   :  { %6527 = vst.msk [vmem:[%s9759_s20 + $0x28] sm:$0xff] %vm764_vm6, %v1885_v26 }
 0xc20   :  { %v1916_v27 = vpop.f32.mrf.mxu2 }
 0xc21   :  { %v1921_v28 = vpack.c.bf16 %v1916_v27, %v1916_v27  ;;  %v1946_v30 = vpop.f32.mrf.mxu3 }
 0xc22   :  { %v1951_v31 = vpack.c.bf16 %v1946_v30, %v1946_v30  ;;  %v1886_v32 = vpop.f32.mrf.mxu1 }
 0xc23   :  { %v2065_v33 = vsel %vm277_vm1, %v1921_v28, 0 }
 0xc24   :  { %v2001_v34 = vsel %vm277_vm1, %v1951_v31, 0  ;;  %2073 = vmatpush.bf16.msrb.mxu1 %v2065_v33 }
 0xc25   :  { %2009 = vmatpush.bf16.msrb.mxu0 %v2001_v34 }
 0xc28   :  { %v1918_v39 = vpop.f32.mrf.mxu2  ;;  %2074 = vmatpush.bf16.msrb.mxu1 %v1920_v35 }
 0xc29   :  { %v1948_v29 = vpop.f32.mrf.mxu3  ;;  %2010 = vmatpush.bf16.msrb.mxu0 %v1950_v36 }
 0xc2b   :  { %6576 = vmatmul.msk.bf16.vlgmr.msrb.gmra.mxu1 %vm264_vm2, %v7478_v38 }
 0xc2c   :  { %6556 = vmatmul.msk.bf16.vlgmr.msrb.gmra.mxu0 %vm264_vm2, %v7482_v40 }
 0xc3b   :  { %6577 = vmatmul.msk.bf16.gmra.mxu1 %vm264_vm2, %v7479_v41 }
 0xc3c   :  { %6557 = vmatmul.msk.bf16.gmra.mxu0 %vm264_vm2, %v7483_v43 }
 0xc4b   :  { %6578 = vmatmul.msk.bf16.gmra.mxu1 %vm264_vm2, %v7480_v48  ;;  %v7493_v48 = vld [vmem:[%s9748_s9 + $0x8] sm:$0xff] }
 0xc4c   :  { %6558 = vmatmul.msk.bf16.gmra.mxu0 %vm264_vm2, %v7484_v49  ;;  %2295 = vmatpush.bf16.msrb.mxu3 %v7493_v48  ;;  %v7492_v49 = vld [vmem:[%s9748_s9] sm:$0xff] }
 0xc50   :  { %2296 = vmatpush.bf16.msrb.mxu3 %v7492_v49 }
 0xc5b   :  { %6579 = vmatmul.msk.bf16.gmra.mxu1 %vm264_vm2, %v7481_v50 }
 0xc5c   :  { %6559 = vmatmul.msk.bf16.gmra.mxu0 %vm264_vm2, %v7485_v42  ;;  %v7676_v42 = vld [vmem:[#allocation2] ss:$0 sm:$0xff] }
 0xca8   :  { %v2076_v55 = vpop.f32.mrf.mxu1 }
 0xca9   :  { %v2012_v56 = vpop.f32.mrf.mxu0 }
 0xcaa   :  { %v2077_v57 = vadd.f32 %v2076_v55, %v2012_v56 }
 0xcac   :  { %v2100_v0 = vadd.f32 %v7675_v58, %v2077_v57 }
 0xcae   :  { %v2108_v4 = vmax.f32 %v2100_v0, 0.0 }
 0xcb0   :  { %v2078_v59 = vpop.f32.mrf.mxu1 }
 0xcb1   :  { %v2014_v60 = vpop.f32.mrf.mxu0 }
 0xcb2   :  { %v2079_v2 = vadd.f32 %v2078_v59, %v2014_v60 }
 0xcb4   :  { %v2101_v3 = vadd.f32 %v7675_v58, %v2079_v2 }
 0xcb6   :  { %v2109_v5 = vmax.f32 %v2101_v3, 0.0 }
 0xcb8   :  { %v2116_v6 = vpack.c.bf16 %v2109_v5, %v2108_v4  ;;  %v2081_v7 = vpop.f32.mrf.mxu1  ;;  %v7503_v4 = vld [vmem:[%s9750_s11 + $0x28] sm:$0xff] }
 0xcb9   :  { %v2017_v9 = vpop.f32.mrf.mxu0  ;;  %2396 = vmatpush.bf16.msra.mxu0 %v7503_v4 }
 0xcba   :  { %6604 = vmatmul.msk.bf16.vlgmr.msra.gmra.mxu2 %vm450_vm3, %v2116_v6  ;;  %v2082_v10 = vadd.f32 %v2081_v7, %v2017_v9  ;;  %v7502_v6 = vld [vmem:[%s9750_s11 + $0x20] sm:$0xff] }
 0xcbc   :  { %v2102_v13 = vadd.f32 %v7675_v58, %v2082_v10 }
 0xcbd   :  { %2397 = vmatpush.bf16.msra.mxu0 %v7502_v6 }
 0xcbe   :  { %v2110_v47 = vmax.f32 %v2102_v13, 0.0 }
 0xcc0   :  { %v2083_v11 = vpop.f32.mrf.mxu1 }
 0xcc1   :  { %v2019_v8 = vpop.f32.mrf.mxu0  ;;  %2398 = vmatpush.bf16.msra.mxu0 %v7501_v20 }
 0xcc2   :  { %v2084_v14 = vadd.f32 %v2083_v11, %v2019_v8 }
 0xcc4   :  { %v2103_v61 = vadd.f32 %v7675_v58, %v2084_v14 }
 0xcc5   :  { %2399 = vmatpush.bf16.msra.mxu0 %v7500_v21  ;;  %v7504_v21 = vld [vmem:[%s9773_s3] sm:$0xff] }
 0xcc6   :  { %v2111_v17 = vmax.f32 %v2103_v61, 0.0 }
 0xcc8   :  { %v2117_v62 = vpack.c.bf16 %v2111_v17, %v2110_v47  ;;  %v2086_v18 = vpop.f32.mrf.mxu1 }
 0xcc9   :  { %v2022_v19 = vpop.f32.mrf.mxu0 }
 0xcca   :  { %6605 = vmatmul.msk.bf16.gmra.mxu2 %vm450_vm3, %v2117_v62  ;;  %v2087_v22 = vadd.f32 %v2086_v18, %v2022_v19 }
 0xccc   :  { %v2104_v25 = vadd.f32 %v7675_v58, %v2087_v22  ;;  %v7499_v22 = vld [vmem:[%s9750_s11 + $0x8] sm:$0xff] }
 0xccd   :  { %2400 = vmatpush.bf16.msra.mxu0 %v7499_v22  ;;  %v2425_v22 = vld [vmem:[%s9773_s3 + $0x8] sm:$0xf] }
 0xcce   :  { %v2112_v28 = vmax.f32 %v2104_v25, 0.0  ;;  %v7677_v25 = vld [vmem:[#allocation4] ss:$0 sm:$0xff] }
 0xcd0   :  { %v2088_v23 = vpop.f32.mrf.mxu1 }
 0xcd1   :  { %v2024_v24 = vpop.f32.mrf.mxu0 }
 0xcd2   :  { %v2089_v26 = vadd.f32 %v2088_v23, %v2024_v24  ;;  %v7498_v23 = vld [vmem:[%s9750_s11] sm:$0xff] }
 0xcd3   :  { %2401 = vmatpush.bf16.msra.mxu0 %v7498_v23  ;;  %v2435_v23 = vunpack.c.l.b16 %v2425_v22 }
 0xcd4   :  { %v2105_v27 = vadd.f32 %v7675_v58, %v2089_v26 }
 0xcd6   :  { %v2113_v30 = vmax.f32 %v2105_v27, 0.0 }
 0xcd8   :  { %v2118_v31 = vpack.c.bf16 %v2113_v30, %v2112_v28  ;;  %v2091_v32 = vpop.f32.mrf.mxu1 }
 0xcd9   :  { %v2027_v33 = vpop.f32.mrf.mxu0 }
 0xcda   :  { %6606 = vmatmul.msk.bf16.gmra.mxu2 %vm450_vm3, %v2118_v31  ;;  %v2092_v34 = vadd.f32 %v2091_v32, %v2027_v33 }
 0xcdc   :  { %v2106_v38 = vadd.f32 %v7675_v58, %v2092_v34 }
 0xcde   :  { %v2114_v29 = vmax.f32 %v2106_v38, 0.0 }
 0xce0   :  { %v2093_v35 = vpop.f32.mrf.mxu1 }
 0xce1   :  { %v2029_v36 = vpop.f32.mrf.mxu0 }
 0xce2   :  { %v2094_v39 = vadd.f32 %v2093_v35, %v2029_v36 }
 0xce4   :  { %v2107_v40 = vadd.f32 %v7675_v58, %v2094_v39 }
 0xce6   :  { %v2115_v41 = vmax.f32 %v2107_v40, 0.0 }
 0xce8   :  { %v2119_v43 = vpack.c.bf16 %v2115_v41, %v2114_v29 }
 0xcea   :  { %6607 = vmatmul.msk.bf16.gmra.mxu2 %vm450_vm3, %v2119_v43 }
 0xd3d   :  { %v2193_v50 = vpop.f32.mrf.mxu2 }
 0xd3e   :  { %v2194_v53 = vadd.f32 %v7676_v42, %v2193_v50 }
 0xd40   :  { %v2213_v54 = vmax.f32 %v2194_v53, 0.0 }
 0xd45   :  { %v2195_v51 = vpop.f32.mrf.mxu2 }
 0xd46   :  { %v2196_v52 = vadd.f32 %v7676_v42, %v2195_v51 }
 0xd48   :  { %v2214_v55 = vmax.f32 %v2196_v52, 0.0 }
 0xd4a   :  { %v2221_v56 = vpack.c.bf16 %v2214_v55, %v2213_v54 }
 0xd4c   :  { %6632 = vmatmul.msk.bf16.vlgmr.msrb.gmra.mxu3 %vm450_vm3, %v2221_v56 }
 0xd4d   :  { %v2198_v57 = vpop.f32.mrf.mxu2 }
 0xd4e   :  { %v2199_v58 = vadd.f32 %v7676_v42, %v2198_v57 }
 0xd50   :  { %v2215_v0 = vmax.f32 %v2199_v58, 0.0 }
 0xd55   :  { %v2200_v59 = vpop.f32.mrf.mxu2 }
 0xd56   :  { %v2201_v60 = vadd.f32 %v7676_v42, %v2200_v59 }
 0xd58   :  { %v2216_v2 = vmax.f32 %v2201_v60, 0.0 }
 0xd5a   :  { %v2222_v3 = vpack.c.bf16 %v2216_v2, %v2215_v0 }
 0xd5c   :  { %6633 = vmatmul.msk.bf16.gmra.mxu3 %vm450_vm3, %v2222_v3  ;;  %v7678_v3 = vld [vmem:[#allocation6] ss:$0 sm:$0xff] }
 0xd5d   :  { %v2203_v5 = vpop.f32.mrf.mxu2 }
 0xd5e   :  { %v2204_v7 = vadd.f32 %v7676_v42, %v2203_v5 }
 0xd60   :  { %v2217_v11 = vmax.f32 %v2204_v7, 0.0 }
 0xd65   :  { %v2205_v9 = vpop.f32.mrf.mxu2 }
 0xd66   :  { %v2206_v10 = vadd.f32 %v7676_v42, %v2205_v9 }
 0xd68   :  { %v2218_v8 = vmax.f32 %v2206_v10, 0.0 }
 0xd6a   :  { %v2223_v13 = vpack.c.bf16 %v2218_v8, %v2217_v11 }
 0xd6c   :  { %6634 = vmatmul.msk.bf16.gmra.mxu3 %vm450_vm3, %v2223_v13  ;;  %v6688_v13 = vld [vmem:[#allocation7] sm:$0xf] }
 0xd6d   :  { %v2208_v14 = vpop.f32.mrf.mxu2 }
 0xd6e   :  { %v2209_v61 = vadd.f32 %v7676_v42, %v2208_v14  ;;  %v7508_v14 = vld [vmem:[#allocation7] sm:$0x10] }
 0xd70   :  { %v2219_v62 = vmax.f32 %v2209_v61, 0.0 }
 0xd75   :  { %v2210_v47 = vpop.f32.mrf.mxu2 }
 0xd76   :  { %v2211_v17 = vadd.f32 %v7676_v42, %v2210_v47 }
 0xd78   :  { %v2220_v18 = vmax.f32 %v2211_v17, 0.0 }
 0xd7a   :  { %v2224_v19 = vpack.c.bf16 %v2220_v18, %v2219_v62  ;;  %v6689_v62 = vor.u32 %v7508_v14, %v6688_v13 }
 0xd7c   :  { %6635 = vmatmul.msk.bf16.gmra.mxu3 %vm450_vm3, %v2224_v19  ;;  %v2562_v20 = vsel %vm174_vm0, %v6689_v62, 0 }
 0xdcf   :  { %v2298_v24 = vpop.f32.mrf.mxu3 }
 0xdd0   :  { %v2299_v26 = vadd.f32 %v7677_v25, %v2298_v24  ;;  %v2437_v24 = vpack.c.b16 %v2435_v23, %v2435_v23 }
 0xdd2   :  { %v2318_v30 = vmax.f32 %v2299_v26, 0.0  ;;  %v7507_v26 = vld [vmem:[%s9753_s14] sm:$0x10] }
 0xdd7   :  { %v2300_v27 = vpop.f32.mrf.mxu3 }
 0xdd8   :  { %v2301_v28 = vadd.f32 %v7677_v25, %v2300_v27  ;;  %v6682_v27 = vld [vmem:[%s9752_s13] sm:$0xf] }
 0xdda   :  { %v2319_v31 = vmax.f32 %v2301_v28, 0.0 }
 0xddc   :  { %v2326_v32 = vpack.c.bf16 %v2319_v31, %v2318_v30  ;;  %v7505_v30 = vld [vmem:[%s9752_s13] sm:$0x30] }
 0xddd   :  { %v6683_v31 = vor.u32 %v7505_v30, %v6682_v27 }
 0xdde   :  { %6660 = vmatmul.msk.bf16.vlgmr.msra.gmra.mxu0 %vm450_vm3, %v2326_v32 }
 0xddf   :  { %v2303_v33 = vpop.f32.mrf.mxu3 }
 0xde0   :  { %v2304_v34 = vadd.f32 %v7677_v25, %v2303_v33  ;;  %v2523_v33 = vand.u32 %v6683_v31, %v8299_v1 }
 0xde2   :  { %v2320_v38 = vmax.f32 %v2304_v34, 0.0  ;;  %2532 = vmatpush.bf16.msra.mxu3 %v2523_v33  ;;  %v7506_v34 = vld [vmem:[%s9774_s22] sm:$0xff] }
 0xde7   :  { %v2305_v35 = vpop.f32.mrf.mxu3 }
 0xde8   :  { %v2306_v36 = vadd.f32 %v7677_v25, %v2305_v35  ;;  %v2468_v35 = vld [vmem:[%s9774_s22 + $0x8] sm:$0xf] }
 0xdea   :  { %v2321_v39 = vmax.f32 %v2306_v36, 0.0  ;;  %v2476_v36 = vunpack.c.l.b16 %v2468_v35 }
 0xdec   :  { %v2327_v40 = vpack.c.bf16 %v2321_v39, %v2320_v38  ;;  %v2478_v38 = vpack.c.b16 %v2476_v36, %v2476_v36 }
 0xdee   :  { %6661 = vmatmul.msk.bf16.gmra.mxu0 %vm450_vm3, %v2327_v40 }
 0xdef   :  { %v2308_v29 = vpop.f32.mrf.mxu3 }
 0xdf0   :  { %v2309_v41 = vadd.f32 %v7677_v25, %v2308_v29 }
 0xdf2   :  { %v2322_v45 = vmax.f32 %v2309_v41, 0.0 }
 0xdf7   :  { %v2310_v43 = vpop.f32.mrf.mxu3 }
 0xdf8   :  { %v2311_v44 = vadd.f32 %v7677_v25, %v2310_v43  ;;  %v7679_v43 = vld [vmem:[#allocation10] ss:$0 sm:$0xff] }
 0xdfa   :  { %v2323_v48 = vmax.f32 %v2311_v44, 0.0 }
 0xdfc   :  { %v2328_v49 = vpack.c.bf16 %v2323_v48, %v2322_v45 }
 0xdfe   :  { %6662 = vmatmul.msk.bf16.gmra.mxu0 %vm450_vm3, %v2328_v49 }
 0xdff   :  { %v2313_v50 = vpop.f32.mrf.mxu3 }
 0xe00   :  { %v2314_v42 = vadd.f32 %v7677_v25, %v2313_v50 }
 0xe02   :  { %v2324_v52 = vmax.f32 %v2314_v42, 0.0 }
 0xe07   :  { %v2315_v53 = vpop.f32.mrf.mxu3 }
 0xe08   :  { %v2316_v51 = vadd.f32 %v7677_v25, %v2315_v53  ;;  %v6676_v25 = vld [vmem:[%s9753_s14] sm:$0xf] }
 0xe09   :  { %v6677_v28 = vor.u32 %v7507_v26, %v6676_v25 }
 0xe0a   :  { %v2325_v54 = vmax.f32 %v2316_v51, 0.0 }
 0xe0b   :  { %v2491_v32 = vand.u32 %v6677_v28, %v8297_v63 }
 0xe0c   :  { %v2329_v55 = vpack.c.bf16 %v2325_v54, %v2324_v52 }
 0xe0d   :  { %2500 = vmatpush.bf16.msrb.mxu2 %v2491_v32 }
 0xe0e   :  { %6663 = vmatmul.msk.bf16.gmra.mxu0 %vm450_vm3, %v2329_v55 }
 0xe10   :  { %6678 = vmatmul.msk.bf16.vlgmr.msrb.gmra.mxu2 %vm764_vm6, %v7506_v34 }
 0xe20   :  { %6679 = vmatmul.msk.bf16.gmra.mxu2 %vm764_vm6, %v2478_v38 }
 0xe5b   :  { %v2403_v56 = vpop.f32.mrf.mxu0 }
 0xe5c   :  { %v2404_v18 = vadd.f32 %v7678_v3, %v2403_v56  ;;  %v7680_v56 = vld [vmem:[#allocation9] ss:$0 sm:$0xff] }
 0xe63   :  { %v2405_v57 = vpop.f32.mrf.mxu0 }
 0xe64   :  { %v2406_v47 = vadd.f32 %v7678_v3, %v2405_v57 }
 0xe66   :  { %v2426_v19 = vpack.c.bf16 %v2406_v47, %v2404_v18 }
 0xe6b   :  { %v2408_v58 = vpop.f32.mrf.mxu0 }
 0xe6c   :  { %v2409_v61 = vadd.f32 %v7678_v3, %v2408_v58 }
 0xe73   :  { %v2410_v59 = vpop.f32.mrf.mxu0 }
 0xe74   :  { %v2411_v11 = vadd.f32 %v7678_v3, %v2410_v59 }
 0xe76   :  { %v2427_v17 = vpack.c.bf16 %v2411_v11, %v2409_v61 }
 0xe7b   :  { %v2413_v60 = vpop.f32.mrf.mxu0 }
 0xe7c   :  { %v2414_v10 = vadd.f32 %v7678_v3, %v2413_v60 }
 0xe83   :  { %v2415_v0 = vpop.f32.mrf.mxu0 }
 0xe84   :  { %v2416_v7 = vadd.f32 %v7678_v3, %v2415_v0 }
 0xe86   :  { %v2428_v8 = vpack.c.bf16 %v2416_v7, %v2414_v10 }
 0xe8b   :  { %v2418_v2 = vpop.f32.mrf.mxu0 }
 0xe8c   :  { %v2419_v5 = vadd.f32 %v7678_v3, %v2418_v2 }
 0xe93   :  { %v2420_v4 = vpop.f32.mrf.mxu0  ;;  %v2502_v51 = vpop.f32.mrf.mxu2 }
 0xe94   :  { %v2421_v6 = vadd.f32 %v7678_v3, %v2420_v4 }
 0xe96   :  { %v2429_v9 = vpack.c.bf16 %v2421_v6, %v2419_v5 }
 0xe98   :  { %2448 = vmatpush.bf16.msra.mxu1 %v2429_v9 }
 0xe9b   :  { %v2504_v52 = vpop.f32.mrf.mxu2 }
 0xe9c   :  { %2449 = vmatpush.bf16.msra.mxu1 %v2428_v8 }
 0xea0   :  { %2450 = vmatpush.bf16.msra.mxu1 %v2427_v17 }
 0xea3   :  { %v2507_v54 = vpop.f32.mrf.mxu2 }
 0xea4   :  { %2451 = vmatpush.bf16.msra.mxu1 %v2426_v19 }
 0xea7   :  { %6668 = vmatmul.msk.bf16.vlgmr.msra.gmra.mxu1 %vm717_vm4, %v7504_v21 }
 0xea8   :  { %2571 = vmatpush.bf16.msrb.mxu1 %v2562_v20 }
 0xeab   :  { %v2509_v55 = vpop.f32.mrf.mxu2 }
 0xeb7   :  { %6669 = vmatmul.msk.bf16.gmra.mxu1 %vm717_vm4, %v2437_v24 }
 0xec7   :  { %6690 = vmatmul.msk.bf16.vlgmr.msrb.gmra.mxu1 %vm170_vm11, %v8604_v46 }
 0xed7   :  { %6691 = vmatmul.msk.bf16.gmra.mxu1 %vm170_vm11, %v8612_v37 }
 0xf24   :  { %v2453_v39 = vpop.f32.mrf.mxu1 }
 0xf2c   :  { %v2455_v40 = vpop.f32.mrf.mxu1 }
 0xf2d   :  { %v2462_v46 = vpack.c.bf16 %v2455_v40, %v2453_v39 }
 0xf2f   :  { %6684 = vmatmul.msk.bf16.vlgmr.msra.gmra.mxu3 %vm799_vm7, %v2462_v46 }
 0xf34   :  { %v2458_v37 = vpop.f32.mrf.mxu1 }
 0xf35   :  { %v2463_v29 = vpack.c.bf16 %v2458_v37, %v2458_v37 }
 0xf3c   :  { %v2460_v41 = vpop.f32.mrf.mxu1 }
 0xf3f   :  { %6685 = vmatmul.msk.bf16.gmra.mxu3 %vm799_vm7, %v2463_v29 }
 0xf44   :  { %v2573_v44 = vpop.f32.mrf.mxu1 }
 0xf45   :  { %v2574_v45 = vadd.f32 %v7679_v43, %v2573_v44 }
 0xf47   :  { %2645 = vrot.lane.b32.xlu1 %v2574_v45, %s8023_s23 }
 0xf4c   :  { %v2575_v48 = vpop.f32.mrf.mxu1 }
 0xf4d   :  { %v2576_v49 = vadd.f32 %v7679_v43, %v2575_v48 }
 0xf4f   :  { %2647 = vrot.lane.b32.xlu2 %v2576_v49, %s8023_s23 }
 0xf54   :  { %v2578_v50 = vpop.f32.mrf.mxu1 }
 0xf55   :  { %v2579_v42 = vadd.f32 %v7679_v43, %v2578_v50 }
 0xf57   :  { %2649 = vrot.lane.b32.xlu0 %v2579_v42, %s8023_s23 }
 0xf5c   :  { %v2580_v53 = vpop.f32.mrf.mxu1 }
 0xfa9   :  { %v2648_v41 = vpop.permute.xlu2 %2647 }
 0xfb2   :  { %v2534_v57 = vpop.f32.mrf.mxu3 }
 0xfb3   :  { %v2535_v58 = vadd.f32 %v2534_v57, %v2502_v51 }
 0xfb5   :  { %v8775_v59 = vadd.f32 %v7680_v56, %v2535_v58 }
 0xfb7   :  { %v2582_v60 = vadd.f32 %v2574_v45, %v8775_v59 }
 0xfb9   :  { %v6692_v0 = vmul.f32 -1.442695, %v2582_v60  ;;  %v2646_v31 = vpop.permute.xlu1 %2645 }
 0xfba   :  { %v2536_v2 = vpop.f32.mrf.mxu3 }
 0xfbb   :  { %7746 = vpow2.f32 %v6692_v0  ;;  %v2537_v3 = vadd.f32 %v2536_v2, %v2504_v52 }
 0xfbd   :  { %v8778_v4 = vadd.f32 %v7680_v56, %v2537_v3 }
 0xfbf   :  { %v2583_v5 = vadd.f32 %v2576_v49, %v8778_v4 }
 0xfc1   :  { %v7747_v6 = vpop.eup %7746  ;;  %v6693_v7 = vmul.f32 -1.442695, %v2583_v5 }
 0xfc2   :  { %v2594_v9 = vadd.f32 1.0, %v7747_v6  ;;  %v2539_v10 = vpop.f32.mrf.mxu3 }
 0xfc3   :  { %7748 = vpow2.f32 %v6693_v7  ;;  %v2540_v11 = vadd.f32 %v2539_v10, %v2507_v54 }
 0xfc4   :  { %7750 = vrcp.f32 %v2594_v9  ;;  %v2608_v20 = vand.u32 2147483648, %v2594_v9  ;;  %v2606_v22 = vand.u32 2147483647, %v2594_v9  ;;  %vm2602_vm8 = vweird.f32 %v2594_v9 }
 0xfc5   :  { %v8781_v8 = vadd.f32 %v7680_v56, %v2540_v11 }
 0xfc6   :  { %v2609_v26 = vor.u32 1.1754944e-38, %v2608_v20  ;;  %vm2607_vm10 = vcmp.eq.f32.partialorder %v2606_v22, 8.507059e+37 }
 0xfc7   :  { %v2584_v13 = vadd.f32 %v2579_v42, %v8781_v8 }
 0xfc9   :  { %v7749_v14 = vpop.eup %7748  ;;  %v6694_v61 = vmul.f32 -1.442695, %v2584_v13  ;;  %v2650_v52 = vpop.permute.xlu0 %2649 }
 0xfca   :  { %v7751_v47 = vpop.eup %7750  ;;  %v2595_v17 = vadd.f32 1.0, %v7749_v14  ;;  %v2541_v62 = vpop.f32.mrf.mxu3 }
 0xfcb   :  { %v2598_v18 = vmul.f32 %v7751_v47, %v2594_v9  ;;  %7752 = vpow2.f32 %v6694_v61  ;;  %vm2603_vm5 = vweird.f32 %v7751_v47 }
 0xfcc   :  { %7754 = vrcp.f32 %v2595_v17  ;;  %vm2604_vm9 = vmor %vm2602_vm8, %vm2603_vm5  ;;  %v2623_v35 = vand.u32 2147483648, %v2595_v17  ;;  %v2621_v38 = vand.u32 2147483647, %v2595_v17  ;;  %vm2617_vm13 = vweird.f32 %v2595_v17 }
 0xfcd   :  { %v2599_v19 = vsub.f32 1.0, %v2598_v18 }
 0xfce   :  { %v2624_v46 = vor.u32 1.1754944e-38, %v2623_v35  ;;  %vm2622_vm15 = vcmp.eq.f32.partialorder %v2621_v38, 8.507059e+37  ;;  %v7681_v35 = vld [vmem:[#allocation12] ss:$0 sm:$0xff] }
 0xfcf   :  { %v2600_v21 = vmul.f32 %v7751_v47, %v2599_v19 }
 0xfd1   :  { %v7753_v23 = vpop.eup %7752  ;;  %v2601_v24 = vadd.f32 %v7751_v47, %v2600_v21  ;;  %v7509_v21 = vld [vmem:[%s9757_s18] sm:$0x10] }
 0xfd2   :  { %v7755_v25 = vpop.eup %7754  ;;  %v2596_v27 = vadd.f32 1.0, %v7753_v23  ;;  %v7510_v23 = vld [vmem:[%s9770_s24] sm:$0x10] }
 0xfd3   :  { %v2605_v28 = vsel %vm2604_vm9, %v7751_v47, %v2601_v24  ;;  %v2613_v30 = vmul.f32 %v7755_v25, %v2595_v17  ;;  %vm2618_vm12 = vweird.f32 %v7755_v25  ;;  %v6712_v24 = vld [vmem:[%s9744_s5] sm:$0xf] }
 0xfd4   :  { %v2610_v32 = vsel %vm2607_vm10, %v2609_v26, %v2605_v28  ;;  %7756 = vrcp.f32 %v2596_v27  ;;  %vm2619_vm14 = vmor %vm2617_vm13, %vm2618_vm12  ;;  %v2638_v48 = vand.u32 2147483648, %v2596_v27  ;;  %v2636_v50 = vand.u32 2147483647, %v2596_v27 }
 0xfd5   :  { %v2654_v33 = vmul.f32 %v2646_v31, %v2610_v32  ;;  %v2614_v34 = vsub.f32 1.0, %v2613_v30  ;;  %vm2632_vm8 = vweird.f32 %v2596_v27  ;;  %v2675_v10 = vsub.f32 1.0, %v2610_v32 }
 0xfd6   :  { %v2639_v53 = vor.u32 1.1754944e-38, %v2638_v48  ;;  %vm2637_vm10 = vcmp.eq.f32.partialorder %v2636_v50, 8.507059e+37 }
 0xfd7   :  { %2660 = vrot.lane.b32.xlu1 %v2654_v33, %s8024_s2  ;;  %v2615_v36 = vmul.f32 %v7755_v25, %v2614_v34 }
 0xfd9   :  { %v2616_v39 = vadd.f32 %v7755_v25, %v2615_v36 }
 0xfda   :  { %v7757_v40 = vpop.eup %7756 }
 0xfdb   :  { %v2628_v37 = vmul.f32 %v7757_v40, %v2596_v27  ;;  %v2620_v29 = vsel %vm2619_vm14, %v7755_v25, %v2616_v39  ;;  %vm2633_vm5 = vweird.f32 %v7757_v40  ;;  %v7511_v25 = vld [vmem:[%s9744_s5] sm:$0x10] }
 0xfdc   :  { %v2625_v43 = vsel %vm2622_vm15, %v2624_v46, %v2620_v29  ;;  %vm2634_vm9 = vmor %vm2632_vm8, %vm2633_vm5  ;;  %v6713_v27 = vor.u32 %v7511_v25, %v6712_v24 }
 0xfdd   :  { %v2629_v44 = vsub.f32 1.0, %v2628_v37  ;;  %v2655_v45 = vmul.f32 %v2648_v41, %v2625_v43  ;;  %v2694_v13 = vmul.f32 %v2625_v43, %v8594_v15  ;;  %v6697_v15 = vld [vmem:[%s9757_s18] sm:$0xf] }
 0xfde   :  { %v6698_v22 = vor.u32 %v7509_v21, %v6697_v15  ;;  %v2787_v31 = vsel %vm174_vm0, %v6713_v27, 0 }
 0xfdf   :  { %v2630_v49 = vmul.f32 %v7757_v40, %v2629_v44  ;;  %2662 = vrot.lane.b32.xlu2 %v2655_v45, %s8024_s2  ;;  %2796 = vmatpush.bf16.msrb.mxu0 %v2787_v31 }
 0xfe0   :  { %v2725_v28 = vsel %vm174_vm0, %v6698_v22, 0 }
 0xfe1   :  { %v2631_v42 = vadd.f32 %v7757_v40, %v2630_v49  ;;  %2734 = vmatpush.bf16.msra.mxu2 %v2725_v28 }
 0xfe3   :  { %v2635_v51 = vsel %vm2634_vm9, %v7757_v40, %v2631_v42 }
 0xfe4   :  { %v2640_v54 = vsel %vm2637_vm10, %v2639_v53, %v2635_v51  ;;  %v7516_v53 = vld [vmem:[%s9772_s29] sm:$0xff] }
 0xfe5   :  { %v2656_v55 = vmul.f32 %v2650_v52, %v2640_v54  ;;  %v2677_v17 = vsub.f32 1.0, %v2640_v54  ;;  %v2695_v18 = vmul.f32 %v2640_v54, %v8596_v16  ;;  %v6706_v16 = vld [vmem:[%s9770_s24] sm:$0xf] }
 0xfe6   :  { %v6707_v26 = vor.u32 %v7510_v23, %v6706_v16 }
 0xfe7   :  { %2664 = vrot.lane.b32.xlu0 %v2656_v55, %s8024_s2  ;;  %v7512_v55 = vld [vmem:[%s9771_s27] sm:$0xff] }
 0xfe8   :  { %v2757_v30 = vsel %vm174_vm0, %v6707_v26, 0 }
 0xfe9   :  { %2766 = vmatpush.bf16.msrb.mxu3 %v2757_v30 }
0x1039   :  { %v2663_v56 = vpop.permute.xlu2 %2662 }
0x103a   :  { %v2670_v57 = vadd.f32 %v2663_v56, %v8778_v4  ;;  %v2676_v4 = vsub.f32 1.0, %v2625_v43 }
0x103c   :  { %7758 = vtanh.f32 %v2670_v57 }
0x1042   :  { %v7759_v58 = vpop.eup %7758 }
0x1043   :  { %2683 = vrot.lane.b32.xlu2 %v7759_v58, %s8025_s25  ;;  %v7517_v58 = vld [vmem:[%s9772_s29 + $0x8] sm:$0xff] }
0x1049   :  { %v2661_v60 = vpop.permute.xlu1 %2660 }
0x104a   :  { %v2669_v0 = vadd.f32 %v2661_v60, %v8775_v59  ;;  %v2693_v59 = vmul.f32 %v2610_v32, %v8591_v12  ;;  %v7513_v60 = vld [vmem:[%s9771_s27 + $0x8] sm:$0xff] }
0x104c   :  { %7760 = vtanh.f32 %v2669_v0  ;;  %v7518_v0 = vld [vmem:[%s9772_s29 + $0x10] sm:$0xff] }
0x1052   :  { %v7761_v2 = vpop.eup %7760 }
0x1053   :  { %2681 = vrot.lane.b32.xlu1 %v7761_v2, %s8025_s25  ;;  %v7514_v2 = vld [vmem:[%s9771_s27 + $0x10] sm:$0xff] }
0x1059   :  { %v2665_v3 = vpop.permute.xlu0 %2664 }
0x105a   :  { %v2671_v5 = vadd.f32 %v2665_v3, %v8781_v8  ;;  %v7519_v3 = vld [vmem:[%s9772_s29 + $0x18] sm:$0xff] }
0x105c   :  { %7762 = vtanh.f32 %v2671_v5  ;;  %v7515_v5 = vld [vmem:[%s9771_s27 + $0x18] sm:$0xff] }
0x1062   :  { %v7763_v6 = vpop.eup %7762 }
0x1063   :  { %2685 = vrot.lane.b32.xlu0 %v7763_v6, %s8025_s25  ;;  %v7525_v6 = vld [vmem:[%s9746_s7 + $0x28] sm:$0xff] }
0x1064   :  { %3043 = vmatpush.bf16.msra.mxu3 %v7525_v6 }
0x109d   :  { %v2684_v7 = vpop.permute.xlu2 %2683 }
0x109e   :  { %v2691_v9 = vmul.f32 %v2684_v7, %v2676_v4  ;;  %v7524_v7 = vld [vmem:[%s9746_s7 + $0x20] sm:$0xff]  ;;  %v7523_v4 = vld [vmem:[%s9746_s7 + $0x18] sm:$0xff] }
0x109f   :  { %3044 = vmatpush.bf16.msra.mxu3 %v7524_v7  ;;  %v7683_v7 = vld [vmem:[#allocation2] ss:$0 sm:$0xff] }
0x10a0   :  { %v8795_v61 = vadd.f32 %v2694_v13, %v2691_v9  ;;  %v7522_v9 = vld [vmem:[%s9746_s7 + $0x10] sm:$0xff] }
0x10a3   :  { %3045 = vmatpush.bf16.msra.mxu3 %v7523_v4 }
0x10a7   :  { %3046 = vmatpush.bf16.msra.mxu3 %v7522_v9 }
0x10c5   :  { %v2682_v11 = vpop.permute.xlu1 %2681 }
0x10c6   :  { %v2690_v14 = vmul.f32 %v2682_v11, %v2675_v10  ;;  %v7521_v10 = vld [vmem:[%s9746_s7 + $0x8] sm:$0xff]  ;;  %v7520_v11 = vld [vmem:[%s9746_s7] sm:$0xff] }
0x10c7   :  { %3047 = vmatpush.bf16.msra.mxu3 %v7521_v10 }
0x10c8   :  { %v8797_v47 = vadd.f32 %v2693_v59, %v2690_v14 }
0x10ca   :  { %v2699_v8 = vpack.c.bf16 %v8795_v61, %v8797_v47 }
0x10cb   :  { %3048 = vmatpush.bf16.msra.mxu3 %v7520_v11 }
0x10cc   :  { %2709 = vrot.lane.b32.xlu1 %v2699_v8, %s8025_s25 }
0x10d5   :  { %v2686_v62 = vpop.permute.xlu0 %2685 }
0x10d6   :  { %v2692_v19 = vmul.f32 %v2686_v62, %v2677_v17  ;;  %v7682_v17 = vld [vmem:[%s9745_s6] ss:$0 sm:$0xff] }
0x10d8   :  { %v8803_v20 = vadd.f32 %v2695_v18, %v2692_v19 }
0x10da   :  { %v2700_v12 = vpack.c.bf16 %v8803_v20, %v8803_v20 }
0x10dc   :  { %2711 = vrot.lane.b32.xlu2 %v2700_v12, %s8025_s25 }
0x1136   :  { %v8837_v33 = vpop.permute.xlu2 %2711 }
0x113e   :  { %v8829_v32 = vpop.permute.xlu1 %2709 }
0x113f   :  { %6699 = vmatmul.msk.bf16.vlgmr.msra.gmra.mxu2 %vm170_vm11, %v8829_v32  ;;  %6708 = vmatmul.msk.bf16.vlgmr.msrb.gmra.mxu3 %vm170_vm11, %v8829_v32 }
0x1140   :  { %6714 = vmatmul.msk.bf16.vlgmr.msrb.gmra.mxu0 %vm170_vm11, %v8829_v32 }
0x114f   :  { %6700 = vmatmul.msk.bf16.gmra.mxu2 %vm170_vm11, %v8837_v33  ;;  %6709 = vmatmul.msk.bf16.gmra.mxu3 %vm170_vm11, %v8837_v33 }
0x1150   :  { %6715 = vmatmul.msk.bf16.gmra.mxu0 %vm170_vm11, %v8837_v33 }
0x11bd   :  { %v2798_v34 = vpop.f32.mrf.mxu0 }
0x11c2   :  { %v2736_v36 = vpop.f32.mrf.mxu2  ;;  %v2768_v38 = vpop.f32.mrf.mxu3 }
0x11c3   :  { %v2737_v39 = vadd.f32 %v7681_v35, %v2736_v36 }
0x11c5   :  { %6701 = vst.msk [vmem:[%s9759_s20 + $0x30] sm:$0xff] %vm764_vm6, %v2737_v39  ;;  %v2800_v40 = vpop.f32.mrf.mxu0  ;;  %v7531_v39 = vld [vmem:[%s9748_s9 + $0x28] sm:$0xff] }
0x11c6   :  { %v2807_v49 = vpack.c.bf16 %v2800_v40, %v2798_v34  ;;  %3148 = vmatpush.bf16.msra.mxu0 %v7531_v39  ;;  %v7530_v40 = vld [vmem:[%s9748_s9 + $0x20] sm:$0xff]  ;;  %v7535_v39 = vld [vmem:[%s9750_s11 + $0x18] sm:$0xff] }
0x11ca   :  { %v2738_v46 = vpop.f32.mrf.mxu2  ;;  %v2770_v37 = vpop.f32.mrf.mxu3  ;;  %3149 = vmatpush.bf16.msra.mxu0 %v7530_v40  ;;  %v7534_v40 = vld [vmem:[%s9750_s11 + $0x10] sm:$0xff] }
0x11cb   :  { %v2739_v29 = vadd.f32 %v7681_v35, %v2738_v46  ;;  %v2777_v54 = vpack.c.bf16 %v2770_v37, %v2768_v38 }
0x11cd   :  { %6702 = vst.msk [vmem:[%s9759_s20 + $0x38] sm:$0xff] %vm764_vm6, %v2739_v29  ;;  %v2803_v41 = vpop.f32.mrf.mxu0 }
0x11ce   :  { %v2808_v43 = vpack.c.bf16 %v2803_v41, %v2803_v41 }
0x11d0   :  { %v2858_v44 = vsel %vm277_vm1, %v2808_v43, 0 }
0x11d1   :  { %2866 = vmatpush.bf16.msra.mxu1 %v2858_v44 }
0x11d2   :  { %v2741_v45 = vpop.f32.mrf.mxu2  ;;  %v2773_v48 = vpop.f32.mrf.mxu3 }
0x11d3   :  { %v2742_v50 = vadd.f32 %v7681_v35, %v2741_v45  ;;  %v2778_v42 = vpack.c.bf16 %v2773_v48, %v2773_v48 }
0x11d5   :  { %6703 = vst.msk [vmem:[%s9759_s20 + $0x40] sm:$0xff] %vm764_vm6, %v2742_v50  ;;  %v2922_v51 = vsel %vm277_vm1, %v2778_v42, 0  ;;  %v2805_v52 = vpop.f32.mrf.mxu0  ;;  %2867 = vmatpush.bf16.msra.mxu1 %v2807_v49 }
0x11d6   :  { %2930 = vmatpush.bf16.msrb.mxu2 %v2922_v51 }
0x11d8   :  { %6732 = vmatmul.msk.bf16.vlgmr.msra.gmra.mxu1 %vm264_vm2, %v7516_v53 }
0x11da   :  { %v2743_v56 = vpop.f32.mrf.mxu2  ;;  %v2775_v57 = vpop.f32.mrf.mxu3  ;;  %2931 = vmatpush.bf16.msrb.mxu2 %v2777_v54 }
0x11dd   :  { %6752 = vmatmul.msk.bf16.vlgmr.msrb.gmra.mxu2 %vm264_vm2, %v7512_v55 }
0x11e8   :  { %6733 = vmatmul.msk.bf16.gmra.mxu1 %vm264_vm2, %v7517_v58 }
0x11ed   :  { %6753 = vmatmul.msk.bf16.gmra.mxu2 %vm264_vm2, %v7513_v60 }
0x11f8   :  { %6734 = vmatmul.msk.bf16.gmra.mxu1 %vm264_vm2, %v7518_v0  ;;  %v7529_v0 = vld [vmem:[%s9748_s9 + $0x18] sm:$0xff] }
0x11f9   :  { %3150 = vmatpush.bf16.msra.mxu0 %v7529_v0 }
0x11fd   :  { %6754 = vmatmul.msk.bf16.gmra.mxu2 %vm264_vm2, %v7514_v2  ;;  %v7528_v2 = vld [vmem:[%s9748_s9 + $0x10] sm:$0xff] }
0x11fe   :  { %3151 = vmatpush.bf16.msra.mxu0 %v7528_v2 }
0x1208   :  { %6735 = vmatmul.msk.bf16.gmra.mxu1 %vm264_vm2, %v7519_v3  ;;  %v7527_v3 = vld [vmem:[%s9748_s9 + $0x8] sm:$0xff] }
0x1209   :  { %3152 = vmatpush.bf16.msra.mxu0 %v7527_v3 }
0x120d   :  { %6755 = vmatmul.msk.bf16.gmra.mxu2 %vm264_vm2, %v7515_v5  ;;  %v7526_v5 = vld [vmem:[%s9748_s9] sm:$0xff] }
0x120e   :  { %3153 = vmatpush.bf16.msra.mxu0 %v7526_v5 }
0x1255   :  { %v2869_v13 = vpop.f32.mrf.mxu1 }
0x125d   :  { %v2871_v59 = vpop.f32.mrf.mxu1 }
0x1260   :  { %v2933_v14 = vpop.f32.mrf.mxu2 }
0x1261   :  { %v2934_v8 = vadd.f32 %v2933_v14, %v2869_v13 }
0x1263   :  { %v2957_v19 = vadd.f32 %v7682_v17, %v2934_v8 }
0x1265   :  { %v2874_v62 = vpop.f32.mrf.mxu1  ;;  %v2965_v21 = vmax.f32 %v2957_v19, 0.0 }
0x1268   :  { %v2935_v18 = vpop.f32.mrf.mxu2 }
0x1269   :  { %v2936_v12 = vadd.f32 %v2935_v18, %v2871_v59 }
0x126b   :  { %v2958_v15 = vadd.f32 %v7682_v17, %v2936_v12 }
0x126d   :  { %v2966_v16 = vmax.f32 %v2958_v15, 0.0  ;;  %v2876_v23 = vpop.f32.mrf.mxu1  ;;  %v7537_v15 = vld [vmem:[%s9750_s11 + $0x28] sm:$0xff] }
0x126e   :  { %3253 = vmatpush.bf16.msrb.mxu1 %v7537_v15 }
0x126f   :  { %v2973_v22 = vpack.c.bf16 %v2966_v16, %v2965_v21  ;;  %v7536_v16 = vld [vmem:[%s9750_s11 + $0x20] sm:$0xff] }
0x1270   :  { %v2938_v24 = vpop.f32.mrf.mxu2 }
0x1271   :  { %6780 = vmatmul.msk.bf16.vlgmr.msra.gmra.mxu3 %vm450_vm3, %v2973_v22  ;;  %v2939_v25 = vadd.f32 %v2938_v24, %v2874_v62 }
0x1272   :  { %3254 = vmatpush.bf16.msrb.mxu1 %v7536_v16 }
0x1273   :  { %v2959_v27 = vadd.f32 %v7682_v17, %v2939_v25 }
0x1275   :  { %v2879_v30 = vpop.f32.mrf.mxu1  ;;  %v2967_v34 = vmax.f32 %v2959_v27, 0.0 }
0x1276   :  { %3255 = vmatpush.bf16.msrb.mxu1 %v7535_v39 }
0x1278   :  { %v2940_v26 = vpop.f32.mrf.mxu2 }
0x1279   :  { %v2941_v28 = vadd.f32 %v2940_v26, %v2876_v23 }
0x127a   :  { %3256 = vmatpush.bf16.msrb.mxu1 %v7534_v40  ;;  %v7538_v40 = vld [vmem:[%s9773_s3] sm:$0xff] }
0x127b   :  { %v2960_v31 = vadd.f32 %v7682_v17, %v2941_v28 }
0x127d   :  { %v2968_v35 = vmax.f32 %v2960_v31, 0.0  ;;  %v2881_v46 = vpop.f32.mrf.mxu1 }
0x127f   :  { %v2974_v36 = vpack.c.bf16 %v2968_v35, %v2967_v34 }
0x1280   :  { %v2943_v38 = vpop.f32.mrf.mxu2 }
0x1281   :  { %6781 = vmatmul.msk.bf16.gmra.mxu3 %vm450_vm3, %v2974_v36  ;;  %v2944_v37 = vadd.f32 %v2943_v38, %v2879_v30 }
0x1283   :  { %v2961_v41 = vadd.f32 %v7682_v17, %v2944_v37  ;;  %v7532_v37 = vld [vmem:[%s9750_s11] sm:$0xff] }
0x1285   :  { %v2969_v45 = vmax.f32 %v2961_v41, 0.0  ;;  %v2884_v49 = vpop.f32.mrf.mxu1  ;;  %v7684_v41 = vld [vmem:[#allocation4] ss:$0 sm:$0xff] }
0x1288   :  { %v2945_v29 = vpop.f32.mrf.mxu2 }
0x1289   :  { %v2946_v43 = vadd.f32 %v2945_v29, %v2881_v46  ;;  %v7533_v46 = vld [vmem:[%s9750_s11 + $0x8] sm:$0xff] }
0x128a   :  { %3257 = vmatpush.bf16.msrb.mxu1 %v7533_v46  ;;  %v3282_v46 = vld [vmem:[%s9773_s3 + $0x8] sm:$0xf] }
0x128b   :  { %v2962_v44 = vadd.f32 %v7682_v17, %v2946_v43 }
0x128d   :  { %v2970_v48 = vmax.f32 %v2962_v44, 0.0  ;;  %v2886_v51 = vpop.f32.mrf.mxu1 }
0x128e   :  { %3258 = vmatpush.bf16.msrb.mxu1 %v7532_v37  ;;  %v3292_v37 = vunpack.c.l.b16 %v3282_v46 }
0x128f   :  { %v2975_v50 = vpack.c.bf16 %v2970_v48, %v2969_v45 }
0x1290   :  { %v2948_v42 = vpop.f32.mrf.mxu2 }
0x1291   :  { %6782 = vmatmul.msk.bf16.gmra.mxu3 %vm450_vm3, %v2975_v50  ;;  %v2949_v53 = vadd.f32 %v2948_v42, %v2884_v49 }
0x1293   :  { %v2963_v54 = vadd.f32 %v7682_v17, %v2949_v53 }
0x1295   :  { %v2971_v57 = vmax.f32 %v2963_v54, 0.0 }
0x1298   :  { %v2950_v52 = vpop.f32.mrf.mxu2 }
0x1299   :  { %v2951_v55 = vadd.f32 %v2950_v52, %v2886_v51 }
0x129b   :  { %v2964_v56 = vadd.f32 %v7682_v17, %v2951_v55 }
0x129d   :  { %v2972_v58 = vmax.f32 %v2964_v56, 0.0 }
0x129f   :  { %v2976_v60 = vpack.c.bf16 %v2972_v58, %v2971_v57 }
0x12a1   :  { %6783 = vmatmul.msk.bf16.gmra.mxu3 %vm450_vm3, %v2976_v60 }
0x12f4   :  { %v3050_v6 = vpop.f32.mrf.mxu3 }
0x12f5   :  { %v3051_v4 = vadd.f32 %v7683_v7, %v3050_v6 }
0x12f7   :  { %v3070_v11 = vmax.f32 %v3051_v4, 0.0 }
0x12fc   :  { %v3052_v9 = vpop.f32.mrf.mxu3 }
0x12fd   :  { %v3053_v10 = vadd.f32 %v7683_v7, %v3052_v9 }
0x12ff   :  { %v3071_v13 = vmax.f32 %v3053_v10, 0.0 }
0x1301   :  { %v3078_v59 = vpack.c.bf16 %v3071_v13, %v3070_v11 }
0x1303   :  { %6808 = vmatmul.msk.bf16.vlgmr.msra.gmra.mxu0 %vm450_vm3, %v3078_v59 }
0x1304   :  { %v3055_v14 = vpop.f32.mrf.mxu3 }
0x1305   :  { %v3056_v8 = vadd.f32 %v7683_v7, %v3055_v14 }
0x1307   :  { %v3072_v18 = vmax.f32 %v3056_v8, 0.0 }
0x130c   :  { %v3057_v17 = vpop.f32.mrf.mxu3 }
0x130d   :  { %v3058_v62 = vadd.f32 %v7683_v7, %v3057_v17 }
0x130f   :  { %v3073_v19 = vmax.f32 %v3058_v62, 0.0 }
0x1311   :  { %v3079_v12 = vpack.c.bf16 %v3073_v19, %v3072_v18 }
0x1313   :  { %6809 = vmatmul.msk.bf16.gmra.mxu0 %vm450_vm3, %v3079_v12  ;;  %v7685_v12 = vld [vmem:[#allocation6] ss:$0 sm:$0xff] }
0x1314   :  { %v3060_v21 = vpop.f32.mrf.mxu3 }
0x1315   :  { %v3061_v22 = vadd.f32 %v7683_v7, %v3060_v21 }
0x1317   :  { %v3074_v25 = vmax.f32 %v3061_v22, 0.0 }
0x131c   :  { %v3062_v23 = vpop.f32.mrf.mxu3 }
0x131d   :  { %v3063_v24 = vadd.f32 %v7683_v7, %v3062_v23 }
0x131f   :  { %v3075_v26 = vmax.f32 %v3063_v24, 0.0 }
0x1321   :  { %v3080_v27 = vpack.c.bf16 %v3075_v26, %v3074_v25 }
0x1323   :  { %6810 = vmatmul.msk.bf16.gmra.mxu0 %vm450_vm3, %v3080_v27  ;;  %v6864_v27 = vld [vmem:[#allocation7] sm:$0xf] }
0x1324   :  { %v3065_v28 = vpop.f32.mrf.mxu3 }
0x1325   :  { %v3066_v30 = vadd.f32 %v7683_v7, %v3065_v28  ;;  %v7542_v28 = vld [vmem:[#allocation7] sm:$0x10] }
0x1327   :  { %v3076_v35 = vmax.f32 %v3066_v30, 0.0 }
0x132c   :  { %v3067_v31 = vpop.f32.mrf.mxu3 }
0x132d   :  { %v3068_v34 = vadd.f32 %v7683_v7, %v3067_v31 }
0x132f   :  { %v3077_v36 = vmax.f32 %v3068_v34, 0.0 }
0x1331   :  { %v3081_v38 = vpack.c.bf16 %v3077_v36, %v3076_v35  ;;  %v6865_v35 = vor.u32 %v7542_v28, %v6864_v27 }
0x1333   :  { %6811 = vmatmul.msk.bf16.gmra.mxu0 %vm450_vm3, %v3081_v38  ;;  %v3419_v39 = vsel %vm174_vm0, %v6865_v35, 0 }
0x1380   :  { %v3155_v29 = vpop.f32.mrf.mxu0 }
0x1381   :  { %v3156_v43 = vadd.f32 %v7684_v41, %v3155_v29  ;;  %v3294_v29 = vpack.c.b16 %v3292_v37, %v3292_v37 }
0x1383   :  { %v3175_v48 = vmax.f32 %v3156_v43, 0.0  ;;  %v7541_v43 = vld [vmem:[%s9753_s14] sm:$0x10] }
0x1388   :  { %v3157_v44 = vpop.f32.mrf.mxu0 }
0x1389   :  { %v3158_v45 = vadd.f32 %v7684_v41, %v3157_v44  ;;  %v6858_v44 = vld [vmem:[%s9752_s13] sm:$0xf] }
0x138b   :  { %v3176_v49 = vmax.f32 %v3158_v45, 0.0 }
0x138d   :  { %v3183_v50 = vpack.c.bf16 %v3176_v49, %v3175_v48  ;;  %v7539_v48 = vld [vmem:[%s9752_s13] sm:$0x30] }
0x138e   :  { %v6859_v49 = vor.u32 %v7539_v48, %v6858_v44 }
0x138f   :  { %6836 = vmatmul.msk.bf16.vlgmr.msrb.gmra.mxu1 %vm450_vm3, %v3183_v50 }
0x1390   :  { %v3160_v42 = vpop.f32.mrf.mxu0 }
0x1391   :  { %v3161_v53 = vadd.f32 %v7684_v41, %v3160_v42  ;;  %v3380_v42 = vand.u32 %v6859_v49, %v8299_v1 }
0x1393   :  { %v3177_v54 = vmax.f32 %v3161_v53, 0.0  ;;  %v7540_v53 = vld [vmem:[%s9774_s22] sm:$0xff]  ;;  %3389 = vmatpush.bf16.msrb.mxu0 %v3380_v42 }
0x1398   :  { %v3162_v51 = vpop.f32.mrf.mxu0 }
0x1399   :  { %v3163_v52 = vadd.f32 %v7684_v41, %v3162_v51  ;;  %v3325_v51 = vld [vmem:[%s9774_s22 + $0x8] sm:$0xf] }
0x139b   :  { %v3178_v55 = vmax.f32 %v3163_v52, 0.0  ;;  %v3333_v52 = vunpack.c.l.b16 %v3325_v51 }
0x139d   :  { %v3184_v56 = vpack.c.bf16 %v3178_v55, %v3177_v54  ;;  %v3335_v54 = vpack.c.b16 %v3333_v52, %v3333_v52 }
0x139f   :  { %6837 = vmatmul.msk.bf16.gmra.mxu1 %vm450_vm3, %v3184_v56 }
0x13a0   :  { %v3165_v57 = vpop.f32.mrf.mxu0 }
0x13a1   :  { %v3166_v58 = vadd.f32 %v7684_v41, %v3165_v57 }
0x13a3   :  { %v3179_v2 = vmax.f32 %v3166_v58, 0.0 }
0x13a8   :  { %v3167_v60 = vpop.f32.mrf.mxu0 }
0x13a9   :  { %v3168_v0 = vadd.f32 %v7684_v41, %v3167_v60 }
0x13ab   :  { %v3180_v3 = vmax.f32 %v3168_v0, 0.0 }
0x13ad   :  { %v3185_v5 = vpack.c.bf16 %v3180_v3, %v3179_v2 }
0x13af   :  { %6838 = vmatmul.msk.bf16.gmra.mxu1 %vm450_vm3, %v3185_v5 }
0x13b0   :  { %v3170_v6 = vpop.f32.mrf.mxu0 }
0x13b1   :  { %v3171_v7 = vadd.f32 %v7684_v41, %v3170_v6 }
0x13b3   :  { %v3181_v10 = vmax.f32 %v3171_v7, 0.0 }
0x13b8   :  { %v3172_v4 = vpop.f32.mrf.mxu0 }
0x13b9   :  { %v3173_v9 = vadd.f32 %v7684_v41, %v3172_v4  ;;  %v6852_v41 = vld [vmem:[%s9753_s14] sm:$0xf] }
0x13ba   :  { %v6853_v45 = vor.u32 %v7541_v43, %v6852_v41 }
0x13bb   :  { %v3182_v11 = vmax.f32 %v3173_v9, 0.0 }
0x13bc   :  { %v3348_v50 = vand.u32 %v6853_v45, %v8297_v63 }
0x13bd   :  { %v3186_v13 = vpack.c.bf16 %v3182_v11, %v3181_v10 }
0x13be   :  { %3357 = vmatpush.bf16.msrb.mxu3 %v3348_v50 }
0x13bf   :  { %6839 = vmatmul.msk.bf16.gmra.mxu1 %vm450_vm3, %v3186_v13 }
0x13c1   :  { %6854 = vmatmul.msk.bf16.vlgmr.msrb.gmra.mxu3 %vm764_vm6, %v7540_v53 }
0x13d1   :  { %6855 = vmatmul.msk.bf16.gmra.mxu3 %vm764_vm6, %v3335_v54 }
0x140c   :  { %v3260_v59 = vpop.f32.mrf.mxu1 }
0x140d   :  { %v3261_v36 = vadd.f32 %v7685_v12, %v3260_v59  ;;  %v7687_v59 = vld [vmem:[#allocation9] ss:$0 sm:$0xff] }
0x1414   :  { %v3262_v14 = vpop.f32.mrf.mxu1 }
0x1415   :  { %v3263_v31 = vadd.f32 %v7685_v12, %v3262_v14 }
0x1417   :  { %v3283_v38 = vpack.c.bf16 %v3263_v31, %v3261_v36 }
0x141c   :  { %v3265_v8 = vpop.f32.mrf.mxu1 }
0x141d   :  { %v3266_v30 = vadd.f32 %v7685_v12, %v3265_v8 }
0x1424   :  { %v3267_v17 = vpop.f32.mrf.mxu1 }
0x1425   :  { %v3268_v25 = vadd.f32 %v7685_v12, %v3267_v17 }
0x1427   :  { %v3284_v34 = vpack.c.bf16 %v3268_v25, %v3266_v30 }
0x142c   :  { %v3270_v62 = vpop.f32.mrf.mxu1 }
0x142d   :  { %v3271_v24 = vadd.f32 %v7685_v12, %v3270_v62 }
0x1434   :  { %v3272_v18 = vpop.f32.mrf.mxu1 }
0x1435   :  { %v3273_v22 = vadd.f32 %v7685_v12, %v3272_v18 }
0x1437   :  { %v3285_v26 = vpack.c.bf16 %v3273_v22, %v3271_v24 }
0x143c   :  { %v3275_v19 = vpop.f32.mrf.mxu1 }
0x143d   :  { %v3276_v21 = vadd.f32 %v7685_v12, %v3275_v19 }
0x1444   :  { %v3277_v15 = vpop.f32.mrf.mxu1  ;;  %v3359_v9 = vpop.f32.mrf.mxu3 }
0x1445   :  { %v3278_v16 = vadd.f32 %v7685_v12, %v3277_v15 }
0x1447   :  { %v3286_v23 = vpack.c.bf16 %v3278_v16, %v3276_v21 }
0x1449   :  { %3305 = vmatpush.bf16.msra.mxu2 %v3286_v23 }
0x144c   :  { %v3361_v10 = vpop.f32.mrf.mxu3 }
0x144d   :  { %3306 = vmatpush.bf16.msra.mxu2 %v3285_v26 }
0x1451   :  { %3307 = vmatpush.bf16.msra.mxu2 %v3284_v34 }
0x1454   :  { %v3364_v11 = vpop.f32.mrf.mxu3 }
0x1455   :  { %3308 = vmatpush.bf16.msra.mxu2 %v3283_v38 }
0x1458   :  { %6844 = vmatmul.msk.bf16.vlgmr.msra.gmra.mxu2 %vm717_vm4, %v7538_v40 }
0x1459   :  { %3428 = vmatpush.bf16.msrb.mxu2 %v3419_v39 }
0x145c   :  { %v3366_v13 = vpop.f32.mrf.mxu3 }
0x1468   :  { %6845 = vmatmul.msk.bf16.gmra.mxu2 %vm717_vm4, %v3294_v29 }
0x1478   :  { %6866 = vmatmul.msk.bf16.vlgmr.msrb.gmra.mxu2 %vm170_vm11, %v8829_v32  ;;  %v7686_v32 = vld [vmem:[#allocation10] ss:$0 sm:$0xff] }
0x1488   :  { %6867 = vmatmul.msk.bf16.gmra.mxu2 %vm170_vm11, %v8837_v33 }
0x14db   :  { %v3310_v55 = vpop.f32.mrf.mxu2 }
0x14e3   :  { %v3312_v56 = vpop.f32.mrf.mxu2 }
0x14e4   :  { %v3319_v57 = vpack.c.bf16 %v3312_v56, %v3310_v55 }
0x14e6   :  { %6860 = vmatmul.msk.bf16.vlgmr.msrb.gmra.mxu0 %vm799_vm7, %v3319_v57 }
0x14eb   :  { %v3315_v58 = vpop.f32.mrf.mxu2 }
0x14ec   :  { %v3320_v60 = vpack.c.bf16 %v3315_v58, %v3315_v58 }
0x14f3   :  { %v3317_v0 = vpop.f32.mrf.mxu2 }
0x14f6   :  { %6861 = vmatmul.msk.bf16.gmra.mxu0 %vm799_vm7, %v3320_v60 }
0x14fb   :  { %v3430_v33 = vpop.f32.mrf.mxu2 }
0x14fc   :  { %v3431_v2 = vadd.f32 %v7686_v32, %v3430_v33 }
0x14fe   :  { %3502 = vrot.lane.b32.xlu0 %v3431_v2, %s8023_s23 }
0x1503   :  { %v3432_v3 = vpop.f32.mrf.mxu2 }
0x1504   :  { %v3433_v5 = vadd.f32 %v7686_v32, %v3432_v3 }
0x1506   :  { %3504 = vrot.lane.b32.xlu1 %v3433_v5, %s8023_s23 }
0x150b   :  { %v3435_v6 = vpop.f32.mrf.mxu2 }
0x150c   :  { %v3436_v7 = vadd.f32 %v7686_v32, %v3435_v6 }
0x150e   :  { %3506 = vrot.lane.b32.xlu2 %v3436_v7, %s8023_s23 }
0x1513   :  { %v3437_v4 = vpop.f32.mrf.mxu2 }
0x1563   :  { %v3391_v14 = vpop.f32.mrf.mxu0 }
0x1564   :  { %v3392_v8 = vadd.f32 %v3391_v14, %v3359_v9 }
0x1566   :  { %v9000_v17 = vadd.f32 %v7687_v59, %v3392_v8 }
0x1568   :  { %v3439_v62 = vadd.f32 %v3431_v2, %v9000_v17 }
0x156a   :  { %v6868_v18 = vmul.f32 -1.442695, %v3439_v62 }
0x156b   :  { %v3393_v19 = vpop.f32.mrf.mxu0 }
0x156c   :  { %7764 = vpow2.f32 %v6868_v18  ;;  %v3394_v12 = vadd.f32 %v3393_v19, %v3361_v10  ;;  %v3507_v10 = vpop.permute.xlu2 %3506 }
0x156e   :  { %v9003_v15 = vadd.f32 %v7687_v59, %v3394_v12 }
0x1570   :  { %v3440_v21 = vadd.f32 %v3433_v5, %v9003_v15  ;;  %v3503_v49 = vpop.permute.xlu0 %3502 }
0x1572   :  { %v7765_v16 = vpop.eup %7764  ;;  %v6869_v22 = vmul.f32 -1.442695, %v3440_v21 }
0x1573   :  { %v3451_v23 = vadd.f32 1.0, %v7765_v16  ;;  %v3396_v24 = vpop.f32.mrf.mxu0 }
0x1574   :  { %7766 = vpow2.f32 %v6869_v22  ;;  %v3397_v25 = vadd.f32 %v3396_v24, %v3364_v11 }
0x1575   :  { %7768 = vrcp.f32 %v3451_v23  ;;  %v3465_v39 = vand.u32 2147483648, %v3451_v23  ;;  %v3463_v46 = vand.u32 2147483647, %v3451_v23  ;;  %vm3459_vm13 = vweird.f32 %v3451_v23 }
0x1576   :  { %v9006_v26 = vadd.f32 %v7687_v59, %v3397_v25 }
0x1577   :  { %v3466_v43 = vor.u32 1.1754944e-38, %v3465_v39  ;;  %vm3464_vm15 = vcmp.eq.f32.partialorder %v3463_v46, 8.507059e+37 }
0x1578   :  { %v3441_v27 = vadd.f32 %v3436_v7, %v9006_v26  ;;  %v3505_v0 = vpop.permute.xlu1 %3504 }
0x157a   :  { %v7767_v28 = vpop.eup %7766  ;;  %v6870_v30 = vmul.f32 -1.442695, %v3441_v27 }
0x157b   :  { %v7769_v31 = vpop.eup %7768  ;;  %v3452_v34 = vadd.f32 1.0, %v7767_v28  ;;  %v3398_v35 = vpop.f32.mrf.mxu0 }
0x157c   :  { %v3455_v36 = vmul.f32 %v7769_v31, %v3451_v23  ;;  %7770 = vpow2.f32 %v6870_v30  ;;  %vm3460_vm12 = vweird.f32 %v7769_v31 }
0x157d   :  { %7772 = vrcp.f32 %v3452_v34  ;;  %vm3461_vm14 = vmor %vm3459_vm13, %vm3460_vm12  ;;  %v3480_v51 = vand.u32 2147483648, %v3452_v34  ;;  %v3478_v54 = vand.u32 2147483647, %v3452_v34  ;;  %vm3474_vm8 = vweird.f32 %v3452_v34 }
0x157e   :  { %v3456_v38 = vsub.f32 1.0, %v3455_v36 }
0x157f   :  { %v3481_v57 = vor.u32 1.1754944e-38, %v3480_v51  ;;  %vm3479_vm10 = vcmp.eq.f32.partialorder %v3478_v54, 8.507059e+37 }
0x1580   :  { %v3457_v40 = vmul.f32 %v7769_v31, %v3456_v38 }
0x1582   :  { %v7771_v37 = vpop.eup %7770  ;;  %v3458_v29 = vadd.f32 %v7769_v31, %v3457_v40  ;;  %v6888_v40 = vld [vmem:[%s9744_s5] sm:$0xf] }
0x1583   :  { %v7773_v41 = vpop.eup %7772  ;;  %v3453_v44 = vadd.f32 1.0, %v7771_v37  ;;  %v7543_v37 = vld [vmem:[%s9757_s18] sm:$0x10] }
0x1584   :  { %v3462_v45 = vsel %vm3461_vm14, %v7769_v31, %v3458_v29  ;;  %v3470_v48 = vmul.f32 %v7773_v41, %v3452_v34  ;;  %vm3475_vm5 = vweird.f32 %v7773_v41  ;;  %v6882_v29 = vld [vmem:[%s9770_s24] sm:$0xf] }
0x1585   :  { %v9009_v50 = vsel %vm3464_vm15, %v3466_v43, %v3462_v45  ;;  %7774 = vrcp.f32 %v3453_v44  ;;  %vm3476_vm9 = vmor %vm3474_vm8, %vm3475_vm5  ;;  %v3495_v3 = vand.u32 2147483648, %v3453_v44  ;;  %v3493_v6 = vand.u32 2147483647, %v3453_v44 }
0x1586   :  { %v3511_v42 = vmul.f32 %v3503_v49, %v9009_v50  ;;  %v3471_v53 = vsub.f32 1.0, %v3470_v48  ;;  %vm3489_vm13 = vweird.f32 %v3453_v44  ;;  %v3550_v34 = vmul.f32 %v9009_v50, %v8797_v47  ;;  %v7545_v47 = vld [vmem:[%s9744_s5] sm:$0x10] }
0x1587   :  { %v3496_v4 = vor.u32 1.1754944e-38, %v3495_v3  ;;  %vm3494_vm15 = vcmp.eq.f32.partialorder %v3493_v6, 8.507059e+37  ;;  %v6889_v46 = vor.u32 %v7545_v47, %v6888_v40 }
0x1588   :  { %v3472_v52 = vmul.f32 %v7773_v41, %v3471_v53  ;;  %3517 = vrot.lane.b32.xlu0 %v3511_v42, %s8024_s2 }
0x1589   :  { %v3644_v45 = vsel %vm174_vm0, %v6889_v46, 0 }
0x158a   :  { %v3473_v55 = vadd.f32 %v7773_v41, %v3472_v52  ;;  %3653 = vmatpush.bf16.msra.mxu1 %v3644_v45  ;;  %v7688_v52 = vld [vmem:[#allocation12] ss:$0 sm:$0xff] }
0x158b   :  { %v7775_v56 = vpop.eup %7774 }
0x158c   :  { %v3477_v58 = vsel %vm3476_vm9, %v7773_v41, %v3473_v55  ;;  %v3485_v60 = vmul.f32 %v7775_v56, %v3453_v44  ;;  %vm3490_vm12 = vweird.f32 %v7775_v56  ;;  %v7544_v41 = vld [vmem:[%s9770_s24] sm:$0x10] }
0x158d   :  { %v3482_v32 = vsel %vm3479_vm10, %v3481_v57, %v3477_v58  ;;  %vm3491_vm14 = vmor %vm3489_vm13, %vm3490_vm12  ;;  %v6883_v44 = vor.u32 %v7544_v41, %v6882_v29 }
0x158e   :  { %v3512_v33 = vmul.f32 %v3505_v0, %v3482_v32  ;;  %v3486_v2 = vsub.f32 1.0, %v3485_v60  ;;  %v3533_v30 = vsub.f32 1.0, %v3482_v32  ;;  %v3551_v35 = vmul.f32 %v3482_v32, %v8795_v61  ;;  %v6873_v61 = vld [vmem:[%s9757_s18] sm:$0xf] }
0x158f   :  { %v6874_v43 = vor.u32 %v7543_v37, %v6873_v61  ;;  %v3614_v49 = vsel %vm174_vm0, %v6883_v44, 0 }
0x1590   :  { %3519 = vrot.lane.b32.xlu1 %v3512_v33, %s8024_s2  ;;  %v3487_v5 = vmul.f32 %v7775_v56, %v3486_v2  ;;  %3623 = vmatpush.bf16.msra.mxu0 %v3614_v49 }
0x1591   :  { %v3582_v48 = vsel %vm174_vm0, %v6874_v43, 0 }
0x1592   :  { %v3488_v7 = vadd.f32 %v7775_v56, %v3487_v5  ;;  %3591 = vmatpush.bf16.msra.mxu3 %v3582_v48 }
0x1594   :  { %v3492_v9 = vsel %vm3491_vm14, %v7775_v56, %v3488_v7 }
0x1595   :  { %v3497_v11 = vsel %vm3494_vm15, %v3496_v4, %v3492_v9 }
0x1596   :  { %v3513_v13 = vmul.f32 %v3507_v10, %v3497_v11  ;;  %v3534_v22 = vsub.f32 1.0, %v3497_v11  ;;  %v3552_v24 = vmul.f32 %v3497_v11, %v8803_v20  ;;  %v7546_v10 = vld [vmem:[%s9771_s27] sm:$0xff] }
0x1598   :  { %3521 = vrot.lane.b32.xlu2 %v3513_v13, %s8024_s2  ;;  %v7550_v13 = vld [vmem:[%s9772_s29] sm:$0xff] }
0x15f2   :  { %v3522_v59 = vpop.permute.xlu2 %3521 }
0x15f3   :  { %v3528_v14 = vadd.f32 %v3522_v59, %v9006_v26 }
0x15f5   :  { %7776 = vtanh.f32 %v3528_v14 }
0x15fa   :  { %v3518_v8 = vpop.permute.xlu0 %3517 }
0x15fb   :  { %v7777_v62 = vpop.eup %7776  ;;  %v3526_v18 = vadd.f32 %v3518_v8, %v9000_v17  ;;  %v7547_v8 = vld [vmem:[%s9771_s27 + $0x8] sm:$0xff] }
0x15fc   :  { %3542 = vrot.lane.b32.xlu2 %v7777_v62, %s8025_s25  ;;  %v7551_v62 = vld [vmem:[%s9772_s29 + $0x8] sm:$0xff] }
0x15fd   :  { %7778 = vtanh.f32 %v3526_v18  ;;  %v7559_v18 = vld [vmem:[%s9746_s7 + $0x28] sm:$0xff] }
0x15fe   :  { %3900 = vmatpush.bf16.msrb.mxu0 %v7559_v18  ;;  %v7563_v18 = vld [vmem:[%s9748_s9 + $0x18] sm:$0xff] }
0x1602   :  { %v3520_v19 = vpop.permute.xlu1 %3519 }
0x1603   :  { %v7779_v12 = vpop.eup %7778  ;;  %v3527_v21 = vadd.f32 %v3520_v19, %v9003_v15  ;;  %v3532_v15 = vsub.f32 1.0, %v9009_v50  ;;  %v7558_v19 = vld [vmem:[%s9746_s7 + $0x20] sm:$0xff] }
0x1604   :  { %3538 = vrot.lane.b32.xlu0 %v7779_v12, %s8025_s25  ;;  %3901 = vmatpush.bf16.msrb.mxu0 %v7558_v19  ;;  %v7548_v12 = vld [vmem:[%s9771_s27 + $0x10] sm:$0xff] }
0x1605   :  { %7780 = vtanh.f32 %v3527_v21  ;;  %v7552_v21 = vld [vmem:[%s9772_s29 + $0x10] sm:$0xff] }
0x1606   :  { %v7562_v19 = vld [vmem:[%s9748_s9 + $0x10] sm:$0xff] }
0x160b   :  { %v7781_v16 = vpop.eup %7780 }
0x160c   :  { %3540 = vrot.lane.b32.xlu1 %v7781_v16, %s8025_s25  ;;  %v7549_v16 = vld [vmem:[%s9771_s27 + $0x18] sm:$0xff] }
0x1656   :  { %v3543_v23 = vpop.permute.xlu2 %3542 }
0x1657   :  { %v3549_v25 = vmul.f32 %v3543_v23, %v3534_v22  ;;  %v7553_v22 = vld [vmem:[%s9772_s29 + $0x18] sm:$0xff] }
0x1658   :  { %v7557_v23 = vld [vmem:[%s9746_s7 + $0x18] sm:$0xff] }
0x1659   :  { %v9022_v26 = vadd.f32 %v3552_v24, %v3549_v25  ;;  %3902 = vmatpush.bf16.msrb.mxu0 %v7557_v23  ;;  %v7556_v24 = vld [vmem:[%s9746_s7 + $0x10] sm:$0xff]  ;;  %v7555_v25 = vld [vmem:[%s9746_s7 + $0x8] sm:$0xff] }
0x165b   :  { %v3557_v17 = vpack.c.bf16 %v9022_v26, %v9022_v26 }
0x165d   :  { %3568 = vrot.lane.b32.xlu1 %v3557_v17, %s8025_s25  ;;  %3903 = vmatpush.bf16.msrb.mxu0 %v7556_v24  ;;  %v7554_v17 = vld [vmem:[%s9746_s7] sm:$0xff] }
0x1661   :  { %3904 = vmatpush.bf16.msrb.mxu0 %v7555_v25 }
0x1665   :  { %3905 = vmatpush.bf16.msrb.mxu0 %v7554_v17 }
0x1676   :  { %v3539_v27 = vpop.permute.xlu0 %3538 }
0x1677   :  { %v3547_v28 = vmul.f32 %v3539_v27, %v3532_v15 }
0x1679   :  { %v9031_v36 = vadd.f32 %v3550_v34, %v3547_v28 }
0x167e   :  { %v3541_v31 = vpop.permute.xlu1 %3540 }
0x167f   :  { %v3548_v20 = vmul.f32 %v3541_v31, %v3533_v30  ;;  %v7689_v30 = vld [vmem:[%s9745_s6] ss:$0 sm:$0xff] }
0x1681   :  { %v9033_v38 = vadd.f32 %v3551_v35, %v3548_v20 }
0x1683   :  { %v3556_v39 = vpack.c.bf16 %v9033_v38, %v9031_v36 }
0x1685   :  { %3566 = vrot.lane.b32.xlu0 %v3556_v39, %s8025_s25 }
0x16cf   :  { %v9067_v42 = vpop.permute.xlu1 %3568 }
0x16f7   :  { %v9059_v50 = vpop.permute.xlu0 %3566 }
0x16f8   :  { %6875 = vmatmul.msk.bf16.vlgmr.msra.gmra.mxu3 %vm170_vm11, %v9059_v50  ;;  %6884 = vmatmul.msk.bf16.vlgmr.msra.gmra.mxu0 %vm170_vm11, %v9059_v50 }
0x16f9   :  { %6890 = vmatmul.msk.bf16.vlgmr.msra.gmra.mxu1 %vm170_vm11, %v9059_v50 }
0x1708   :  { %6876 = vmatmul.msk.bf16.gmra.mxu3 %vm170_vm11, %v9067_v42  ;;  %6885 = vmatmul.msk.bf16.gmra.mxu0 %vm170_vm11, %v9067_v42 }
0x1709   :  { %6891 = vmatmul.msk.bf16.gmra.mxu1 %vm170_vm11, %v9067_v42 }
0x1775   :  { %v3625_v53 = vpop.f32.mrf.mxu0 }
0x1776   :  { %v3655_v51 = vpop.f32.mrf.mxu1 }
0x177b   :  { %v3593_v54 = vpop.f32.mrf.mxu3 }
0x177c   :  { %v3594_v55 = vadd.f32 %v7688_v52, %v3593_v54 }
0x177d   :  { %v3627_v56 = vpop.f32.mrf.mxu0 }
0x177e   :  { %6877 = vst.msk [vmem:[%s9759_s20 + $0x48] sm:$0xff] %vm764_vm6, %v3594_v55  ;;  %v3657_v57 = vpop.f32.mrf.mxu1  ;;  %v3634_v6 = vpack.c.bf16 %v3627_v56, %v3625_v53  ;;  %v7565_v55 = vld [vmem:[%s9748_s9 + $0x28] sm:$0xff]  ;;  %v7564_v56 = vld [vmem:[%s9748_s9 + $0x20] sm:$0xff] }
0x177f   :  { %v3664_v4 = vpack.c.bf16 %v3657_v57, %v3655_v51  ;;  %4005 = vmatpush.bf16.msrb.mxu1 %v7565_v55  ;;  %v7569_v55 = vld [vmem:[%s9750_s11 + $0x18] sm:$0xff] }
0x1783   :  { %v3595_v58 = vpop.f32.mrf.mxu3  ;;  %4006 = vmatpush.bf16.msrb.mxu1 %v7564_v56  ;;  %v7568_v56 = vld [vmem:[%s9750_s11 + $0x10] sm:$0xff] }
0x1784   :  { %v3596_v60 = vadd.f32 %v7688_v52, %v3595_v58 }
0x1785   :  { %v3630_v0 = vpop.f32.mrf.mxu0 }
0x1786   :  { %6878 = vst.msk [vmem:[%s9759_s20 + $0x50] sm:$0xff] %vm764_vm6, %v3596_v60  ;;  %v3635_v32 = vpack.c.bf16 %v3630_v0, %v3630_v0  ;;  %v3660_v33 = vpop.f32.mrf.mxu1 }
0x1787   :  { %v3665_v2 = vpack.c.bf16 %v3660_v33, %v3660_v33  ;;  %4007 = vmatpush.bf16.msrb.mxu1 %v7563_v18 }
0x1788   :  { %v3779_v3 = vsel %vm277_vm1, %v3635_v32, 0 }
0x1789   :  { %v3715_v5 = vsel %vm277_vm1, %v3665_v2, 0  ;;  %3787 = vmatpush.bf16.msrb.mxu3 %v3779_v3 }
0x178a   :  { %3723 = vmatpush.bf16.msra.mxu2 %v3715_v5 }
0x178b   :  { %v3598_v7 = vpop.f32.mrf.mxu3  ;;  %4008 = vmatpush.bf16.msrb.mxu1 %v7562_v19 }
0x178c   :  { %v3599_v9 = vadd.f32 %v7688_v52, %v3598_v7 }
0x178d   :  { %v3632_v11 = vpop.f32.mrf.mxu0  ;;  %3788 = vmatpush.bf16.msrb.mxu3 %v3634_v6 }
0x178e   :  { %6879 = vst.msk [vmem:[%s9759_s20 + $0x58] sm:$0xff] %vm764_vm6, %v3599_v9  ;;  %v3662_v59 = vpop.f32.mrf.mxu1  ;;  %3724 = vmatpush.bf16.msra.mxu2 %v3664_v4 }
0x1790   :  { %6928 = vmatmul.msk.bf16.vlgmr.msrb.gmra.mxu3 %vm264_vm2, %v7546_v10 }
0x1791   :  { %6908 = vmatmul.msk.bf16.vlgmr.msra.gmra.mxu2 %vm264_vm2, %v7550_v13 }
0x1793   :  { %v3600_v14 = vpop.f32.mrf.mxu3 }
0x17a0   :  { %6929 = vmatmul.msk.bf16.gmra.mxu3 %vm264_vm2, %v7547_v8 }
0x17a1   :  { %6909 = vmatmul.msk.bf16.gmra.mxu2 %vm264_vm2, %v7551_v62 }
0x17b0   :  { %6930 = vmatmul.msk.bf16.gmra.mxu3 %vm264_vm2, %v7548_v12  ;;  %v7561_v12 = vld [vmem:[%s9748_s9 + $0x8] sm:$0xff] }
0x17b1   :  { %6910 = vmatmul.msk.bf16.gmra.mxu2 %vm264_vm2, %v7552_v21  ;;  %4009 = vmatpush.bf16.msrb.mxu1 %v7561_v12  ;;  %v7560_v21 = vld [vmem:[%s9748_s9] sm:$0xff] }
0x17b5   :  { %4010 = vmatpush.bf16.msrb.mxu1 %v7560_v21 }
0x17c0   :  { %6931 = vmatmul.msk.bf16.gmra.mxu3 %vm264_vm2, %v7549_v16 }
0x17c1   :  { %6911 = vmatmul.msk.bf16.gmra.mxu2 %vm264_vm2, %v7553_v22  ;;  %v7690_v22 = vld [vmem:[#allocation2] ss:$0 sm:$0xff] }
0x1813   :  { %v3790_v27 = vpop.f32.mrf.mxu3 }
0x1814   :  { %v3726_v15 = vpop.f32.mrf.mxu2 }
0x1815   :  { %v3791_v28 = vadd.f32 %v3790_v27, %v3726_v15 }
0x1817   :  { %v3814_v35 = vadd.f32 %v7689_v30, %v3791_v28 }
0x1819   :  { %v3822_v40 = vmax.f32 %v3814_v35, 0.0 }
0x181b   :  { %v3792_v31 = vpop.f32.mrf.mxu3 }
0x181c   :  { %v3728_v34 = vpop.f32.mrf.mxu2 }
0x181d   :  { %v3793_v20 = vadd.f32 %v3792_v31, %v3728_v34 }
0x181f   :  { %v3815_v39 = vadd.f32 %v7689_v30, %v3793_v20 }
0x1821   :  { %v3823_v47 = vmax.f32 %v3815_v39, 0.0 }
0x1823   :  { %v3830_v61 = vpack.c.bf16 %v3823_v47, %v3822_v40  ;;  %v3795_v46 = vpop.f32.mrf.mxu3  ;;  %v7571_v40 = vld [vmem:[%s9750_s11 + $0x28] sm:$0xff] }
0x1824   :  { %v3731_v37 = vpop.f32.mrf.mxu2  ;;  %4110 = vmatpush.bf16.msrb.mxu2 %v7571_v40 }
0x1825   :  { %6956 = vmatmul.msk.bf16.vlgmr.msrb.gmra.mxu0 %vm450_vm3, %v3830_v61  ;;  %v3796_v29 = vadd.f32 %v3795_v46, %v3731_v37  ;;  %v7570_v61 = vld [vmem:[%s9750_s11 + $0x20] sm:$0xff] }
0x1827   :  { %v3816_v44 = vadd.f32 %v7689_v30, %v3796_v29 }
0x1828   :  { %4111 = vmatpush.bf16.msrb.mxu2 %v7570_v61 }
0x1829   :  { %v3824_v49 = vmax.f32 %v3816_v44, 0.0 }
0x182b   :  { %v3797_v41 = vpop.f32.mrf.mxu3 }
0x182c   :  { %v3733_v43 = vpop.f32.mrf.mxu2  ;;  %4112 = vmatpush.bf16.msrb.mxu2 %v7569_v55 }
0x182d   :  { %v3798_v45 = vadd.f32 %v3797_v41, %v3733_v43 }
0x182f   :  { %v3817_v48 = vadd.f32 %v7689_v30, %v3798_v45 }
0x1830   :  { %4113 = vmatpush.bf16.msrb.mxu2 %v7568_v56  ;;  %v7572_v56 = vld [vmem:[%s9773_s3] sm:$0xff] }
0x1831   :  { %v3825_v53 = vmax.f32 %v3817_v48, 0.0 }
0x1833   :  { %v3831_v51 = vpack.c.bf16 %v3825_v53, %v3824_v49  ;;  %v3800_v52 = vpop.f32.mrf.mxu3 }
0x1834   :  { %v3736_v54 = vpop.f32.mrf.mxu2 }
0x1835   :  { %6957 = vmatmul.msk.bf16.gmra.mxu0 %vm450_vm3, %v3831_v51  ;;  %v3801_v57 = vadd.f32 %v3800_v52, %v3736_v54 }
0x1837   :  { %v3818_v0 = vadd.f32 %v7689_v30, %v3801_v57  ;;  %v7567_v57 = vld [vmem:[%s9750_s11 + $0x8] sm:$0xff] }
0x1838   :  { %4114 = vmatpush.bf16.msrb.mxu2 %v7567_v57  ;;  %v4139_v57 = vld [vmem:[%s9773_s3 + $0x8] sm:$0xf] }
0x1839   :  { %v3826_v2 = vmax.f32 %v3818_v0, 0.0  ;;  %v7691_v0 = vld [vmem:[#allocation4] ss:$0 sm:$0xff] }
0x183b   :  { %v3802_v58 = vpop.f32.mrf.mxu3 }
0x183c   :  { %v3738_v60 = vpop.f32.mrf.mxu2 }
0x183d   :  { %v3803_v32 = vadd.f32 %v3802_v58, %v3738_v60  ;;  %v7566_v58 = vld [vmem:[%s9750_s11] sm:$0xff] }
0x183e   :  { %4115 = vmatpush.bf16.msrb.mxu2 %v7566_v58  ;;  %v4149_v58 = vunpack.c.l.b16 %v4139_v57 }
0x183f   :  { %v3819_v33 = vadd.f32 %v7689_v30, %v3803_v32 }
0x1841   :  { %v3827_v3 = vmax.f32 %v3819_v33, 0.0 }
0x1843   :  { %v3832_v5 = vpack.c.bf16 %v3827_v3, %v3826_v2  ;;  %v3805_v6 = vpop.f32.mrf.mxu3 }
0x1844   :  { %v3741_v7 = vpop.f32.mrf.mxu2 }
0x1845   :  { %6958 = vmatmul.msk.bf16.gmra.mxu0 %vm450_vm3, %v3832_v5  ;;  %v3806_v4 = vadd.f32 %v3805_v6, %v3741_v7 }
0x1847   :  { %v3820_v11 = vadd.f32 %v7689_v30, %v3806_v4 }
0x1849   :  { %v3828_v14 = vmax.f32 %v3820_v11, 0.0 }
0x184b   :  { %v3807_v9 = vpop.f32.mrf.mxu3 }
0x184c   :  { %v3743_v10 = vpop.f32.mrf.mxu2 }
0x184d   :  { %v3808_v13 = vadd.f32 %v3807_v9, %v3743_v10 }
0x184f   :  { %v3821_v59 = vadd.f32 %v7689_v30, %v3808_v13 }
0x1851   :  { %v3829_v8 = vmax.f32 %v3821_v59, 0.0 }
0x1853   :  { %v3833_v62 = vpack.c.bf16 %v3829_v8, %v3828_v14 }
0x1855   :  { %6959 = vmatmul.msk.bf16.gmra.mxu0 %vm450_vm3, %v3833_v62 }
0x18a2   :  { %v3907_v16 = vpop.f32.mrf.mxu0 }
0x18a3   :  { %v3908_v23 = vadd.f32 %v7690_v22, %v3907_v16 }
0x18a5   :  { %v3927_v17 = vmax.f32 %v3908_v23, 0.0 }
0x18aa   :  { %v3909_v24 = vpop.f32.mrf.mxu0 }
0x18ab   :  { %v3910_v25 = vadd.f32 %v7690_v22, %v3909_v24 }
0x18ad   :  { %v3928_v27 = vmax.f32 %v3910_v25, 0.0 }
0x18af   :  { %v3935_v15 = vpack.c.bf16 %v3928_v27, %v3927_v17 }
0x18b1   :  { %6984 = vmatmul.msk.bf16.vlgmr.msrb.gmra.mxu1 %vm450_vm3, %v3935_v15 }
0x18b2   :  { %v3912_v28 = vpop.f32.mrf.mxu0 }
0x18b3   :  { %v3913_v30 = vadd.f32 %v7690_v22, %v3912_v28 }
0x18b5   :  { %v3929_v35 = vmax.f32 %v3913_v30, 0.0 }
0x18ba   :  { %v3914_v31 = vpop.f32.mrf.mxu0 }
0x18bb   :  { %v3915_v34 = vadd.f32 %v7690_v22, %v3914_v31 }
0x18bd   :  { %v3930_v20 = vmax.f32 %v3915_v34, 0.0 }
0x18bf   :  { %v3936_v39 = vpack.c.bf16 %v3930_v20, %v3929_v35 }
0x18c1   :  { %6985 = vmatmul.msk.bf16.gmra.mxu1 %vm450_vm3, %v3936_v39  ;;  %v7692_v39 = vld [vmem:[#allocation6] ss:$0 sm:$0xff] }
0x18c2   :  { %v3917_v47 = vpop.f32.mrf.mxu0 }
0x18c3   :  { %v3918_v46 = vadd.f32 %v7690_v22, %v3917_v47 }
0x18c5   :  { %v3931_v41 = vmax.f32 %v3918_v46, 0.0 }
0x18ca   :  { %v3919_v37 = vpop.f32.mrf.mxu0 }
0x18cb   :  { %v3920_v29 = vadd.f32 %v7690_v22, %v3919_v37 }
0x18cd   :  { %v3932_v43 = vmax.f32 %v3920_v29, 0.0 }
0x18cf   :  { %v3937_v44 = vpack.c.bf16 %v3932_v43, %v3931_v41 }
0x18d1   :  { %6986 = vmatmul.msk.bf16.gmra.mxu1 %vm450_vm3, %v3937_v44  ;;  %v7040_v44 = vld [vmem:[#allocation7] sm:$0xf] }
0x18d2   :  { %v3922_v45 = vpop.f32.mrf.mxu0 }
0x18d3   :  { %v3923_v48 = vadd.f32 %v7690_v22, %v3922_v45  ;;  %v7576_v45 = vld [vmem:[#allocation7] sm:$0x10] }
0x18d5   :  { %v3933_v51 = vmax.f32 %v3923_v48, 0.0 }
0x18da   :  { %v3924_v49 = vpop.f32.mrf.mxu0 }
0x18db   :  { %v3925_v53 = vadd.f32 %v7690_v22, %v3924_v49 }
0x18dd   :  { %v3934_v52 = vmax.f32 %v3925_v53, 0.0 }
0x18df   :  { %v3938_v54 = vpack.c.bf16 %v3934_v52, %v3933_v51  ;;  %v7041_v51 = vor.u32 %v7576_v45, %v7040_v44 }
0x18e1   :  { %6987 = vmatmul.msk.bf16.gmra.mxu1 %vm450_vm3, %v3938_v54  ;;  %v4276_v55 = vsel %vm174_vm0, %v7041_v51, 0 }
0x192e   :  { %v4012_v60 = vpop.f32.mrf.mxu1 }
0x192f   :  { %v4013_v32 = vadd.f32 %v7691_v0, %v4012_v60  ;;  %v4151_v60 = vpack.c.b16 %v4149_v58, %v4149_v58 }
0x1931   :  { %v4032_v3 = vmax.f32 %v4013_v32, 0.0  ;;  %v7575_v32 = vld [vmem:[%s9753_s14] sm:$0x10] }
0x1936   :  { %v4014_v33 = vpop.f32.mrf.mxu1 }
0x1937   :  { %v4015_v2 = vadd.f32 %v7691_v0, %v4014_v33  ;;  %v7034_v33 = vld [vmem:[%s9752_s13] sm:$0xf] }
0x1939   :  { %v4033_v5 = vmax.f32 %v4015_v2, 0.0 }
0x193b   :  { %v4040_v6 = vpack.c.bf16 %v4033_v5, %v4032_v3  ;;  %v7573_v3 = vld [vmem:[%s9752_s13] sm:$0x30] }
0x193c   :  { %v7035_v5 = vor.u32 %v7573_v3, %v7034_v33 }
0x193d   :  { %7012 = vmatmul.msk.bf16.vlgmr.msrb.gmra.mxu2 %vm450_vm3, %v4040_v6 }
0x193e   :  { %v4017_v7 = vpop.f32.mrf.mxu1 }
0x193f   :  { %v4018_v4 = vadd.f32 %v7691_v0, %v4017_v7  ;;  %v4237_v7 = vand.u32 %v7035_v5, %v8299_v1 }
0x1941   :  { %v4034_v11 = vmax.f32 %v4018_v4, 0.0  ;;  %4246 = vmatpush.bf16.msra.mxu1 %v4237_v7  ;;  %v7574_v4 = vld [vmem:[%s9774_s22] sm:$0xff] }
0x1946   :  { %v4019_v9 = vpop.f32.mrf.mxu1 }
0x1947   :  { %v4020_v10 = vadd.f32 %v7691_v0, %v4019_v9  ;;  %v4182_v9 = vld [vmem:[%s9774_s22 + $0x8] sm:$0xf] }
0x1949   :  { %v4035_v13 = vmax.f32 %v4020_v10, 0.0  ;;  %v4190_v10 = vunpack.c.l.b16 %v4182_v9 }
0x194b   :  { %v4041_v59 = vpack.c.bf16 %v4035_v13, %v4034_v11  ;;  %v4192_v11 = vpack.c.b16 %v4190_v10, %v4190_v10 }
0x194d   :  { %7013 = vmatmul.msk.bf16.gmra.mxu2 %vm450_vm3, %v4041_v59 }
0x194e   :  { %v4022_v14 = vpop.f32.mrf.mxu1 }
0x194f   :  { %v4023_v8 = vadd.f32 %v7691_v0, %v4022_v14 }
0x1951   :  { %v4036_v19 = vmax.f32 %v4023_v8, 0.0 }
0x1956   :  { %v4024_v62 = vpop.f32.mrf.mxu1 }
0x1957   :  { %v4025_v18 = vadd.f32 %v7691_v0, %v4024_v62  ;;  %v7693_v62 = vld [vmem:[#allocation10] ss:$0 sm:$0xff] }
0x1959   :  { %v4037_v12 = vmax.f32 %v4025_v18, 0.0 }
0x195b   :  { %v4042_v21 = vpack.c.bf16 %v4037_v12, %v4036_v19 }
0x195d   :  { %7014 = vmatmul.msk.bf16.gmra.mxu2 %vm450_vm3, %v4042_v21 }
0x195e   :  { %v4027_v16 = vpop.f32.mrf.mxu1 }
0x195f   :  { %v4028_v22 = vadd.f32 %v7691_v0, %v4027_v16 }
0x1961   :  { %v4038_v25 = vmax.f32 %v4028_v22, 0.0 }
0x1966   :  { %v4029_v23 = vpop.f32.mrf.mxu1 }
0x1967   :  { %v4030_v24 = vadd.f32 %v7691_v0, %v4029_v23  ;;  %v7028_v0 = vld [vmem:[%s9753_s14] sm:$0xf] }
0x1968   :  { %v7029_v2 = vor.u32 %v7575_v32, %v7028_v0 }
0x1969   :  { %v4039_v17 = vmax.f32 %v4030_v24, 0.0 }
0x196a   :  { %v4205_v6 = vand.u32 %v7029_v2, %v8297_v63 }
0x196b   :  { %v4043_v27 = vpack.c.bf16 %v4039_v17, %v4038_v25 }
0x196c   :  { %4214 = vmatpush.bf16.msra.mxu0 %v4205_v6 }
0x196d   :  { %7015 = vmatmul.msk.bf16.gmra.mxu2 %vm450_vm3, %v4043_v27 }
0x196f   :  { %7030 = vmatmul.msk.bf16.vlgmr.msra.gmra.mxu0 %vm764_vm6, %v7574_v4 }
0x197f   :  { %7031 = vmatmul.msk.bf16.gmra.mxu0 %vm764_vm6, %v4192_v11 }
0x19c0   :  { %v4117_v15 = vpop.f32.mrf.mxu2 }
0x19c1   :  { %v4118_v52 = vadd.f32 %v7692_v39, %v4117_v15  ;;  %v7694_v15 = vld [vmem:[#allocation9] ss:$0 sm:$0xff] }
0x19c8   :  { %v4119_v28 = vpop.f32.mrf.mxu2 }
0x19c9   :  { %v4120_v49 = vadd.f32 %v7692_v39, %v4119_v28 }
0x19cb   :  { %v4140_v54 = vpack.c.bf16 %v4120_v49, %v4118_v52 }
0x19d0   :  { %v4122_v30 = vpop.f32.mrf.mxu2 }
0x19d1   :  { %v4123_v48 = vadd.f32 %v7692_v39, %v4122_v30 }
0x19d8   :  { %v4124_v31 = vpop.f32.mrf.mxu2 }
0x19d9   :  { %v4125_v41 = vadd.f32 %v7692_v39, %v4124_v31 }
0x19db   :  { %v4141_v53 = vpack.c.bf16 %v4125_v41, %v4123_v48 }
0x19e0   :  { %v4127_v34 = vpop.f32.mrf.mxu2 }
0x19e1   :  { %v4128_v29 = vadd.f32 %v7692_v39, %v4127_v34 }
0x19e8   :  { %v4129_v35 = vpop.f32.mrf.mxu2 }
0x19e9   :  { %v4130_v46 = vadd.f32 %v7692_v39, %v4129_v35 }
0x19eb   :  { %v4142_v43 = vpack.c.bf16 %v4130_v46, %v4128_v29 }
0x19ec   :  { %v4216_v24 = vpop.f32.mrf.mxu0 }
0x19f0   :  { %v4132_v20 = vpop.f32.mrf.mxu2 }
0x19f1   :  { %v4133_v47 = vadd.f32 %v7692_v39, %v4132_v20 }
0x19f4   :  { %v4218_v25 = vpop.f32.mrf.mxu0 }
0x19f8   :  { %v4134_v40 = vpop.f32.mrf.mxu2 }
0x19f9   :  { %v4135_v61 = vadd.f32 %v7692_v39, %v4134_v40 }
0x19fb   :  { %v4143_v37 = vpack.c.bf16 %v4135_v61, %v4133_v47 }
0x19fc   :  { %v4221_v17 = vpop.f32.mrf.mxu0 }
0x19fd   :  { %4162 = vmatpush.bf16.msra.mxu3 %v4143_v37 }
0x1a01   :  { %4163 = vmatpush.bf16.msra.mxu3 %v4142_v43 }
0x1a04   :  { %v4223_v27 = vpop.f32.mrf.mxu0 }
0x1a05   :  { %4164 = vmatpush.bf16.msra.mxu3 %v4141_v53 }
0x1a09   :  { %4165 = vmatpush.bf16.msra.mxu3 %v4140_v54 }
0x1a0c   :  { %7020 = vmatmul.msk.bf16.vlgmr.msra.gmra.mxu3 %vm717_vm4, %v7572_v56 }
0x1a0d   :  { %4285 = vmatpush.bf16.msrb.mxu3 %v4276_v55 }
0x1a1c   :  { %7021 = vmatmul.msk.bf16.gmra.mxu3 %vm717_vm4, %v4151_v60 }
0x1a2c   :  { %7042 = vmatmul.msk.bf16.vlgmr.msrb.gmra.mxu3 %vm170_vm11, %v9059_v50 }
0x1a3c   :  { %7043 = vmatmul.msk.bf16.gmra.mxu3 %vm170_vm11, %v9067_v42 }
0x1a8f   :  { %v4167_v13 = vpop.f32.mrf.mxu3 }
0x1a97   :  { %v4169_v59 = vpop.f32.mrf.mxu3 }
0x1a98   :  { %v4176_v50 = vpack.c.bf16 %v4169_v59, %v4167_v13 }
0x1a9a   :  { %7036 = vmatmul.msk.bf16.vlgmr.msra.gmra.mxu1 %vm799_vm7, %v4176_v50 }
0x1a9f   :  { %v4172_v42 = vpop.f32.mrf.mxu3 }
0x1aa0   :  { %v4177_v14 = vpack.c.bf16 %v4172_v42, %v4172_v42 }
0x1aa7   :  { %v4174_v8 = vpop.f32.mrf.mxu3 }
0x1aaa   :  { %7037 = vmatmul.msk.bf16.gmra.mxu1 %vm799_vm7, %v4177_v14 }
0x1aaf   :  { %v4287_v18 = vpop.f32.mrf.mxu3 }
0x1ab0   :  { %v4288_v19 = vadd.f32 %v7693_v62, %v4287_v18 }
0x1ab2   :  { %4359 = vrot.lane.b32.xlu2 %v4288_v19, %s8023_s23 }
0x1ab7   :  { %v4289_v12 = vpop.f32.mrf.mxu3 }
0x1ab8   :  { %v4290_v21 = vadd.f32 %v7693_v62, %v4289_v12 }
0x1aba   :  { %4361 = vrot.lane.b32.xlu0 %v4290_v21, %s8023_s23 }
0x1abf   :  { %v4292_v16 = vpop.f32.mrf.mxu3 }
0x1ac0   :  { %v4293_v22 = vadd.f32 %v7693_v62, %v4292_v16 }
0x1ac2   :  { %4363 = vrot.lane.b32.xlu1 %v4293_v22, %s8023_s23 }
0x1ac7   :  { %v4294_v23 = vpop.f32.mrf.mxu3 }
0x1b0c   :  { %v4360_v5 = vpop.permute.xlu2 %4359 }
0x1b17   :  { %v4248_v28 = vpop.f32.mrf.mxu1 }
0x1b18   :  { %v4249_v30 = vadd.f32 %v4248_v28, %v4216_v24 }
0x1b1a   :  { %v9230_v31 = vadd.f32 %v7694_v15, %v4249_v30 }
0x1b1c   :  { %v4296_v34 = vadd.f32 %v4288_v19, %v9230_v31 }
0x1b1e   :  { %v7044_v35 = vmul.f32 -1.442695, %v4296_v34 }
0x1b1f   :  { %v4250_v20 = vpop.f32.mrf.mxu1 }
0x1b20   :  { %7782 = vpow2.f32 %v7044_v35  ;;  %v4251_v39 = vadd.f32 %v4250_v20, %v4218_v25 }
0x1b22   :  { %v9233_v40 = vadd.f32 %v7694_v15, %v4251_v39 }
0x1b24   :  { %v4297_v47 = vadd.f32 %v4290_v21, %v9233_v40 }
0x1b26   :  { %v7783_v61 = vpop.eup %7782  ;;  %v7045_v46 = vmul.f32 -1.442695, %v4297_v47 }
0x1b27   :  { %v4308_v37 = vadd.f32 1.0, %v7783_v61  ;;  %v4253_v29 = vpop.f32.mrf.mxu1 }
0x1b28   :  { %7784 = vpow2.f32 %v7045_v46  ;;  %v4254_v41 = vadd.f32 %v4253_v29, %v4221_v17  ;;  %v7577_v46 = vld [vmem:[%s9757_s18] sm:$0x10] }
0x1b29   :  { %7786 = vrcp.f32 %v4308_v37  ;;  %v4322_v56 = vand.u32 2147483648, %v4308_v37  ;;  %v4320_v57 = vand.u32 2147483647, %v4308_v37  ;;  %vm4316_vm8 = vweird.f32 %v4308_v37  ;;  %v7578_v29 = vld [vmem:[%s9770_s24] sm:$0x10] }
0x1b2a   :  { %v9236_v43 = vadd.f32 %v7694_v15, %v4254_v41  ;;  %v7064_v41 = vld [vmem:[%s9744_s5] sm:$0xf] }
0x1b2b   :  { %v4323_v3 = vor.u32 1.1754944e-38, %v4322_v56  ;;  %vm4321_vm10 = vcmp.eq.f32.partialorder %v4320_v57, 8.507059e+37 }
0x1b2c   :  { %v4298_v44 = vadd.f32 %v4293_v22, %v9236_v43  ;;  %v4362_v8 = vpop.permute.xlu0 %4361 }
0x1b2e   :  { %v7785_v45 = vpop.eup %7784  ;;  %v7046_v48 = vmul.f32 -1.442695, %v4298_v44 }
0x1b2f   :  { %v7787_v49 = vpop.eup %7786  ;;  %v4309_v53 = vadd.f32 1.0, %v7785_v45  ;;  %v4255_v51 = vpop.f32.mrf.mxu1 }
0x1b30   :  { %7788 = vpow2.f32 %v7046_v48  ;;  %v4312_v52 = vmul.f32 %v7787_v49, %v4308_v37  ;;  %vm4317_vm5 = vweird.f32 %v7787_v49 }
0x1b31   :  { %7790 = vrcp.f32 %v4309_v53  ;;  %vm4318_vm9 = vmor %vm4316_vm8, %vm4317_vm5  ;;  %v4337_v4 = vand.u32 2147483648, %v4309_v53  ;;  %v4335_v11 = vand.u32 2147483647, %v4309_v53  ;;  %vm4331_vm13 = vweird.f32 %v4309_v53 }
0x1b32   :  { %v4313_v54 = vsub.f32 1.0, %v4312_v52 }
0x1b33   :  { %v4338_v50 = vor.u32 1.1754944e-38, %v4337_v4  ;;  %vm4336_vm15 = vcmp.eq.f32.partialorder %v4335_v11, 8.507059e+37 }
0x1b34   :  { %v4314_v55 = vmul.f32 %v7787_v49, %v4313_v54  ;;  %v4364_v25 = vpop.permute.xlu1 %4363 }
0x1b36   :  { %v7789_v58 = vpop.eup %7788  ;;  %v4315_v60 = vadd.f32 %v7787_v49, %v4314_v55 }
0x1b37   :  { %v7791_v0 = vpop.eup %7790  ;;  %v4310_v32 = vadd.f32 1.0, %v7789_v58 }
0x1b38   :  { %v4327_v33 = vmul.f32 %v7791_v0, %v4309_v53  ;;  %v4319_v2 = vsel %vm4318_vm9, %v7787_v49, %v4315_v60  ;;  %vm4332_vm12 = vweird.f32 %v7791_v0 }
0x1b39   :  { %7792 = vrcp.f32 %v4310_v32  ;;  %v9239_v7 = vsel %vm4321_vm10, %v4323_v3, %v4319_v2  ;;  %vm4333_vm14 = vmor %vm4331_vm13, %vm4332_vm12  ;;  %v4352_v12 = vand.u32 2147483648, %v4310_v32  ;;  %v4350_v16 = vand.u32 2147483647, %v4310_v32 }
0x1b3a   :  { %v4328_v6 = vsub.f32 1.0, %v4327_v33  ;;  %v4368_v9 = vmul.f32 %v4360_v5, %v9239_v7  ;;  %vm4346_vm8 = vweird.f32 %v4310_v32  ;;  %v4389_v52 = vsub.f32 1.0, %v9239_v7 }
0x1b3b   :  { %v4353_v23 = vor.u32 1.1754944e-38, %v4352_v12  ;;  %vm4351_vm10 = vcmp.eq.f32.partialorder %v4350_v16, 8.507059e+37  ;;  %v4407_v57 = vmul.f32 %v9239_v7, %v9031_v36  ;;  %v7695_v7 = vld [vmem:[#allocation12] ss:$0 sm:$0xff] }
0x1b3c   :  { %v4329_v10 = vmul.f32 %v7791_v0, %v4328_v6  ;;  %4374 = vrot.lane.b32.xlu2 %v4368_v9, %s8024_s2 }
0x1b3e   :  { %v4330_v13 = vadd.f32 %v7791_v0, %v4329_v10 }
0x1b3f   :  { %v7793_v59 = vpop.eup %7792 }
0x1b40   :  { %v4334_v42 = vsel %vm4333_vm14, %v7791_v0, %v4330_v13  ;;  %v4342_v14 = vmul.f32 %v7793_v59, %v4310_v32  ;;  %vm4347_vm5 = vweird.f32 %v7793_v59 }
0x1b41   :  { %v4339_v62 = vsel %vm4336_vm15, %v4338_v50, %v4334_v42  ;;  %vm4348_vm9 = vmor %vm4346_vm8, %vm4347_vm5 }
0x1b42   :  { %v4369_v18 = vmul.f32 %v4362_v8, %v4339_v62  ;;  %v4343_v19 = vsub.f32 1.0, %v4342_v14  ;;  %v4390_v55 = vsub.f32 1.0, %v4339_v62  ;;  %v4408_v58 = vmul.f32 %v4339_v62, %v9033_v38 }
0x1b44   :  { %v4344_v21 = vmul.f32 %v7793_v59, %v4343_v19  ;;  %4376 = vrot.lane.b32.xlu0 %v4369_v18, %s8024_s2 }
0x1b46   :  { %v4345_v22 = vadd.f32 %v7793_v59, %v4344_v21 }
0x1b48   :  { %v4349_v24 = vsel %vm4348_vm9, %v7793_v59, %v4345_v22  ;;  %v7580_v22 = vld [vmem:[%s9771_s27] sm:$0xff] }
0x1b49   :  { %v4354_v17 = vsel %vm4351_vm10, %v4353_v23, %v4349_v24 }
0x1b4a   :  { %v4370_v27 = vmul.f32 %v4364_v25, %v4354_v17  ;;  %v4391_v2 = vsub.f32 1.0, %v4354_v17  ;;  %v4409_v5 = vmul.f32 %v4354_v17, %v9022_v26 }
0x1b4c   :  { %4378 = vrot.lane.b32.xlu1 %v4370_v27, %s8024_s2 }
0x1b96   :  { %v4375_v15 = vpop.permute.xlu2 %4374 }
0x1b97   :  { %v4383_v28 = vadd.f32 %v4375_v15, %v9230_v31  ;;  %v7049_v31 = vld [vmem:[%s9757_s18] sm:$0xf] }
0x1b98   :  { %v7050_v37 = vor.u32 %v7577_v46, %v7049_v31  ;;  %v7584_v15 = vld [vmem:[%s9772_s29] sm:$0xff]  ;;  %v7591_v46 = vld [vmem:[%s9746_s7 + $0x18] sm:$0xff] }
0x1b99   :  { %7794 = vtanh.f32 %v4383_v28  ;;  %v7592_v31 = vld [vmem:[%s9746_s7 + $0x20] sm:$0xff] }
0x1b9a   :  { %v4439_v48 = vsel %vm174_vm0, %v7050_v37, 0  ;;  %v7589_v37 = vld [vmem:[%s9746_s7 + $0x8] sm:$0xff] }
0x1b9b   :  { %4448 = vmatpush.bf16.msrb.mxu0 %v4439_v48  ;;  %v7696_v48 = vld [vmem:[%s9745_s6] ss:$0 sm:$0xff] }
0x1b9f   :  { %v7795_v30 = vpop.eup %7794 }
0x1ba0   :  { %4395 = vrot.lane.b32.xlu2 %v7795_v30, %s8025_s25  ;;  %v7581_v30 = vld [vmem:[%s9771_s27 + $0x8] sm:$0xff] }
0x1bb6   :  { %v4377_v34 = vpop.permute.xlu0 %4376 }
0x1bb7   :  { %v4384_v35 = vadd.f32 %v4377_v34, %v9233_v40  ;;  %v7058_v40 = vld [vmem:[%s9770_s24] sm:$0xf]  ;;  %v7585_v34 = vld [vmem:[%s9772_s29 + $0x8] sm:$0xff] }
0x1bb8   :  { %v7059_v44 = vor.u32 %v7578_v29, %v7058_v40  ;;  %v7590_v40 = vld [vmem:[%s9746_s7 + $0x10] sm:$0xff]  ;;  %v7588_v29 = vld [vmem:[%s9746_s7] sm:$0xff] }
0x1bb9   :  { %7796 = vtanh.f32 %v4384_v35  ;;  %v7582_v35 = vld [vmem:[%s9771_s27 + $0x10] sm:$0xff] }
0x1bba   :  { %v4471_v49 = vsel %vm174_vm0, %v7059_v44, 0 }
0x1bbb   :  { %4480 = vmatpush.bf16.msrb.mxu1 %v4471_v49 }
0x1bbe   :  { %v4379_v20 = vpop.permute.xlu1 %4378 }
0x1bbf   :  { %v7797_v39 = vpop.eup %7796  ;;  %v4385_v47 = vadd.f32 %v4379_v20, %v9236_v43  ;;  %v7579_v43 = vld [vmem:[%s9744_s5] sm:$0x10]  ;;  %v7586_v20 = vld [vmem:[%s9772_s29 + $0x10] sm:$0xff] }
0x1bc0   :  { %4397 = vrot.lane.b32.xlu0 %v7797_v39, %s8025_s25  ;;  %v7065_v45 = vor.u32 %v7579_v43, %v7064_v41  ;;  %v7583_v39 = vld [vmem:[%s9771_s27 + $0x18] sm:$0xff] }
0x1bc1   :  { %7798 = vtanh.f32 %v4385_v47  ;;  %v7587_v47 = vld [vmem:[%s9772_s29 + $0x18] sm:$0xff] }
0x1bc2   :  { %v4501_v53 = vsel %vm174_vm0, %v7065_v45, 0 }
0x1bc3   :  { %4510 = vmatpush.bf16.msra.mxu2 %v4501_v53 }
0x1bc7   :  { %v7799_v61 = vpop.eup %7798 }
0x1bc8   :  { %4399 = vrot.lane.b32.xlu1 %v7799_v61, %s8025_s25  ;;  %v7593_v61 = vld [vmem:[%s9746_s7 + $0x28] sm:$0xff] }
0x1bc9   :  { %4757 = vmatpush.bf16.msra.mxu1 %v7593_v61 }
0x1bcd   :  { %4758 = vmatpush.bf16.msra.mxu1 %v7592_v31  ;;  %v7697_v31 = vld [vmem:[#allocation2] ss:$0 sm:$0xff] }
0x1bd1   :  { %4759 = vmatpush.bf16.msra.mxu1 %v7591_v46 }
0x1bd5   :  { %4760 = vmatpush.bf16.msra.mxu1 %v7590_v40 }
0x1bd9   :  { %4761 = vmatpush.bf16.msra.mxu1 %v7589_v37 }
0x1bdd   :  { %4762 = vmatpush.bf16.msra.mxu1 %v7588_v29 }
0x1bfa   :  { %v4396_v51 = vpop.permute.xlu2 %4395 }
0x1bfb   :  { %v4404_v54 = vmul.f32 %v4396_v51, %v4389_v52 }
0x1bfd   :  { %v9276_v0 = vadd.f32 %v4407_v57, %v4404_v54 }
0x1c32   :  { %v4398_v56 = vpop.permute.xlu0 %4397 }
0x1c33   :  { %v4405_v60 = vmul.f32 %v4398_v56, %v4390_v55 }
0x1c35   :  { %v9278_v32 = vadd.f32 %v4408_v58, %v4405_v60 }
0x1c37   :  { %v4413_v33 = vpack.c.bf16 %v9278_v32, %v9276_v0 }
0x1c39   :  { %4423 = vrot.lane.b32.xlu2 %v4413_v33, %s8025_s25 }
0x1c3a   :  { %v4400_v3 = vpop.permute.xlu1 %4399 }
0x1c3b   :  { %v4406_v6 = vmul.f32 %v4400_v3, %v4391_v2 }
0x1c3d   :  { %v9284_v4 = vadd.f32 %v4409_v5, %v4406_v6 }
0x1c3f   :  { %v4414_v36 = vpack.c.bf16 %v9284_v4, %v9284_v4 }
0x1c41   :  { %4425 = vrot.lane.b32.xlu0 %v4414_v36, %s8025_s25 }
0x1c93   :  { %v9289_v38 = vpop.permute.xlu2 %4423 }
0x1c94   :  { %7051 = vmatmul.msk.bf16.vlgmr.msrb.gmra.mxu0 %vm170_vm11, %v9289_v38  ;;  %7060 = vmatmul.msk.bf16.vlgmr.msrb.gmra.mxu1 %vm170_vm11, %v9289_v38 }
0x1c95   :  { %7066 = vmatmul.msk.bf16.vlgmr.msra.gmra.mxu2 %vm170_vm11, %v9289_v38 }
0x1cb3   :  { %v9297_v26 = vpop.permute.xlu0 %4425 }
0x1cb4   :  { %7052 = vmatmul.msk.bf16.gmra.mxu0 %vm170_vm11, %v9297_v26  ;;  %7061 = vmatmul.msk.bf16.gmra.mxu1 %vm170_vm11, %v9297_v26 }
0x1cb5   :  { %7067 = vmatmul.msk.bf16.gmra.mxu2 %vm170_vm11, %v9297_v26 }
0x1d11   :  { %v4450_v9 = vpop.f32.mrf.mxu0  ;;  %v4482_v59 = vpop.f32.mrf.mxu1 }
0x1d12   :  { %v4451_v10 = vadd.f32 %v7695_v7, %v4450_v9 }
0x1d14   :  { %7053 = vst.msk [vmem:[%s9759_s20 + $0x60] sm:$0xff] %vm764_vm6, %v4451_v10 }
0x1d18   :  { %v4512_v50 = vpop.f32.mrf.mxu2 }
0x1d19   :  { %v4452_v11 = vpop.f32.mrf.mxu0  ;;  %v4484_v42 = vpop.f32.mrf.mxu1 }
0x1d1a   :  { %v4453_v13 = vadd.f32 %v7695_v7, %v4452_v11  ;;  %v4491_v21 = vpack.c.bf16 %v4484_v42, %v4482_v59  ;;  %v7598_v59 = vld [vmem:[%s9748_s9 + $0x20] sm:$0xff] }
0x1d1c   :  { %7054 = vst.msk [vmem:[%s9759_s20 + $0x68] sm:$0xff] %vm764_vm6, %v4453_v13  ;;  %v7599_v13 = vld [vmem:[%s9748_s9 + $0x28] sm:$0xff] }
0x1d1d   :  { %4862 = vmatpush.bf16.msrb.mxu2 %v7599_v13  ;;  %v7603_v13 = vld [vmem:[%s9750_s11 + $0x18] sm:$0xff] }
0x1d20   :  { %v4514_v14 = vpop.f32.mrf.mxu2 }
0x1d21   :  { %v4521_v27 = vpack.c.bf16 %v4514_v14, %v4512_v50  ;;  %4863 = vmatpush.bf16.msrb.mxu2 %v7598_v59  ;;  %v7602_v59 = vld [vmem:[%s9750_s11 + $0x10] sm:$0xff] }
0x1d31   :  { %v4455_v8 = vpop.f32.mrf.mxu0  ;;  %v4487_v62 = vpop.f32.mrf.mxu1 }
0x1d32   :  { %v4456_v18 = vadd.f32 %v7695_v7, %v4455_v8  ;;  %v4492_v19 = vpack.c.bf16 %v4487_v62, %v4487_v62 }
0x1d34   :  { %7055 = vst.msk [vmem:[%s9759_s20 + $0x70] sm:$0xff] %vm764_vm6, %v4456_v18  ;;  %v4636_v12 = vsel %vm277_vm1, %v4492_v19, 0 }
0x1d35   :  { %4644 = vmatpush.bf16.msra.mxu0 %v4636_v12 }
0x1d38   :  { %v4517_v16 = vpop.f32.mrf.mxu2 }
0x1d39   :  { %v4522_v23 = vpack.c.bf16 %v4517_v16, %v4517_v16  ;;  %v4457_v24 = vpop.f32.mrf.mxu0  ;;  %v4489_v25 = vpop.f32.mrf.mxu1  ;;  %4645 = vmatpush.bf16.msra.mxu0 %v4491_v21 }
0x1d3b   :  { %v4572_v17 = vsel %vm277_vm1, %v4522_v23, 0 }
0x1d3c   :  { %4580 = vmatpush.bf16.msra.mxu3 %v4572_v17  ;;  %7104 = vmatmul.msk.bf16.vlgmr.msra.gmra.mxu0 %vm264_vm2, %v7580_v22 }
0x1d40   :  { %v4519_v28 = vpop.f32.mrf.mxu2  ;;  %4581 = vmatpush.bf16.msra.mxu3 %v4521_v27 }
0x1d43   :  { %7084 = vmatmul.msk.bf16.vlgmr.msra.gmra.mxu3 %vm264_vm2, %v7584_v15 }
0x1d4c   :  { %7105 = vmatmul.msk.bf16.gmra.mxu0 %vm264_vm2, %v7581_v30 }
0x1d53   :  { %7085 = vmatmul.msk.bf16.gmra.mxu3 %vm264_vm2, %v7585_v34 }
0x1d5c   :  { %7106 = vmatmul.msk.bf16.gmra.mxu0 %vm264_vm2, %v7582_v35  ;;  %v7597_v35 = vld [vmem:[%s9748_s9 + $0x18] sm:$0xff] }
0x1d5d   :  { %4864 = vmatpush.bf16.msrb.mxu2 %v7597_v35 }
0x1d63   :  { %7086 = vmatmul.msk.bf16.gmra.mxu3 %vm264_vm2, %v7586_v20  ;;  %v7596_v20 = vld [vmem:[%s9748_s9 + $0x10] sm:$0xff] }
0x1d64   :  { %4865 = vmatpush.bf16.msrb.mxu2 %v7596_v20 }
0x1d6c   :  { %7107 = vmatmul.msk.bf16.gmra.mxu0 %vm264_vm2, %v7583_v39  ;;  %v7595_v39 = vld [vmem:[%s9748_s9 + $0x8] sm:$0xff] }
0x1d6d   :  { %4866 = vmatpush.bf16.msrb.mxu2 %v7595_v39 }
0x1d73   :  { %7087 = vmatmul.msk.bf16.gmra.mxu3 %vm264_vm2, %v7587_v47  ;;  %v7594_v47 = vld [vmem:[%s9748_s9] sm:$0xff] }
0x1d74   :  { %4867 = vmatpush.bf16.msrb.mxu2 %v7594_v47 }
0x1db9   :  { %v4647_v41 = vpop.f32.mrf.mxu0 }
0x1dc1   :  { %v4649_v43 = vpop.f32.mrf.mxu0 }
0x1dc6   :  { %v4583_v44 = vpop.f32.mrf.mxu3 }
0x1dc7   :  { %v4648_v45 = vadd.f32 %v4647_v41, %v4583_v44 }
0x1dc9   :  { %v4652_v49 = vpop.f32.mrf.mxu0  ;;  %v4671_v51 = vadd.f32 %v7696_v48, %v4648_v45 }
0x1dcb   :  { %v4679_v55 = vmax.f32 %v4671_v51, 0.0 }
0x1dce   :  { %v4585_v53 = vpop.f32.mrf.mxu3 }
0x1dcf   :  { %v4650_v52 = vadd.f32 %v4649_v43, %v4585_v53 }
0x1dd1   :  { %v4672_v54 = vadd.f32 %v7696_v48, %v4650_v52  ;;  %v4654_v60 = vpop.f32.mrf.mxu0 }
0x1dd3   :  { %v4680_v56 = vmax.f32 %v4672_v54, 0.0  ;;  %v7605_v54 = vld [vmem:[%s9750_s11 + $0x28] sm:$0xff] }
0x1dd4   :  { %4967 = vmatpush.bf16.msrb.mxu3 %v7605_v54 }
0x1dd5   :  { %v4687_v57 = vpack.c.bf16 %v4680_v56, %v4679_v55  ;;  %v7604_v56 = vld [vmem:[%s9750_s11 + $0x20] sm:$0xff] }
0x1dd6   :  { %v4588_v58 = vpop.f32.mrf.mxu3 }
0x1dd7   :  { %7132 = vmatmul.msk.bf16.vlgmr.msra.gmra.mxu1 %vm450_vm3, %v4687_v57  ;;  %v4653_v33 = vadd.f32 %v4652_v49, %v4588_v58 }
0x1dd8   :  { %4968 = vmatpush.bf16.msrb.mxu3 %v7604_v56 }
0x1dd9   :  { %v4673_v3 = vadd.f32 %v7696_v48, %v4653_v33  ;;  %v4657_v6 = vpop.f32.mrf.mxu0 }
0x1ddb   :  { %v4681_v7 = vmax.f32 %v4673_v3, 0.0 }
0x1ddc   :  { %4969 = vmatpush.bf16.msrb.mxu3 %v7603_v13 }
0x1dde   :  { %v4590_v2 = vpop.f32.mrf.mxu3 }
0x1ddf   :  { %v4655_v5 = vadd.f32 %v4654_v60, %v4590_v2 }
0x1de0   :  { %4970 = vmatpush.bf16.msrb.mxu3 %v7602_v59  ;;  %v7606_v59 = vld [vmem:[%s9773_s3] sm:$0xff] }
0x1de1   :  { %v4674_v36 = vadd.f32 %v7696_v48, %v4655_v5  ;;  %v4659_v50 = vpop.f32.mrf.mxu0 }
0x1de3   :  { %v4682_v9 = vmax.f32 %v4674_v36, 0.0 }
0x1de5   :  { %v4688_v10 = vpack.c.bf16 %v4682_v9, %v4681_v7 }
0x1de6   :  { %v4593_v11 = vpop.f32.mrf.mxu3 }
0x1de7   :  { %7133 = vmatmul.msk.bf16.gmra.mxu1 %vm450_vm3, %v4688_v10  ;;  %v4658_v42 = vadd.f32 %v4657_v6, %v4593_v11 }
0x1de9   :  { %v4675_v8 = vadd.f32 %v7696_v48, %v4658_v42  ;;  %v4662_v21 = vpop.f32.mrf.mxu0  ;;  %v7600_v42 = vld [vmem:[%s9750_s11] sm:$0xff] }
0x1deb   :  { %v4683_v19 = vmax.f32 %v4675_v8, 0.0  ;;  %v7698_v8 = vld [vmem:[#allocation4] ss:$0 sm:$0xff] }
0x1dee   :  { %v4595_v14 = vpop.f32.mrf.mxu3 }
0x1def   :  { %v4660_v62 = vadd.f32 %v4659_v50, %v4595_v14  ;;  %v7601_v50 = vld [vmem:[%s9750_s11 + $0x8] sm:$0xff] }
0x1df0   :  { %4971 = vmatpush.bf16.msrb.mxu3 %v7601_v50  ;;  %v4996_v50 = vld [vmem:[%s9773_s3 + $0x8] sm:$0xf] }
0x1df1   :  { %v4676_v18 = vadd.f32 %v7696_v48, %v4660_v62  ;;  %v4664_v24 = vpop.f32.mrf.mxu0 }
0x1df3   :  { %v4684_v12 = vmax.f32 %v4676_v18, 0.0 }
0x1df4   :  { %4972 = vmatpush.bf16.msrb.mxu3 %v7600_v42  ;;  %v5006_v42 = vunpack.c.l.b16 %v4996_v50 }
0x1df5   :  { %v4689_v16 = vpack.c.bf16 %v4684_v12, %v4683_v19 }
0x1df6   :  { %v4598_v22 = vpop.f32.mrf.mxu3 }
0x1df7   :  { %7134 = vmatmul.msk.bf16.gmra.mxu1 %vm450_vm3, %v4689_v16  ;;  %v4663_v23 = vadd.f32 %v4662_v21, %v4598_v22 }
0x1df9   :  { %v4677_v17 = vadd.f32 %v7696_v48, %v4663_v23 }
0x1dfb   :  { %v4685_v28 = vmax.f32 %v4677_v17, 0.0 }
0x1dfe   :  { %v4600_v25 = vpop.f32.mrf.mxu3 }
0x1dff   :  { %v4665_v27 = vadd.f32 %v4664_v24, %v4600_v25 }
0x1e01   :  { %v4678_v15 = vadd.f32 %v7696_v48, %v4665_v27 }
0x1e03   :  { %v4686_v30 = vmax.f32 %v4678_v15, 0.0 }
0x1e05   :  { %v4690_v34 = vpack.c.bf16 %v4686_v30, %v4685_v28 }
0x1e07   :  { %7135 = vmatmul.msk.bf16.gmra.mxu1 %vm450_vm3, %v4690_v34 }
0x1e54   :  { %v4764_v61 = vpop.f32.mrf.mxu1 }
0x1e55   :  { %v4765_v46 = vadd.f32 %v7697_v31, %v4764_v61 }
0x1e57   :  { %v4784_v29 = vmax.f32 %v4765_v46, 0.0 }
0x1e5c   :  { %v4766_v40 = vpop.f32.mrf.mxu1 }
0x1e5d   :  { %v4767_v37 = vadd.f32 %v7697_v31, %v4766_v40 }
0x1e5f   :  { %v4785_v41 = vmax.f32 %v4767_v37, 0.0 }
0x1e61   :  { %v4792_v43 = vpack.c.bf16 %v4785_v41, %v4784_v29 }
0x1e63   :  { %7160 = vmatmul.msk.bf16.vlgmr.msrb.gmra.mxu2 %vm450_vm3, %v4792_v43 }
0x1e64   :  { %v4769_v44 = vpop.f32.mrf.mxu1 }
0x1e65   :  { %v4770_v45 = vadd.f32 %v7697_v31, %v4769_v44 }
0x1e67   :  { %v4786_v53 = vmax.f32 %v4770_v45, 0.0 }
0x1e6c   :  { %v4771_v48 = vpop.f32.mrf.mxu1 }
0x1e6d   :  { %v4772_v49 = vadd.f32 %v7697_v31, %v4771_v48 }
0x1e6f   :  { %v4787_v51 = vmax.f32 %v4772_v49, 0.0 }
0x1e71   :  { %v4793_v52 = vpack.c.bf16 %v4787_v51, %v4786_v53 }
0x1e73   :  { %7161 = vmatmul.msk.bf16.gmra.mxu2 %vm450_vm3, %v4793_v52  ;;  %v7699_v52 = vld [vmem:[#allocation6] ss:$0 sm:$0xff] }
0x1e74   :  { %v4774_v55 = vpop.f32.mrf.mxu1 }
0x1e75   :  { %v4775_v57 = vadd.f32 %v7697_v31, %v4774_v55 }
0x1e77   :  { %v4788_v33 = vmax.f32 %v4775_v57, 0.0 }
0x1e7c   :  { %v4776_v58 = vpop.f32.mrf.mxu1 }
0x1e7d   :  { %v4777_v60 = vadd.f32 %v7697_v31, %v4776_v58 }
0x1e7f   :  { %v4789_v2 = vmax.f32 %v4777_v60, 0.0 }
0x1e81   :  { %v4794_v3 = vpack.c.bf16 %v4789_v2, %v4788_v33 }
0x1e83   :  { %7162 = vmatmul.msk.bf16.gmra.mxu2 %vm450_vm3, %v4794_v3  ;;  %v7216_v3 = vld [vmem:[#allocation7] sm:$0xf] }
0x1e84   :  { %v4779_v5 = vpop.f32.mrf.mxu1 }
0x1e85   :  { %v4780_v6 = vadd.f32 %v7697_v31, %v4779_v5  ;;  %v7610_v5 = vld [vmem:[#allocation7] sm:$0x10] }
0x1e87   :  { %v4790_v9 = vmax.f32 %v4780_v6, 0.0 }
0x1e8c   :  { %v4781_v36 = vpop.f32.mrf.mxu1 }
0x1e8d   :  { %v4782_v7 = vadd.f32 %v7697_v31, %v4781_v36 }
0x1e8f   :  { %v4791_v10 = vmax.f32 %v4782_v7, 0.0 }
0x1e91   :  { %v4795_v11 = vpack.c.bf16 %v4791_v10, %v4790_v9  ;;  %v7217_v9 = vor.u32 %v7610_v5, %v7216_v3 }
0x1e93   :  { %7163 = vmatmul.msk.bf16.gmra.mxu2 %vm450_vm3, %v4795_v11  ;;  %v5133_v13 = vsel %vm174_vm0, %v7217_v9, 0 }
0x1ee6   :  { %v4869_v14 = vpop.f32.mrf.mxu2 }
0x1ee7   :  { %v4870_v62 = vadd.f32 %v7698_v8, %v4869_v14  ;;  %v5008_v14 = vpack.c.b16 %v5006_v42, %v5006_v42 }
0x1ee9   :  { %v4889_v12 = vmax.f32 %v4870_v62, 0.0  ;;  %v7607_v62 = vld [vmem:[%s9752_s13] sm:$0x30] }
0x1eee   :  { %v4871_v18 = vpop.f32.mrf.mxu2 }
0x1eef   :  { %v4872_v19 = vadd.f32 %v7698_v8, %v4871_v18 }
0x1ef1   :  { %v4890_v21 = vmax.f32 %v4872_v19, 0.0 }
0x1ef3   :  { %v4897_v16 = vpack.c.bf16 %v4890_v21, %v4889_v12  ;;  %v7204_v12 = vld [vmem:[%s9753_s14] sm:$0xf]  ;;  %v7609_v21 = vld [vmem:[%s9753_s14] sm:$0x10] }
0x1ef5   :  { %7188 = vmatmul.msk.bf16.vlgmr.msrb.gmra.mxu3 %vm450_vm3, %v4897_v16  ;;  %v7205_v16 = vor.u32 %v7609_v21, %v7204_v12 }
0x1ef6   :  { %v4874_v22 = vpop.f32.mrf.mxu2 }
0x1ef7   :  { %v4875_v23 = vadd.f32 %v7698_v8, %v4874_v22  ;;  %v5062_v22 = vand.u32 %v7205_v16, %v8297_v63 }
0x1ef9   :  { %v4891_v17 = vmax.f32 %v4875_v23, 0.0  ;;  %5071 = vmatpush.bf16.msrb.mxu1 %v5062_v22  ;;  %v7608_v23 = vld [vmem:[%s9774_s22] sm:$0xff] }
0x1efc   :  { %7206 = vmatmul.msk.bf16.vlgmr.msrb.gmra.mxu1 %vm764_vm6, %v7608_v23 }
0x1efe   :  { %v4876_v24 = vpop.f32.mrf.mxu2 }
0x1eff   :  { %v4877_v25 = vadd.f32 %v7698_v8, %v4876_v24 }
0x1f01   :  { %v4892_v27 = vmax.f32 %v4877_v25, 0.0 }
0x1f03   :  { %v4898_v15 = vpack.c.bf16 %v4892_v27, %v4891_v17 }
0x1f05   :  { %7189 = vmatmul.msk.bf16.gmra.mxu3 %vm450_vm3, %v4898_v15 }
0x1f06   :  { %v4879_v28 = vpop.f32.mrf.mxu2 }
0x1f07   :  { %v4880_v30 = vadd.f32 %v7698_v8, %v4879_v28 }
0x1f09   :  { %v4893_v20 = vmax.f32 %v4880_v30, 0.0 }
0x1f0e   :  { %v4881_v34 = vpop.f32.mrf.mxu2 }
0x1f0f   :  { %v4882_v35 = vadd.f32 %v7698_v8, %v4881_v34  ;;  %v7700_v34 = vld [vmem:[#allocation10] ss:$0 sm:$0xff] }
0x1f11   :  { %v4894_v39 = vmax.f32 %v4882_v35, 0.0 }
0x1f13   :  { %v4899_v47 = vpack.c.bf16 %v4894_v39, %v4893_v20 }
0x1f15   :  { %7190 = vmatmul.msk.bf16.gmra.mxu3 %vm450_vm3, %v4899_v47 }
0x1f16   :  { %v4884_v61 = vpop.f32.mrf.mxu2 }
0x1f17   :  { %v4885_v31 = vadd.f32 %v7698_v8, %v4884_v61 }
0x1f19   :  { %v4895_v37 = vmax.f32 %v4885_v31, 0.0 }
0x1f1e   :  { %v4886_v46 = vpop.f32.mrf.mxu2 }
0x1f1f   :  { %v4887_v40 = vadd.f32 %v7698_v8, %v4886_v46  ;;  %v7210_v8 = vld [vmem:[%s9752_s13] sm:$0xf] }
0x1f20   :  { %v7211_v18 = vor.u32 %v7607_v62, %v7210_v8 }
0x1f21   :  { %v4896_v29 = vmax.f32 %v4887_v40, 0.0 }
0x1f22   :  { %v5094_v19 = vand.u32 %v7211_v18, %v8299_v1 }
0x1f23   :  { %v4900_v41 = vpack.c.bf16 %v4896_v29, %v4895_v37 }
0x1f24   :  { %5103 = vmatpush.bf16.msra.mxu2 %v5094_v19 }
0x1f25   :  { %7191 = vmatmul.msk.bf16.gmra.mxu3 %vm450_vm3, %v4900_v41 }
0x1f78   :  { %v4974_v43 = vpop.f32.mrf.mxu3 }
0x1f79   :  { %v4975_v10 = vadd.f32 %v7699_v52, %v4974_v43  ;;  %v5073_v40 = vpop.f32.mrf.mxu1  ;;  %v7701_v43 = vld [vmem:[#allocation9] ss:$0 sm:$0xff] }
0x1f80   :  { %v4976_v44 = vpop.f32.mrf.mxu3 }
0x1f81   :  { %v4977_v36 = vadd.f32 %v7699_v52, %v4976_v44  ;;  %v5075_v37 = vpop.f32.mrf.mxu1 }
0x1f83   :  { %v4997_v11 = vpack.c.bf16 %v4977_v36, %v4975_v10 }
0x1f88   :  { %v4979_v45 = vpop.f32.mrf.mxu3 }
0x1f89   :  { %v4980_v6 = vadd.f32 %v7699_v52, %v4979_v45 }
0x1f90   :  { %v4981_v48 = vpop.f32.mrf.mxu3 }
0x1f91   :  { %v4982_v33 = vadd.f32 %v7699_v52, %v4981_v48 }
0x1f93   :  { %v4998_v7 = vpack.c.bf16 %v4982_v33, %v4980_v6 }
0x1f98   :  { %v4984_v49 = vpop.f32.mrf.mxu3 }
0x1f99   :  { %v4985_v60 = vadd.f32 %v7699_v52, %v4984_v49 }
0x1fa0   :  { %v4986_v53 = vpop.f32.mrf.mxu3 }
0x1fa1   :  { %v4987_v57 = vadd.f32 %v7699_v52, %v4986_v53 }
0x1fa3   :  { %v4999_v2 = vpack.c.bf16 %v4987_v57, %v4985_v60 }
0x1fa8   :  { %v4989_v51 = vpop.f32.mrf.mxu3 }
0x1fa9   :  { %v4990_v55 = vadd.f32 %v7699_v52, %v4989_v51 }
0x1fb0   :  { %v4991_v54 = vpop.f32.mrf.mxu3 }
0x1fb1   :  { %v4992_v56 = vadd.f32 %v7699_v52, %v4991_v54 }
0x1fb3   :  { %v5000_v58 = vpack.c.bf16 %v4992_v56, %v4990_v55 }
0x1fb5   :  { %5019 = vmatpush.bf16.msrb.mxu0 %v5000_v58 }
0x1fb9   :  { %5020 = vmatpush.bf16.msrb.mxu0 %v4999_v2 }
0x1fbd   :  { %5021 = vmatpush.bf16.msrb.mxu0 %v4998_v7 }
0x1fc1   :  { %5022 = vmatpush.bf16.msrb.mxu0 %v4997_v11 }
0x1fc4   :  { %7196 = vmatmul.msk.bf16.vlgmr.msrb.gmra.mxu0 %vm717_vm4, %v7606_v59 }
0x1fc5   :  { %5142 = vmatpush.bf16.msra.mxu0 %v5133_v13 }
0x1fd4   :  { %7197 = vmatmul.msk.bf16.gmra.mxu0 %vm717_vm4, %v5008_v14 }
0x1fe4   :  { %7218 = vmatmul.msk.bf16.vlgmr.msra.gmra.mxu0 %vm170_vm11, %v9289_v38  ;;  %v5039_v38 = vld [vmem:[%s9774_s22 + $0x8] sm:$0xf] }
0x1ff4   :  { %7219 = vmatmul.msk.bf16.gmra.mxu0 %vm170_vm11, %v9297_v26  ;;  %v5047_v26 = vunpack.c.l.b16 %v5039_v38 }
0x1ff6   :  { %v5049_v25 = vpack.c.b16 %v5047_v26, %v5047_v26 }
0x1ff8   :  { %7207 = vmatmul.msk.bf16.gmra.mxu1 %vm764_vm6, %v5049_v25 }
0x2041   :  { %v5024_v24 = vpop.f32.mrf.mxu0 }
0x2049   :  { %v5026_v17 = vpop.f32.mrf.mxu0 }
0x204a   :  { %v5033_v27 = vpack.c.bf16 %v5026_v17, %v5024_v24 }
0x204c   :  { %7212 = vmatmul.msk.bf16.vlgmr.msra.gmra.mxu2 %vm799_vm7, %v5033_v27 }
0x2051   :  { %v5029_v15 = vpop.f32.mrf.mxu0 }
0x2052   :  { %v5034_v28 = vpack.c.bf16 %v5029_v15, %v5029_v15 }
0x2059   :  { %v5031_v30 = vpop.f32.mrf.mxu0 }
0x205c   :  { %7213 = vmatmul.msk.bf16.gmra.mxu2 %vm799_vm7, %v5034_v28 }
0x2061   :  { %v5144_v35 = vpop.f32.mrf.mxu0 }
0x2062   :  { %v5145_v20 = vadd.f32 %v7700_v34, %v5144_v35 }
0x2064   :  { %5216 = vrot.lane.b32.xlu1 %v5145_v20, %s8023_s23 }
0x2069   :  { %v5146_v39 = vpop.f32.mrf.mxu0 }
0x206a   :  { %v5147_v47 = vadd.f32 %v7700_v34, %v5146_v39 }
0x206c   :  { %5218 = vrot.lane.b32.xlu2 %v5147_v47, %s8023_s23 }
0x2071   :  { %v5149_v61 = vpop.f32.mrf.mxu0 }
0x2072   :  { %v5150_v31 = vadd.f32 %v7700_v34, %v5149_v61 }
0x2074   :  { %5220 = vrot.lane.b32.xlu0 %v5150_v31, %s8023_s23 }
0x2075   :  { %v5078_v29 = vpop.f32.mrf.mxu1 }
0x2079   :  { %v5151_v46 = vpop.f32.mrf.mxu0 }
0x207d   :  { %v5080_v41 = vpop.f32.mrf.mxu1 }
0x20c6   :  { %v5219_v30 = vpop.permute.xlu2 %5218 }
0x20cf   :  { %v5105_v44 = vpop.f32.mrf.mxu2 }
0x20d0   :  { %v5106_v45 = vadd.f32 %v5105_v44, %v5073_v40 }
0x20d2   :  { %v9460_v48 = vadd.f32 %v7701_v43, %v5106_v45 }
0x20d4   :  { %v5153_v49 = vadd.f32 %v5145_v20, %v9460_v48 }
0x20d6   :  { %v7220_v53 = vmul.f32 -1.442695, %v5153_v49  ;;  %v5217_v21 = vpop.permute.xlu1 %5216 }
0x20d7   :  { %v5107_v51 = vpop.f32.mrf.mxu2 }
0x20d8   :  { %7800 = vpow2.f32 %v7220_v53  ;;  %v5108_v52 = vadd.f32 %v5107_v51, %v5075_v37 }
0x20da   :  { %v9463_v54 = vadd.f32 %v7701_v43, %v5108_v52 }
0x20dc   :  { %v5154_v55 = vadd.f32 %v5147_v47, %v9463_v54 }
0x20de   :  { %v7801_v56 = vpop.eup %7800  ;;  %v7221_v57 = vmul.f32 -1.442695, %v5154_v55 }
0x20df   :  { %v5165_v58 = vadd.f32 1.0, %v7801_v56  ;;  %v5110_v60 = vpop.f32.mrf.mxu2 }
0x20e0   :  { %7802 = vpow2.f32 %v7221_v57  ;;  %v5111_v33 = vadd.f32 %v5110_v60, %v5078_v29  ;;  %v7613_v57 = vld [vmem:[%s9744_s5] sm:$0x10] }
0x20e1   :  { %7804 = vrcp.f32 %v5165_v58  ;;  %v5179_v13 = vand.u32 2147483648, %v5165_v58  ;;  %v5177_v50 = vand.u32 2147483647, %v5165_v58  ;;  %vm5173_vm13 = vweird.f32 %v5165_v58 }
0x20e2   :  { %v9466_v2 = vadd.f32 %v7701_v43, %v5111_v33 }
0x20e3   :  { %v5180_v62 = vor.u32 1.1754944e-38, %v5179_v13  ;;  %vm5178_vm15 = vcmp.eq.f32.partialorder %v5177_v50, 8.507059e+37 }
0x20e4   :  { %v5155_v3 = vadd.f32 %v5150_v31, %v9466_v2 }
0x20e6   :  { %v7803_v5 = vpop.eup %7802  ;;  %v7222_v6 = vmul.f32 -1.442695, %v5155_v3  ;;  %v5221_v37 = vpop.permute.xlu0 %5220 }
0x20e7   :  { %v7805_v36 = vpop.eup %7804  ;;  %v5166_v7 = vadd.f32 1.0, %v7803_v5  ;;  %v5112_v9 = vpop.f32.mrf.mxu2 }
0x20e8   :  { %v5169_v10 = vmul.f32 %v7805_v36, %v5165_v58  ;;  %7806 = vpow2.f32 %v7222_v6  ;;  %vm5174_vm12 = vweird.f32 %v7805_v36 }
0x20e9   :  { %7808 = vrcp.f32 %v5166_v7  ;;  %vm5175_vm14 = vmor %vm5173_vm13, %vm5174_vm12  ;;  %v5194_v38 = vand.u32 2147483648, %v5166_v7  ;;  %v5192_v24 = vand.u32 2147483647, %v5166_v7  ;;  %vm5188_vm8 = vweird.f32 %v5166_v7 }
0x20ea   :  { %v5170_v11 = vsub.f32 1.0, %v5169_v10 }
0x20eb   :  { %v5195_v27 = vor.u32 1.1754944e-38, %v5194_v38  ;;  %vm5193_vm10 = vcmp.eq.f32.partialorder %v5192_v24, 8.507059e+37 }
0x20ec   :  { %v5171_v59 = vmul.f32 %v7805_v36, %v5170_v11 }
0x20ee   :  { %v7807_v42 = vpop.eup %7806  ;;  %v5172_v14 = vadd.f32 %v7805_v36, %v5171_v59 }
0x20ef   :  { %v7809_v8 = vpop.eup %7808  ;;  %v5167_v18 = vadd.f32 1.0, %v7807_v42 }
0x20f0   :  { %v5176_v19 = vsel %vm5175_vm14, %v7805_v36, %v5172_v14  ;;  %v5184_v12 = vmul.f32 %v7809_v8, %v5166_v7  ;;  %vm5189_vm5 = vweird.f32 %v7809_v8 }
0x20f1   :  { %v9469_v16 = vsel %vm5178_vm15, %v5180_v62, %v5176_v19  ;;  %7810 = vrcp.f32 %v5167_v18  ;;  %vm5190_vm9 = vmor %vm5188_vm8, %vm5189_vm5  ;;  %v5209_v39 = vand.u32 2147483648, %v5167_v18  ;;  %v5207_v61 = vand.u32 2147483647, %v5167_v18 }
0x20f2   :  { %v5225_v22 = vmul.f32 %v5217_v21, %v9469_v16  ;;  %v5185_v23 = vsub.f32 1.0, %v5184_v12  ;;  %vm5203_vm13 = vweird.f32 %v5167_v18  ;;  %v5264_v36 = vmul.f32 %v9469_v16, %v9276_v0 }
0x20f3   :  { %v5210_v46 = vor.u32 1.1754944e-38, %v5209_v39  ;;  %vm5208_vm15 = vcmp.eq.f32.partialorder %v5207_v61, 8.507059e+37 }
0x20f4   :  { %5231 = vrot.lane.b32.xlu1 %v5225_v22, %s8024_s2  ;;  %v5186_v26 = vmul.f32 %v7809_v8, %v5185_v23  ;;  %v7702_v23 = vld [vmem:[#allocation12] ss:$0 sm:$0xff] }
0x20f6   :  { %v5187_v25 = vadd.f32 %v7809_v8, %v5186_v26 }
0x20f7   :  { %v7811_v17 = vpop.eup %7810 }
0x20f8   :  { %v5199_v15 = vmul.f32 %v7811_v17, %v5167_v18  ;;  %v5191_v28 = vsel %vm5190_vm9, %v7809_v8, %v5187_v25  ;;  %vm5204_vm12 = vweird.f32 %v7811_v17  ;;  %v7611_v8 = vld [vmem:[%s9757_s18] sm:$0x10] }
0x20f9   :  { %v5196_v34 = vsel %vm5193_vm10, %v5195_v27, %v5191_v28  ;;  %vm5205_vm14 = vmor %vm5203_vm13, %vm5204_vm12  ;;  %v7612_v18 = vld [vmem:[%s9770_s24] sm:$0x10] }
0x20fa   :  { %v5200_v35 = vsub.f32 1.0, %v5199_v15  ;;  %v5226_v20 = vmul.f32 %v5219_v30, %v5196_v34  ;;  %v5247_v33 = vsub.f32 1.0, %v5196_v34  ;;  %v5265_v6 = vmul.f32 %v5196_v34, %v9278_v32  ;;  %v7225_v32 = vld [vmem:[%s9757_s18] sm:$0xf] }
0x20fb   :  { %v7226_v62 = vor.u32 %v7611_v8, %v7225_v32 }
0x20fc   :  { %v5201_v47 = vmul.f32 %v7811_v17, %v5200_v35  ;;  %5233 = vrot.lane.b32.xlu2 %v5226_v20, %s8024_s2 }
0x20fd   :  { %v5296_v12 = vsel %vm174_vm0, %v7226_v62, 0 }
0x20fe   :  { %v5202_v31 = vadd.f32 %v7811_v17, %v5201_v47  ;;  %5305 = vmatpush.bf16.msra.mxu1 %v5296_v12 }
0x2100   :  { %v5206_v40 = vsel %vm5205_vm14, %v7811_v17, %v5202_v31 }
0x2101   :  { %v5211_v29 = vsel %vm5208_vm15, %v5210_v46, %v5206_v40 }
0x2102   :  { %v5227_v41 = vmul.f32 %v5221_v37, %v5211_v29  ;;  %v5248_v13 = vsub.f32 1.0, %v5211_v29  ;;  %v5266_v50 = vmul.f32 %v5211_v29, %v9284_v4  ;;  %v7234_v4 = vld [vmem:[%s9770_s24] sm:$0xf] }
0x2103   :  { %v7235_v19 = vor.u32 %v7612_v18, %v7234_v4  ;;  %v7614_v29 = vld [vmem:[%s9771_s27] sm:$0xff] }
0x2104   :  { %5235 = vrot.lane.b32.xlu0 %v5227_v41, %s8024_s2 }
0x2105   :  { %v5328_v21 = vsel %vm174_vm0, %v7235_v19, 0 }
0x2106   :  { %5337 = vmatpush.bf16.msrb.mxu2 %v5328_v21 }
0x2156   :  { %v5234_v43 = vpop.permute.xlu2 %5233 }
0x2157   :  { %v5241_v44 = vadd.f32 %v5234_v43, %v9463_v54  ;;  %v7240_v54 = vld [vmem:[%s9744_s5] sm:$0xf] }
0x2158   :  { %v7618_v43 = vld [vmem:[%s9772_s29] sm:$0xff] }
0x2159   :  { %7812 = vtanh.f32 %v5241_v44 }
0x215f   :  { %v7813_v45 = vpop.eup %7812 }
0x2160   :  { %5254 = vrot.lane.b32.xlu2 %v7813_v45, %s8025_s25  ;;  %v7615_v45 = vld [vmem:[%s9771_s27 + $0x8] sm:$0xff] }
0x2166   :  { %v5232_v49 = vpop.permute.xlu1 %5231 }
0x2167   :  { %v5240_v53 = vadd.f32 %v5232_v49, %v9460_v48  ;;  %v7241_v48 = vor.u32 %v7613_v57, %v7240_v54  ;;  %v7619_v49 = vld [vmem:[%s9772_s29 + $0x8] sm:$0xff]  ;;  %v7621_v54 = vld [vmem:[%s9772_s29 + $0x18] sm:$0xff] }
0x2168   :  { %v7625_v57 = vld [vmem:[%s9746_s7 + $0x18] sm:$0xff] }
0x2169   :  { %7814 = vtanh.f32 %v5240_v53  ;;  %v5358_v58 = vsel %vm174_vm0, %v7241_v48, 0  ;;  %v7627_v53 = vld [vmem:[%s9746_s7 + $0x28] sm:$0xff]  ;;  %v7624_v48 = vld [vmem:[%s9746_s7 + $0x10] sm:$0xff] }
0x216a   :  { %5367 = vmatpush.bf16.msra.mxu3 %v5358_v58  ;;  %5614 = vmatpush.bf16.msra.mxu2 %v7627_v53  ;;  %v7623_v58 = vld [vmem:[%s9746_s7 + $0x8] sm:$0xff]  ;;  %v7631_v53 = vld [vmem:[%s9748_s9 + $0x18] sm:$0xff] }
0x216f   :  { %v7815_v51 = vpop.eup %7814 }
0x2170   :  { %5252 = vrot.lane.b32.xlu1 %v7815_v51, %s8025_s25  ;;  %v7626_v51 = vld [vmem:[%s9746_s7 + $0x20] sm:$0xff] }
0x2171   :  { %5615 = vmatpush.bf16.msra.mxu2 %v7626_v51  ;;  %v7630_v51 = vld [vmem:[%s9748_s9 + $0x10] sm:$0xff] }
0x2175   :  { %5616 = vmatpush.bf16.msra.mxu2 %v7625_v57 }
0x2176   :  { %v5236_v52 = vpop.permute.xlu0 %5235 }
0x2177   :  { %v5242_v55 = vadd.f32 %v5236_v52, %v9466_v2  ;;  %v5246_v2 = vsub.f32 1.0, %v9469_v16  ;;  %v7616_v52 = vld [vmem:[%s9771_s27 + $0x10] sm:$0xff] }
0x2179   :  { %7816 = vtanh.f32 %v5242_v55  ;;  %v7620_v55 = vld [vmem:[%s9772_s29 + $0x10] sm:$0xff]  ;;  %5617 = vmatpush.bf16.msra.mxu2 %v7624_v48 }
0x217d   :  { %5618 = vmatpush.bf16.msra.mxu2 %v7623_v58 }
0x217f   :  { %v7817_v56 = vpop.eup %7816 }
0x2180   :  { %5256 = vrot.lane.b32.xlu0 %v7817_v56, %s8025_s25  ;;  %v7617_v56 = vld [vmem:[%s9771_s27 + $0x18] sm:$0xff] }
0x21ba   :  { %v5255_v60 = vpop.permute.xlu2 %5254 }
0x21bb   :  { %v5262_v3 = vmul.f32 %v5255_v60, %v5247_v33  ;;  %v7622_v60 = vld [vmem:[%s9746_s7] sm:$0xff] }
0x21bc   :  { %5619 = vmatpush.bf16.msra.mxu2 %v7622_v60 }
0x21bd   :  { %v9492_v9 = vadd.f32 %v5265_v6, %v5262_v3 }
0x21e2   :  { %v5253_v5 = vpop.permute.xlu1 %5252 }
0x21e3   :  { %v5261_v7 = vmul.f32 %v5253_v5, %v5246_v2  ;;  %v7703_v5 = vld [vmem:[%s9745_s6] ss:$0 sm:$0xff] }
0x21e5   :  { %v9494_v10 = vadd.f32 %v5264_v36, %v5261_v7 }
0x21e7   :  { %v5270_v11 = vpack.c.bf16 %v9492_v9, %v9494_v10 }
0x21e9   :  { %5280 = vrot.lane.b32.xlu1 %v5270_v11, %s8025_s25 }
0x21f2   :  { %v5257_v59 = vpop.permute.xlu0 %5256 }
0x21f3   :  { %v5263_v42 = vmul.f32 %v5257_v59, %v5248_v13 }
0x21f5   :  { %v9500_v14 = vadd.f32 %v5266_v50, %v5263_v42 }
0x21f7   :  { %v5271_v0 = vpack.c.bf16 %v9500_v14, %v9500_v14 }
0x21f9   :  { %5282 = vrot.lane.b32.xlu2 %v5271_v0, %s8025_s25 }
0x2253   :  { %v9527_v22 = vpop.permute.xlu2 %5282 }
0x225b   :  { %v9519_v16 = vpop.permute.xlu1 %5280 }
0x225c   :  { %7227 = vmatmul.msk.bf16.vlgmr.msra.gmra.mxu1 %vm170_vm11, %v9519_v16  ;;  %7236 = vmatmul.msk.bf16.vlgmr.msrb.gmra.mxu2 %vm170_vm11, %v9519_v16 }
0x225d   :  { %7242 = vmatmul.msk.bf16.vlgmr.msra.gmra.mxu3 %vm170_vm11, %v9519_v16 }
0x226c   :  { %7228 = vmatmul.msk.bf16.gmra.mxu1 %vm170_vm11, %v9527_v22  ;;  %7237 = vmatmul.msk.bf16.gmra.mxu2 %vm170_vm11, %v9527_v22 }
0x226d   :  { %7243 = vmatmul.msk.bf16.gmra.mxu3 %vm170_vm11, %v9527_v22 }
0x22d9   :  { %v5307_v38 = vpop.f32.mrf.mxu1 }
0x22da   :  { %v5308_v26 = vadd.f32 %v7702_v23, %v5307_v38 }
0x22dc   :  { %7229 = vst.msk [vmem:[%s9759_s20 + $0x78] sm:$0xff] %vm764_vm6, %v5308_v26 }
0x22df   :  { %v5339_v24 = vpop.f32.mrf.mxu2 }
0x22e0   :  { %v5369_v25 = vpop.f32.mrf.mxu3 }
0x22e1   :  { %v5309_v17 = vpop.f32.mrf.mxu1 }
0x22e2   :  { %v5310_v27 = vadd.f32 %v7702_v23, %v5309_v17  ;;  %v7632_v17 = vld [vmem:[%s9748_s9 + $0x20] sm:$0xff] }
0x22e4   :  { %7230 = vst.msk [vmem:[%s9759_s20 + $0x80] sm:$0xff] %vm764_vm6, %v5310_v27 }
0x22e7   :  { %v5341_v15 = vpop.f32.mrf.mxu2 }
0x22e8   :  { %v5371_v28 = vpop.f32.mrf.mxu3  ;;  %v5348_v40 = vpack.c.bf16 %v5341_v15, %v5339_v24 }
0x22e9   :  { %v5312_v30 = vpop.f32.mrf.mxu1  ;;  %v5378_v37 = vpack.c.bf16 %v5371_v28, %v5369_v25  ;;  %v7633_v25 = vld [vmem:[%s9748_s9 + $0x28] sm:$0xff] }
0x22ea   :  { %v5313_v34 = vadd.f32 %v7702_v23, %v5312_v30  ;;  %5719 = vmatpush.bf16.msrb.mxu3 %v7633_v25  ;;  %v7637_v25 = vld [vmem:[%s9750_s11 + $0x18] sm:$0xff] }
0x22ec   :  { %7231 = vst.msk [vmem:[%s9759_s20 + $0x88] sm:$0xff] %vm764_vm6, %v5313_v34 }
0x22ee   :  { %5720 = vmatpush.bf16.msrb.mxu3 %v7632_v17  ;;  %v7636_v17 = vld [vmem:[%s9750_s11 + $0x10] sm:$0xff] }
0x22ef   :  { %v5344_v35 = vpop.f32.mrf.mxu2 }
0x22f0   :  { %v5349_v20 = vpack.c.bf16 %v5344_v35, %v5344_v35  ;;  %v5374_v39 = vpop.f32.mrf.mxu3 }
0x22f1   :  { %v5379_v47 = vpack.c.bf16 %v5374_v39, %v5374_v39  ;;  %v5314_v61 = vpop.f32.mrf.mxu1 }
0x22f2   :  { %v5493_v31 = vsel %vm277_vm1, %v5349_v20, 0  ;;  %5721 = vmatpush.bf16.msrb.mxu3 %v7631_v53 }
0x22f3   :  { %v5429_v46 = vsel %vm277_vm1, %v5379_v47, 0  ;;  %5501 = vmatpush.bf16.msrb.mxu1 %v5493_v31 }
0x22f4   :  { %5437 = vmatpush.bf16.msrb.mxu0 %v5429_v46 }
0x22f6   :  { %5722 = vmatpush.bf16.msrb.mxu3 %v7630_v51 }
0x22f7   :  { %v5346_v41 = vpop.f32.mrf.mxu2  ;;  %5502 = vmatpush.bf16.msrb.mxu1 %v5348_v40 }
0x22f8   :  { %v5376_v44 = vpop.f32.mrf.mxu3  ;;  %5438 = vmatpush.bf16.msrb.mxu0 %v5378_v37 }
0x22fa   :  { %7280 = vmatmul.msk.bf16.vlgmr.msrb.gmra.mxu1 %vm264_vm2, %v7614_v29 }
0x22fb   :  { %7260 = vmatmul.msk.bf16.vlgmr.msrb.gmra.mxu0 %vm264_vm2, %v7618_v43 }
0x230a   :  { %7281 = vmatmul.msk.bf16.gmra.mxu1 %vm264_vm2, %v7615_v45 }
0x230b   :  { %7261 = vmatmul.msk.bf16.gmra.mxu0 %vm264_vm2, %v7619_v49 }
0x231a   :  { %7282 = vmatmul.msk.bf16.gmra.mxu1 %vm264_vm2, %v7616_v52  ;;  %v7629_v52 = vld [vmem:[%s9748_s9 + $0x8] sm:$0xff] }
0x231b   :  { %7262 = vmatmul.msk.bf16.gmra.mxu0 %vm264_vm2, %v7620_v55  ;;  %5723 = vmatpush.bf16.msrb.mxu3 %v7629_v52  ;;  %v7628_v55 = vld [vmem:[%s9748_s9] sm:$0xff] }
0x231f   :  { %5724 = vmatpush.bf16.msrb.mxu3 %v7628_v55 }
0x232a   :  { %7283 = vmatmul.msk.bf16.gmra.mxu1 %vm264_vm2, %v7617_v56 }
0x232b   :  { %7263 = vmatmul.msk.bf16.gmra.mxu0 %vm264_vm2, %v7621_v54  ;;  %v7704_v54 = vld [vmem:[#allocation2] ss:$0 sm:$0xff] }
0x2377   :  { %v5504_v33 = vpop.f32.mrf.mxu1 }
0x2378   :  { %v5440_v3 = vpop.f32.mrf.mxu0 }
0x2379   :  { %v5505_v2 = vadd.f32 %v5504_v33, %v5440_v3 }
0x237b   :  { %v5528_v7 = vadd.f32 %v7703_v5, %v5505_v2 }
0x237d   :  { %v5536_v59 = vmax.f32 %v5528_v7, 0.0 }
0x237f   :  { %v5506_v6 = vpop.f32.mrf.mxu1 }
0x2380   :  { %v5442_v36 = vpop.f32.mrf.mxu0 }
0x2381   :  { %v5507_v11 = vadd.f32 %v5506_v6, %v5442_v36 }
0x2383   :  { %v5529_v13 = vadd.f32 %v7703_v5, %v5507_v11 }
0x2385   :  { %v5537_v50 = vmax.f32 %v5529_v13, 0.0 }
0x2387   :  { %v5544_v42 = vpack.c.bf16 %v5537_v50, %v5536_v59  ;;  %v5509_v0 = vpop.f32.mrf.mxu1  ;;  %v7639_v59 = vld [vmem:[%s9750_s11 + $0x28] sm:$0xff] }
0x2388   :  { %v5445_v32 = vpop.f32.mrf.mxu0  ;;  %5824 = vmatpush.bf16.msra.mxu0 %v7639_v59 }
0x2389   :  { %7308 = vmatmul.msk.bf16.vlgmr.msra.gmra.mxu2 %vm450_vm3, %v5544_v42  ;;  %v5510_v8 = vadd.f32 %v5509_v0, %v5445_v32  ;;  %v7638_v42 = vld [vmem:[%s9750_s11 + $0x20] sm:$0xff] }
0x238b   :  { %v5530_v18 = vadd.f32 %v7703_v5, %v5510_v8 }
0x238c   :  { %5825 = vmatpush.bf16.msra.mxu0 %v7638_v42 }
0x238d   :  { %v5538_v21 = vmax.f32 %v5530_v18, 0.0 }
0x238f   :  { %v5511_v4 = vpop.f32.mrf.mxu1 }
0x2390   :  { %v5447_v62 = vpop.f32.mrf.mxu0  ;;  %5826 = vmatpush.bf16.msra.mxu0 %v7637_v25 }
0x2391   :  { %v5512_v19 = vadd.f32 %v5511_v4, %v5447_v62 }
0x2393   :  { %v5531_v12 = vadd.f32 %v7703_v5, %v5512_v19 }
0x2394   :  { %5827 = vmatpush.bf16.msra.mxu0 %v7636_v17  ;;  %v7640_v17 = vld [vmem:[%s9773_s3] sm:$0xff] }
0x2395   :  { %v5539_v23 = vmax.f32 %v5531_v12, 0.0 }
0x2397   :  { %v5545_v38 = vpack.c.bf16 %v5539_v23, %v5538_v21  ;;  %v5514_v26 = vpop.f32.mrf.mxu1 }
0x2398   :  { %v5450_v24 = vpop.f32.mrf.mxu0 }
0x2399   :  { %7309 = vmatmul.msk.bf16.gmra.mxu2 %vm450_vm3, %v5545_v38  ;;  %v5515_v27 = vadd.f32 %v5514_v26, %v5450_v24 }
0x239b   :  { %v5532_v30 = vadd.f32 %v7703_v5, %v5515_v27  ;;  %v7635_v27 = vld [vmem:[%s9750_s11 + $0x8] sm:$0xff] }
0x239c   :  { %5828 = vmatpush.bf16.msra.mxu0 %v7635_v27  ;;  %v5853_v27 = vld [vmem:[%s9773_s3 + $0x8] sm:$0xf] }
0x239d   :  { %v5540_v20 = vmax.f32 %v5532_v30, 0.0  ;;  %v7705_v30 = vld [vmem:[#allocation4] ss:$0 sm:$0xff] }
0x239f   :  { %v5516_v15 = vpop.f32.mrf.mxu1 }
0x23a0   :  { %v5452_v28 = vpop.f32.mrf.mxu0 }
0x23a1   :  { %v5517_v34 = vadd.f32 %v5516_v15, %v5452_v28  ;;  %v7634_v15 = vld [vmem:[%s9750_s11] sm:$0xff] }
0x23a2   :  { %5829 = vmatpush.bf16.msra.mxu0 %v7634_v15  ;;  %v5863_v15 = vunpack.c.l.b16 %v5853_v27 }
0x23a3   :  { %v5533_v35 = vadd.f32 %v7703_v5, %v5517_v34 }
0x23a5   :  { %v5541_v39 = vmax.f32 %v5533_v35, 0.0 }
0x23a7   :  { %v5546_v47 = vpack.c.bf16 %v5541_v39, %v5540_v20  ;;  %v5519_v61 = vpop.f32.mrf.mxu1 }
0x23a8   :  { %v5455_v31 = vpop.f32.mrf.mxu0 }
0x23a9   :  { %7310 = vmatmul.msk.bf16.gmra.mxu2 %vm450_vm3, %v5546_v47  ;;  %v5520_v46 = vadd.f32 %v5519_v61, %v5455_v31 }
0x23ab   :  { %v5534_v29 = vadd.f32 %v7703_v5, %v5520_v46 }
0x23ad   :  { %v5542_v44 = vmax.f32 %v5534_v29, 0.0 }
0x23af   :  { %v5521_v40 = vpop.f32.mrf.mxu1 }
0x23b0   :  { %v5457_v37 = vpop.f32.mrf.mxu0 }
0x23b1   :  { %v5522_v41 = vadd.f32 %v5521_v40, %v5457_v37 }
0x23b3   :  { %v5535_v43 = vadd.f32 %v7703_v5, %v5522_v41 }
0x23b5   :  { %v5543_v45 = vmax.f32 %v5535_v43, 0.0 }
0x23b7   :  { %v5547_v49 = vpack.c.bf16 %v5543_v45, %v5542_v44 }
0x23b9   :  { %7311 = vmatmul.msk.bf16.gmra.mxu2 %vm450_vm3, %v5547_v49 }
0x240c   :  { %v5621_v56 = vpop.f32.mrf.mxu2 }
0x240d   :  { %v5622_v57 = vadd.f32 %v7704_v54, %v5621_v56 }
0x240f   :  { %v5641_v60 = vmax.f32 %v5622_v57, 0.0 }
0x2414   :  { %v5623_v48 = vpop.f32.mrf.mxu2 }
0x2415   :  { %v5624_v58 = vadd.f32 %v7704_v54, %v5623_v48 }
0x2417   :  { %v5642_v33 = vmax.f32 %v5624_v58, 0.0 }
0x2419   :  { %v5649_v3 = vpack.c.bf16 %v5642_v33, %v5641_v60 }
0x241b   :  { %7336 = vmatmul.msk.bf16.vlgmr.msrb.gmra.mxu3 %vm450_vm3, %v5649_v3 }
0x241c   :  { %v5626_v2 = vpop.f32.mrf.mxu2 }
0x241d   :  { %v5627_v5 = vadd.f32 %v7704_v54, %v5626_v2 }
0x241f   :  { %v5643_v7 = vmax.f32 %v5627_v5, 0.0 }
0x2424   :  { %v5628_v6 = vpop.f32.mrf.mxu2 }
0x2425   :  { %v5629_v36 = vadd.f32 %v7704_v54, %v5628_v6 }
0x2427   :  { %v5644_v11 = vmax.f32 %v5629_v36, 0.0 }
0x2429   :  { %v5650_v13 = vpack.c.bf16 %v5644_v11, %v5643_v7 }
0x242b   :  { %7337 = vmatmul.msk.bf16.gmra.mxu3 %vm450_vm3, %v5650_v13  ;;  %v7706_v13 = vld [vmem:[#allocation6] ss:$0 sm:$0xff] }
0x242c   :  { %v5631_v50 = vpop.f32.mrf.mxu2 }
0x242d   :  { %v5632_v0 = vadd.f32 %v7704_v54, %v5631_v50 }
0x242f   :  { %v5645_v4 = vmax.f32 %v5632_v0, 0.0 }
0x2434   :  { %v5633_v32 = vpop.f32.mrf.mxu2 }
0x2435   :  { %v5634_v8 = vadd.f32 %v7704_v54, %v5633_v32 }
0x2437   :  { %v5646_v62 = vmax.f32 %v5634_v8, 0.0 }
0x2439   :  { %v5651_v18 = vpack.c.bf16 %v5646_v62, %v5645_v4 }
0x243b   :  { %7338 = vmatmul.msk.bf16.gmra.mxu3 %vm450_vm3, %v5651_v18  ;;  %v7392_v18 = vld [vmem:[#allocation7] sm:$0xf] }
0x243c   :  { %v5636_v19 = vpop.f32.mrf.mxu2 }
0x243d   :  { %v5637_v12 = vadd.f32 %v7704_v54, %v5636_v19  ;;  %v7644_v19 = vld [vmem:[#allocation7] sm:$0x10] }
0x243f   :  { %v5647_v38 = vmax.f32 %v5637_v12, 0.0 }
0x2444   :  { %v5638_v21 = vpop.f32.mrf.mxu2 }
0x2445   :  { %v5639_v23 = vadd.f32 %v7704_v54, %v5638_v21 }
0x2447   :  { %v5648_v26 = vmax.f32 %v5639_v23, 0.0 }
0x2449   :  { %v5652_v24 = vpack.c.bf16 %v5648_v26, %v5647_v38  ;;  %v7393_v38 = vor.u32 %v7644_v19, %v7392_v18 }
0x244b   :  { %7339 = vmatmul.msk.bf16.gmra.mxu3 %vm450_vm3, %v5652_v24  ;;  %v5990_v25 = vsel %vm174_vm0, %v7393_v38, 0 }
0x249e   :  { %v5726_v28 = vpop.f32.mrf.mxu3 }
0x249f   :  { %v5727_v34 = vadd.f32 %v7705_v30, %v5726_v28  ;;  %v5865_v28 = vpack.c.b16 %v5863_v15, %v5863_v15 }
0x24a1   :  { %v5746_v39 = vmax.f32 %v5727_v34, 0.0  ;;  %v7643_v34 = vld [vmem:[%s9753_s14] sm:$0x10] }
0x24a6   :  { %v5728_v35 = vpop.f32.mrf.mxu3 }
0x24a7   :  { %v5729_v20 = vadd.f32 %v7705_v30, %v5728_v35  ;;  %v7386_v35 = vld [vmem:[%s9752_s13] sm:$0xf] }
0x24a9   :  { %v5747_v47 = vmax.f32 %v5729_v20, 0.0 }
0x24ab   :  { %v5754_v61 = vpack.c.bf16 %v5747_v47, %v5746_v39  ;;  %v7641_v39 = vld [vmem:[%s9752_s13] sm:$0x30] }
0x24ac   :  { %v7387_v47 = vor.u32 %v7641_v39, %v7386_v35 }
0x24ad   :  { %7364 = vmatmul.msk.bf16.vlgmr.msra.gmra.mxu0 %vm450_vm3, %v5754_v61 }
0x24ae   :  { %v5731_v31 = vpop.f32.mrf.mxu3 }
0x24af   :  { %v5732_v46 = vadd.f32 %v7705_v30, %v5731_v31  ;;  %v5951_v31 = vand.u32 %v7387_v47, %v8299_v1 }
0x24b1   :  { %v5748_v29 = vmax.f32 %v5732_v46, 0.0  ;;  %5960 = vmatpush.bf16.msra.mxu3 %v5951_v31  ;;  %v7642_v46 = vld [vmem:[%s9774_s22] sm:$0xff] }
0x24b6   :  { %v5733_v40 = vpop.f32.mrf.mxu3 }
0x24b7   :  { %v5734_v37 = vadd.f32 %v7705_v30, %v5733_v40 }
0x24b9   :  { %v5749_v41 = vmax.f32 %v5734_v37, 0.0 }
0x24bb   :  { %v5755_v43 = vpack.c.bf16 %v5749_v41, %v5748_v29 }
0x24bd   :  { %7365 = vmatmul.msk.bf16.gmra.mxu0 %vm450_vm3, %v5755_v43 }
0x24be   :  { %v5736_v44 = vpop.f32.mrf.mxu3 }
0x24bf   :  { %v5737_v45 = vadd.f32 %v7705_v30, %v5736_v44  ;;  %v7707_v44 = vld [vmem:[#allocation10] ss:$0 sm:$0xff] }
0x24c1   :  { %v5750_v51 = vmax.f32 %v5737_v45, 0.0 }
0x24c6   :  { %v5738_v49 = vpop.f32.mrf.mxu3 }
0x24c7   :  { %v5739_v53 = vadd.f32 %v7705_v30, %v5738_v49 }
0x24c9   :  { %v5751_v52 = vmax.f32 %v5739_v53, 0.0 }
0x24cb   :  { %v5756_v55 = vpack.c.bf16 %v5751_v52, %v5750_v51 }
0x24cd   :  { %7366 = vmatmul.msk.bf16.gmra.mxu0 %vm450_vm3, %v5756_v55 }
0x24ce   :  { %v5741_v56 = vpop.f32.mrf.mxu3 }
0x24cf   :  { %v5742_v54 = vadd.f32 %v7705_v30, %v5741_v56 }
0x24d1   :  { %v5752_v58 = vmax.f32 %v5742_v54, 0.0 }
0x24d6   :  { %v5743_v57 = vpop.f32.mrf.mxu3 }
0x24d7   :  { %v5744_v48 = vadd.f32 %v7705_v30, %v5743_v57  ;;  %v7380_v30 = vld [vmem:[%s9753_s14] sm:$0xf] }
0x24d8   :  { %v7381_v20 = vor.u32 %v7643_v34, %v7380_v30 }
0x24d9   :  { %v5753_v60 = vmax.f32 %v5744_v48, 0.0 }
0x24da   :  { %v5919_v61 = vand.u32 %v7381_v20, %v8297_v63  ;;  %v5896_v63 = vld [vmem:[%s9774_s22 + $0x8] sm:$0xf] }
0x24db   :  { %v5757_v33 = vpack.c.bf16 %v5753_v60, %v5752_v58  ;;  %v5904_v40 = vunpack.c.l.b16 %v5896_v63  ;;  %v7708_v60 = vld [vmem:[#allocation9] ss:$0 sm:$0xff] }
0x24dc   :  { %5928 = vmatpush.bf16.msrb.mxu2 %v5919_v61 }
0x24dd   :  { %7367 = vmatmul.msk.bf16.gmra.mxu0 %vm450_vm3, %v5757_v33  ;;  %v5906_v1 = vpack.c.b16 %v5904_v40, %v5904_v40 }
0x24df   :  { %7382 = vmatmul.msk.bf16.vlgmr.msrb.gmra.mxu2 %vm764_vm6, %v7642_v46 }
0x24ef   :  { %7383 = vmatmul.msk.bf16.gmra.mxu2 %vm764_vm6, %v5906_v1 }
0x252a   :  { %v5831_v3 = vpop.f32.mrf.mxu0 }
0x252b   :  { %v5832_v26 = vadd.f32 %v7706_v13, %v5831_v3 }
0x2532   :  { %v5833_v2 = vpop.f32.mrf.mxu0 }
0x2533   :  { %v5834_v21 = vadd.f32 %v7706_v13, %v5833_v2 }
0x2535   :  { %v5854_v24 = vpack.c.bf16 %v5834_v21, %v5832_v26 }
0x253a   :  { %v5836_v5 = vpop.f32.mrf.mxu0 }
0x253b   :  { %v5837_v12 = vadd.f32 %v7706_v13, %v5836_v5 }
0x2542   :  { %v5838_v6 = vpop.f32.mrf.mxu0 }
0x2543   :  { %v5839_v4 = vadd.f32 %v7706_v13, %v5838_v6 }
0x2545   :  { %v5855_v23 = vpack.c.bf16 %v5839_v4, %v5837_v12 }
0x254a   :  { %v5841_v36 = vpop.f32.mrf.mxu0 }
0x254b   :  { %v5842_v8 = vadd.f32 %v7706_v13, %v5841_v36 }
0x2552   :  { %v5843_v7 = vpop.f32.mrf.mxu0 }
0x2553   :  { %v5844_v0 = vadd.f32 %v7706_v13, %v5843_v7 }
0x2555   :  { %v5856_v62 = vpack.c.bf16 %v5844_v0, %v5842_v8 }
0x255a   :  { %v5846_v11 = vpop.f32.mrf.mxu0 }
0x255b   :  { %v5847_v50 = vadd.f32 %v7706_v13, %v5846_v11 }
0x2562   :  { %v5848_v59 = vpop.f32.mrf.mxu0  ;;  %v5930_v54 = vpop.f32.mrf.mxu2 }
0x2563   :  { %v5849_v42 = vadd.f32 %v7706_v13, %v5848_v59 }
0x2565   :  { %v5857_v32 = vpack.c.bf16 %v5849_v42, %v5847_v50 }
0x2567   :  { %5876 = vmatpush.bf16.msra.mxu1 %v5857_v32 }
0x256a   :  { %v5932_v57 = vpop.f32.mrf.mxu2 }
0x256b   :  { %5877 = vmatpush.bf16.msra.mxu1 %v5856_v62 }
0x256f   :  { %5878 = vmatpush.bf16.msra.mxu1 %v5855_v23 }
0x2572   :  { %v5935_v48 = vpop.f32.mrf.mxu2 }
0x2573   :  { %5879 = vmatpush.bf16.msra.mxu1 %v5854_v24 }
0x2576   :  { %7372 = vmatmul.msk.bf16.vlgmr.msra.gmra.mxu1 %vm717_vm4, %v7640_v17 }
0x2577   :  { %5999 = vmatpush.bf16.msrb.mxu1 %v5990_v25 }
0x257a   :  { %v5937_v58 = vpop.f32.mrf.mxu2 }
0x2586   :  { %7373 = vmatmul.msk.bf16.gmra.mxu1 %vm717_vm4, %v5865_v28 }
0x2596   :  { %7394 = vmatmul.msk.bf16.vlgmr.msrb.gmra.mxu1 %vm170_vm11, %v9519_v16 }
0x25a6   :  { %7395 = vmatmul.msk.bf16.gmra.mxu1 %vm170_vm11, %v9527_v22 }
0x25f3   :  { %v5881_v37 = vpop.f32.mrf.mxu1 }
0x25fb   :  { %v5883_v29 = vpop.f32.mrf.mxu1 }
0x25fc   :  { %v5890_v16 = vpack.c.bf16 %v5883_v29, %v5881_v37 }
0x25fe   :  { %7388 = vmatmul.msk.bf16.vlgmr.msra.gmra.mxu3 %vm799_vm7, %v5890_v16 }
0x2603   :  { %v5886_v22 = vpop.f32.mrf.mxu1 }
0x2604   :  { %v5891_v41 = vpack.c.bf16 %v5886_v22, %v5886_v22 }
0x260b   :  { %v5888_v43 = vpop.f32.mrf.mxu1 }
0x260e   :  { %7389 = vmatmul.msk.bf16.gmra.mxu3 %vm799_vm7, %v5891_v41 }
0x2613   :  { %v6001_v45 = vpop.f32.mrf.mxu1 }
0x2614   :  { %v6002_v49 = vadd.f32 %v7707_v44, %v6001_v45 }
0x2616   :  { %6073 = vrot.lane.b32.xlu0 %v6002_v49, %s8023_s23 }
0x261b   :  { %v6003_v53 = vpop.f32.mrf.mxu1 }
0x261c   :  { %v6004_v51 = vadd.f32 %v7707_v44, %v6003_v53 }
0x261e   :  { %6075 = vrot.lane.b32.xlu1 %v6004_v51, %s8023_s23 }
0x2623   :  { %v6006_v52 = vpop.f32.mrf.mxu1 }
0x2624   :  { %v6007_v55 = vadd.f32 %v7707_v44, %v6006_v52 }
0x2626   :  { %6077 = vrot.lane.b32.xlu2 %v6007_v55, %s8023_s23 }
0x262b   :  { %v6008_v56 = vpop.f32.mrf.mxu1 }
0x2680   :  { %v6078_v56 = vpop.permute.xlu2 %6077 }
0x2681   :  { %v5962_v33 = vpop.f32.mrf.mxu3 }
0x2682   :  { %v5963_v3 = vadd.f32 %v5962_v33, %v5930_v54 }
0x2684   :  { %v9690_v2 = vadd.f32 %v7708_v60, %v5963_v3 }
0x2686   :  { %v6010_v5 = vadd.f32 %v6002_v49, %v9690_v2 }
0x2688   :  { %v7396_v6 = vmul.f32 -1.442695, %v6010_v5  ;;  %v6074_v20 = vpop.permute.xlu0 %6073 }
0x2689   :  { %v5964_v36 = vpop.f32.mrf.mxu3 }
0x268a   :  { %7818 = vpow2.f32 %v7396_v6  ;;  %v5965_v7 = vadd.f32 %v5964_v36, %v5932_v57 }
0x268c   :  { %v9693_v11 = vadd.f32 %v7708_v60, %v5965_v7 }
0x268e   :  { %v6011_v13 = vadd.f32 %v6004_v51, %v9693_v11 }
0x2690   :  { %v7819_v59 = vpop.eup %7818  ;;  %v7397_v50 = vmul.f32 -1.442695, %v6011_v13  ;;  %v6076_v22 = vpop.permute.xlu1 %6075 }
0x2691   :  { %v6022_v42 = vadd.f32 1.0, %v7819_v59  ;;  %v5967_v0 = vpop.f32.mrf.mxu3 }
0x2692   :  { %7820 = vpow2.f32 %v7397_v50  ;;  %v5968_v32 = vadd.f32 %v5967_v0, %v5935_v48 }
0x2693   :  { %7822 = vrcp.f32 %v6022_v42  ;;  %v6036_v26 = vand.u32 2147483648, %v6022_v42  ;;  %v6034_v25 = vand.u32 2147483647, %v6022_v42  ;;  %vm6030_vm2 = vweird.f32 %v6022_v42 }
0x2694   :  { %v9696_v8 = vadd.f32 %v7708_v60, %v5968_v32 }
0x2695   :  { %v6037_v28 = vor.u32 1.1754944e-38, %v6036_v26  ;;  %vm6035_vm4 = vcmp.eq.f32.partialorder %v6034_v25, 8.507059e+37  ;;  %v7645_v26 = vld [vmem:[%s9757_s18] sm:$0x10] }
0x2696   :  { %v6012_v4 = vadd.f32 %v6007_v55, %v9696_v8 }
0x2698   :  { %v7821_v62 = vpop.eup %7820  ;;  %v7398_v18 = vmul.f32 -1.442695, %v6012_v4 }
0x2699   :  { %v7823_v19 = vpop.eup %7822  ;;  %v6023_v12 = vadd.f32 1.0, %v7821_v62  ;;  %v5969_v21 = vpop.f32.mrf.mxu3 }
0x269a   :  { %v6026_v23 = vmul.f32 %v7823_v19, %v6022_v42  ;;  %7824 = vpow2.f32 %v7398_v18  ;;  %vm6031_vm1 = vweird.f32 %v7823_v19 }
0x269b   :  { %7826 = vrcp.f32 %v6023_v12  ;;  %vm6032_vm3 = vmor %vm6030_vm2, %vm6031_vm1  ;;  %v6051_v31 = vand.u32 2147483648, %v6023_v12  ;;  %v6049_v63 = vand.u32 2147483647, %v6023_v12  ;;  %vm6045_vm5 = vweird.f32 %v6023_v12 }
0x269c   :  { %v6027_v38 = vsub.f32 1.0, %v6026_v23 }
0x269d   :  { %v6052_v37 = vor.u32 1.1754944e-38, %v6051_v31  ;;  %vm6050_vm9 = vcmp.eq.f32.partialorder %v6049_v63, 8.507059e+37 }
0x269e   :  { %v6028_v24 = vmul.f32 %v7823_v19, %v6027_v38  ;;  %v7401_v38 = vld [vmem:[%s9757_s18] sm:$0xf] }
0x26a0   :  { %v7825_v17 = vpop.eup %7824  ;;  %v6029_v27 = vadd.f32 %v7823_v19, %v6028_v24  ;;  %v7402_v24 = vor.u32 %v7645_v26, %v7401_v38 }
0x26a1   :  { %v7827_v15 = vpop.eup %7826  ;;  %v6024_v30 = vadd.f32 1.0, %v7825_v17  ;;  %v7709_v17 = vld [vmem:[#allocation12] ss:$0 sm:$0xff] }
0x26a2   :  { %v6033_v34 = vsel %vm6032_vm3, %v7823_v19, %v6029_v27  ;;  %v6041_v35 = vmul.f32 %v7827_v15, %v6023_v12  ;;  %vm6046_vm7 = vweird.f32 %v7827_v15  ;;  %v6153_v25 = vsel %vm174_vm0, %v7402_v24, 0 }
0x26a3   :  { %v9699_v39 = vsel %vm6035_vm4, %v6037_v28, %v6033_v34  ;;  %7828 = vrcp.f32 %v6024_v30  ;;  %vm6047_vm8 = vmor %vm6045_vm5, %vm6046_vm7  ;;  %v6066_v45 = vand.u32 2147483648, %v6024_v30  ;;  %v6064_v53 = vand.u32 2147483647, %v6024_v30  ;;  %6162 = vmatpush.bf16.msra.mxu2 %v6153_v25 }
0x26a4   :  { %v6082_v47 = vmul.f32 %v6074_v20, %v9699_v39  ;;  %v6042_v61 = vsub.f32 1.0, %v6041_v35  ;;  %vm6060_vm12 = vweird.f32 %v6024_v30  ;;  %v6121_v18 = vmul.f32 %v9699_v39, %v9494_v10 }
0x26a5   :  { %v6067_v52 = vor.u32 1.1754944e-38, %v6066_v45  ;;  %vm6065_vm14 = vcmp.eq.f32.partialorder %v6064_v53, 8.507059e+37 }
0x26a6   :  { %v6043_v46 = vmul.f32 %v7827_v15, %v6042_v61  ;;  %6088 = vrot.lane.b32.xlu0 %v6082_v47, %s8024_s2 }
0x26a8   :  { %v6044_v40 = vadd.f32 %v7827_v15, %v6043_v46 }
0x26a9   :  { %v7829_v1 = vpop.eup %7828 }
0x26aa   :  { %v6048_v29 = vsel %vm6047_vm8, %v7827_v15, %v6044_v40  ;;  %v6056_v16 = vmul.f32 %v7829_v1, %v6024_v30  ;;  %vm6061_vm10 = vweird.f32 %v7829_v1 }
0x26ab   :  { %v6053_v41 = vsel %vm6050_vm9, %v6052_v37, %v6048_v29  ;;  %vm6062_vm13 = vmor %vm6060_vm12, %vm6061_vm10 }
0x26ac   :  { %v6083_v43 = vmul.f32 %v6076_v22, %v6053_v41  ;;  %v6057_v44 = vsub.f32 1.0, %v6056_v16  ;;  %v6122_v19 = vmul.f32 %v6053_v41, %v9492_v9 }
0x26ae   :  { %6090 = vrot.lane.b32.xlu1 %v6083_v43, %s8024_s2  ;;  %v6058_v49 = vmul.f32 %v7829_v1, %v6057_v44 }
0x26b0   :  { %v6059_v51 = vadd.f32 %v7829_v1, %v6058_v49 }
0x26b2   :  { %v6063_v55 = vsel %vm6062_vm13, %v7829_v1, %v6059_v51 }
0x26b3   :  { %v6068_v54 = vsel %vm6065_vm14, %v6067_v52, %v6063_v55 }
0x26b4   :  { %v6084_v57 = vmul.f32 %v6078_v56, %v6068_v54  ;;  %v6105_v13 = vsub.f32 1.0, %v6068_v54  ;;  %v6123_v50 = vmul.f32 %v6068_v54, %v9500_v14 }
0x26b6   :  { %6092 = vrot.lane.b32.xlu2 %v6084_v57, %s8024_s2 }
0x2710   :  { %v6093_v48 = vpop.permute.xlu2 %6092 }
0x2711   :  { %v6099_v58 = vadd.f32 %v6093_v48, %v9696_v8  ;;  %v6103_v8 = vsub.f32 1.0, %v9699_v39 }
0x2713   :  { %7830 = vtanh.f32 %v6099_v58 }
0x2718   :  { %v6089_v60 = vpop.permute.xlu0 %6088 }
0x2719   :  { %v7831_v33 = vpop.eup %7830  ;;  %v6097_v3 = vadd.f32 %v6089_v60, %v9690_v2 }
0x271a   :  { %6113 = vrot.lane.b32.xlu2 %v7831_v33, %s8025_s25 }
0x271b   :  { %7832 = vtanh.f32 %v6097_v3 }
0x2720   :  { %v6091_v5 = vpop.permute.xlu1 %6090 }
0x2721   :  { %v7833_v6 = vpop.eup %7832  ;;  %v6098_v36 = vadd.f32 %v6091_v5, %v9693_v11  ;;  %v6104_v11 = vsub.f32 1.0, %v6053_v41 }
0x2722   :  { %6109 = vrot.lane.b32.xlu0 %v7833_v6, %s8025_s25 }
0x2723   :  { %7834 = vtanh.f32 %v6098_v36 }
0x2729   :  { %v7835_v7 = vpop.eup %7834 }
0x272a   :  { %6111 = vrot.lane.b32.xlu1 %v7835_v7, %s8025_s25 }
0x2774   :  { %v6114_v59 = vpop.permute.xlu2 %6113 }
0x2775   :  { %v6120_v42 = vmul.f32 %v6114_v59, %v6105_v13 }
0x2777   :  { %v6126_v0 = vadd.f32 %v6123_v50, %v6120_v42 }
0x2779   :  { %v6128_v2 = vpack.c.bf16 %v6126_v0, %v6126_v0 }
0x277b   :  { %6139 = vrot.lane.b32.xlu1 %v6128_v2, %s8025_s25 }
0x2794   :  { %v6110_v32 = vpop.permute.xlu0 %6109 }
0x2795   :  { %v6118_v4 = vmul.f32 %v6110_v32, %v6103_v8 }
0x2797   :  { %v6124_v21 = vadd.f32 %v6121_v18, %v6118_v4 }
0x279c   :  { %v6112_v62 = vpop.permute.xlu1 %6111 }
0x279d   :  { %v6119_v12 = vmul.f32 %v6112_v62, %v6104_v11 }
0x279f   :  { %v6125_v23 = vadd.f32 %v6122_v19, %v6119_v12 }
0x27a1   :  { %v6127_v14 = vpack.c.bf16 %v6125_v23, %v6124_v21 }
0x27a3   :  { %6137 = vrot.lane.b32.xlu0 %v6127_v14, %s8025_s25 }
0x27ed   :  { %v6140_v9 = vpop.permute.xlu1 %6139 }
0x2815   :  { %v6138_v10 = vpop.permute.xlu0 %6137 }
0x2816   :  { %7403 = vmatmul.msk.bf16.vlgmr.msra.gmra.mxu2 %vm170_vm11, %v6138_v10 }
0x2826   :  { %7404 = vmatmul.msk.bf16.gmra.mxu2 %vm170_vm11, %v6140_v9 }
0x2899   :  { %v6164_v27 = vpop.f32.mrf.mxu2 }
0x289a   :  { %v6165_v15 = vadd.f32 %v7709_v17, %v6164_v27 }
0x289c   :  { %7405 = vst.msk [vmem:[%s9759_s20 + $0x90] sm:$0xff] %vm764_vm6, %v6165_v15 }
0x28a1   :  { %v6166_v28 = vpop.f32.mrf.mxu2 }
0x28a2   :  { %v6167_v30 = vadd.f32 %v7709_v17, %v6166_v28 }
0x28a4   :  { %7406 = vst.msk [vmem:[%s9759_s20 + $0x98] sm:$0xff] %vm764_vm6, %v6167_v30 }
0x28a9   :  { %v6169_v34 = vpop.f32.mrf.mxu2 }
0x28aa   :  { %v6170_v35 = vadd.f32 %v7709_v17, %v6169_v34 }
0x28ac   :  { %7407 = vst.msk [vmem:[%s9759_s20 + $0xa0] sm:$0xff] %vm764_vm6, %v6170_v35 }
0x28b1   :  { %v6171_v20 = vpop.f32.mrf.mxu2 }
0x28b2   :  { %6181 = vsyncpa [#allocation3], 1 }
0x28b3   :  { %6182 = vsyncpa [#allocation5], 1 }
0x28b4   :  { %6183 = vsyncpa [#allocation8], 1 }
0x28b5   :  { %6184 = vsyncpa [#allocation11], 1 }

</bundles_post_ra>
